<compile_context>
chip_gen: v7x
topology: tpu7x:2x2x1
jax: 0.10.0
libtpu: 0.0.40
codegen_flags: <defaults>
</compile_context>

<pallas_src>
import numpy as np
import jax
import jax.numpy as jnp
from jax.experimental import pallas as pl
from jax.experimental.pallas import tpu as pltpu

# -----------------------------------------------------------------------------
# hyper-parameters matching the PyTorch module defaults
ROT_N = 8                 # rotation group order -> regular repr has 8 channels/field
ROI_SIZE = 7
GAT_HIDDEN = 256
SPATIAL_SCALE = 1.0 / 4.0
SAMPLING_RATIO = 2
NUM_OBJ_CLASSES = 10
NUM_REL_CLASSES = 6
BN_EPS = 1e-5
HEAD_PAD = 128            # lane-dense padded width for the tiny classification heads

# antialiased pooling gaussian (sigma = 0.66, stride 2) used by e2cnn.
_SIGMA = 0.66
_FSIZE = 2 * int(round(3 * _SIGMA)) + 1            # 5-tap blur
_PPAD = (_FSIZE - 1) // 2
_rr = np.arange(_FSIZE, dtype=np.float64) - (_FSIZE - 1) / 2.0
_g1 = np.exp(-_rr ** 2 / (2.0 * _SIGMA ** 2))
_G1 = (_g1 / _g1.sum()).astype(np.float32)

_VMEM = pl.BlockSpec(memory_space=pltpu.MemorySpace.VMEM)


# -----------------------------------------------------------------------------
# static glue: pooling matrix (gaussian taps x stride-2 selection, zero padding)
def _pool_matrix(h, w):
    hout, wout = h // 2, w // 2
    P = np.zeros((hout * wout, h * w), np.float32)
    for ho in range(hout):
        for wo in range(wout):
            row = ho * wout + wo
            for i in range(_FSIZE):
                yy = 2 * ho + i - _PPAD
                if not (0 <= yy < h):
                    continue
                for j in range(_FSIZE):
                    xx = 2 * wo + j - _PPAD
                    if 0 <= xx < w:
                        P[row, yy * w + xx] += _G1[i] * _G1[j]
    return jnp.asarray(P)


# glue: im2col in bf16 (K rounded up to a multiple of 8 for sublane alignment)
def _im2col(x, k, pad):
    b, hh, ww, c = x.shape
    if pad > 0:
        x = jnp.pad(x, ((0, 0), (pad, pad), (pad, pad), (0, 0)))
    cols = [x[:, i:i + hh, j:j + ww, :] for i in range(k) for j in range(k)]
    patches = jnp.stack(cols, axis=3).reshape(b, hh * ww, k * k * c)
    kpad = (-(k * k * c)) % 8
    if kpad:
        patches = jnp.pad(patches, ((0, 0), (0, 0), (0, kpad)))
    return patches.astype(jnp.bfloat16)


# -----------------------------------------------------------------------------
# Pallas kernel 1: fused conv(+folded BN+ReLU) + antialiased pool as two matmuls.
#   acc    = relu(patches_b @ W + shift)       bf16 x bf16 -> f32 accum (MXU)
#   pooled = P @ acc                           f32 x f32 (MXU), bf16 writeback
def _conv_pool(patches, w, shift, pool_mat):
    b, hw, kc = patches.shape
    c_out = w.shape[1]
    howo = pool_mat.shape[0]

    def kernel(patches_ref, w_ref, bias_ref, p_ref, o_ref):
        acc = jnp.dot(patches_ref[...], w_ref[...], preferred_element_type=jnp.float32)
        acc = jnp.maximum(acc + bias_ref[...], 0.0)
        pooled = jnp.dot(p_ref[...], acc, preferred_element_type=jnp.float32)
        o_ref[...] = pooled.astype(o_ref.dtype)

    # TODO(synk): for real image sizes, add an H-row grid axis (halo via index_map)
    # and a K grid axis + VMEM accumulator, re-derived against v7x's 64 MiB VMEM.
    return pl.pallas_call(
        kernel,
        out_shape=jax.ShapeDtypeStruct((b, howo, c_out), jnp.bfloat16),
        grid=(b,),
        in_specs=[
            pl.BlockSpec((None, hw, kc), lambda i: (i, 0, 0)),
            pl.BlockSpec((kc, c_out), lambda i: (0, 0)),
            pl.BlockSpec((1, c_out), lambda i: (0, 0)),
            pl.BlockSpec((howo, hw), lambda i: (0, 0)),
        ],
        out_specs=pl.BlockSpec((None, howo, c_out), lambda i: (i, 0, 0)),
        compiler_params=pltpu.CompilerParams(dimension_semantics=("parallel",)),
    )(patches, w, shift.reshape(1, -1), pool_mat)


# -----------------------------------------------------------------------------
# Pallas kernel 2: fused 1x1 conv3 (+folded BN + ReLU) and RoIAlign sampling matmul.
# The bilinear sampling matmul is kept in f32 (correctness fix).
def _conv3_roi_kernel(x_ref, w3_ref, b3_ref, wroi_ref, o_ref):
    f = jnp.dot(x_ref[...], w3_ref[...], preferred_element_type=jnp.float32) + b3_ref[...]
    f = jnp.maximum(f, 0.0)                                                 # (B*hf*wf, 64)
    roi = jnp.dot(wroi_ref[...], f, preferred_element_type=jnp.float32)     # f32 RoIAlign
    o_ref[...] = roi.astype(o_ref.dtype)                                    # bf16 writeback


# RoIAlign (aligned=True) as a precomputed bilinear sampling matrix (XLA glue).
# TODO(synk): for large scenes replace this dense (R*49, B*hf*wf) matrix with
# scalar-prefetched boxes + in-kernel 4-tap gathers (it is >99% zeros at scale).
def _roi_sampling_matrix(boxes, batch_idx, num_images, hf, wf):
    r = boxes.shape[0]
    x1 = boxes[:, 0] * SPATIAL_SCALE - 0.5
    y1 = boxes[:, 1] * SPATIAL_SCALE - 0.5
    x2 = boxes[:, 2] * SPATIAL_SCALE - 0.5
    y2 = boxes[:, 3] * SPATIAL_SCALE - 0.5
    bin_h = (y2 - y1) / ROI_SIZE
    bin_w = (x2 - x1) / ROI_SIZE
    p = jnp.arange(ROI_SIZE, dtype=jnp.float32)
    s = (jnp.arange(SAMPLING_RATIO, dtype=jnp.float32) + 0.5) / SAMPLING_RATIO
    ys = y1[:, None, None] + (p[None, :, None] + s[None, None, :]) * bin_h[:, None, None]
    xs = x1[:, None, None] + (p[None, :, None] + s[None, None, :]) * bin_w[:, None, None]

    def axis_weights(coords, size):
        valid = ((coords >= -1.0) & (coords <= float(size))).astype(jnp.float32)
        c = jnp.clip(coords, 0.0, float(size) - 1.0)
        grid = jnp.arange(size, dtype=jnp.float32)
        w = jnp.maximum(0.0, 1.0 - jnp.abs(c[..., None] - grid))
        return (w * valid[..., None]).sum(axis=2)             # (R, ROI_SIZE, size)

    wy = axis_weights(ys, hf)
    wx = axis_weights(xs, wf)
    count = float(SAMPLING_RATIO * SAMPLING_RATIO)
    w_sp = wy[:, :, None, :, None] * wx[:, None, :, None, :] / count   # (R,7,7,hf,wf)
    onehot = (batch_idx[:, None] == jnp.arange(num_images)[None, :]).astype(jnp.float32)
    w_full = onehot[:, None, None, :, None, None] * w_sp[:, :, :, None, :, :]
    return w_full.reshape(r * ROI_SIZE * ROI_SIZE, num_images * hf * wf)


# -----------------------------------------------------------------------------
# Pallas kernel 3: fused box MLP (2 linears + ReLU) and GAT layer-1.
# The 4-head projection is one lane-dense 256->1024 matmul; the heads then run
# on 128-aligned lane slices of x_all inside the same kernel.
def _mlp_gat1_kernel(x_ref, w1_ref, b1_ref, w2_ref, b2_ref,
                     lw_ref, asrc_ref, adst_ref, gb_ref, adj_ref, o_ref):
    h = jnp.dot(x_ref[...], w1_ref[...], preferred_element_type=jnp.float32) + b1_ref[...]
    h = jnp.maximum(h, 0.0)
    h = jnp.dot(h.astype(jnp.bfloat16), w2_ref[...],
                preferred_element_type=jnp.float32) + b2_ref[...]
    h = jnp.maximum(h, 0.0)                                                 # (R, 256)

    x_all = jnp.dot(h.astype(jnp.bfloat16), lw_ref[...],
                    preferred_element_type=jnp.float32)                     # (R, 1024)
    mask = adj_ref[...] > 0.5
    heads = o_ref.shape[1] // GAT_HIDDEN
    for hh in range(heads):
        lo = hh * GAT_HIDDEN
        x = x_all[:, lo:lo + GAT_HIDDEN]                                    # (R, 256)
        a_dst = jnp.sum(x * adst_ref[:, lo:lo + GAT_HIDDEN], axis=-1, keepdims=True)
        a_src = jax.lax.dot_general(asrc_ref[:, lo:lo + GAT_HIDDEN], x,
                                    (((1,), (1,)), ((), ())),
                                    preferred_element_type=jnp.float32)     # (1, R)
        logits = a_dst + a_src                             # [i, j] = dst_i + src_j
        logits = jnp.where(logits >= 0.0, logits, 0.2 * logits)    # leaky_relu(0.2)
        logits = jnp.where(mask, logits, -1e30)
        m = jnp.max(logits, axis=-1, keepdims=True)
        e = jnp.where(mask, jnp.exp(logits - m), 0.0)
        att = e / jnp.sum(e, axis=-1, keepdims=True)       # softmax over sources
        # TODO(synk): GATConv attention dropout (p=0.2) is a no-op in eval mode.
        o_ref[:, lo:lo + GAT_HIDDEN] = (
            jnp.dot(att, x, preferred_element_type=jnp.float32)
            + gb_ref[:, lo:lo + GAT_HIDDEN])


# -----------------------------------------------------------------------------
# Pallas kernel 4: fused GAT layer-2 + obj head + edge features + rel head.
# Edge feature gather/concat is expressed as one-hot matmuls:
#   rel = gsub @ (h2 @ Wrel_subj) + gobj @ (h2 @ Wrel_obj) + b
def _gat2_heads_kernel(h_ref, lw_ref, asrc_ref, adst_ref, gb_ref, adj_ref,
                       ow_ref, ob_ref, rws_ref, rwo_ref, rb_ref,
                       gs_ref, go_ref, obj_ref, rel_ref):
    x = jnp.dot(h_ref[...].astype(jnp.bfloat16), lw_ref[...],
                preferred_element_type=jnp.float32)                         # (R, 256)
    a_dst = jnp.sum(x * adst_ref[...], axis=-1, keepdims=True)
    a_src = jax.lax.dot_general(asrc_ref[...], x, (((1,), (1,)), ((), ())),
                                preferred_element_type=jnp.float32)
    logits = a_dst + a_src
    logits = jnp.where(logits >= 0.0, logits, 0.2 * logits)
    mask = adj_ref[...] > 0.5
    logits = jnp.where(mask, logits, -1e30)
    m = jnp.max(logits, axis=-1, keepdims=True)
    e = jnp.where(mask, jnp.exp(logits - m), 0.0)
    att = e / jnp.sum(e, axis=-1, keepdims=True)
    h2 = jnp.dot(att, x, preferred_element_type=jnp.float32) + gb_ref[...]  # (R, 256)

    h2b = h2.astype(jnp.bfloat16)
    obj_ref[...] = jnp.dot(h2b, ow_ref[...],
                           preferred_element_type=jnp.float32) + ob_ref[...]
    rel_s = jnp.dot(h2b, rws_ref[...], preferred_element_type=jnp.float32)  # (R, 128)
    rel_o = jnp.dot(h2b, rwo_ref[...], preferred_element_type=jnp.float32)  # (R, 128)
    rel_ref[...] = (jnp.dot(gs_ref[...], rel_s, preferred_element_type=jnp.float32)
                    + jnp.dot(go_ref[...], rel_o, preferred_element_type=jnp.float32)
                    + rb_ref[...])


# -----------------------------------------------------------------------------
# parameters (deterministic synthetic init; shapes follow the module __init__).
# eval-BatchNorm scale is folded into the conv weights offline; weights are bf16.
def init_params(key):
    ks = iter(jax.random.split(key, 48))

    def dense(shape, fan_in):
        return (jax.random.normal(next(ks), shape, jnp.float32) / np.sqrt(fan_in)).astype(jnp.float32)

    def bn(num_fields):
        return {
            "gamma": 1.0 + 0.1 * jax.random.normal(next(ks), (num_fields,), jnp.float32),
            "beta": 0.1 * jax.random.normal(next(ks), (num_fields,), jnp.float32),
            "rm": 0.1 * jax.random.normal(next(ks), (num_fields,), jnp.float32),
            "rv": 1.0 + 0.1 * jnp.abs(jax.random.normal(next(ks), (num_fields,), jnp.float32)),
        }

    def fold_bn(w, bn_p, group):
        # InnerBatchNorm (eval): per-field running stats broadcast over the group dim.
        # NOTE: assumes field-major channel ordering, matching the synthesized weights.
        scale_f = bn_p["gamma"] / jnp.sqrt(bn_p["rv"] + BN_EPS)
        shift_f = bn_p["beta"] - bn_p["rm"] * scale_f
        scale = jnp.repeat(scale_f, group)
        shift = jnp.repeat(shift_f, group)
        return (w * scale[None, :]).astype(jnp.bfloat16), shift.astype(jnp.float32)

    p = {}
    # TODO(synk): e2cnn R2Conv expands an equivariance-constrained basis into the
    # filter; here the expanded filter is synthesized directly (same conv semantics).
    w1 = dense((3 * 3 * 3, 16 * ROT_N), 27)                    # 3 -> 128, k=3
    w1, p["conv1_shift"] = fold_bn(w1, bn(16), ROT_N)
    p["conv1_w"] = jnp.pad(w1, ((0, (-27) % 8), (0, 0)))       # K 27 -> 32 (sublane aligned)

    w2 = dense((3 * 3 * 16 * ROT_N, 32 * ROT_N), 3 * 3 * 128)  # 128 -> 256, k=3
    p["conv2_w"], p["conv2_shift"] = fold_bn(w2, bn(32), ROT_N)

    w3 = dense((1 * 1 * 32 * ROT_N, 64), 256)                  # 256 -> 64, k=1
    p["conv3_w"], p["conv3_shift"] = fold_bn(w3, bn(64), 1)

    feat_dim = 64 * ROI_SIZE * ROI_SIZE
    w = dense((feat_dim, GAT_HIDDEN), feat_dim)                # rows in PyTorch (c,py,px) order
    # absorb the RoI (R,7,7,64)->(R,64,7,7) NCHW-flatten permutation into the rows
    perm = np.arange(feat_dim).reshape(64, ROI_SIZE, ROI_SIZE).transpose(1, 2, 0).reshape(-1)
    p["mlp_w1"] = w[perm].astype(jnp.bfloat16)
    p["mlp_b1"] = 0.01 * jax.random.normal(next(ks), (GAT_HIDDEN,), jnp.float32)
    p["mlp_w2"] = dense((GAT_HIDDEN, GAT_HIDDEN), GAT_HIDDEN).astype(jnp.bfloat16)
    p["mlp_b2"] = 0.01 * jax.random.normal(next(ks), (GAT_HIDDEN,), jnp.float32)

    p["gat1"] = {
        "lin_w": dense((GAT_HIDDEN, 4 * GAT_HIDDEN), GAT_HIDDEN).astype(jnp.bfloat16),
        "att_src": dense((4, GAT_HIDDEN), GAT_HIDDEN),
        "att_dst": dense((4, GAT_HIDDEN), GAT_HIDDEN),
        "bias": 0.01 * jax.random.normal(next(ks), (4 * GAT_HIDDEN,), jnp.float32),
    }
    p["gat2"] = {
        "lin_w": dense((4 * GAT_HIDDEN, GAT_HIDDEN), 4 * GAT_HIDDEN).astype(jnp.bfloat16),
        "att_src": dense((1, GAT_HIDDEN), GAT_HIDDEN),
        "att_dst": dense((1, GAT_HIDDEN), GAT_HIDDEN),
        "bias": 0.01 * jax.random.normal(next(ks), (GAT_HIDDEN,), jnp.float32),
    }
    # classification heads, lane-padded to 128 output columns (zeros, sliced off later)
    ow = dense((GAT_HIDDEN, NUM_OBJ_CLASSES), GAT_HIDDEN)
    p["obj_w"] = jnp.pad(ow, ((0, 0), (0, HEAD_PAD - NUM_OBJ_CLASSES))).astype(jnp.bfloat16)
    ob = 0.01 * jax.random.normal(next(ks), (NUM_OBJ_CLASSES,), jnp.float32)
    p["obj_b"] = jnp.pad(ob, (0, HEAD_PAD - NUM_OBJ_CLASSES))
    rw = dense((2 * GAT_HIDDEN, NUM_REL_CLASSES), 2 * GAT_HIDDEN)
    rw = jnp.pad(rw, ((0, 0), (0, HEAD_PAD - NUM_REL_CLASSES)))
    p["rel_w_s"] = rw[:GAT_HIDDEN].astype(jnp.bfloat16)        # applied to h[subj]
    p["rel_w_o"] = rw[GAT_HIDDEN:].astype(jnp.bfloat16)        # applied to h[obj]
    rb = 0.01 * jax.random.normal(next(ks), (NUM_REL_CLASSES,), jnp.float32)
    p["rel_b"] = jnp.pad(rb, (0, HEAD_PAD - NUM_REL_CLASSES))
    return p


# -----------------------------------------------------------------------------
# full forward pass
def forward(params, images_nchw, boxes, batch_idx, edge_index):
    b, _, hi, wi = images_nchw.shape
    x = jnp.transpose(images_nchw, (0, 2, 3, 1)).astype(jnp.float32)     # NCHW -> NHWC (once)

    # stage 1/2: conv(+folded BN+ReLU) fused with the antialiased-pool matmul
    y1 = _conv_pool(_im2col(x, 3, 1), params["conv1_w"], params["conv1_shift"],
                    _pool_matrix(hi, wi))                                # (B, H/2*W/2, 128) bf16
    h2, w2 = hi // 2, wi // 2
    x1 = y1.reshape(b, h2, w2, 16 * ROT_N)
    y2 = _conv_pool(_im2col(x1, 3, 1), params["conv2_w"], params["conv2_shift"],
                    _pool_matrix(h2, w2))                                # (B, hf*wf, 256) bf16
    hf, wf = h2 // 2, w2 // 2
    xf = y2.reshape(b * hf * wf, 32 * ROT_N)                             # (B*hf*wf, 256) bf16

    # stage 3: fused 1x1 conv3(+BN+ReLU) and RoIAlign sampling matmul (f32)
    r = boxes.shape[0]
    w_roi = _roi_sampling_matrix(boxes, batch_idx, b, hf, wf)            # (R*49, B*hf*wf) f32
    roi = pl.pallas_call(
        _conv3_roi_kernel,
        out_shape=jax.ShapeDtypeStruct((r * ROI_SIZE * ROI_SIZE, 64), jnp.bfloat16),
        in_specs=[_VMEM] * 4,
        out_specs=_VMEM,
    )(xf, params["conv3_w"], params["conv3_shift"].reshape(1, -1), w_roi)
    roi_flat = roi.reshape(r, ROI_SIZE * ROI_SIZE * 64)                  # NCHW perm lives in mlp_w1

    # dense adjacency (edge j->i plus self loops, as PyG GATConv does)
    # NOTE: duplicate edges collapse to one attention weight (binary mask).
    subj, objn = edge_index[0], edge_index[1]
    adj = jnp.zeros((r, r), jnp.float32).at[objn, subj].set(1.0)
    adj = jnp.maximum(adj, jnp.eye(r, dtype=jnp.float32))

    # stage 4: fused box MLP + GAT layer-1 (4 heads unrolled, lane-dense projection)
    g1 = params["gat1"]
    h1 = pl.pallas_call(
        _mlp_gat1_kernel,
        out_shape=jax.ShapeDtypeStruct((r, 4 * GAT_HIDDEN), jnp.float32),
        in_specs=[_VMEM] * 10,
        out_specs=_VMEM,
    )(roi_flat, params["mlp_w1"], params["mlp_b1"].reshape(1, -1),
      params["mlp_w2"], params["mlp_b2"].reshape(1, -1),
      g1["lin_w"], g1["att_src"].reshape(1, -1), g1["att_dst"].reshape(1, -1),
      g1["bias"].reshape(1, -1), adj)

    # stage 5: fused GAT layer-2 + classification heads (edge gather as one-hot matmuls)
    e = edge_index.shape[1]
    e_pad = ((e + 7) // 8) * 8
    gsub = jnp.zeros((e_pad, r), jnp.float32).at[jnp.arange(e), subj].set(1.0)
    gobj = jnp.zeros((e_pad, r), jnp.float32).at[jnp.arange(e), objn].set(1.0)
    g2 = params["gat2"]
    obj_pad, rel_pad = pl.pallas_call(
        _gat2_heads_kernel,
        out_shape=(jax.ShapeDtypeStruct((r, HEAD_PAD), jnp.float32),
                   jax.ShapeDtypeStruct((e_pad, HEAD_PAD), jnp.float32)),
        in_specs=[_VMEM] * 13,
        out_specs=(_VMEM, _VMEM),
    )(h1, g2["lin_w"], g2["att_src"].reshape(1, -1), g2["att_dst"].reshape(1, -1),
      g2["bias"].reshape(1, -1), adj,
      params["obj_w"], params["obj_b"].reshape(1, -1),
      params["rel_w_s"], params["rel_w_o"], params["rel_b"].reshape(1, -1),
      gsub, gobj)

    obj_logits = obj_pad[:, :NUM_OBJ_CLASSES]
    rel_logits = rel_pad[:e, :NUM_REL_CLASSES]
    return obj_logits, rel_logits


# -----------------------------------------------------------------------------
if __name__ == "__main__":
    key = jax.random.PRNGKey(0)
    pkey, ikey = jax.random.split(key)
    params = init_params(pkey)

    # images: B=2, 3 channels, 16x16 (NCHW, like the PyTorch module input)
    images = jax.random.normal(ikey, (2, 3, 16, 16), jnp.float32)
    # boxes: 4 boxes per image (absolute coords), flattened with per-box batch index
    boxes = jnp.array(
        [[1.0, 1.0, 9.0, 9.0], [4.0, 2.0, 14.0, 12.0],
         [0.0, 5.0, 7.0, 15.0], [8.0, 8.0, 15.5, 15.5],
         [2.0, 3.0, 10.0, 11.0], [5.0, 5.0, 12.0, 12.0],
         [0.5, 0.5, 6.0, 6.0], [9.0, 1.0, 15.0, 8.0]], jnp.float32)
    batch_idx = jnp.array([0, 0, 0, 0, 1, 1, 1, 1], jnp.int32)
    # edge_index: [2, E] global subj -> obj indices (edges stay within each image)
    edge_index = jnp.array(
        [[0, 1, 2, 3, 0, 4, 5, 6, 7, 4],
         [1, 2, 3, 0, 2, 5, 6, 7, 4, 6]], jnp.int32)

    fwd = jax.jit(forward)
    obj_logits, rel_logits = fwd(params, images, boxes, batch_idx, edge_index)
    jax.block_until_ready((obj_logits, rel_logits))

    assert obj_logits.shape == (8, NUM_OBJ_CLASSES)
    assert rel_logits.shape == (10, NUM_REL_CLASSES)
    assert bool(jnp.all(jnp.isfinite(obj_logits))) and bool(jnp.all(jnp.isfinite(rel_logits)))
    print("KERNEL_OK")
</pallas_src>

<mosaic_0001>
module attributes {stable_mosaic.version = 11 : i64} {
  func.func @kernel(%arg0: i32, %arg1: memref<1x256x32xbf16, #tpu.memory_space<vmem>>, %arg2: memref<32x128xbf16, #tpu.memory_space<vmem>>, %arg3: memref<1x128xf32, #tpu.memory_space<vmem>>, %arg4: memref<64x256xf32, #tpu.memory_space<vmem>>, %arg5: memref<1x64x128xbf16, #tpu.memory_space<vmem>>) attributes {dimension_semantics = [#tpu.dimension_semantics<parallel>], iteration_bounds = array<i64: 2>, scalar_prefetch = 0 : i64, scratch_operands = 0 : i64, tpu.core_type = #tpu.core_type<tc>, window_params = [{transform_indices = @transform_0, window_bounds = array<i64: 1, 256, 32>}, {pipeline_mode = #tpu.pipeline_mode<synchronous>, transform_indices = @transform_1, window_bounds = array<i64: 32, 128>}, {pipeline_mode = #tpu.pipeline_mode<synchronous>, transform_indices = @transform_2, window_bounds = array<i64: 1, 128>}, {pipeline_mode = #tpu.pipeline_mode<synchronous>, transform_indices = @transform_3, window_bounds = array<i64: 64, 256>}, {transform_indices = @transform_4, window_bounds = array<i64: 1, 64, 128>}]} {
    %c0 = arith.constant 0 : index
    %c0_0 = arith.constant 0 : index
    %c0_1 = arith.constant 0 : index
    %0 = vector.load %arg1[%c0, %c0_0, %c0_1] : memref<1x256x32xbf16, #tpu.memory_space<vmem>>, vector<1x256x32xbf16>
    %1 = vector.shape_cast %0 : vector<1x256x32xbf16> to vector<256x32xbf16>
    %c0_2 = arith.constant 0 : index
    %c0_3 = arith.constant 0 : index
    %2 = vector.load %arg2[%c0_2, %c0_3] : memref<32x128xbf16, #tpu.memory_space<vmem>>, vector<32x128xbf16>
    %cst = arith.constant dense<0.000000e+00> : vector<256x128xf32>
    %3 = tpu.matmul %1, %2, %cst {dimension_numbers = #tpu.dot_dimension_numbers<[1], [0], [0], [1], [0, 0, 1, 1], [], []>} : vector<256x32xbf16>, vector<32x128xbf16>, vector<256x128xf32> -> vector<256x128xf32>
    %c0_4 = arith.constant 0 : index
    %c0_5 = arith.constant 0 : index
    %4 = vector.load %arg3[%c0_4, %c0_5] : memref<1x128xf32, #tpu.memory_space<vmem>>, vector<1x128xf32>
    %5 = vector.broadcast %4 : vector<1x128xf32> to vector<256x128xf32>
    %6 = arith.addf %3, %5 : vector<256x128xf32>
    %cst_6 = arith.constant 0.000000e+00 : f32
    %7 = vector.broadcast %cst_6 : f32 to vector<256x128xf32>
    %8 = arith.maximumf %6, %7 : vector<256x128xf32>
    %c0_7 = arith.constant 0 : index
    %c0_8 = arith.constant 0 : index
    %9 = vector.load %arg4[%c0_7, %c0_8] : memref<64x256xf32, #tpu.memory_space<vmem>>, vector<64x256xf32>
    %cst_9 = arith.constant dense<0.000000e+00> : vector<64x128xf32>
    %10 = tpu.matmul %9, %8, %cst_9 {dimension_numbers = #tpu.dot_dimension_numbers<[1], [0], [0], [1], [0, 0, 1, 1], [], []>} : vector<64x256xf32>, vector<256x128xf32>, vector<64x128xf32> -> vector<64x128xf32>
    %11 = arith.truncf %10 : vector<64x128xf32> to vector<64x128xbf16>
    %c0_10 = arith.constant 0 : index
    %c0_11 = arith.constant 0 : index
    %c0_12 = arith.constant 0 : index
    %12 = vector.load %arg5[%c0_10, %c0_11, %c0_12] : memref<1x64x128xbf16, #tpu.memory_space<vmem>>, vector<1x64x128xbf16>
    %13 = vector.shape_cast %12 : vector<1x64x128xbf16> to vector<64x128xbf16>
    %14 = vector.shape_cast %11 : vector<64x128xbf16> to vector<1x64x128xbf16>
    tpu.vector_store %arg5[%c0_10, %c0_11, %c0_12], %14 {strides = array<i32>} : memref<1x64x128xbf16, #tpu.memory_space<vmem>>, vector<1x64x128xbf16>,
    return
  }
  func.func @transform_0(%arg0: i32) -> (i32, i32, i32) {
    %c0_i32 = arith.constant 0 : i32
    %c0_i32_0 = arith.constant 0 : i32
    %c0_i32_1 = arith.constant 0 : i32
    return %arg0, %c0_i32, %c0_i32_0 : i32, i32, i32
  }
  func.func @transform_1(%arg0: i32) -> (i32, i32) {
    %c0_i32 = arith.constant 0 : i32
    %c0_i32_0 = arith.constant 0 : i32
    %c0_i32_1 = arith.constant 0 : i32
    return %c0_i32, %c0_i32_0 : i32, i32
  }
  func.func @transform_2(%arg0: i32) -> (i32, i32) {
    %c0_i32 = arith.constant 0 : i32
    %c0_i32_0 = arith.constant 0 : i32
    %c0_i32_1 = arith.constant 0 : i32
    return %c0_i32, %c0_i32_0 : i32, i32
  }
  func.func @transform_3(%arg0: i32) -> (i32, i32) {
    %c0_i32 = arith.constant 0 : i32
    %c0_i32_0 = arith.constant 0 : i32
    %c0_i32_1 = arith.constant 0 : i32
    return %c0_i32, %c0_i32_0 : i32, i32
  }
  func.func @transform_4(%arg0: i32) -> (i32, i32, i32) {
    %c0_i32 = arith.constant 0 : i32
    %c0_i32_0 = arith.constant 0 : i32
    %c0_i32_1 = arith.constant 0 : i32
    return %arg0, %c0_i32, %c0_i32_0 : i32, i32, i32
  }
}

module attributes {stable_mosaic.version = 11 : i64} {
  func.func @kernel(%arg0: i32, %arg1: memref<1x64x1152xbf16, #tpu.memory_space<vmem>>, %arg2: memref<1152x256xbf16, #tpu.memory_space<vmem>>, %arg3: memref<1x256xf32, #tpu.memory_space<vmem>>, %arg4: memref<16x64xf32, #tpu.memory_space<vmem>>, %arg5: memref<1x16x256xbf16, #tpu.memory_space<vmem>>) attributes {dimension_semantics = [#tpu.dimension_semantics<parallel>], iteration_bounds = array<i64: 2>, scalar_prefetch = 0 : i64, scratch_operands = 0 : i64, tpu.core_type = #tpu.core_type<tc>, window_params = [{transform_indices = @transform_0, window_bounds = array<i64: 1, 64, 1152>}, {pipeline_mode = #tpu.pipeline_mode<synchronous>, transform_indices = @transform_1, window_bounds = array<i64: 1152, 256>}, {pipeline_mode = #tpu.pipeline_mode<synchronous>, transform_indices = @transform_2, window_bounds = array<i64: 1, 256>}, {pipeline_mode = #tpu.pipeline_mode<synchronous>, transform_indices = @transform_3, window_bounds = array<i64: 16, 64>}, {transform_indices = @transform_4, window_bounds = array<i64: 1, 16, 256>}]} {
    %c0 = arith.constant 0 : index
    %c0_0 = arith.constant 0 : index
    %c0_1 = arith.constant 0 : index
    %0 = vector.load %arg1[%c0, %c0_0, %c0_1] : memref<1x64x1152xbf16, #tpu.memory_space<vmem>>, vector<1x64x1152xbf16>
    %1 = vector.shape_cast %0 : vector<1x64x1152xbf16> to vector<64x1152xbf16>
    %c0_2 = arith.constant 0 : index
    %c0_3 = arith.constant 0 : index
    %2 = vector.load %arg2[%c0_2, %c0_3] : memref<1152x256xbf16, #tpu.memory_space<vmem>>, vector<1152x256xbf16>
    %cst = arith.constant dense<0.000000e+00> : vector<64x256xf32>
    %3 = tpu.matmul %1, %2, %cst {dimension_numbers = #tpu.dot_dimension_numbers<[1], [0], [0], [1], [0, 0, 1, 1], [], []>} : vector<64x1152xbf16>, vector<1152x256xbf16>, vector<64x256xf32> -> vector<64x256xf32>
    %c0_4 = arith.constant 0 : index
    %c0_5 = arith.constant 0 : index
    %4 = vector.load %arg3[%c0_4, %c0_5] : memref<1x256xf32, #tpu.memory_space<vmem>>, vector<1x256xf32>
    %5 = vector.broadcast %4 : vector<1x256xf32> to vector<64x256xf32>
    %6 = arith.addf %3, %5 : vector<64x256xf32>
    %cst_6 = arith.constant 0.000000e+00 : f32
    %7 = vector.broadcast %cst_6 : f32 to vector<64x256xf32>
    %8 = arith.maximumf %6, %7 : vector<64x256xf32>
    %c0_7 = arith.constant 0 : index
    %c0_8 = arith.constant 0 : index
    %9 = vector.load %arg4[%c0_7, %c0_8] : memref<16x64xf32, #tpu.memory_space<vmem>>, vector<16x64xf32>
    %cst_9 = arith.constant dense<0.000000e+00> : vector<16x256xf32>
    %10 = tpu.matmul %9, %8, %cst_9 {dimension_numbers = #tpu.dot_dimension_numbers<[1], [0], [0], [1], [0, 0, 1, 1], [], []>} : vector<16x64xf32>, vector<64x256xf32>, vector<16x256xf32> -> vector<16x256xf32>
    %11 = arith.truncf %10 : vector<16x256xf32> to vector<16x256xbf16>
    %c0_10 = arith.constant 0 : index
    %c0_11 = arith.constant 0 : index
    %c0_12 = arith.constant 0 : index
    %12 = vector.load %arg5[%c0_10, %c0_11, %c0_12] : memref<1x16x256xbf16, #tpu.memory_space<vmem>>, vector<1x16x256xbf16>
    %13 = vector.shape_cast %12 : vector<1x16x256xbf16> to vector<16x256xbf16>
    %14 = vector.shape_cast %11 : vector<16x256xbf16> to vector<1x16x256xbf16>
    tpu.vector_store %arg5[%c0_10, %c0_11, %c0_12], %14 {strides = array<i32>} : memref<1x16x256xbf16, #tpu.memory_space<vmem>>, vector<1x16x256xbf16>,
    return
  }
  func.func @transform_0(%arg0: i32) -> (i32, i32, i32) {
    %c0_i32 = arith.constant 0 : i32
    %c0_i32_0 = arith.constant 0 : i32
    %c0_i32_1 = arith.constant 0 : i32
    return %arg0, %c0_i32, %c0_i32_0 : i32, i32, i32
  }
  func.func @transform_1(%arg0: i32) -> (i32, i32) {
    %c0_i32 = arith.constant 0 : i32
    %c0_i32_0 = arith.constant 0 : i32
    %c0_i32_1 = arith.constant 0 : i32
    return %c0_i32, %c0_i32_0 : i32, i32
  }
  func.func @transform_2(%arg0: i32) -> (i32, i32) {
    %c0_i32 = arith.constant 0 : i32
    %c0_i32_0 = arith.constant 0 : i32
    %c0_i32_1 = arith.constant 0 : i32
    return %c0_i32, %c0_i32_0 : i32, i32
  }
  func.func @transform_3(%arg0: i32) -> (i32, i32) {
    %c0_i32 = arith.constant 0 : i32
    %c0_i32_0 = arith.constant 0 : i32
    %c0_i32_1 = arith.constant 0 : i32
    return %c0_i32, %c0_i32_0 : i32, i32
  }
  func.func @transform_4(%arg0: i32) -> (i32, i32, i32) {
    %c0_i32 = arith.constant 0 : i32
    %c0_i32_0 = arith.constant 0 : i32
    %c0_i32_1 = arith.constant 0 : i32
    return %arg0, %c0_i32, %c0_i32_0 : i32, i32, i32
  }
}

module attributes {stable_mosaic.version = 11 : i64} {
  func.func @_conv3_roi_kernel(%arg0: memref<32x256xbf16, #tpu.memory_space<vmem>>, %arg1: memref<256x64xbf16, #tpu.memory_space<vmem>>, %arg2: memref<1x64xf32, #tpu.memory_space<vmem>>, %arg3: memref<392x32xf32, #tpu.memory_space<vmem>>, %arg4: memref<392x64xbf16, #tpu.memory_space<vmem>>) attributes {dimension_semantics = [], scalar_prefetch = 0 : i64, scratch_operands = 0 : i64, tpu.core_type = #tpu.core_type<tc>} {
    %c0 = arith.constant 0 : index
    %c0_0 = arith.constant 0 : index
    %0 = vector.load %arg0[%c0, %c0_0] : memref<32x256xbf16, #tpu.memory_space<vmem>>, vector<32x256xbf16>
    %c0_1 = arith.constant 0 : index
    %c0_2 = arith.constant 0 : index
    %1 = vector.load %arg1[%c0_1, %c0_2] : memref<256x64xbf16, #tpu.memory_space<vmem>>, vector<256x64xbf16>
    %cst = arith.constant dense<0.000000e+00> : vector<32x64xf32>
    %2 = tpu.matmul %0, %1, %cst {dimension_numbers = #tpu.dot_dimension_numbers<[1], [0], [0], [1], [0, 0, 1, 1], [], []>} : vector<32x256xbf16>, vector<256x64xbf16>, vector<32x64xf32> -> vector<32x64xf32>
    %c0_3 = arith.constant 0 : index
    %c0_4 = arith.constant 0 : index
    %3 = vector.load %arg2[%c0_3, %c0_4] : memref<1x64xf32, #tpu.memory_space<vmem>>, vector<1x64xf32>
    %4 = vector.broadcast %3 : vector<1x64xf32> to vector<32x64xf32>
    %5 = arith.addf %2, %4 : vector<32x64xf32>
    %cst_5 = arith.constant 0.000000e+00 : f32
    %6 = vector.broadcast %cst_5 : f32 to vector<32x64xf32>
    %7 = arith.maximumf %5, %6 : vector<32x64xf32>
    %c0_6 = arith.constant 0 : index
    %c0_7 = arith.constant 0 : index
    %8 = vector.load %arg3[%c0_6, %c0_7] : memref<392x32xf32, #tpu.memory_space<vmem>>, vector<392x32xf32>
    %cst_8 = arith.constant dense<0.000000e+00> : vector<392x64xf32>
    %9 = tpu.matmul %8, %7, %cst_8 {dimension_numbers = #tpu.dot_dimension_numbers<[1], [0], [0], [1], [0, 0, 1, 1], [], []>} : vector<392x32xf32>, vector<32x64xf32>, vector<392x64xf32> -> vector<392x64xf32>
    %10 = arith.truncf %9 : vector<392x64xf32> to vector<392x64xbf16>
    %c0_9 = arith.constant 0 : index
    %c0_10 = arith.constant 0 : index
    %11 = vector.load %arg4[%c0_9, %c0_10] : memref<392x64xbf16, #tpu.memory_space<vmem>>, vector<392x64xbf16>
    tpu.vector_store %arg4[%c0_9, %c0_10], %10 {strides = array<i32>} : memref<392x64xbf16, #tpu.memory_space<vmem>>, vector<392x64xbf16>,
    return
  }
}

module attributes {stable_mosaic.version = 11 : i64} {
  func.func @_mlp_gat1_kernel(%arg0: memref<8x3136xbf16, #tpu.memory_space<vmem>>, %arg1: memref<3136x256xbf16, #tpu.memory_space<vmem>>, %arg2: memref<1x256xf32, #tpu.memory_space<vmem>>, %arg3: memref<256x256xbf16, #tpu.memory_space<vmem>>, %arg4: memref<1x256xf32, #tpu.memory_space<vmem>>, %arg5: memref<256x1024xbf16, #tpu.memory_space<vmem>>, %arg6: memref<1x1024xf32, #tpu.memory_space<vmem>>, %arg7: memref<1x1024xf32, #tpu.memory_space<vmem>>, %arg8: memref<1x1024xf32, #tpu.memory_space<vmem>>, %arg9: memref<8x8xf32, #tpu.memory_space<vmem>>, %arg10: memref<8x1024xf32, #tpu.memory_space<vmem>>) attributes {dimension_semantics = [], scalar_prefetch = 0 : i64, scratch_operands = 0 : i64, tpu.core_type = #tpu.core_type<tc>} {
    %c0 = arith.constant 0 : index
    %c0_0 = arith.constant 0 : index
    %0 = vector.load %arg0[%c0, %c0_0] : memref<8x3136xbf16, #tpu.memory_space<vmem>>, vector<8x3136xbf16>
    %c0_1 = arith.constant 0 : index
    %c0_2 = arith.constant 0 : index
    %1 = vector.load %arg1[%c0_1, %c0_2] : memref<3136x256xbf16, #tpu.memory_space<vmem>>, vector<3136x256xbf16>
    %cst = arith.constant dense<0.000000e+00> : vector<8x256xf32>
    %2 = tpu.matmul %0, %1, %cst {dimension_numbers = #tpu.dot_dimension_numbers<[1], [0], [0], [1], [0, 0, 1, 1], [], []>} : vector<8x3136xbf16>, vector<3136x256xbf16>, vector<8x256xf32> -> vector<8x256xf32>
    %c0_3 = arith.constant 0 : index
    %c0_4 = arith.constant 0 : index
    %3 = vector.load %arg2[%c0_3, %c0_4] : memref<1x256xf32, #tpu.memory_space<vmem>>, vector<1x256xf32>
    %4 = vector.broadcast %3 : vector<1x256xf32> to vector<8x256xf32>
    %5 = arith.addf %2, %4 : vector<8x256xf32>
    %cst_5 = arith.constant 0.000000e+00 : f32
    %6 = vector.broadcast %cst_5 : f32 to vector<8x256xf32>
    %7 = arith.maximumf %5, %6 : vector<8x256xf32>
    %8 = arith.truncf %7 : vector<8x256xf32> to vector<8x256xbf16>
    %c0_6 = arith.constant 0 : index
    %c0_7 = arith.constant 0 : index
    %9 = vector.load %arg3[%c0_6, %c0_7] : memref<256x256xbf16, #tpu.memory_space<vmem>>, vector<256x256xbf16>
    %cst_8 = arith.constant dense<0.000000e+00> : vector<8x256xf32>
    %10 = tpu.matmul %8, %9, %cst_8 {dimension_numbers = #tpu.dot_dimension_numbers<[1], [0], [0], [1], [0, 0, 1, 1], [], []>} : vector<8x256xbf16>, vector<256x256xbf16>, vector<8x256xf32> -> vector<8x256xf32>
    %c0_9 = arith.constant 0 : index
    %c0_10 = arith.constant 0 : index
    %11 = vector.load %arg4[%c0_9, %c0_10] : memref<1x256xf32, #tpu.memory_space<vmem>>, vector<1x256xf32>
    %12 = vector.broadcast %11 : vector<1x256xf32> to vector<8x256xf32>
    %13 = arith.addf %10, %12 : vector<8x256xf32>
    %cst_11 = arith.constant 0.000000e+00 : f32
    %14 = vector.broadcast %cst_11 : f32 to vector<8x256xf32>
    %15 = arith.maximumf %13, %14 : vector<8x256xf32>
    %16 = arith.truncf %15 : vector<8x256xf32> to vector<8x256xbf16>
    %c0_12 = arith.constant 0 : index
    %c0_13 = arith.constant 0 : index
    %17 = vector.load %arg5[%c0_12, %c0_13] : memref<256x1024xbf16, #tpu.memory_space<vmem>>, vector<256x1024xbf16>
    %cst_14 = arith.constant dense<0.000000e+00> : vector<8x1024xf32>
    %18 = tpu.matmul %16, %17, %cst_14 {dimension_numbers = #tpu.dot_dimension_numbers<[1], [0], [0], [1], [0, 0, 1, 1], [], []>} : vector<8x256xbf16>, vector<256x1024xbf16>, vector<8x1024xf32> -> vector<8x1024xf32>
    %c0_15 = arith.constant 0 : index
    %c0_16 = arith.constant 0 : index
    %19 = vector.load %arg9[%c0_15, %c0_16] : memref<8x8xf32, #tpu.memory_space<vmem>>, vector<8x8xf32>
    %cst_17 = arith.constant 5.000000e-01 : f32
    %20 = vector.broadcast %cst_17 : f32 to vector<8x8xf32>
    %21 = arith.cmpf ogt, %19, %20 : vector<8x8xf32>
    %22 = vector.extract_strided_slice %18 {offsets = [0, 0], sizes = [8, 256], strides = [1, 1]} : vector<8x1024xf32> to vector<8x256xf32>
    %c0_18 = arith.constant 0 : index
    %c0_19 = arith.constant 0 : index
    %23 = vector.load %arg7[%c0_18, %c0_19] : memref<1x1024xf32, #tpu.memory_space<vmem>>, vector<1x256xf32>
    %24 = vector.broadcast %23 : vector<1x256xf32> to vector<8x256xf32>
    %25 = arith.mulf %22, %24 : vector<8x256xf32>
    %cst_20 = arith.constant dense<0.000000e+00> : vector<8xf32>
    %26 = vector.multi_reduction <add>, %25, %cst_20 [1] : vector<8x256xf32> to vector<8xf32>
    %27 = vector.shape_cast %26 : vector<8xf32> to vector<8x1xf32>
    %c0_21 = arith.constant 0 : index
    %c0_22 = arith.constant 0 : index
    %28 = vector.load %arg6[%c0_21, %c0_22] : memref<1x1024xf32, #tpu.memory_space<vmem>>, vector<1x256xf32>
    %cst_23 = arith.constant dense<0.000000e+00> : vector<1x8xf32>
    %29 = tpu.matmul %28, %22, %cst_23 {dimension_numbers = #tpu.dot_dimension_numbers<[1], [1], [0], [0], [0, 0, 1, 0], [], []>} : vector<1x256xf32>, vector<8x256xf32>, vector<1x8xf32> -> vector<1x8xf32>
    %30 = vector.broadcast %27 : vector<8x1xf32> to vector<8x8xf32>
    %31 = vector.broadcast %29 : vector<1x8xf32> to vector<8x8xf32>
    %32 = arith.addf %30, %31 : vector<8x8xf32>
    %cst_24 = arith.constant 0.000000e+00 : f32
    %33 = vector.broadcast %cst_24 : f32 to vector<8x8xf32>
    %34 = arith.cmpf oge, %32, %33 : vector<8x8xf32>
    %cst_25 = arith.constant 2.000000e-01 : f32
    %35 = vector.broadcast %cst_25 : f32 to vector<8x8xf32>
    %36 = arith.mulf %35, %32 : vector<8x8xf32>
    %37 = arith.select %34, %32, %36 : vector<8x8xi1>, vector<8x8xf32>
    %cst_26 = arith.constant -1.000000e+30 : f32
    %38 = vector.broadcast %cst_26 : f32 to vector<8x8xf32>
    %39 = arith.select %21, %37, %38 : vector<8x8xi1>, vector<8x8xf32>
    %cst_27 = arith.constant dense<0xFF800000> : vector<8xf32>
    %40 = vector.multi_reduction <maximumf>, %39, %cst_27 [1] : vector<8x8xf32> to vector<8xf32>
    %41 = vector.shape_cast %40 : vector<8xf32> to vector<8x1xf32>
    %42 = vector.broadcast %41 : vector<8x1xf32> to vector<8x8xf32>
    %43 = arith.subf %39, %42 : vector<8x8xf32>
    %44 = math.exp %43 : vector<8x8xf32>
    %cst_28 = arith.constant 0.000000e+00 : f32
    %45 = vector.broadcast %cst_28 : f32 to vector<8x8xf32>
    %46 = arith.select %21, %44, %45 : vector<8x8xi1>, vector<8x8xf32>
    %cst_29 = arith.constant dense<0.000000e+00> : vector<8xf32>
    %47 = vector.multi_reduction <add>, %46, %cst_29 [1] : vector<8x8xf32> to vector<8xf32>
    %48 = vector.shape_cast %47 : vector<8xf32> to vector<8x1xf32>
    %49 = vector.broadcast %48 : vector<8x1xf32> to vector<8x8xf32>
    %50 = arith.divf %46, %49 : vector<8x8xf32>
    %cst_30 = arith.constant dense<0.000000e+00> : vector<8x256xf32>
    %51 = tpu.matmul %50, %22, %cst_30 {dimension_numbers = #tpu.dot_dimension_numbers<[1], [0], [0], [1], [0, 0, 1, 1], [], []>} : vector<8x8xf32>, vector<8x256xf32>, vector<8x256xf32> -> vector<8x256xf32>
    %c0_31 = arith.constant 0 : index
    %c0_32 = arith.constant 0 : index
    %52 = vector.load %arg8[%c0_31, %c0_32] : memref<1x1024xf32, #tpu.memory_space<vmem>>, vector<1x256xf32>
    %53 = vector.broadcast %52 : vector<1x256xf32> to vector<8x256xf32>
    %54 = arith.addf %51, %53 : vector<8x256xf32>
    %c0_33 = arith.constant 0 : index
    %c0_34 = arith.constant 0 : index
    %55 = vector.load %arg10[%c0_33, %c0_34] : memref<8x1024xf32, #tpu.memory_space<vmem>>, vector<8x256xf32>
    tpu.vector_store %arg10[%c0_33, %c0_34], %54 {strides = array<i32>} : memref<8x1024xf32, #tpu.memory_space<vmem>>, vector<8x256xf32>,
    %56 = vector.extract_strided_slice %18 {offsets = [0, 256], sizes = [8, 256], strides = [1, 1]} : vector<8x1024xf32> to vector<8x256xf32>
    %c0_35 = arith.constant 0 : index
    %c256 = arith.constant 256 : index
    %57 = vector.load %arg7[%c0_35, %c256] : memref<1x1024xf32, #tpu.memory_space<vmem>>, vector<1x256xf32>
    %58 = vector.broadcast %57 : vector<1x256xf32> to vector<8x256xf32>
    %59 = arith.mulf %56, %58 : vector<8x256xf32>
    %cst_36 = arith.constant dense<0.000000e+00> : vector<8xf32>
    %60 = vector.multi_reduction <add>, %59, %cst_36 [1] : vector<8x256xf32> to vector<8xf32>
    %61 = vector.shape_cast %60 : vector<8xf32> to vector<8x1xf32>
    %c0_37 = arith.constant 0 : index
    %c256_38 = arith.constant 256 : index
    %62 = vector.load %arg6[%c0_37, %c256_38] : memref<1x1024xf32, #tpu.memory_space<vmem>>, vector<1x256xf32>
    %cst_39 = arith.constant dense<0.000000e+00> : vector<1x8xf32>
    %63 = tpu.matmul %62, %56, %cst_39 {dimension_numbers = #tpu.dot_dimension_numbers<[1], [1], [0], [0], [0, 0, 1, 0], [], []>} : vector<1x256xf32>, vector<8x256xf32>, vector<1x8xf32> -> vector<1x8xf32>
    %64 = vector.broadcast %61 : vector<8x1xf32> to vector<8x8xf32>
    %65 = vector.broadcast %63 : vector<1x8xf32> to vector<8x8xf32>
    %66 = arith.addf %64, %65 : vector<8x8xf32>
    %cst_40 = arith.constant 0.000000e+00 : f32
    %67 = vector.broadcast %cst_40 : f32 to vector<8x8xf32>
    %68 = arith.cmpf oge, %66, %67 : vector<8x8xf32>
    %cst_41 = arith.constant 2.000000e-01 : f32
    %69 = vector.broadcast %cst_41 : f32 to vector<8x8xf32>
    %70 = arith.mulf %69, %66 : vector<8x8xf32>
    %71 = arith.select %68, %66, %70 : vector<8x8xi1>, vector<8x8xf32>
    %cst_42 = arith.constant -1.000000e+30 : f32
    %72 = vector.broadcast %cst_42 : f32 to vector<8x8xf32>
    %73 = arith.select %21, %71, %72 : vector<8x8xi1>, vector<8x8xf32>
    %cst_43 = arith.constant dense<0xFF800000> : vector<8xf32>
    %74 = vector.multi_reduction <maximumf>, %73, %cst_43 [1] : vector<8x8xf32> to vector<8xf32>
    %75 = vector.shape_cast %74 : vector<8xf32> to vector<8x1xf32>
    %76 = vector.broadcast %75 : vector<8x1xf32> to vector<8x8xf32>
    %77 = arith.subf %73, %76 : vector<8x8xf32>
    %78 = math.exp %77 : vector<8x8xf32>
    %cst_44 = arith.constant 0.000000e+00 : f32
    %79 = vector.broadcast %cst_44 : f32 to vector<8x8xf32>
    %80 = arith.select %21, %78, %79 : vector<8x8xi1>, vector<8x8xf32>
    %cst_45 = arith.constant dense<0.000000e+00> : vector<8xf32>
    %81 = vector.multi_reduction <add>, %80, %cst_45 [1] : vector<8x8xf32> to vector<8xf32>
    %82 = vector.shape_cast %81 : vector<8xf32> to vector<8x1xf32>
    %83 = vector.broadcast %82 : vector<8x1xf32> to vector<8x8xf32>
    %84 = arith.divf %80, %83 : vector<8x8xf32>
    %cst_46 = arith.constant dense<0.000000e+00> : vector<8x256xf32>
    %85 = tpu.matmul %84, %56, %cst_46 {dimension_numbers = #tpu.dot_dimension_numbers<[1], [0], [0], [1], [0, 0, 1, 1], [], []>} : vector<8x8xf32>, vector<8x256xf32>, vector<8x256xf32> -> vector<8x256xf32>
    %c0_47 = arith.constant 0 : index
    %c256_48 = arith.constant 256 : index
    %86 = vector.load %arg8[%c0_47, %c256_48] : memref<1x1024xf32, #tpu.memory_space<vmem>>, vector<1x256xf32>
    %87 = vector.broadcast %86 : vector<1x256xf32> to vector<8x256xf32>
    %88 = arith.addf %85, %87 : vector<8x256xf32>
    %c0_49 = arith.constant 0 : index
    %c256_50 = arith.constant 256 : index
    %89 = vector.load %arg10[%c0_49, %c256_50] : memref<8x1024xf32, #tpu.memory_space<vmem>>, vector<8x256xf32>
    tpu.vector_store %arg10[%c0_49, %c256_50], %88 {strides = array<i32>} : memref<8x1024xf32, #tpu.memory_space<vmem>>, vector<8x256xf32>,
    %90 = vector.extract_strided_slice %18 {offsets = [0, 512], sizes = [8, 256], strides = [1, 1]} : vector<8x1024xf32> to vector<8x256xf32>
    %c0_51 = arith.constant 0 : index
    %c512 = arith.constant 512 : index
    %91 = vector.load %arg7[%c0_51, %c512] : memref<1x1024xf32, #tpu.memory_space<vmem>>, vector<1x256xf32>
    %92 = vector.broadcast %91 : vector<1x256xf32> to vector<8x256xf32>
    %93 = arith.mulf %90, %92 : vector<8x256xf32>
    %cst_52 = arith.constant dense<0.000000e+00> : vector<8xf32>
    %94 = vector.multi_reduction <add>, %93, %cst_52 [1] : vector<8x256xf32> to vector<8xf32>
    %95 = vector.shape_cast %94 : vector<8xf32> to vector<8x1xf32>
    %c0_53 = arith.constant 0 : index
    %c512_54 = arith.constant 512 : index
    %96 = vector.load %arg6[%c0_53, %c512_54] : memref<1x1024xf32, #tpu.memory_space<vmem>>, vector<1x256xf32>
    %cst_55 = arith.constant dense<0.000000e+00> : vector<1x8xf32>
    %97 = tpu.matmul %96, %90, %cst_55 {dimension_numbers = #tpu.dot_dimension_numbers<[1], [1], [0], [0], [0, 0, 1, 0], [], []>} : vector<1x256xf32>, vector<8x256xf32>, vector<1x8xf32> -> vector<1x8xf32>
    %98 = vector.broadcast %95 : vector<8x1xf32> to vector<8x8xf32>
    %99 = vector.broadcast %97 : vector<1x8xf32> to vector<8x8xf32>
    %100 = arith.addf %98, %99 : vector<8x8xf32>
    %cst_56 = arith.constant 0.000000e+00 : f32
    %101 = vector.broadcast %cst_56 : f32 to vector<8x8xf32>
    %102 = arith.cmpf oge, %100, %101 : vector<8x8xf32>
    %cst_57 = arith.constant 2.000000e-01 : f32
    %103 = vector.broadcast %cst_57 : f32 to vector<8x8xf32>
    %104 = arith.mulf %103, %100 : vector<8x8xf32>
    %105 = arith.select %102, %100, %104 : vector<8x8xi1>, vector<8x8xf32>
    %cst_58 = arith.constant -1.000000e+30 : f32
    %106 = vector.broadcast %cst_58 : f32 to vector<8x8xf32>
    %107 = arith.select %21, %105, %106 : vector<8x8xi1>, vector<8x8xf32>
    %cst_59 = arith.constant dense<0xFF800000> : vector<8xf32>
    %108 = vector.multi_reduction <maximumf>, %107, %cst_59 [1] : vector<8x8xf32> to vector<8xf32>
    %109 = vector.shape_cast %108 : vector<8xf32> to vector<8x1xf32>
    %110 = vector.broadcast %109 : vector<8x1xf32> to vector<8x8xf32>
    %111 = arith.subf %107, %110 : vector<8x8xf32>
    %112 = math.exp %111 : vector<8x8xf32>
    %cst_60 = arith.constant 0.000000e+00 : f32
    %113 = vector.broadcast %cst_60 : f32 to vector<8x8xf32>
    %114 = arith.select %21, %112, %113 : vector<8x8xi1>, vector<8x8xf32>
    %cst_61 = arith.constant dense<0.000000e+00> : vector<8xf32>
    %115 = vector.multi_reduction <add>, %114, %cst_61 [1] : vector<8x8xf32> to vector<8xf32>
    %116 = vector.shape_cast %115 : vector<8xf32> to vector<8x1xf32>
    %117 = vector.broadcast %116 : vector<8x1xf32> to vector<8x8xf32>
    %118 = arith.divf %114, %117 : vector<8x8xf32>
    %cst_62 = arith.constant dense<0.000000e+00> : vector<8x256xf32>
    %119 = tpu.matmul %118, %90, %cst_62 {dimension_numbers = #tpu.dot_dimension_numbers<[1], [0], [0], [1], [0, 0, 1, 1], [], []>} : vector<8x8xf32>, vector<8x256xf32>, vector<8x256xf32> -> vector<8x256xf32>
    %c0_63 = arith.constant 0 : index
    %c512_64 = arith.constant 512 : index
    %120 = vector.load %arg8[%c0_63, %c512_64] : memref<1x1024xf32, #tpu.memory_space<vmem>>, vector<1x256xf32>
    %121 = vector.broadcast %120 : vector<1x256xf32> to vector<8x256xf32>
    %122 = arith.addf %119, %121 : vector<8x256xf32>
    %c0_65 = arith.constant 0 : index
    %c512_66 = arith.constant 512 : index
    %123 = vector.load %arg10[%c0_65, %c512_66] : memref<8x1024xf32, #tpu.memory_space<vmem>>, vector<8x256xf32>
    tpu.vector_store %arg10[%c0_65, %c512_66], %122 {strides = array<i32>} : memref<8x1024xf32, #tpu.memory_space<vmem>>, vector<8x256xf32>,
    %124 = vector.extract_strided_slice %18 {offsets = [0, 768], sizes = [8, 256], strides = [1, 1]} : vector<8x1024xf32> to vector<8x256xf32>
    %c0_67 = arith.constant 0 : index
    %c768 = arith.constant 768 : index
    %125 = vector.load %arg7[%c0_67, %c768] : memref<1x1024xf32, #tpu.memory_space<vmem>>, vector<1x256xf32>
    %126 = vector.broadcast %125 : vector<1x256xf32> to vector<8x256xf32>
    %127 = arith.mulf %124, %126 : vector<8x256xf32>
    %cst_68 = arith.constant dense<0.000000e+00> : vector<8xf32>
    %128 = vector.multi_reduction <add>, %127, %cst_68 [1] : vector<8x256xf32> to vector<8xf32>
    %129 = vector.shape_cast %128 : vector<8xf32> to vector<8x1xf32>
    %c0_69 = arith.constant 0 : index
    %c768_70 = arith.constant 768 : index
    %130 = vector.load %arg6[%c0_69, %c768_70] : memref<1x1024xf32, #tpu.memory_space<vmem>>, vector<1x256xf32>
    %cst_71 = arith.constant dense<0.000000e+00> : vector<1x8xf32>
    %131 = tpu.matmul %130, %124, %cst_71 {dimension_numbers = #tpu.dot_dimension_numbers<[1], [1], [0], [0], [0, 0, 1, 0], [], []>} : vector<1x256xf32>, vector<8x256xf32>, vector<1x8xf32> -> vector<1x8xf32>
    %132 = vector.broadcast %129 : vector<8x1xf32> to vector<8x8xf32>
    %133 = vector.broadcast %131 : vector<1x8xf32> to vector<8x8xf32>
    %134 = arith.addf %132, %133 : vector<8x8xf32>
    %cst_72 = arith.constant 0.000000e+00 : f32
    %135 = vector.broadcast %cst_72 : f32 to vector<8x8xf32>
    %136 = arith.cmpf oge, %134, %135 : vector<8x8xf32>
    %cst_73 = arith.constant 2.000000e-01 : f32
    %137 = vector.broadcast %cst_73 : f32 to vector<8x8xf32>
    %138 = arith.mulf %137, %134 : vector<8x8xf32>
    %139 = arith.select %136, %134, %138 : vector<8x8xi1>, vector<8x8xf32>
    %cst_74 = arith.constant -1.000000e+30 : f32
    %140 = vector.broadcast %cst_74 : f32 to vector<8x8xf32>
    %141 = arith.select %21, %139, %140 : vector<8x8xi1>, vector<8x8xf32>
    %cst_75 = arith.constant dense<0xFF800000> : vector<8xf32>
    %142 = vector.multi_reduction <maximumf>, %141, %cst_75 [1] : vector<8x8xf32> to vector<8xf32>
    %143 = vector.shape_cast %142 : vector<8xf32> to vector<8x1xf32>
    %144 = vector.broadcast %143 : vector<8x1xf32> to vector<8x8xf32>
    %145 = arith.subf %141, %144 : vector<8x8xf32>
    %146 = math.exp %145 : vector<8x8xf32>
    %cst_76 = arith.constant 0.000000e+00 : f32
    %147 = vector.broadcast %cst_76 : f32 to vector<8x8xf32>
    %148 = arith.select %21, %146, %147 : vector<8x8xi1>, vector<8x8xf32>
    %cst_77 = arith.constant dense<0.000000e+00> : vector<8xf32>
    %149 = vector.multi_reduction <add>, %148, %cst_77 [1] : vector<8x8xf32> to vector<8xf32>
    %150 = vector.shape_cast %149 : vector<8xf32> to vector<8x1xf32>
    %151 = vector.broadcast %150 : vector<8x1xf32> to vector<8x8xf32>
    %152 = arith.divf %148, %151 : vector<8x8xf32>
    %cst_78 = arith.constant dense<0.000000e+00> : vector<8x256xf32>
    %153 = tpu.matmul %152, %124, %cst_78 {dimension_numbers = #tpu.dot_dimension_numbers<[1], [0], [0], [1], [0, 0, 1, 1], [], []>} : vector<8x8xf32>, vector<8x256xf32>, vector<8x256xf32> -> vector<8x256xf32>
    %c0_79 = arith.constant 0 : index
    %c768_80 = arith.constant 768 : index
    %154 = vector.load %arg8[%c0_79, %c768_80] : memref<1x1024xf32, #tpu.memory_space<vmem>>, vector<1x256xf32>
    %155 = vector.broadcast %154 : vector<1x256xf32> to vector<8x256xf32>
    %156 = arith.addf %153, %155 : vector<8x256xf32>
    %c0_81 = arith.constant 0 : index
    %c768_82 = arith.constant 768 : index
    %157 = vector.load %arg10[%c0_81, %c768_82] : memref<8x1024xf32, #tpu.memory_space<vmem>>, vector<8x256xf32>
    tpu.vector_store %arg10[%c0_81, %c768_82], %156 {strides = array<i32>} : memref<8x1024xf32, #tpu.memory_space<vmem>>, vector<8x256xf32>,
    return
  }
}

module attributes {stable_mosaic.version = 11 : i64} {
  func.func @_gat2_heads_kernel(%arg0: memref<8x1024xf32, #tpu.memory_space<vmem>>, %arg1: memref<1024x256xbf16, #tpu.memory_space<vmem>>, %arg2: memref<1x256xf32, #tpu.memory_space<vmem>>, %arg3: memref<1x256xf32, #tpu.memory_space<vmem>>, %arg4: memref<1x256xf32, #tpu.memory_space<vmem>>, %arg5: memref<8x8xf32, #tpu.memory_space<vmem>>, %arg6: memref<256x128xbf16, #tpu.memory_space<vmem>>, %arg7: memref<1x128xf32, #tpu.memory_space<vmem>>, %arg8: memref<256x128xbf16, #tpu.memory_space<vmem>>, %arg9: memref<256x128xbf16, #tpu.memory_space<vmem>>, %arg10: memref<1x128xf32, #tpu.memory_space<vmem>>, %arg11: memref<16x8xf32, #tpu.memory_space<vmem>>, %arg12: memref<16x8xf32, #tpu.memory_space<vmem>>, %arg13: memref<8x128xf32, #tpu.memory_space<vmem>>, %arg14: memref<16x128xf32, #tpu.memory_space<vmem>>) attributes {dimension_semantics = [], scalar_prefetch = 0 : i64, scratch_operands = 0 : i64, tpu.core_type = #tpu.core_type<tc>} {
    %c0 = arith.constant 0 : index
    %c0_0 = arith.constant 0 : index
    %0 = vector.load %arg0[%c0, %c0_0] : memref<8x1024xf32, #tpu.memory_space<vmem>>, vector<8x1024xf32>
    %1 = arith.truncf %0 : vector<8x1024xf32> to vector<8x1024xbf16>
    %c0_1 = arith.constant 0 : index
    %c0_2 = arith.constant 0 : index
    %2 = vector.load %arg1[%c0_1, %c0_2] : memref<1024x256xbf16, #tpu.memory_space<vmem>>, vector<1024x256xbf16>
    %cst = arith.constant dense<0.000000e+00> : vector<8x256xf32>
    %3 = tpu.matmul %1, %2, %cst {dimension_numbers = #tpu.dot_dimension_numbers<[1], [0], [0], [1], [0, 0, 1, 1], [], []>} : vector<8x1024xbf16>, vector<1024x256xbf16>, vector<8x256xf32> -> vector<8x256xf32>
    %c0_3 = arith.constant 0 : index
    %c0_4 = arith.constant 0 : index
    %4 = vector.load %arg3[%c0_3, %c0_4] : memref<1x256xf32, #tpu.memory_space<vmem>>, vector<1x256xf32>
    %5 = vector.broadcast %4 : vector<1x256xf32> to vector<8x256xf32>
    %6 = arith.mulf %3, %5 : vector<8x256xf32>
    %cst_5 = arith.constant dense<0.000000e+00> : vector<8xf32>
    %7 = vector.multi_reduction <add>, %6, %cst_5 [1] : vector<8x256xf32> to vector<8xf32>
    %8 = vector.shape_cast %7 : vector<8xf32> to vector<8x1xf32>
    %c0_6 = arith.constant 0 : index
    %c0_7 = arith.constant 0 : index
    %9 = vector.load %arg2[%c0_6, %c0_7] : memref<1x256xf32, #tpu.memory_space<vmem>>, vector<1x256xf32>
    %cst_8 = arith.constant dense<0.000000e+00> : vector<1x8xf32>
    %10 = tpu.matmul %9, %3, %cst_8 {dimension_numbers = #tpu.dot_dimension_numbers<[1], [1], [0], [0], [0, 0, 1, 0], [], []>} : vector<1x256xf32>, vector<8x256xf32>, vector<1x8xf32> -> vector<1x8xf32>
    %11 = vector.broadcast %8 : vector<8x1xf32> to vector<8x8xf32>
    %12 = vector.broadcast %10 : vector<1x8xf32> to vector<8x8xf32>
    %13 = arith.addf %11, %12 : vector<8x8xf32>
    %cst_9 = arith.constant 0.000000e+00 : f32
    %14 = vector.broadcast %cst_9 : f32 to vector<8x8xf32>
    %15 = arith.cmpf oge, %13, %14 : vector<8x8xf32>
    %cst_10 = arith.constant 2.000000e-01 : f32
    %16 = vector.broadcast %cst_10 : f32 to vector<8x8xf32>
    %17 = arith.mulf %16, %13 : vector<8x8xf32>
    %18 = arith.select %15, %13, %17 : vector<8x8xi1>, vector<8x8xf32>
    %c0_11 = arith.constant 0 : index
    %c0_12 = arith.constant 0 : index
    %19 = vector.load %arg5[%c0_11, %c0_12] : memref<8x8xf32, #tpu.memory_space<vmem>>, vector<8x8xf32>
    %cst_13 = arith.constant 5.000000e-01 : f32
    %20 = vector.broadcast %cst_13 : f32 to vector<8x8xf32>
    %21 = arith.cmpf ogt, %19, %20 : vector<8x8xf32>
    %cst_14 = arith.constant -1.000000e+30 : f32
    %22 = vector.broadcast %cst_14 : f32 to vector<8x8xf32>
    %23 = arith.select %21, %18, %22 : vector<8x8xi1>, vector<8x8xf32>
    %cst_15 = arith.constant dense<0xFF800000> : vector<8xf32>
    %24 = vector.multi_reduction <maximumf>, %23, %cst_15 [1] : vector<8x8xf32> to vector<8xf32>
    %25 = vector.shape_cast %24 : vector<8xf32> to vector<8x1xf32>
    %26 = vector.broadcast %25 : vector<8x1xf32> to vector<8x8xf32>
    %27 = arith.subf %23, %26 : vector<8x8xf32>
    %28 = math.exp %27 : vector<8x8xf32>
    %cst_16 = arith.constant 0.000000e+00 : f32
    %29 = vector.broadcast %cst_16 : f32 to vector<8x8xf32>
    %30 = arith.select %21, %28, %29 : vector<8x8xi1>, vector<8x8xf32>
    %cst_17 = arith.constant dense<0.000000e+00> : vector<8xf32>
    %31 = vector.multi_reduction <add>, %30, %cst_17 [1] : vector<8x8xf32> to vector<8xf32>
    %32 = vector.shape_cast %31 : vector<8xf32> to vector<8x1xf32>
    %33 = vector.broadcast %32 : vector<8x1xf32> to vector<8x8xf32>
    %34 = arith.divf %30, %33 : vector<8x8xf32>
    %cst_18 = arith.constant dense<0.000000e+00> : vector<8x256xf32>
    %35 = tpu.matmul %34, %3, %cst_18 {dimension_numbers = #tpu.dot_dimension_numbers<[1], [0], [0], [1], [0, 0, 1, 1], [], []>} : vector<8x8xf32>, vector<8x256xf32>, vector<8x256xf32> -> vector<8x256xf32>
    %c0_19 = arith.constant 0 : index
    %c0_20 = arith.constant 0 : index
    %36 = vector.load %arg4[%c0_19, %c0_20] : memref<1x256xf32, #tpu.memory_space<vmem>>, vector<1x256xf32>
    %37 = vector.broadcast %36 : vector<1x256xf32> to vector<8x256xf32>
    %38 = arith.addf %35, %37 : vector<8x256xf32>
    %39 = arith.truncf %38 : vector<8x256xf32> to vector<8x256xbf16>
    %c0_21 = arith.constant 0 : index
    %c0_22 = arith.constant 0 : index
    %40 = vector.load %arg6[%c0_21, %c0_22] : memref<256x128xbf16, #tpu.memory_space<vmem>>, vector<256x128xbf16>
    %cst_23 = arith.constant dense<0.000000e+00> : vector<8x128xf32>
    %41 = tpu.matmul %39, %40, %cst_23 {dimension_numbers = #tpu.dot_dimension_numbers<[1], [0], [0], [1], [0, 0, 1, 1], [], []>} : vector<8x256xbf16>, vector<256x128xbf16>, vector<8x128xf32> -> vector<8x128xf32>
    %c0_24 = arith.constant 0 : index
    %c0_25 = arith.constant 0 : index
    %42 = vector.load %arg7[%c0_24, %c0_25] : memref<1x128xf32, #tpu.memory_space<vmem>>, vector<1x128xf32>
    %43 = vector.broadcast %42 : vector<1x128xf32> to vector<8x128xf32>
    %44 = arith.addf %41, %43 : vector<8x128xf32>
    %c0_26 = arith.constant 0 : index
    %c0_27 = arith.constant 0 : index
    %45 = vector.load %arg13[%c0_26, %c0_27] : memref<8x128xf32, #tpu.memory_space<vmem>>, vector<8x128xf32>
    tpu.vector_store %arg13[%c0_26, %c0_27], %44 {strides = array<i32>} : memref<8x128xf32, #tpu.memory_space<vmem>>, vector<8x128xf32>,
    %c0_28 = arith.constant 0 : index
    %c0_29 = arith.constant 0 : index
    %46 = vector.load %arg8[%c0_28, %c0_29] : memref<256x128xbf16, #tpu.memory_space<vmem>>, vector<256x128xbf16>
    %cst_30 = arith.constant dense<0.000000e+00> : vector<8x128xf32>
    %47 = tpu.matmul %39, %46, %cst_30 {dimension_numbers = #tpu.dot_dimension_numbers<[1], [0], [0], [1], [0, 0, 1, 1], [], []>} : vector<8x256xbf16>, vector<256x128xbf16>, vector<8x128xf32> -> vector<8x128xf32>
    %c0_31 = arith.constant 0 : index
    %c0_32 = arith.constant 0 : index
    %48 = vector.load %arg9[%c0_31, %c0_32] : memref<256x128xbf16, #tpu.memory_space<vmem>>, vector<256x128xbf16>
    %cst_33 = arith.constant dense<0.000000e+00> : vector<8x128xf32>
    %49 = tpu.matmul %39, %48, %cst_33 {dimension_numbers = #tpu.dot_dimension_numbers<[1], [0], [0], [1], [0, 0, 1, 1], [], []>} : vector<8x256xbf16>, vector<256x128xbf16>, vector<8x128xf32> -> vector<8x128xf32>
    %c0_34 = arith.constant 0 : index
    %c0_35 = arith.constant 0 : index
    %50 = vector.load %arg11[%c0_34, %c0_35] : memref<16x8xf32, #tpu.memory_space<vmem>>, vector<16x8xf32>
    %cst_36 = arith.constant dense<0.000000e+00> : vector<16x128xf32>
    %51 = tpu.matmul %50, %47, %cst_36 {dimension_numbers = #tpu.dot_dimension_numbers<[1], [0], [0], [1], [0, 0, 1, 1], [], []>} : vector<16x8xf32>, vector<8x128xf32>, vector<16x128xf32> -> vector<16x128xf32>
    %c0_37 = arith.constant 0 : index
    %c0_38 = arith.constant 0 : index
    %52 = vector.load %arg12[%c0_37, %c0_38] : memref<16x8xf32, #tpu.memory_space<vmem>>, vector<16x8xf32>
    %cst_39 = arith.constant dense<0.000000e+00> : vector<16x128xf32>
    %53 = tpu.matmul %52, %49, %cst_39 {dimension_numbers = #tpu.dot_dimension_numbers<[1], [0], [0], [1], [0, 0, 1, 1], [], []>} : vector<16x8xf32>, vector<8x128xf32>, vector<16x128xf32> -> vector<16x128xf32>
    %54 = arith.addf %51, %53 : vector<16x128xf32>
    %c0_40 = arith.constant 0 : index
    %c0_41 = arith.constant 0 : index
    %55 = vector.load %arg10[%c0_40, %c0_41] : memref<1x128xf32, #tpu.memory_space<vmem>>, vector<1x128xf32>
    %56 = vector.broadcast %55 : vector<1x128xf32> to vector<16x128xf32>
    %57 = arith.addf %54, %56 : vector<16x128xf32>
    %c0_42 = arith.constant 0 : index
    %c0_43 = arith.constant 0 : index
    %58 = vector.load %arg14[%c0_42, %c0_43] : memref<16x128xf32, #tpu.memory_space<vmem>>, vector<16x128xf32>
    tpu.vector_store %arg14[%c0_42, %c0_43], %57 {strides = array<i32>} : memref<16x128xf32, #tpu.memory_space<vmem>>, vector<16x128xf32>,
    return
  }
}

</mosaic_0001>

<bundles_post_ra>
// kernel: forward.5
= control target key start
LH: loop header
LB: loop body
LE: loop exit
PB: predicated region body
PF: predicated region fallthrough
CT: control target
= control target key end

     0   :  { %s1080_s15 = smov 0   ;;  %s1250_s0 = inlined_call_operand.vmem [shape: bf16[2,256,32], index: 0, kind: input, shape index: {}]   ;;  %s1251_s1 = inlined_call_operand.vmem [shape: bf16[32,128], index: 1, kind: input, shape index: {}]   ;;  %s1252_s2 = inlined_call_operand.vmem [shape: f32[1,128], index: 2, kind: input, shape index: {}]   ;;  %s1253_s3 = inlined_call_operand.vmem [shape: f32[64,256], index: 3, kind: input, shape index: {}]   ;;  %s1254_s4 = inlined_call_operand.vmem [shape: bf16[2,64,128], index: 4, kind: output, shape index: {}]  }
   0x1 LB: > { %s792_s16 = sadd.s32 4294967295, %s1053_s15   ;;  %p796_p0 = scmp.ge.s32.totalorder %s1053_s15, 1  ;;  %s1053_s15 = sphi %s1080_s15, %s14_s15  }
   0x2   : > { %p162_p1 = scmp.lt.s32.totalorder %s1053_s15, 3 }
   0x4   : > { %p163_p2 = pnand %p796_p0, %p162_p1 }
   0x5   : > { %v1029_v0 = vld [vmem:[%s1251_s1] sm:$0xff] (!%p163_p2)   ;;  %p188_p3 = scmp.lt.s32.totalorder (!%p163_p2), %s792_s16, 1  ;;  %v1030_v1 = vld [vmem:[%s1251_s1 + $0x8] sm:$0xff] (!%p163_p2)   ;;  %vm334_vm0 = vcmask (!%p163_p2), 261120  }
   0x6   : > { %166 = sbr.rel (%p163_p2) target bundleno = 549 (0x225), region = 36  ;;  %953 = vmatprep.subr.bf16.mxu0 (!%p163_p2), %v1029_v0  ;;  %v577_v18 = vld [vmem:[%s1253_s3 + $0x8] sm:$0xff] (!%p163_p2)  ;;  %v1140_v19 = vld [vmem:[%s1252_s2] ss:$0 sm:$0xff] (!%p163_p2) }
   0x7   : > { %954 = vmatpush3.bf16.msra.mxu0 (!%p163_p2), %v1029_v0  ;;  %656 = vmatprep.mubr.f32.mxu1 (!%p163_p2), %v577_v18 }
   0x8   : > { %955 = vmatprep.subr.bf16.mxu0 (!%p163_p2), %v1030_v1 }
   0xb   : > { %956 = vmatpush3.bf16.msra.mxu0 (!%p163_p2), %v1030_v1 }
   0xd   : > { %s1256_s16 = smov (!%p188_p3, %s792_s16), 1 }
   0xe   : > { %s846_s21 = sshll.u32 %s1256_s16, 7  ;;  %s847_s9 = sshll.u32 %s1256_s16, 5 }
   0xf   : > { %s1100_s24 = scalar_lea.vmem %s1250_s0, %s846_s21  ;;  %s197_s12 = scalar_lea.vmem %s1254_s4, %s847_s9 }
  0x10   : > { %v1031_v2 = vld [vmem:[%s1100_s24] sm:$0xff]   ;;  %v1032_v3 = vld [vmem:[%s1100_s24 + $0x8] sm:$0xff]   ;;  %v1033_v4 = vld [vmem:[%s1100_s24 + $0x10] sm:$0xff]  }
  0x11   : > { %957 = vmatprep.mubr.msk.bf16.mxu0 %vm334_vm0, %v1031_v2  ;;  %v1034_v5 = vld [vmem:[%s1100_s24 + $0x18] sm:$0xff]   ;;  %v1035_v6 = vld [vmem:[%s1100_s24 + $0x20] sm:$0xff]   ;;  %v1036_v7 = vld [vmem:[%s1100_s24 + $0x28] sm:$0xff]  }
  0x12   : > { %958 = vmatmul.mubr.msk.bf16.vlgmr.msra.gmra.mrb[0].mxu0 %vm334_vm0, %v1032_v3  ;;  %v1037_v8 = vld [vmem:[%s1100_s24 + $0x30] sm:$0xff]   ;;  %v1038_v9 = vld [vmem:[%s1100_s24 + $0x38] sm:$0xff]   ;;  %v1039_v10 = vld [vmem:[%s1100_s24 + $0x40] sm:$0xff]  }
  0x13   : > { %961 = vmatprep.mubr.msk.bf16.mxu0 %vm334_vm0, %v1033_v4  ;;  %v1040_v11 = vld [vmem:[%s1100_s24 + $0x48] sm:$0xff]   ;;  %v1041_v12 = vld [vmem:[%s1100_s24 + $0x50] sm:$0xff]   ;;  %v1042_v13 = vld [vmem:[%s1100_s24 + $0x58] sm:$0xff]  }
  0x14   : > { %v1043_v14 = vld [vmem:[%s1100_s24 + $0x60] sm:$0xff]   ;;  %v1044_v15 = vld [vmem:[%s1100_s24 + $0x68] sm:$0xff]   ;;  %v1045_v16 = vld [vmem:[%s1100_s24 + $0x70] sm:$0xff]  }
  0x15   : > { %v1046_v17 = vld [vmem:[%s1100_s24 + $0x78] sm:$0xff]  }
  0x1a   : > { %962 = vmatmul.mubr.msk.bf16.gmra.mrb[4].mxu0 %vm334_vm0, %v1034_v5 }
  0x1b   : > { %965 = vmatprep.mubr.msk.bf16.mxu0 %vm334_vm0, %v1035_v6 }
  0x22   : > { %966 = vmatmul.mubr.msk.bf16.gmra.mrb[8].mxu0 %vm334_vm0, %v1036_v7 }
  0x23   : > { %969 = vmatprep.mubr.msk.bf16.mxu0 %vm334_vm0, %v1037_v8 }
  0x2a   : > { %970 = vmatmul.mubr.msk.bf16.gmra.mrb[12].mxu0 %vm334_vm0, %v1038_v9 }
  0x2b   : > { %973 = vmatprep.mubr.msk.bf16.mxu0 %vm334_vm0, %v1039_v10 }
  0x32   : > { %974 = vmatmul.mubr.msk.bf16.gmra.mrb[16].mxu0 %vm334_vm0, %v1040_v11 }
  0x33   : > { %977 = vmatprep.mubr.msk.bf16.mxu0 %vm334_vm0, %v1041_v12 }
  0x3a   : > { %978 = vmatmul.mubr.msk.bf16.gmra.mrb[20].mxu0 %vm334_vm0, %v1042_v13 }
  0x3b   : > { %981 = vmatprep.mubr.msk.bf16.mxu0 %vm334_vm0, %v1043_v14 }
  0x42   : > { %982 = vmatmul.mubr.msk.bf16.gmra.mrb[24].mxu0 %vm334_vm0, %v1044_v15 }
  0x43   : > { %985 = vmatprep.mubr.msk.bf16.mxu0 %vm334_vm0, %v1045_v16 }
  0x4a   : > { %986 = vmatmul.mubr.msk.bf16.gmra.mrb[28].mxu0 %vm334_vm0, %v1046_v17 }
  0xe5   : > { %v959_v20 = vpop.f32.mrb[0].mxu0 }
  0xe6   : > { %v426_v21 = vadd.f32 %v959_v20, %v1140_v19  ;;  %v417_v22 = vpop.f32.mrb[1].mxu0 }
  0xe7   : > { %v418_v23 = vadd.f32 %v1140_v19, %v417_v22  ;;  %v960_v24 = vpop.f32.mrb[2].mxu0 }
  0xe8   : > { %v429_v25 = vadd.f32 %v960_v24, %v1140_v19  ;;  %v420_v26 = vpop.f32.mrb[3].mxu0  ;;  %v546_v28 = vmax.f32 %v426_v21, 0.0 }
  0xe9   : > { %v421_v27 = vadd.f32 %v1140_v19, %v420_v26  ;;  %v544_v30 = vmax.f32 %v418_v23, 0.0 }
  0xea   : > { %v547_v29 = vmax.f32 %v429_v25, 0.0 }
  0xeb   : > { %v545_v31 = vmax.f32 %v421_v27, 0.0 }
  0xec   : > { %v1146_v32 = vpack.c.bf16 %v547_v29, %v546_v28 }
  0xed   : > { %v963_v33 = vpop.f32.mrb[4].mxu0  ;;  %v1148_v34 = vpack.c.bf16 %v545_v31, %v544_v30 }
  0xee   : > { %v442_v35 = vadd.f32 %v963_v33, %v1140_v19  ;;  %v433_v36 = vpop.f32.mrb[5].mxu0 }
  0xef   : > { %v434_v37 = vadd.f32 %v1140_v19, %v433_v36  ;;  %v964_v38 = vpop.f32.mrb[6].mxu0 }
  0xf0   : > { %v445_v39 = vadd.f32 %v964_v38, %v1140_v19  ;;  %v436_v40 = vpop.f32.mrb[7].mxu0  ;;  %v550_v42 = vmax.f32 %v442_v35, 0.0 }
  0xf1   : > { %v437_v41 = vadd.f32 %v1140_v19, %v436_v40  ;;  %v548_v44 = vmax.f32 %v434_v37, 0.0 }
  0xf2   : > { %v551_v43 = vmax.f32 %v445_v39, 0.0 }
  0xf3   : > { %v549_v45 = vmax.f32 %v437_v41, 0.0 }
  0xf4   : > { %v1154_v46 = vpack.c.bf16 %v551_v43, %v550_v42 }
  0xf5   : > { %v1156_v47 = vpack.c.bf16 %v549_v45, %v548_v44  ;;  %v967_v48 = vpop.f32.mrb[8].mxu0 }
  0xf6   : > { %v458_v49 = vadd.f32 %v967_v48, %v1140_v19  ;;  %v449_v50 = vpop.f32.mrb[9].mxu0 }
  0xf7   : > { %v450_v51 = vadd.f32 %v1140_v19, %v449_v50  ;;  %v968_v52 = vpop.f32.mrb[10].mxu0 }
  0xf8   : > { %v461_v53 = vadd.f32 %v968_v52, %v1140_v19  ;;  %v452_v54 = vpop.f32.mrb[11].mxu0  ;;  %v554_v56 = vmax.f32 %v458_v49, 0.0 }
  0xf9   : > { %v453_v55 = vadd.f32 %v1140_v19, %v452_v54  ;;  %v552_v58 = vmax.f32 %v450_v51, 0.0 }
  0xfa   : > { %v555_v57 = vmax.f32 %v461_v53, 0.0 }
  0xfb   : > { %v553_v59 = vmax.f32 %v453_v55, 0.0 }
  0xfc   : > { %v1162_v60 = vpack.c.bf16 %v555_v57, %v554_v56 }
  0xfd   : > { %v1164_v61 = vpack.c.bf16 %v553_v59, %v552_v58  ;;  %v971_v62 = vpop.f32.mrb[12].mxu0 }
  0xfe   : > { %v474_v63 = vadd.f32 %v971_v62, %v1140_v19  ;;  %v465_v0 = vpop.f32.mrb[13].mxu0 }
  0xff   : > { %v466_v1 = vadd.f32 %v1140_v19, %v465_v0  ;;  %v972_v2 = vpop.f32.mrb[14].mxu0 }
 0x100   : > { %v477_v3 = vadd.f32 %v972_v2, %v1140_v19  ;;  %v468_v4 = vpop.f32.mrb[15].mxu0  ;;  %v558_v6 = vmax.f32 %v474_v63, 0.0 }
 0x101   : > { %v469_v5 = vadd.f32 %v1140_v19, %v468_v4  ;;  %v556_v8 = vmax.f32 %v466_v1, 0.0 }
 0x102   : > { %v559_v7 = vmax.f32 %v477_v3, 0.0 }
 0x103   : > { %v557_v9 = vmax.f32 %v469_v5, 0.0 }
 0x104   : > { %v1170_v10 = vpack.c.bf16 %v559_v7, %v558_v6  ;;  %v581_v7 = vld [vmem:[%s1253_s3 + $0x28] sm:$0xff] }
 0x105   : > { %v1172_v11 = vpack.c.bf16 %v557_v9, %v556_v8  ;;  %v975_v12 = vpop.f32.mrb[16].mxu0  ;;  %v580_v8 = vld [vmem:[%s1253_s3 + $0x20] sm:$0xff]  ;;  %v583_v9 = vld [vmem:[%s1253_s3 + $0x38] sm:$0xff] }
 0x106   : > { %v490_v13 = vadd.f32 %v975_v12, %v1140_v19  ;;  %v481_v14 = vpop.f32.mrb[17].mxu0  ;;  %v584_v12 = vld [vmem:[%s1253_s3 + $0x40] sm:$0xff] }
 0x107   : > { %v482_v15 = vadd.f32 %v1140_v19, %v481_v14  ;;  %v976_v16 = vpop.f32.mrb[18].mxu0  ;;  %v586_v14 = vld [vmem:[%s1253_s3 + $0x50] sm:$0xff] }
 0x108   : > { %v493_v17 = vadd.f32 %v976_v16, %v1140_v19  ;;  %v484_v18 = vpop.f32.mrb[19].mxu0  ;;  %v562_v21 = vmax.f32 %v490_v13, 0.0  ;;  %v587_v13 = vld [vmem:[%s1253_s3 + $0x58] sm:$0xff]  ;;  %v588_v16 = vld [vmem:[%s1253_s3 + $0x60] sm:$0xff] }
 0x109   : > { %v485_v20 = vadd.f32 %v1140_v19, %v484_v18  ;;  %v560_v23 = vmax.f32 %v482_v15, 0.0  ;;  %v589_v15 = vld [vmem:[%s1253_s3 + $0x68] sm:$0xff]  ;;  %v590_v18 = vld [vmem:[%s1253_s3 + $0x70] sm:$0xff] }
 0x10a   : > { %v563_v22 = vmax.f32 %v493_v17, 0.0  ;;  %v591_v17 = vld [vmem:[%s1253_s3 + $0x78] sm:$0xff] }
 0x10b   : > { %v561_v24 = vmax.f32 %v485_v20, 0.0 }
 0x10c   : > { %v993_v25 = vpack.c.bf16 %v563_v22, %v562_v21 }
 0x10d   : > { %v979_v26 = vpop.f32.mrb[20].mxu0  ;;  %v989_v27 = vpack.c.bf16 %v561_v24, %v560_v23 }
 0x10e   : > { %v506_v28 = vadd.f32 %v979_v26, %v1140_v19  ;;  %v497_v29 = vpop.f32.mrb[21].mxu0 }
 0x10f   : > { %v498_v30 = vadd.f32 %v1140_v19, %v497_v29  ;;  %v980_v31 = vpop.f32.mrb[22].mxu0  ;;  %990 = vmatprep.subr.bf16.mxu1 %v989_v27 }
 0x110   : > { %v509_v33 = vadd.f32 %v980_v31, %v1140_v19  ;;  %v500_v35 = vpop.f32.mrb[23].mxu0  ;;  %992 = vmatpush3.bf16.msra.mxu1 %v1148_v34  ;;  %v566_v37 = vmax.f32 %v506_v28, 0.0 }
 0x111   : > { %v501_v36 = vadd.f32 %v1140_v19, %v500_v35  ;;  %994 = vmatprep.subr.bf16.mxu1 %v993_v25  ;;  %v564_v39 = vmax.f32 %v498_v30, 0.0 }
 0x112   : > { %v567_v38 = vmax.f32 %v509_v33, 0.0 }
 0x113   : > { %v565_v40 = vmax.f32 %v501_v36, 0.0 }
 0x114   : > { %v1001_v41 = vpack.c.bf16 %v567_v38, %v566_v37  ;;  %996 = vmatpush3.bf16.msra.mxu1 %v1146_v32 }
 0x115   : > { %v997_v42 = vpack.c.bf16 %v565_v40, %v564_v39  ;;  %v983_v43 = vpop.f32.mrb[24].mxu0 }
 0x116   : > { %v522_v44 = vadd.f32 %v983_v43, %v1140_v19  ;;  %v513_v45 = vpop.f32.mrb[25].mxu0 }
 0x117   : > { %v514_v48 = vadd.f32 %v1140_v19, %v513_v45  ;;  %v984_v49 = vpop.f32.mrb[26].mxu0  ;;  %998 = vmatprep.subr.bf16.mxu1 %v997_v42 }
 0x118   : > { %v525_v34 = vadd.f32 %v984_v49, %v1140_v19  ;;  %v516_v50 = vpop.f32.mrb[27].mxu0  ;;  %1000 = vmatpush3.bf16.msra.mxu1 %v1156_v47  ;;  %v570_v52 = vmax.f32 %v522_v44, 0.0 }
 0x119   : > { %v517_v51 = vadd.f32 %v1140_v19, %v516_v50  ;;  %1002 = vmatprep.subr.bf16.mxu1 %v1001_v41  ;;  %v568_v32 = vmax.f32 %v514_v48, 0.0 }
 0x11a   : > { %v571_v53 = vmax.f32 %v525_v34, 0.0 }
 0x11b   : > { %v569_v54 = vmax.f32 %v517_v51, 0.0 }
 0x11c   : > { %v1009_v55 = vpack.c.bf16 %v571_v53, %v570_v52  ;;  %1004 = vmatpush3.bf16.msra.mxu1 %v1154_v46 }
 0x11d   : > { %v1005_v56 = vpack.c.bf16 %v569_v54, %v568_v32  ;;  %v987_v57 = vpop.f32.mrb[28].mxu0 }
 0x11e   : > { %v538_v58 = vadd.f32 %v987_v57, %v1140_v19  ;;  %v529_v59 = vpop.f32.mrb[29].mxu0 }
 0x11f   : > { %v530_v62 = vadd.f32 %v1140_v19, %v529_v59  ;;  %v988_v63 = vpop.f32.mrb[30].mxu0  ;;  %1006 = vmatprep.subr.bf16.mxu1 %v1005_v56 }
 0x120   : > { %v541_v47 = vadd.f32 %v988_v63, %v1140_v19  ;;  %v532_v0 = vpop.f32.mrb[31].mxu0  ;;  %1008 = vmatpush3.bf16.msra.mxu1 %v1164_v61  ;;  %v574_v2 = vmax.f32 %v538_v58, 0.0  ;;  %v576_v61 = vld [vmem:[%s1253_s3] sm:$0xff] }
 0x121   : > { %v533_v1 = vadd.f32 %v1140_v19, %v532_v0  ;;  %1010 = vmatprep.subr.bf16.mxu1 %v1009_v55  ;;  %v572_v46 = vmax.f32 %v530_v62, 0.0  ;;  %v579_v19 = vld [vmem:[%s1253_s3 + $0x18] sm:$0xff] }
 0x122   : > { %v575_v3 = vmax.f32 %v541_v47, 0.0 }
 0x123   : > { %v573_v4 = vmax.f32 %v533_v1, 0.0 }
 0x124   : > { %v1017_v5 = vpack.c.bf16 %v575_v3, %v574_v2  ;;  %1012 = vmatpush3.bf16.msra.mxu1 %v1162_v60  ;;  %v578_v60 = vld [vmem:[%s1253_s3 + $0x10] sm:$0xff] }
 0x125   : > { %v1013_v6 = vpack.c.bf16 %v573_v4, %v572_v46 }
 0x127   : > { %1014 = vmatprep.subr.bf16.mxu1 %v1013_v6 }
 0x128   : > { %1016 = vmatpush3.bf16.msra.mxu1 %v1172_v11  ;;  %v585_v11 = vld [vmem:[%s1253_s3 + $0x48] sm:$0xff] }
 0x129   : > { %1018 = vmatprep.subr.bf16.mxu1 %v1017_v5 }
 0x12c   : > { %1020 = vmatpush3.bf16.msra.mxu1 %v1170_v10  ;;  %v582_v10 = vld [vmem:[%s1253_s3 + $0x30] sm:$0xff] }
 0x12f   : > { %657 = vmatmul.mubr.f32.vlgmr.msra.gmra.mrb[0].mxu1 %v576_v61 }
 0x130   : > { %661 = vmatprep.mubr.f32.mxu1 %v579_v19 }
 0x133   : > { %662 = vmatmul.mubr.f32.gmra.mrb[2].mxu1 %v578_v60 }
 0x134   : > { %666 = vmatprep.mubr.f32.mxu1 %v581_v7 }
 0x137   : > { %667 = vmatmul.mubr.f32.gmra.mrb[4].mxu1 %v580_v8 }
 0x138   : > { %671 = vmatprep.mubr.f32.mxu1 %v583_v9 }
 0x13b   : > { %672 = vmatmul.mubr.f32.gmra.mrb[6].mxu1 %v582_v10 }
 0x13c   : > { %676 = vmatprep.mubr.f32.mxu1 %v585_v11 }
 0x13f   : > { %677 = vmatmul.mubr.f32.gmra.mrb[8].mxu1 %v584_v12 }
 0x140   : > { %681 = vmatprep.mubr.f32.mxu1 %v587_v13 }
 0x143   : > { %682 = vmatmul.mubr.f32.gmra.mrb[10].mxu1 %v586_v14 }
 0x144   : > { %686 = vmatprep.mubr.f32.mxu1 %v589_v15 }
 0x147   : > { %687 = vmatmul.mubr.f32.gmra.mrb[12].mxu1 %v588_v16 }
 0x148   : > { %691 = vmatprep.mubr.f32.mxu1 %v591_v17 }
 0x14b   : > { %692 = vmatmul.mubr.f32.gmra.mrb[14].mxu1 %v590_v18 }
 0x202   : > { %v929_v20 = vpop.f32.mrb[0].mxu1 }
 0x203   : > { %v930_v21 = vpop.f32.mrb[1].mxu1 }
 0x204   : > { %v931_v22 = vadd.f32 %v930_v21, %v929_v20 }
 0x206   : > { %v932_v23 = vpop.f32.mrb[2].mxu1 }
 0x207   : > { %v933_v24 = vpop.f32.mrb[3].mxu1 }
 0x208   : > { %v934_v25 = vadd.f32 %v933_v24, %v932_v23 }
 0x20a   : > { %v859_v26 = vpack.c.bf16 %v934_v25, %v931_v22  ;;  %v935_v27 = vpop.f32.mrb[4].mxu1 }
 0x20b   : > { %v936_v28 = vpop.f32.mrb[5].mxu1 }
 0x20c   : > { %860 = vst [vmem:[%s197_s12] sm:$0xff] %v859_v26   ;;  %v937_v29 = vadd.f32 %v936_v28, %v935_v27 }
 0x20e   : > { %v938_v30 = vpop.f32.mrb[6].mxu1 }
 0x20f   : > { %v939_v31 = vpop.f32.mrb[7].mxu1 }
 0x210   : > { %v940_v33 = vadd.f32 %v939_v31, %v938_v30 }
 0x212   : > { %v864_v35 = vpack.c.bf16 %v940_v33, %v937_v29  ;;  %v941_v36 = vpop.f32.mrb[8].mxu1 }
 0x213   : > { %v942_v37 = vpop.f32.mrb[9].mxu1 }
 0x214   : > { %876 = vst [vmem:[%s197_s12 + $0x8] sm:$0xff] %v864_v35   ;;  %v943_v38 = vadd.f32 %v942_v37, %v941_v36 }
 0x216   : > { %v944_v39 = vpop.f32.mrb[10].mxu1 }
 0x217   : > { %v945_v40 = vpop.f32.mrb[11].mxu1 }
 0x218   : > { %v946_v41 = vadd.f32 %v945_v40, %v944_v39 }
 0x21a   : > { %v869_v42 = vpack.c.bf16 %v946_v41, %v943_v38  ;;  %v947_v43 = vpop.f32.mrb[12].mxu1 }
 0x21b   : > { %v948_v44 = vpop.f32.mrb[13].mxu1 }
 0x21c   : > { %877 = vst [vmem:[%s197_s12 + $0x10] sm:$0xff] %v869_v42   ;;  %v949_v45 = vadd.f32 %v948_v44, %v947_v43 }
 0x21e   : > { %v950_v48 = vpop.f32.mrb[14].mxu1 }
 0x21f   : > { %v951_v49 = vpop.f32.mrb[15].mxu1 }
 0x220   : > { %v952_v34 = vadd.f32 %v951_v49, %v950_v48 }
 0x222   : > { %v874_v50 = vpack.c.bf16 %v952_v34, %v949_v45 }
 0x224   : > { %878 = vst [vmem:[%s197_s12 + $0x18] sm:$0xff] %v874_v50  }
 0x225 PF: > { %s14_s15 = sadd.s32 1, %s1053_s15  }
 0x226   : > { %p11_p4 = scmp.ge.s32.totalorder %s14_s15, 4  }
 0x228   :  { %13 = sbr.rel (!%p11_p4) target bundleno = 1 (0x1), region = 66 }

// kernel: forward.6
= control target key start
LH: loop header
LB: loop body
LE: loop exit
PB: predicated region body
PF: predicated region fallthrough
CT: control target
= control target key end

     0   :  { %s2442_s15 = smov 0   ;;  %s2977_s0 = inlined_call_operand.vmem [shape: bf16[2,64,1152], index: 0, kind: input, shape index: {}]   ;;  %s2978_s1 = inlined_call_operand.vmem [shape: bf16[1152,256], index: 1, kind: input, shape index: {}]   ;;  %s2979_s2 = inlined_call_operand.vmem [shape: f32[1,256], index: 2, kind: input, shape index: {}]   ;;  %s2980_s3 = inlined_call_operand.vmem [shape: f32[16,64], index: 3, kind: input, shape index: {}]   ;;  %s2981_s4 = inlined_call_operand.vmem [shape: bf16[2,16,256], index: 4, kind: output, shape index: {}]  }
   0x1 LB: > { %s1835_s16 = sadd.s32 4294967295, %s2413_s15   ;;  %p1839_p0 = scmp.ge.s32.totalorder %s2413_s15, 1  ;;  %s2413_s15 = sphi %s2442_s15, %s14_s15  }
   0x2   : > { %p162_p1 = scmp.lt.s32.totalorder %s2413_s15, 3 }
   0x4   : > { %p163_p2 = pnand %p1839_p0, %p162_p1 }
   0x5   : > { %v2139_v0 = vld [vmem:[%s2978_s1 + $0x4] ss:$8 sps:$4 sm:$0xff] (!%p163_p2)   ;;  %v2143_v2 = vld [vmem:[%s2978_s1] ss:$8 sps:$4 sm:$0xff] (!%p163_p2)   ;;  %v2145_v4 = vld [vmem:[%s2978_s1 + $0x14] ss:$8 sps:$4 sm:$0xff] (!%p163_p2)  }
   0x6   : > { %166 = sbr.rel (%p163_p2) target bundleno = 636 (0x27c), region = 36  ;;  %v2141_v1 = vld [vmem:[%s2978_s1 + $0x204] ss:$8 sps:$4 sm:$0xff] (!%p163_p2)   ;;  %1299 = vmatprep.subr.bf16.mxu1 (!%p163_p2), %v2139_v0  ;;  %v2144_v3 = vld [vmem:[%s2978_s1 + $0x200] ss:$8 sps:$4 sm:$0xff] (!%p163_p2)   ;;  %p188_p3 = scmp.lt.s32.totalorder (!%p163_p2), %s1835_s16, 1 }
   0x7   : > { %1445 = vmatprep.subr.bf16.mxu0 (!%p163_p2), %v2141_v1  ;;  %1300 = vmatpush1.bf16.msra.mxu1 (!%p163_p2), %v2143_v2  ;;  %v2147_v5 = vld [vmem:[%s2978_s1 + $0x214] ss:$8 sps:$4 sm:$0xff] (!%p163_p2)   ;;  %v2149_v6 = vld [vmem:[%s2978_s1 + $0x10] ss:$8 sps:$4 sm:$0xff] (!%p163_p2)   ;;  %v2151_v8 = vld [vmem:[%s2978_s1 + $0x24] ss:$8 sps:$4 sm:$0xff] (!%p163_p2)  }
   0x8   : > { %1446 = vmatpush1.bf16.msra.mxu0 (!%p163_p2), %v2144_v3  ;;  %1301 = vmatprep.subr.bf16.mxu1 (!%p163_p2), %v2145_v4  ;;  %v2150_v7 = vld [vmem:[%s2978_s1 + $0x210] ss:$8 sps:$4 sm:$0xff] (!%p163_p2)   ;;  %v2153_v9 = vld [vmem:[%s2978_s1 + $0x224] ss:$8 sps:$4 sm:$0xff] (!%p163_p2)   ;;  %v2155_v10 = vld [vmem:[%s2978_s1 + $0x20] ss:$8 sps:$4 sm:$0xff] (!%p163_p2)  }
   0x9   : > { %1447 = vmatprep.subr.bf16.mxu0 (!%p163_p2), %v2147_v5  ;;  %v2156_v11 = vld [vmem:[%s2978_s1 + $0x220] ss:$8 sps:$4 sm:$0xff] (!%p163_p2)   ;;  %v2157_v12 = vld [vmem:[%s2978_s1 + $0x34] ss:$8 sps:$4 sm:$0xff] (!%p163_p2)   ;;  %v2161_v14 = vld [vmem:[%s2978_s1 + $0x30] ss:$8 sps:$4 sm:$0xff] (!%p163_p2)  }
   0xa   : > { %v2159_v13 = vld [vmem:[%s2978_s1 + $0x234] ss:$8 sps:$4 sm:$0xff] (!%p163_p2)   ;;  %v2162_v15 = vld [vmem:[%s2978_s1 + $0x230] ss:$8 sps:$4 sm:$0xff] (!%p163_p2)   ;;  %v2163_v16 = vld [vmem:[%s2978_s1 + $0x44] ss:$8 sps:$4 sm:$0xff] (!%p163_p2)  }
   0xb   : > { %1302 = vmatpush1.bf16.msra.mxu1 (!%p163_p2), %v2149_v6  ;;  %v2165_v17 = vld [vmem:[%s2978_s1 + $0x244] ss:$8 sps:$4 sm:$0xff] (!%p163_p2)   ;;  %v2167_v18 = vld [vmem:[%s2978_s1 + $0x40] ss:$8 sps:$4 sm:$0xff] (!%p163_p2)   ;;  %v2169_v20 = vld [vmem:[%s2978_s1 + $0x54] ss:$8 sps:$4 sm:$0xff] (!%p163_p2)  }
   0xc   : > { %1448 = vmatpush1.bf16.msra.mxu0 (!%p163_p2), %v2150_v7  ;;  %1303 = vmatprep.subr.bf16.mxu1 (!%p163_p2), %v2151_v8  ;;  %v2168_v19 = vld [vmem:[%s2978_s1 + $0x240] ss:$8 sps:$4 sm:$0xff] (!%p163_p2)   ;;  %v2171_v21 = vld [vmem:[%s2978_s1 + $0x254] ss:$8 sps:$4 sm:$0xff] (!%p163_p2)   ;;  %v2173_v22 = vld [vmem:[%s2978_s1 + $0x50] ss:$8 sps:$4 sm:$0xff] (!%p163_p2)  }
   0xd   : > { %1449 = vmatprep.subr.bf16.mxu0 %v2153_v9  ;;  %v2174_v23 = vld [vmem:[%s2978_s1 + $0x250] ss:$8 sps:$4 sm:$0xff]   ;;  %v2175_v24 = vld [vmem:[%s2978_s1 + $0x64] ss:$8 sps:$4 sm:$0xff]   ;;  %v2179_v26 = vld [vmem:[%s2978_s1 + $0x60] ss:$8 sps:$4 sm:$0xff]  }
   0xe   : > { %v2177_v25 = vld [vmem:[%s2978_s1 + $0x264] ss:$8 sps:$4 sm:$0xff]   ;;  %v2180_v27 = vld [vmem:[%s2978_s1 + $0x260] ss:$8 sps:$4 sm:$0xff]   ;;  %v2181_v28 = vld [vmem:[%s2978_s1 + $0x74] ss:$8 sps:$4 sm:$0xff]  }
   0xf   : > { %1304 = vmatpush1.bf16.msra.mxu1 %v2155_v10  ;;  %v2183_v29 = vld [vmem:[%s2978_s1 + $0x274] ss:$8 sps:$4 sm:$0xff]   ;;  %v2185_v30 = vld [vmem:[%s2978_s1 + $0x70] ss:$8 sps:$4 sm:$0xff]   ;;  %v2187_v32 = vld [vmem:[%s2978_s1 + $0x84] ss:$8 sps:$4 sm:$0xff]  }
  0x10   : > { %1450 = vmatpush1.bf16.msra.mxu0 %v2156_v11  ;;  %1305 = vmatprep.subr.bf16.mxu1 %v2157_v12  ;;  %v2186_v31 = vld [vmem:[%s2978_s1 + $0x270] ss:$8 sps:$4 sm:$0xff]   ;;  %v2189_v33 = vld [vmem:[%s2978_s1 + $0x284] ss:$8 sps:$4 sm:$0xff]   ;;  %v2191_v34 = vld [vmem:[%s2978_s1 + $0x80] ss:$8 sps:$4 sm:$0xff]  }
  0x11   : > { %1451 = vmatprep.subr.bf16.mxu0 %v2159_v13  ;;  %v2192_v35 = vld [vmem:[%s2978_s1 + $0x280] ss:$8 sps:$4 sm:$0xff]   ;;  %v2193_v36 = vld [vmem:[%s2978_s1 + $0x94] ss:$8 sps:$4 sm:$0xff]   ;;  %s2983_s16 = smov (!%p188_p3, %s1835_s16), 1  ;;  %vm1682_vm0 = vcmask 523264  }
  0x12   : > { %v2195_v37 = vld [vmem:[%s2978_s1 + $0x294] ss:$8 sps:$4 sm:$0xff]   ;;  %v2197_v38 = vld [vmem:[%s2978_s1 + $0x90] ss:$8 sps:$4 sm:$0xff]   ;;  %v2199_v40 = vld [vmem:[%s2978_s1 + $0xa4] ss:$8 sps:$4 sm:$0xff]  }
  0x13   : > { %1306 = vmatpush1.bf16.msra.mxu1 %v2161_v14  ;;  %v2198_v39 = vld [vmem:[%s2978_s1 + $0x290] ss:$8 sps:$4 sm:$0xff]   ;;  %s2128_s27 = smul.u32 288, %s2983_s16  ;;  %v2201_v41 = vld [vmem:[%s2978_s1 + $0x2a4] ss:$8 sps:$4 sm:$0xff]   ;;  %s2029_s8 = sshll.u32 %s2983_s16, 4 }
  0x14   : > { %1452 = vmatpush1.bf16.msra.mxu0 %v2162_v15  ;;  %1307 = vmatprep.subr.bf16.mxu1 %v2163_v16  ;;  %v2203_v42 = vld [vmem:[%s2978_s1 + $0xa0] ss:$8 sps:$4 sm:$0xff]   ;;  %v2205_v44 = vld [vmem:[%s2978_s1 + $0xb4] ss:$8 sps:$4 sm:$0xff]   ;;  %v2209_v46 = vld [vmem:[%s2978_s1 + $0xb0] ss:$8 sps:$4 sm:$0xff]   ;;  %s197_s11 = scalar_lea.vmem %s2981_s4, %s2029_s8 }
  0x15   : > { %1453 = vmatprep.subr.bf16.mxu0 %v2165_v17  ;;  %v2204_v43 = vld [vmem:[%s2978_s1 + $0x2a0] ss:$8 sps:$4 sm:$0xff]   ;;  %s2595_s12 = scalar_lea.vmem %s2977_s0, %s2128_s27  ;;  %v2207_v45 = vld [vmem:[%s2978_s1 + $0x2b4] ss:$8 sps:$4 sm:$0xff]   ;;  %v2210_v47 = vld [vmem:[%s2978_s1 + $0x2b0] ss:$8 sps:$4 sm:$0xff]  }
  0x16   : > { %v2237_v48 = vld [vmem:[%s2595_s12 + $0x4] ss:$36 sps:$4 sm:$0xff]   ;;  %v2243_v51 = vld [vmem:[%s2595_s12 + $0x14] ss:$36 sps:$4 sm:$0xff]  }
  0x17   : > { %1308 = vmatpush1.bf16.msra.mxu1 %v2167_v18  ;;  %v2211_v49 = vld [vmem:[%s2978_s1 + $0xc4] ss:$8 sps:$4 sm:$0xff]   ;;  %1331 = vmatprep.mubr.bf16.mxu1 %v2237_v48  ;;  %v2215_v52 = vld [vmem:[%s2978_s1 + $0xc0] ss:$8 sps:$4 sm:$0xff]   ;;  %v2217_v54 = vld [vmem:[%s2978_s1 + $0xd4] ss:$8 sps:$4 sm:$0xff]  }
  0x18   : > { %1454 = vmatpush1.bf16.msra.mxu0 %v2168_v19  ;;  %1309 = vmatprep.subr.bf16.mxu1 %v2169_v20  ;;  %v2213_v50 = vld [vmem:[%s2978_s1 + $0x2c4] ss:$8 sps:$4 sm:$0xff]   ;;  %v2216_v53 = vld [vmem:[%s2978_s1 + $0x2c0] ss:$8 sps:$4 sm:$0xff]   ;;  %v2219_v55 = vld [vmem:[%s2978_s1 + $0x2d4] ss:$8 sps:$4 sm:$0xff]  }
  0x19   : > { %1455 = vmatprep.subr.bf16.mxu0 %v2171_v21  ;;  %1477 = vmatprep.mubr.bf16.mxu0 %v2243_v51  ;;  %v2221_v56 = vld [vmem:[%s2978_s1 + $0xd0] ss:$8 sps:$4 sm:$0xff]   ;;  %v2223_v58 = vld [vmem:[%s2978_s1 + $0xe4] ss:$8 sps:$4 sm:$0xff]   ;;  %v2227_v60 = vld [vmem:[%s2978_s1 + $0xe0] ss:$8 sps:$4 sm:$0xff]  }
  0x1a   : > { %v2222_v57 = vld [vmem:[%s2978_s1 + $0x2d0] ss:$8 sps:$4 sm:$0xff]   ;;  %v2225_v59 = vld [vmem:[%s2978_s1 + $0x2e4] ss:$8 sps:$4 sm:$0xff]   ;;  %v2228_v61 = vld [vmem:[%s2978_s1 + $0x2e0] ss:$8 sps:$4 sm:$0xff]  }
  0x1b   : > { %1310 = vmatpush1.bf16.msra.mxu1 %v2173_v22  ;;  %v2229_v62 = vld [vmem:[%s2978_s1 + $0xf4] ss:$8 sps:$4 sm:$0xff]   ;;  %v2233_v0 = vld [vmem:[%s2978_s1 + $0xf0] ss:$8 sps:$4 sm:$0xff]   ;;  %v2240_v2 = vld [vmem:[%s2978_s1 + $0x104] ss:$8 sps:$4 sm:$0xff]  }
  0x1c   : > { %1456 = vmatpush1.bf16.msra.mxu0 %v2174_v23  ;;  %1311 = vmatprep.subr.bf16.mxu1 %v2175_v24  ;;  %v2231_v63 = vld [vmem:[%s2978_s1 + $0x2f4] ss:$8 sps:$4 sm:$0xff]   ;;  %v2234_v1 = vld [vmem:[%s2978_s1 + $0x2f0] ss:$8 sps:$4 sm:$0xff]   ;;  %v2246_v3 = vld [vmem:[%s2978_s1 + $0x304] ss:$8 sps:$4 sm:$0xff]  }
  0x1d   : > { %1457 = vmatprep.subr.bf16.mxu0 %v2177_v25  ;;  %v2235_v4 = vld [vmem:[%s2595_s12] ss:$36 sps:$4 sm:$0xff]   ;;  %v2241_v6 = vld [vmem:[%s2595_s12 + $0x10] ss:$36 sps:$4 sm:$0xff]   ;;  %v2305_v20 = vld [vmem:[%s2595_s12 + $0x48] ss:$36 sps:$4 sm:$0xff]  }
  0x1e   : > { %v2238_v5 = vld [vmem:[%s2978_s1 + $0x100] ss:$8 sps:$4 sm:$0xff]   ;;  %v2249_v8 = vld [vmem:[%s2978_s1 + $0x114] ss:$8 sps:$4 sm:$0xff]   ;;  %v2247_v10 = vld [vmem:[%s2978_s1 + $0x110] ss:$8 sps:$4 sm:$0xff]  }
  0x1f   : > { %1312 = vmatpush1.bf16.msra.mxu1 %v2179_v26  ;;  %v2244_v7 = vld [vmem:[%s2978_s1 + $0x300] ss:$8 sps:$4 sm:$0xff]   ;;  %v2252_v9 = vld [vmem:[%s2978_s1 + $0x314] ss:$8 sps:$4 sm:$0xff]   ;;  %v2250_v11 = vld [vmem:[%s2978_s1 + $0x310] ss:$8 sps:$4 sm:$0xff]  }
  0x20   : > { %1458 = vmatpush1.bf16.msra.mxu0 %v2180_v27  ;;  %1313 = vmatprep.subr.bf16.mxu1 %v2181_v28  ;;  %v2255_v12 = vld [vmem:[%s2978_s1 + $0x124] ss:$8 sps:$4 sm:$0xff]   ;;  %v2253_v14 = vld [vmem:[%s2978_s1 + $0x120] ss:$8 sps:$4 sm:$0xff]   ;;  %v2261_v16 = vld [vmem:[%s2978_s1 + $0x134] ss:$8 sps:$4 sm:$0xff]  }
  0x21   : > { %1459 = vmatprep.subr.bf16.mxu0 %v2183_v29  ;;  %v2258_v13 = vld [vmem:[%s2978_s1 + $0x324] ss:$8 sps:$4 sm:$0xff]   ;;  %v2256_v15 = vld [vmem:[%s2978_s1 + $0x320] ss:$8 sps:$4 sm:$0xff]   ;;  %v2264_v17 = vld [vmem:[%s2978_s1 + $0x334] ss:$8 sps:$4 sm:$0xff]  }
  0x22   : > { %v2301_v18 = vld [vmem:[%s2595_s12 + $0x4c] ss:$36 sps:$4 sm:$0xff]   ;;  %v2303_v19 = vld [vmem:[%s2595_s12 + $0x5c] ss:$36 sps:$4 sm:$0xff]  }
  0x23   : > { %1314 = vmatpush1.bf16.msra.mxu1 %v2185_v30  ;;  %v2259_v21 = vld [vmem:[%s2978_s1 + $0x130] ss:$8 sps:$4 sm:$0xff]   ;;  %v2267_v24 = vld [vmem:[%s2978_s1 + $0x144] ss:$8 sps:$4 sm:$0xff]   ;;  %v2265_v26 = vld [vmem:[%s2978_s1 + $0x140] ss:$8 sps:$4 sm:$0xff]  }
  0x24   : > { %1460 = vmatpush1.bf16.msra.mxu0 %v2186_v31  ;;  %1315 = vmatprep.subr.bf16.mxu1 %v2187_v32  ;;  %v2262_v22 = vld [vmem:[%s2978_s1 + $0x330] ss:$8 sps:$4 sm:$0xff]   ;;  %v2270_v25 = vld [vmem:[%s2978_s1 + $0x344] ss:$8 sps:$4 sm:$0xff]   ;;  %v2268_v27 = vld [vmem:[%s2978_s1 + $0x340] ss:$8 sps:$4 sm:$0xff]  }
  0x25   : > { %1461 = vmatprep.subr.bf16.mxu0 %v2189_v33  ;;  %v2309_v23 = vld [vmem:[%s2595_s12 + $0x58] ss:$36 sps:$4 sm:$0xff]   ;;  %v2321_v31 = vld [vmem:[%s2595_s12 + $0xa4] ss:$36 sps:$4 sm:$0xff]   ;;  %v2323_v32 = vld [vmem:[%s2595_s12 + $0x90] ss:$36 sps:$4 sm:$0xff]  }
  0x26   : > { %v2273_v28 = vld [vmem:[%s2978_s1 + $0x154] ss:$8 sps:$4 sm:$0xff]   ;;  %v2271_v33 = vld [vmem:[%s2978_s1 + $0x150] ss:$8 sps:$4 sm:$0xff]   ;;  %v2291_v48 = vld [vmem:[%s2978_s1 + $0x184] ss:$8 sps:$4 sm:$0xff]  }
  0x27   : > { %1316 = vmatpush1.bf16.msra.mxu1 %v2191_v34  ;;  %v2276_v29 = vld [vmem:[%s2978_s1 + $0x354] ss:$8 sps:$4 sm:$0xff]   ;;  %v2274_v34 = vld [vmem:[%s2978_s1 + $0x350] ss:$8 sps:$4 sm:$0xff]   ;;  %v2292_v51 = vld [vmem:[%s2978_s1 + $0x380] ss:$8 sps:$4 sm:$0xff]  }
  0x28   : > { %1462 = vmatpush1.bf16.msra.mxu0 %v2192_v35  ;;  %1317 = vmatprep.subr.bf16.mxu1 %v2193_v36  ;;  %v2319_v30 = vld [vmem:[%s2595_s12 + $0x94] ss:$36 sps:$4 sm:$0xff]   ;;  %v2327_v35 = vld [vmem:[%s2595_s12 + $0xa0] ss:$36 sps:$4 sm:$0xff]  }
  0x29   : > { %1463 = vmatprep.subr.bf16.mxu0 %v2195_v37  ;;  %v2279_v36 = vld [vmem:[%s2978_s1 + $0x164] ss:$8 sps:$4 sm:$0xff]  }
  0x2a   : > { %v2282_v37 = vld [vmem:[%s2978_s1 + $0x364] ss:$8 sps:$4 sm:$0xff]  }
  0x2b   : > { %1318 = vmatpush1.bf16.msra.mxu1 %v2197_v38  ;;  %v2277_v38 = vld [vmem:[%s2978_s1 + $0x160] ss:$8 sps:$4 sm:$0xff]  }
  0x2c   : > { %1464 = vmatpush1.bf16.msra.mxu0 %v2198_v39  ;;  %1319 = vmatprep.subr.bf16.mxu1 %v2199_v40  ;;  %v2280_v39 = vld [vmem:[%s2978_s1 + $0x360] ss:$8 sps:$4 sm:$0xff]   ;;  %v2285_v40 = vld [vmem:[%s2978_s1 + $0x174] ss:$8 sps:$4 sm:$0xff]  }
  0x2d   : > { %1465 = vmatprep.subr.bf16.mxu0 %v2201_v41  ;;  %v2288_v41 = vld [vmem:[%s2978_s1 + $0x374] ss:$8 sps:$4 sm:$0xff]  }
  0x2f   : > { %1320 = vmatpush1.bf16.msra.mxu1 %v2203_v42  ;;  %v2337_v42 = vld [vmem:[%s2595_s12 + $0xdc] ss:$36 sps:$4 sm:$0xff]  }
  0x30   : > { %1466 = vmatpush1.bf16.msra.mxu0 %v2204_v43  ;;  %1321 = vmatprep.subr.bf16.mxu1 %v2205_v44  ;;  %v2339_v43 = vld [vmem:[%s2595_s12 + $0xec] ss:$36 sps:$4 sm:$0xff]   ;;  %v2341_v44 = vld [vmem:[%s2595_s12 + $0xd8] ss:$36 sps:$4 sm:$0xff]  }
  0x31   : > { %1467 = vmatprep.subr.bf16.mxu0 %v2207_v45  ;;  %v2283_v45 = vld [vmem:[%s2978_s1 + $0x170] ss:$8 sps:$4 sm:$0xff]  }
  0x33   : > { %1322 = vmatpush1.bf16.msra.mxu1 %v2209_v46  ;;  %v2286_v46 = vld [vmem:[%s2978_s1 + $0x370] ss:$8 sps:$4 sm:$0xff]  }
  0x34   : > { %1468 = vmatpush1.bf16.msra.mxu0 %v2210_v47  ;;  %1323 = vmatprep.subr.bf16.mxu1 %v2211_v49  ;;  %v2345_v47 = vld [vmem:[%s2595_s12 + $0xe8] ss:$36 sps:$4 sm:$0xff]  }
  0x35   : > { %1469 = vmatprep.subr.bf16.mxu0 %v2213_v50  ;;  %v2294_v49 = vld [vmem:[%s2978_s1 + $0x384] ss:$8 sps:$4 sm:$0xff]   ;;  %v2289_v50 = vld [vmem:[%s2978_s1 + $0x180] ss:$8 sps:$4 sm:$0xff]  }
  0x37   : > { %1324 = vmatpush1.bf16.msra.mxu1 %v2215_v52  ;;  %v2297_v52 = vld [vmem:[%s2978_s1 + $0x194] ss:$8 sps:$4 sm:$0xff]  }
  0x38   : > { %1470 = vmatpush1.bf16.msra.mxu0 %v2216_v53  ;;  %1325 = vmatprep.subr.bf16.mxu1 %v2217_v54  ;;  %v2300_v53 = vld [vmem:[%s2978_s1 + $0x394] ss:$8 sps:$4 sm:$0xff]   ;;  %v2357_v54 = vld [vmem:[%s2595_s12 + $0xc] ss:$36 sps:$4 sm:$0xff]  }
  0x39   : > { %1471 = vmatprep.subr.bf16.mxu0 %v2219_v55  ;;  %v2360_v55 = vld [vmem:[%s2595_s12 + $0x1c] ss:$36 sps:$4 sm:$0xff]  }
  0x3b   : > { %1326 = vmatpush1.bf16.msra.mxu1 %v2221_v56  ;;  %v2295_v56 = vld [vmem:[%s2978_s1 + $0x190] ss:$8 sps:$4 sm:$0xff]  }
  0x3c   : > { %1472 = vmatpush1.bf16.msra.mxu0 %v2222_v57  ;;  %1327 = vmatprep.subr.bf16.mxu1 %v2223_v58  ;;  %v2298_v57 = vld [vmem:[%s2978_s1 + $0x390] ss:$8 sps:$4 sm:$0xff]   ;;  %v2308_v58 = vld [vmem:[%s2978_s1 + $0x1a4] ss:$8 sps:$4 sm:$0xff]  }
  0x3d   : > { %1473 = vmatprep.subr.bf16.mxu0 %v2225_v59  ;;  %v2312_v59 = vld [vmem:[%s2978_s1 + $0x3a4] ss:$8 sps:$4 sm:$0xff]  }
  0x3f   : > { %1328 = vmatpush1.bf16.msra.mxu1 %v2227_v60  ;;  %v2306_v60 = vld [vmem:[%s2978_s1 + $0x1a0] ss:$8 sps:$4 sm:$0xff]  }
  0x40   : > { %1474 = vmatpush1.bf16.msra.mxu0 %v2228_v61  ;;  %1329 = vmatprep.subr.bf16.mxu1 %v2229_v62  ;;  %v2310_v61 = vld [vmem:[%s2978_s1 + $0x3a0] ss:$8 sps:$4 sm:$0xff]   ;;  %v2315_v62 = vld [vmem:[%s2978_s1 + $0x1b4] ss:$8 sps:$4 sm:$0xff]  }
  0x41   : > { %1475 = vmatprep.subr.bf16.mxu0 %v2231_v63  ;;  %v2318_v63 = vld [vmem:[%s2978_s1 + $0x3b4] ss:$8 sps:$4 sm:$0xff]  }
  0x43   : > { %1330 = vmatpush1.bf16.msra.mxu1 %v2233_v0  ;;  %v2313_v0 = vld [vmem:[%s2978_s1 + $0x1b0] ss:$8 sps:$4 sm:$0xff]  }
  0x44   : > { %1476 = vmatpush1.bf16.msra.mxu0 %v2234_v1  ;;  %1372 = vmatprep.subr.bf16.mxu1 %v2240_v2  ;;  %v2316_v1 = vld [vmem:[%s2978_s1 + $0x3b0] ss:$8 sps:$4 sm:$0xff]   ;;  %v2326_v2 = vld [vmem:[%s2978_s1 + $0x1c4] ss:$8 sps:$4 sm:$0xff]  }
  0x45   : > { %1518 = vmatprep.subr.bf16.mxu0 %v2246_v3  ;;  %v2330_v3 = vld [vmem:[%s2978_s1 + $0x3c4] ss:$8 sps:$4 sm:$0xff]  }
  0x46   : > { %1332 = vmatmul.mubr.bf16.vlgmr.msra.gmra.mrb[0].mxu1 %v2235_v4  ;;  %v2324_v4 = vld [vmem:[%s2978_s1 + $0x1c0] ss:$8 sps:$4 sm:$0xff]  }
  0x47   : > { %1478 = vmatmul.mubr.bf16.vlgmr.msra.gmra.mrb[0].mxu0 %v2241_v6  ;;  %1373 = vmatpush1.bf16.msra.mxu1 %v2238_v5  ;;  %v2328_v5 = vld [vmem:[%s2978_s1 + $0x3c0] ss:$8 sps:$4 sm:$0xff]   ;;  %v2333_v6 = vld [vmem:[%s2978_s1 + $0x1d4] ss:$8 sps:$4 sm:$0xff]  }
  0x48   : > { %1519 = vmatpush1.bf16.msra.mxu0 %v2244_v7  ;;  %1374 = vmatprep.subr.bf16.mxu1 %v2249_v8  ;;  %v2336_v7 = vld [vmem:[%s2978_s1 + $0x3d4] ss:$8 sps:$4 sm:$0xff]   ;;  %v2331_v8 = vld [vmem:[%s2978_s1 + $0x1d0] ss:$8 sps:$4 sm:$0xff]  }
  0x49   : > { %1520 = vmatprep.subr.bf16.mxu0 %v2252_v9  ;;  %1341 = vmatprep.mubr.bf16.mxu1 %v2301_v18  ;;  %v2334_v9 = vld [vmem:[%s2978_s1 + $0x3d0] ss:$8 sps:$4 sm:$0xff]   ;;  %v2363_v18 = vld [vmem:[%s2978_s1 + $0x404] ss:$8 sps:$4 sm:$0xff]  }
  0x4a   : > { %1487 = vmatprep.mubr.bf16.mxu0 %v2303_v19  ;;  %v2355_v19 = vld [vmem:[%s2595_s12 + $0x8] ss:$36 sps:$4 sm:$0xff]  }
  0x4b   : > { %1375 = vmatpush1.bf16.msra.mxu1 %v2247_v10  ;;  %v2344_v10 = vld [vmem:[%s2978_s1 + $0x1e4] ss:$8 sps:$4 sm:$0xff]  }
  0x4c   : > { %1521 = vmatpush1.bf16.msra.mxu0 %v2250_v11  ;;  %1376 = vmatprep.subr.bf16.mxu1 %v2255_v12  ;;  %v2348_v11 = vld [vmem:[%s2978_s1 + $0x3e4] ss:$8 sps:$4 sm:$0xff]   ;;  %v2342_v12 = vld [vmem:[%s2978_s1 + $0x1e0] ss:$8 sps:$4 sm:$0xff]  }
  0x4d   : > { %1522 = vmatprep.subr.bf16.mxu0 %v2258_v13  ;;  %v2346_v13 = vld [vmem:[%s2978_s1 + $0x3e0] ss:$8 sps:$4 sm:$0xff]  }
  0x4e   : > { %1342 = vmatmul.mubr.bf16.gmra.mrb[4].mxu1 %v2305_v20  ;;  %v2358_v20 = vld [vmem:[%s2595_s12 + $0x18] ss:$36 sps:$4 sm:$0xff]  }
  0x4f   : > { %1377 = vmatpush1.bf16.msra.mxu1 %v2253_v14  ;;  %1488 = vmatmul.mubr.bf16.gmra.mrb[4].mxu0 %v2309_v23  ;;  %v2351_v14 = vld [vmem:[%s2978_s1 + $0x1f4] ss:$8 sps:$4 sm:$0xff]  }
  0x50   : > { %1523 = vmatpush1.bf16.msra.mxu0 %v2256_v15  ;;  %1378 = vmatprep.subr.bf16.mxu1 %v2261_v16  ;;  %v2354_v15 = vld [vmem:[%s2978_s1 + $0x3f4] ss:$8 sps:$4 sm:$0xff]   ;;  %v2349_v16 = vld [vmem:[%s2978_s1 + $0x1f0] ss:$8 sps:$4 sm:$0xff]  }
  0x51   : > { %1524 = vmatprep.subr.bf16.mxu0 %v2264_v17  ;;  %1351 = vmatprep.mubr.bf16.mxu1 %v2319_v30  ;;  %v2352_v17 = vld [vmem:[%s2978_s1 + $0x3f0] ss:$8 sps:$4 sm:$0xff]   ;;  %v2366_v23 = vld [vmem:[%s2978_s1 + $0x414] ss:$8 sps:$4 sm:$0xff]  }
  0x52   : > { %1497 = vmatprep.mubr.bf16.mxu0 %v2321_v31  ;;  %v2379_v30 = vld [vmem:[%s2595_s12 + $0x9c] ss:$36 sps:$4 sm:$0xff]  }
  0x53   : > { %1379 = vmatpush1.bf16.msra.mxu1 %v2259_v21  ;;  %v2361_v21 = vld [vmem:[%s2978_s1 + $0x400] ss:$8 sps:$4 sm:$0xff]   ;;  %v2378_v31 = vld [vmem:[%s2978_s1 + $0x434] ss:$8 sps:$4 sm:$0xff]  }
  0x54   : > { %1525 = vmatpush1.bf16.msra.mxu0 %v2262_v22  ;;  %1380 = vmatprep.subr.bf16.mxu1 %v2267_v24  ;;  %v2367_v22 = vld [vmem:[%s2595_s12 + $0x54] ss:$36 sps:$4 sm:$0xff]   ;;  %v2369_v24 = vld [vmem:[%s2595_s12 + $0x64] ss:$36 sps:$4 sm:$0xff]  }
  0x55   : > { %1526 = vmatprep.subr.bf16.mxu0 %v2270_v25  ;;  %v2364_v25 = vld [vmem:[%s2978_s1 + $0x410] ss:$8 sps:$4 sm:$0xff]  }
  0x56   : > { %1352 = vmatmul.mubr.bf16.gmra.mrb[8].mxu1 %v2323_v32  ;;  %v2381_v32 = vld [vmem:[%s2595_s12 + $0xac] ss:$36 sps:$4 sm:$0xff]  }
  0x57   : > { %1381 = vmatpush1.bf16.msra.mxu1 %v2265_v26  ;;  %1498 = vmatmul.mubr.bf16.gmra.mrb[8].mxu0 %v2327_v35  ;;  %v2375_v26 = vld [vmem:[%s2978_s1 + $0x424] ss:$8 sps:$4 sm:$0xff]   ;;  %v2383_v35 = vld [vmem:[%s2595_s12 + $0x98] ss:$36 sps:$4 sm:$0xff]  }
  0x58   : > { %1527 = vmatpush1.bf16.msra.mxu0 %v2268_v27  ;;  %1382 = vmatprep.subr.bf16.mxu1 %v2273_v28  ;;  %v2371_v27 = vld [vmem:[%s2595_s12 + $0x50] ss:$36 sps:$4 sm:$0xff]   ;;  %v2372_v28 = vld [vmem:[%s2595_s12 + $0x60] ss:$36 sps:$4 sm:$0xff]  }
  0x59   : > { %1528 = vmatprep.subr.bf16.mxu0 %v2276_v29  ;;  %1361 = vmatprep.mubr.bf16.mxu1 %v2337_v42  ;;  %v2373_v29 = vld [vmem:[%s2978_s1 + $0x420] ss:$8 sps:$4 sm:$0xff]   ;;  %v2399_v42 = vld [vmem:[%s2978_s1 + $0x464] ss:$8 sps:$4 sm:$0xff]  }
  0x5a   : > { %1507 = vmatprep.mubr.bf16.mxu0 %v2339_v43  ;;  %v2395_v43 = vld [vmem:[%s2595_s12 + $0xe0] ss:$36 sps:$4 sm:$0xff]  }
  0x5b   : > { %1383 = vmatpush1.bf16.msra.mxu1 %v2271_v33  ;;  %v2376_v33 = vld [vmem:[%s2978_s1 + $0x430] ss:$8 sps:$4 sm:$0xff]  }
  0x5c   : > { %1529 = vmatpush1.bf16.msra.mxu0 %v2274_v34  ;;  %1384 = vmatprep.subr.bf16.mxu1 %v2279_v36  ;;  %v2387_v34 = vld [vmem:[%s2978_s1 + $0x444] ss:$8 sps:$4 sm:$0xff]  }
  0x5d   : > { %1530 = vmatprep.subr.bf16.mxu0 %v2282_v37  ;;  %v2384_v36 = vld [vmem:[%s2595_s12 + $0xa8] ss:$36 sps:$4 sm:$0xff]  }
  0x5e   : > { %1362 = vmatmul.mubr.bf16.gmra.mrb[12].mxu1 %v2341_v44  ;;  %v2385_v37 = vld [vmem:[%s2978_s1 + $0x440] ss:$8 sps:$4 sm:$0xff]   ;;  %v2396_v44 = vld [vmem:[%s2595_s12 + $0xf0] ss:$36 sps:$4 sm:$0xff]  }
  0x5f   : > { %1385 = vmatpush1.bf16.msra.mxu1 %v2277_v38  ;;  %1508 = vmatmul.mubr.bf16.gmra.mrb[12].mxu0 %v2345_v47  ;;  %v2391_v38 = vld [vmem:[%s2595_s12 + $0xe4] ss:$36 sps:$4 sm:$0xff]   ;;  %v2400_v47 = vld [vmem:[%s2978_s1 + $0x470] ss:$8 sps:$4 sm:$0xff]  }
  0x60   : > { %1531 = vmatpush1.bf16.msra.mxu0 %v2280_v39  ;;  %1386 = vmatprep.subr.bf16.mxu1 %v2285_v40  ;;  %v2390_v39 = vld [vmem:[%s2978_s1 + $0x454] ss:$8 sps:$4 sm:$0xff]  }
  0x61   : > { %1532 = vmatprep.subr.bf16.mxu0 %v2288_v41  ;;  %1404 = vmatprep.mubr.bf16.mxu1 %v2357_v54  ;;  %v2393_v40 = vld [vmem:[%s2595_s12 + $0xf4] ss:$36 sps:$4 sm:$0xff]  }
  0x62   : > { %1550 = vmatprep.mubr.bf16.mxu0 %v2360_v55  ;;  %v2388_v41 = vld [vmem:[%s2978_s1 + $0x450] ss:$8 sps:$4 sm:$0xff]  }
  0x63   : > { %1387 = vmatpush1.bf16.msra.mxu1 %v2283_v45  ;;  %v2397_v45 = vld [vmem:[%s2978_s1 + $0x460] ss:$8 sps:$4 sm:$0xff]  }
  0x64   : > { %1533 = vmatpush1.bf16.msra.mxu0 %v2286_v46  ;;  %1388 = vmatprep.subr.bf16.mxu1 %v2291_v48  ;;  %v2402_v46 = vld [vmem:[%s2978_s1 + $0x474] ss:$8 sps:$4 sm:$0xff]   ;;  %v2415_v48 = vmov 0  }
  0x65   : > { %1534 = vmatprep.subr.bf16.mxu0 %v2294_v49  ;;  %v2403_v49 = vld [vmem:[%s2595_s12 + $0x20] ss:$36 sps:$4 sm:$0xff]  }
  0x67   : > { %1389 = vmatpush1.bf16.msra.mxu1 %v2289_v50  ;;  %v2404_v50 = vld [vmem:[%s2595_s12 + $0x68] ss:$36 sps:$4 sm:$0xff]  }
  0x68   : > { %1535 = vmatpush1.bf16.msra.mxu0 %v2292_v51  ;;  %1390 = vmatprep.subr.bf16.mxu1 %v2297_v52  ;;  %v2405_v51 = vld [vmem:[%s2595_s12 + $0xb0] ss:$36 sps:$4 sm:$0xff]   ;;  %v2406_v52 = vld [vmem:[%s2595_s12 + $0xf8] ss:$36 sps:$4 sm:$0xff]  }
  0x69   : > { %1536 = vmatprep.subr.bf16.mxu0 %v2300_v53  ;;  %v2416_v53 = vmov 0.0  }
  0x6b   : > { %1391 = vmatpush1.bf16.msra.mxu1 %v2295_v56 }
  0x6c   : > { %1537 = vmatpush1.bf16.msra.mxu0 %v2298_v57  ;;  %1392 = vmatprep.subr.bf16.mxu1 %v2308_v58 }
  0x6d   : > { %1538 = vmatprep.subr.bf16.mxu0 %v2312_v59 }
  0x6f   : > { %1393 = vmatpush1.bf16.msra.mxu1 %v2306_v60 }
  0x70   : > { %1539 = vmatpush1.bf16.msra.mxu0 %v2310_v61  ;;  %1394 = vmatprep.subr.bf16.mxu1 %v2315_v62  ;;  %v385_v62 = vlaneseq }
  0x71   : > { %1540 = vmatprep.subr.bf16.mxu0 %v2318_v63 }
  0x73   : > { %1395 = vmatpush1.bf16.msra.mxu1 %v2313_v0 }
  0x74   : > { %1541 = vmatpush1.bf16.msra.mxu0 %v2316_v1  ;;  %1396 = vmatprep.subr.bf16.mxu1 %v2326_v2  ;;  %v386_v2 = vshrl.u32 %v385_v62, 7 }
  0x75   : > { %1542 = vmatprep.subr.bf16.mxu0 %v2330_v3 }
  0x77   : > { %1397 = vmatpush1.bf16.msra.mxu1 %v2324_v4  ;;  %v387_v4 = vsub.s32 0, %v386_v2 }
  0x78   : > { %1543 = vmatpush1.bf16.msra.mxu0 %v2328_v5  ;;  %1398 = vmatprep.subr.bf16.mxu1 %v2333_v6  ;;  %v383_v5 = vld [vmem:[%s2979_s2] sm:$0x3]  ;;  %v391_v6 = vsub.s32 1, %v386_v2 }
  0x79   : > { %1544 = vmatprep.subr.bf16.mxu0 %v2336_v7 }
  0x7b   : > { %1399 = vmatpush1.bf16.msra.mxu1 %v2331_v8 }
  0x7c   : > { %1545 = vmatpush1.bf16.msra.mxu0 %v2334_v9  ;;  %1400 = vmatprep.subr.bf16.mxu1 %v2344_v10  ;;  %v2938_v10 = vrot.slane %v383_v5, %v387_v4 }
  0x7d   : > { %1546 = vmatprep.subr.bf16.mxu0 %v2348_v11 }
  0x7f   : > { %1401 = vmatpush1.bf16.msra.mxu1 %v2342_v12  ;;  %v2942_v12 = vrot.slane %v383_v5, %v391_v6 }
  0x80   : > { %1547 = vmatpush1.bf16.msra.mxu0 %v2346_v13  ;;  %1402 = vmatprep.subr.bf16.mxu1 %v2351_v14 }
  0x81   : > { %1548 = vmatprep.subr.bf16.mxu0 %v2354_v15 }
  0x83   : > { %1403 = vmatpush1.bf16.msra.mxu1 %v2349_v16 }
  0x84   : > { %1549 = vmatpush1.bf16.msra.mxu0 %v2352_v17 }
  0x85   : > { %1591 = vmatprep.subr.bf16.mxu0 %v2363_v18 }
  0x86   : > { %1405 = vmatmul.mubr.bf16.vlgmr.msra.gmra.mrb[0].mxu1 %v2355_v19 }
  0x87   : > { %1551 = vmatmul.mubr.bf16.vlgmr.msra.gmra.mrb[0].mxu0 %v2358_v20  ;;  %1414 = vmatprep.mubr.bf16.mxu1 %v2367_v22 }
  0x88   : > { %1592 = vmatpush1.bf16.msra.mxu0 %v2361_v21  ;;  %1560 = vmatprep.mubr.bf16.mxu0 %v2369_v24 }
  0x89   : > { %1593 = vmatprep.subr.bf16.mxu0 %v2366_v23 }
  0x8c   : > { %1594 = vmatpush1.bf16.msra.mxu0 %v2364_v25 }
  0x8d   : > { %1595 = vmatprep.subr.bf16.mxu0 %v2375_v26 }
  0x8e   : > { %1415 = vmatmul.mubr.bf16.gmra.mrb[4].mxu1 %v2371_v27 }
  0x8f   : > { %1561 = vmatmul.mubr.bf16.gmra.mrb[4].mxu0 %v2372_v28  ;;  %1424 = vmatprep.mubr.bf16.mxu1 %v2379_v30 }
  0x90   : > { %1596 = vmatpush1.bf16.msra.mxu0 %v2373_v29  ;;  %1570 = vmatprep.mubr.bf16.mxu0 %v2381_v32 }
  0x91   : > { %1597 = vmatprep.subr.bf16.mxu0 %v2378_v31 }
  0x94   : > { %1598 = vmatpush1.bf16.msra.mxu0 %v2376_v33 }
  0x95   : > { %1599 = vmatprep.subr.bf16.mxu0 %v2387_v34 }
  0x96   : > { %1425 = vmatmul.mubr.bf16.gmra.mrb[8].mxu1 %v2383_v35 }
  0x97   : > { %1571 = vmatmul.mubr.bf16.gmra.mrb[8].mxu0 %v2384_v36  ;;  %1434 = vmatprep.mubr.bf16.mxu1 %v2391_v38 }
  0x98   : > { %1600 = vmatpush1.bf16.msra.mxu0 %v2385_v37  ;;  %1580 = vmatprep.mubr.bf16.mxu0 %v2393_v40 }
  0x99   : > { %1601 = vmatprep.subr.bf16.mxu0 %v2390_v39 }
  0x9c   : > { %1602 = vmatpush1.bf16.msra.mxu0 %v2388_v41 }
  0x9d   : > { %1603 = vmatprep.subr.bf16.mxu0 %v2399_v42 }
  0x9e   : > { %1435 = vmatmul.mubr.bf16.gmra.mrb[12].mxu1 %v2395_v43 }
  0x9f   : > { %1581 = vmatmul.mubr.bf16.gmra.mrb[12].mxu0 %v2396_v44  ;;  %1753 = vmatprep.mubr.f32.mxu1 %v2416_v53 }
  0xa0   : > { %1604 = vmatpush1.bf16.msra.mxu0 %v2397_v45  ;;  %1623 = vmatprep.mubr.bf16.mxu0 %v2415_v48 }
  0xa1   : > { %1605 = vmatprep.subr.bf16.mxu0 %v2402_v46 }
  0xa4   : > { %1606 = vmatpush1.bf16.msra.mxu0 %v2400_v47 }
  0xa7   : > { %1624 = vmatmul.mubr.bf16.vlgmr.msra.gmra.mrb[0].mxu0 %v2403_v49 }
  0xa8   : > { %1633 = vmatprep.mubr.bf16.mxu0 %v2415_v48 }
  0xaf   : > { %1634 = vmatmul.mubr.bf16.gmra.mrb[4].mxu0 %v2404_v50 }
  0xb0   : > { %1643 = vmatprep.mubr.bf16.mxu0 %v2415_v48 }
  0xb7   : > { %1644 = vmatmul.mubr.bf16.gmra.mrb[8].mxu0 %v2405_v51 }
  0xb8   : > { %1653 = vmatprep.mubr.bf16.mxu0 %v2415_v48 }
  0xbf   : > { %1654 = vmatmul.mubr.bf16.gmra.mrb[12].mxu0 %v2406_v52 }
 0x159   : > { %v1406_v54 = vpop.f32.mrb[0].mxu1 }
 0x15a   : > { %v1408_v55 = vpop.f32.mrb[1].mxu1  ;;  %v2048_v13 = vadd.f32 %v1406_v54, %v2938_v10 }
 0x15b   : > { %v1410_v56 = vpop.f32.mrb[2].mxu1  ;;  %v2050_v14 = vadd.f32 %v1408_v55, %v2942_v12 }
 0x15c   : > { %v1412_v57 = vpop.f32.mrb[3].mxu1  ;;  %v2052_v16 = vadd.f32 %v1410_v56, %v2938_v10 }
 0x15d   : > { %v2054_v19 = vadd.f32 %v1412_v57, %v2942_v12 }
 0x161   : > { %v1416_v58 = vpop.f32.mrb[4].mxu1 }
 0x162   : > { %v1418_v59 = vpop.f32.mrb[5].mxu1  ;;  %v2056_v29 = vadd.f32 %v1416_v58, %v2938_v10 }
 0x163   : > { %v1420_v60 = vpop.f32.mrb[6].mxu1  ;;  %v2058_v31 = vadd.f32 %v1418_v59, %v2942_v12 }
 0x164   : > { %v1422_v61 = vpop.f32.mrb[7].mxu1  ;;  %v2060_v34 = vadd.f32 %v1420_v60, %v2938_v10 }
 0x165   : > { %v2062_v37 = vadd.f32 %v1422_v61, %v2942_v12 }
 0x169   : > { %v1426_v63 = vpop.f32.mrb[8].mxu1 }
 0x16a   : > { %v1428_v0 = vpop.f32.mrb[9].mxu1  ;;  %v2064_v47 = vadd.f32 %v1426_v63, %v2938_v10 }
 0x16b   : > { %v1430_v1 = vpop.f32.mrb[10].mxu1  ;;  %v2066_v49 = vadd.f32 %v1428_v0, %v2942_v12 }
 0x16c   : > { %v1432_v3 = vpop.f32.mrb[11].mxu1  ;;  %v2068_v52 = vadd.f32 %v1430_v1, %v2938_v10 }
 0x16d   : > { %v2070_v56 = vadd.f32 %v1432_v3, %v2942_v12 }
 0x171   : > { %v1436_v7 = vpop.f32.mrb[12].mxu1 }
 0x172   : > { %v2934_v8 = vpop.f32.mrb[13].mxu1  ;;  %v2072_v0 = vadd.f32 %v1436_v7, %v2938_v10 }
 0x173   : > { %v2936_v9 = vpop.f32.mrb[14].mxu1  ;;  %v2074_v1 = vadd.f32 %v2934_v8, %v2942_v12 }
 0x174   : > { %v2940_v11 = vpop.f32.mrb[15].mxu1  ;;  %v2076_v3 = vadd.f32 %v2936_v9, %v2938_v10  ;;  %v1680_v9 = vld [vmem:[%s2980_s3] sm:$0xff]  ;;  %v1681_v10 = vld [vmem:[%s2980_s3 + $0x8] sm:$0xff] }
 0x17a   : > { %v1625_v15 = vpop.f32.mrb[0].mxu0 }
 0x17b   : > { %v2049_v17 = vadd.f32 %v2048_v13, %v1625_v15  ;;  %v1627_v18 = vpop.f32.mrb[1].mxu0 }
 0x17c   : > { %v2051_v20 = vadd.f32 %v2050_v14, %v1627_v18  ;;  %v1629_v21 = vpop.f32.mrb[2].mxu0 }
 0x17d   : > { %v2053_v22 = vadd.f32 %v2052_v16, %v1629_v21  ;;  %v1631_v23 = vpop.f32.mrb[3].mxu0  ;;  %v1664_v25 = vmax.f32 %v2049_v17, 0.0  ;;  %v2078_v16 = vadd.f32 %v2940_v11, %v2942_v12 }
 0x17e   : > { %v2055_v24 = vadd.f32 %v2054_v19, %v1631_v23  ;;  %v1665_v27 = vmax.f32 %v2051_v20, 0.0 }
 0x17f   : > { %v1666_v26 = vmax.f32 %v2053_v22, 0.0 }
 0x180   : > { %v1667_v28 = vmax.f32 %v2055_v24, 0.0 }
 0x181   : > { %v2034_v30 = vpack.c.bf16 %v1666_v26, %v1664_v25 }
 0x182   : > { %v2032_v32 = vpack.c.bf16 %v1667_v28, %v1665_v27  ;;  %v1635_v33 = vpop.f32.mrb[4].mxu0 }
 0x183   : > { %v2057_v35 = vadd.f32 %v2056_v29, %v1635_v33  ;;  %v1637_v36 = vpop.f32.mrb[5].mxu0 }
 0x184   : > { %v2059_v38 = vadd.f32 %v2058_v31, %v1637_v36  ;;  %v1639_v39 = vpop.f32.mrb[6].mxu0  ;;  %2033 = vmatprep.subr.bf16.mxu1 %v2032_v32 }
 0x185   : > { %v2061_v40 = vadd.f32 %v2060_v34, %v1639_v39  ;;  %v1641_v41 = vpop.f32.mrb[7].mxu0  ;;  %2035 = vmatpush1.bf16.msra.mxu1 %v2034_v30  ;;  %v1668_v43 = vmax.f32 %v2057_v35, 0.0 }
 0x186   : > { %v2063_v42 = vadd.f32 %v2062_v37, %v1641_v41  ;;  %v1669_v45 = vmax.f32 %v2059_v38, 0.0 }
 0x187   : > { %v1670_v44 = vmax.f32 %v2061_v40, 0.0 }
 0x188   : > { %v1671_v46 = vmax.f32 %v2063_v42, 0.0 }
 0x189   : > { %v2038_v48 = vpack.c.bf16 %v1670_v44, %v1668_v43 }
 0x18a   : > { %v2036_v50 = vpack.c.bf16 %v1671_v46, %v1669_v45  ;;  %v1645_v51 = vpop.f32.mrb[8].mxu0 }
 0x18b   : > { %v2065_v54 = vadd.f32 %v2064_v47, %v1645_v51  ;;  %v1647_v55 = vpop.f32.mrb[9].mxu0 }
 0x18c   : > { %v2067_v57 = vadd.f32 %v2066_v49, %v1647_v55  ;;  %v1649_v58 = vpop.f32.mrb[10].mxu0  ;;  %2037 = vmatprep.subr.bf16.mxu1 %v2036_v50 }
 0x18d   : > { %v2069_v59 = vadd.f32 %v2068_v52, %v1649_v58  ;;  %v1651_v60 = vpop.f32.mrb[11].mxu0  ;;  %2039 = vmatpush1.bf16.msra.mxu1 %v2038_v48  ;;  %v1672_v62 = vmax.f32 %v2065_v54, 0.0 }
 0x18e   : > { %v2071_v61 = vadd.f32 %v2070_v56, %v1651_v60  ;;  %v1673_v2 = vmax.f32 %v2067_v57, 0.0 }
 0x18f   : > { %v1674_v63 = vmax.f32 %v2069_v59, 0.0 }
 0x190   : > { %v1675_v4 = vmax.f32 %v2071_v61, 0.0 }
 0x191   : > { %v2042_v5 = vpack.c.bf16 %v1674_v63, %v1672_v62 }
 0x192   : > { %v2040_v6 = vpack.c.bf16 %v1675_v4, %v1673_v2  ;;  %v1655_v13 = vpop.f32.mrb[12].mxu0 }
 0x193   : > { %v2073_v14 = vadd.f32 %v2072_v0, %v1655_v13  ;;  %v1657_v15 = vpop.f32.mrb[13].mxu0 }
 0x194   : > { %v2075_v17 = vadd.f32 %v2074_v1, %v1657_v15  ;;  %v1659_v18 = vpop.f32.mrb[14].mxu0  ;;  %2041 = vmatprep.subr.bf16.mxu1 %v2040_v6 }
 0x195   : > { %v2077_v19 = vadd.f32 %v2076_v3, %v1659_v18  ;;  %v1661_v20 = vpop.f32.mrb[15].mxu0  ;;  %2043 = vmatpush1.bf16.msra.mxu1 %v2042_v5  ;;  %v1676_v21 = vmax.f32 %v2073_v14, 0.0 }
 0x196   : > { %v2079_v7 = vadd.f32 %v2078_v16, %v1661_v20  ;;  %v1677_v22 = vmax.f32 %v2075_v17, 0.0 }
 0x197   : > { %v1678_v8 = vmax.f32 %v2077_v19, 0.0 }
 0x198   : > { %v1679_v23 = vmax.f32 %v2079_v7, 0.0 }
 0x199   : > { %v2046_v24 = vpack.c.bf16 %v1678_v8, %v1676_v21 }
 0x19a   : > { %v2044_v25 = vpack.c.bf16 %v1679_v23, %v1677_v22 }
 0x19c   : > { %2045 = vmatprep.subr.bf16.mxu1 %v2044_v25 }
 0x19d   : > { %2047 = vmatpush1.bf16.msra.mxu1 %v2046_v24 }
 0x1a0   : > { %2023 = vmatmul.mubr.msk.f32.vlgmr.msra.gmra.mrb[16].mxu1 %vm1682_vm0, %v1680_v9 }
 0x1a1   : > { %1759 = vmatprep.mubr.f32.mxu1 %v2416_v53 }
 0x1a4   : > { %2024 = vmatmul.mubr.msk.f32.gmra.mrb[18].mxu1 %vm1682_vm0, %v1681_v10 }
 0x273   : > { %v1755_v11 = vpop.f32.mrb[16].mxu1 }
 0x274   : > { %v1757_v12 = vpop.f32.mrb[17].mxu1 }
 0x275   : > { %v2030_v26 = vpack.c.bf16 %v1757_v12, %v1755_v11 }
 0x277   : > { %1778 = vst [vmem:[%s197_s11] sm:$0xff] %v2030_v26  ;;  %v1761_v27 = vpop.f32.mrb[18].mxu1 }
 0x278   : > { %v1763_v28 = vpop.f32.mrb[19].mxu1 }
 0x279   : > { %v2031_v29 = vpack.c.bf16 %v1763_v28, %v1761_v27 }
 0x27b   : > { %1779 = vst [vmem:[%s197_s11 + $0x8] sm:$0xff] %v2031_v29 }
 0x27c PF: > { %s14_s15 = sadd.s32 1, %s2413_s15  }
 0x27d   : > { %p11_p4 = scmp.ge.s32.totalorder %s14_s15, 4  }
 0x27f   :  { %13 = sbr.rel (!%p11_p4) target bundleno = 1 (0x1), region = 66 }

// kernel: forward.7
= control target key start
LH: loop header
LB: loop body
LE: loop exit
PB: predicated region body
PF: predicated region fallthrough
CT: control target
= control target key end

     0   :  { %v1427_v20 = vmov 0.0|0.0   ;;  %vm1428_vm0 = vmmov 0   ;;  %v1429_v21 = vmov 0.0   ;;  %vm279_vm1 = vcmask 261120   ;;  %s2008_s1 = inlined_call_operand.vmem [shape: bf16[256,64], index: 1, kind: input, shape index: {}]   ;;  %s2009_s0 = inlined_call_operand.vmem [shape: bf16[32,256], index: 0, kind: input, shape index: {}]   ;;  %s2010_s2 = inlined_call_operand.vmem [shape: f32[1,64], index: 2, kind: input, shape index: {}]   ;;  %s2011_s3 = inlined_call_operand.vmem [shape: f32[392,32], index: 3, kind: input, shape index: {}]   ;;  %s2012_s4 = inlined_call_operand.vmem [shape: bf16[392,64], index: 4, kind: output, shape index: {}]  }
   0x1   :  { %v1405_v0 = vld [vmem:[%s2008_s1 + $0x40] sm:$0xff]   ;;  %v1407_v2 = vld [vmem:[%s2008_s1 + $0x48] sm:$0xff]   ;;  %v1409_v4 = vld [vmem:[%s2008_s1 + $0x50] sm:$0xff]   ;;  %1398 = vmatprep.subr.bf16.mxu1 %v1427_v20  ;;  %1302 = vmatprep.mubr.msk.f32.mxu1 %vm1428_vm0, %v1429_v21  ;;  %vm934_vm2 = vcmask 519168  }
   0x2   :  { %v1406_v1 = vld [vmem:[%s2008_s1] sm:$0xff]   ;;  %1156 = vmatprep.subr.bf16.mxu0 %v1405_v0  ;;  %v1408_v3 = vld [vmem:[%s2008_s1 + $0x8] sm:$0xff]   ;;  %v1410_v5 = vld [vmem:[%s2008_s1 + $0x10] sm:$0xff]  }
   0x3   :  { %1157 = vmatpush3.bf16.msra.mxu0 %v1406_v1  ;;  %v1411_v6 = vld [vmem:[%s2008_s1 + $0x58] sm:$0xff]   ;;  %v1413_v8 = vld [vmem:[%s2008_s1 + $0x60] sm:$0xff]   ;;  %v1415_v10 = vld [vmem:[%s2008_s1 + $0x68] sm:$0xff]  }
   0x4   :  { %1158 = vmatprep.subr.bf16.mxu0 %v1407_v2  ;;  %v1412_v7 = vld [vmem:[%s2008_s1 + $0x18] sm:$0xff]   ;;  %v1414_v9 = vld [vmem:[%s2008_s1 + $0x20] sm:$0xff]   ;;  %v1416_v12 = vld [vmem:[%s2008_s1 + $0x28] sm:$0xff]  }
   0x5   :  { %v1423_v11 = vld [vmem:[%s2009_s0 + $0x4] ss:$8 sps:$4 sm:$0xff]   ;;  %v1417_v13 = vld [vmem:[%s2008_s1 + $0x70] sm:$0xff]   ;;  %v1419_v15 = vld [vmem:[%s2008_s1 + $0x78] sm:$0xff]  }
   0x6   :  { %209 = vmatprep.mubr.bf16.mxu0 %v1423_v11  ;;  %v1418_v14 = vld [vmem:[%s2008_s1 + $0x30] sm:$0xff]   ;;  %v1420_v16 = vld [vmem:[%s2008_s1 + $0x38] sm:$0xff]   ;;  %v1421_v17 = vld [vmem:[%s2009_s0] ss:$8 sps:$4 sm:$0xff]  }
   0x7   :  { %1159 = vmatpush3.bf16.msra.mxu0 %v1408_v3  ;;  %v1424_v18 = vld [vmem:[%s2009_s0 + $0x14] ss:$8 sps:$4 sm:$0xff]   ;;  %v1426_v19 = vld [vmem:[%s2009_s0 + $0x10] ss:$8 sps:$4 sm:$0xff]   ;;  %v988_v23 = vld [vmem:[%s2010_s2] ss:$0 sm:$0xff] }
   0x8   :  { %1160 = vmatprep.subr.bf16.mxu0 %v1409_v4  ;;  %v249_v45 = vld [vmem:[%s2011_s3 + $0x98] sm:$0xff]  ;;  %v230_v46 = vld [vmem:[%s2011_s3] sm:$0xff]  ;;  %v231_v48 = vld [vmem:[%s2011_s3 + $0x8] sm:$0xff] }
   0x9   :  { %v250_v47 = vld [vmem:[%s2011_s3 + $0xa0] sm:$0xff]  ;;  %v251_v49 = vld [vmem:[%s2011_s3 + $0xa8] sm:$0xff]  ;;  %v232_v50 = vld [vmem:[%s2011_s3 + $0x10] sm:$0xff] }
   0xa   :  { %v252_v51 = vld [vmem:[%s2011_s3 + $0xb0] sm:$0xff]  ;;  %v233_v52 = vld [vmem:[%s2011_s3 + $0x18] sm:$0xff]  ;;  %v234_v54 = vld [vmem:[%s2011_s3 + $0x20] sm:$0xff] }
   0xb   :  { %1161 = vmatpush3.bf16.msra.mxu0 %v1410_v5  ;;  %v253_v53 = vld [vmem:[%s2011_s3 + $0xb8] sm:$0xff]  ;;  %v254_v55 = vld [vmem:[%s2011_s3 + $0xc0] sm:$0xff]  ;;  %v235_v56 = vld [vmem:[%s2011_s3 + $0x28] sm:$0xff] }
   0xc   :  { %1162 = vmatprep.subr.bf16.mxu0 %v1411_v6  ;;  %v255_v57 = vld [vmem:[%s2011_s3 + $0xc8] sm:$0xff]  ;;  %v236_v58 = vld [vmem:[%s2011_s3 + $0x30] sm:$0xff]  ;;  %v237_v60 = vld [vmem:[%s2011_s3 + $0x38] sm:$0xff] }
   0xd   :  { %v256_v59 = vld [vmem:[%s2011_s3 + $0xd0] sm:$0xff]  ;;  %v257_v61 = vld [vmem:[%s2011_s3 + $0xd8] sm:$0xff]  ;;  %v238_v62 = vld [vmem:[%s2011_s3 + $0x40] sm:$0xff] }
   0xe   :  { %v258_v63 = vld [vmem:[%s2011_s3 + $0xe0] sm:$0xff]  ;;  %v239_v0 = vld [vmem:[%s2011_s3 + $0x48] sm:$0xff]  ;;  %v240_v2 = vld [vmem:[%s2011_s3 + $0x50] sm:$0xff] }
   0xf   :  { %1163 = vmatpush3.bf16.msra.mxu0 %v1412_v7  ;;  %v259_v1 = vld [vmem:[%s2011_s3 + $0xe8] sm:$0xff]  ;;  %v260_v3 = vld [vmem:[%s2011_s3 + $0xf0] sm:$0xff]  ;;  %v241_v4 = vld [vmem:[%s2011_s3 + $0x58] sm:$0xff] }
  0x10   :  { %1164 = vmatprep.subr.bf16.mxu0 %v1413_v8  ;;  %v261_v5 = vld [vmem:[%s2011_s3 + $0xf8] sm:$0xff]  ;;  %v242_v6 = vld [vmem:[%s2011_s3 + $0x60] sm:$0xff]  ;;  %v243_v8 = vld [vmem:[%s2011_s3 + $0x68] sm:$0xff] }
  0x11   :  { %v262_v7 = vld [vmem:[%s2011_s3 + $0x100] sm:$0xff]  ;;  %v264_v11 = vld [vmem:[%s2011_s3 + $0x110] sm:$0xff] }
  0x13   :  { %1165 = vmatpush3.bf16.msra.mxu0 %v1414_v9  ;;  %v263_v9 = vld [vmem:[%s2011_s3 + $0x108] sm:$0xff] }
  0x14   :  { %1166 = vmatprep.subr.bf16.mxu0 %v1415_v10  ;;  %v244_v10 = vld [vmem:[%s2011_s3 + $0x70] sm:$0xff] }
  0x17   :  { %1167 = vmatpush3.bf16.msra.mxu0 %v1416_v12  ;;  %v245_v12 = vld [vmem:[%s2011_s3 + $0x78] sm:$0xff] }
  0x18   :  { %1168 = vmatprep.subr.bf16.mxu0 %v1417_v13  ;;  %v265_v13 = vld [vmem:[%s2011_s3 + $0x118] sm:$0xff] }
  0x1b   :  { %1169 = vmatpush3.bf16.msra.mxu0 %v1418_v14  ;;  %v246_v14 = vld [vmem:[%s2011_s3 + $0x80] sm:$0xff] }
  0x1c   :  { %1170 = vmatprep.subr.bf16.mxu0 %v1419_v15  ;;  %v266_v15 = vld [vmem:[%s2011_s3 + $0x120] sm:$0xff] }
  0x1f   :  { %1171 = vmatpush3.bf16.msra.mxu0 %v1420_v16  ;;  %v247_v16 = vld [vmem:[%s2011_s3 + $0x88] sm:$0xff] }
  0x20   :  { %1392 = vmatprep.subr.bf16.mxu0 %v1427_v20 }
  0x22   :  { %210 = vmatmul.mubr.bf16.vlgmr.msra.gmra.mrb[0].mxu0 %v1421_v17  ;;  %v267_v17 = vld [vmem:[%s2011_s3 + $0x128] sm:$0xff] }
  0x23   :  { %217 = vmatprep.mubr.bf16.mxu0 %v1424_v18  ;;  %v248_v18 = vld [vmem:[%s2011_s3 + $0x90] sm:$0xff] }
  0x2a   :  { %218 = vmatmul.mubr.bf16.gmra.mrb[4].mxu0 %v1426_v19  ;;  %v268_v19 = vld [vmem:[%s2011_s3 + $0x130] sm:$0xff] }
  0x2b   :  { %1245 = vmatprep.mubr.msk.f32.mxu0 %vm1428_vm0, %v1429_v21 }
  0xf5   :  { %v1172_v22 = vpop.f32.mrb[0].mxu0 }
  0xf6   :  { %v1173_v24 = vpop.f32.mrb[1].mxu0 }
  0xf7   :  { %v1174_v25 = vadd.f32 %v1173_v24, %v1172_v22  ;;  %v1175_v26 = vpop.f32.mrb[2].mxu0  ;;  %v270_v22 = vld [vmem:[%s2011_s3 + $0x140] sm:$0xff]  ;;  %v272_v24 = vld [vmem:[%s2011_s3 + $0x150] sm:$0xff] }
  0xf8   :  { %v1176_v27 = vpop.f32.mrb[3].mxu0 }
  0xf9   :  { %v212_v28 = vadd.f32 %v1174_v25, %v988_v23  ;;  %v1177_v29 = vadd.f32 %v1176_v27, %v1175_v26  ;;  %v273_v25 = vld [vmem:[%s2011_s3 + $0x158] sm:$0xff]  ;;  %v274_v26 = vld [vmem:[%s2011_s3 + $0x160] sm:$0xff]  ;;  %v275_v27 = vld [vmem:[%s2011_s3 + $0x168] sm:$0xff] }
  0xfb   :  { %v215_v30 = vadd.f32 %v1177_v29, %v988_v23  ;;  %v226_v31 = vmax.f32 %v212_v28, 0.0  ;;  %v276_v28 = vld [vmem:[%s2011_s3 + $0x170] sm:$0xff]  ;;  %v277_v29 = vld [vmem:[%s2011_s3 + $0x178] sm:$0xff] }
  0xfd   :  { %v227_v32 = vmax.f32 %v215_v30, 0.0  ;;  %v1178_v33 = vpop.f32.mrb[4].mxu0  ;;  %v278_v30 = vld [vmem:[%s2011_s3 + $0x180] sm:$0xff] }
  0xfe   :  { %v1179_v34 = vpop.f32.mrb[5].mxu0 }
  0xff   :  { %v1393_v35 = vpack.c.bf16 %v227_v32, %v226_v31  ;;  %v1180_v36 = vadd.f32 %v1179_v34, %v1178_v33  ;;  %v1181_v37 = vpop.f32.mrb[6].mxu0 }
 0x100   :  { %v1182_v38 = vpop.f32.mrb[7].mxu0 }
 0x101   :  { %v220_v39 = vadd.f32 %v1180_v36, %v988_v23  ;;  %v1183_v40 = vadd.f32 %v1182_v38, %v1181_v37  ;;  %1394 = vmatpush3.bf16.msra.mxu0 %v1393_v35  ;;  %1400 = vmatpush3.bf16.msra.mxu1 %v1393_v35 }
 0x102   :  { %1395 = vmatprep.subr.bf16.mxu0 %v1427_v20  ;;  %1399 = vmatprep.subr.bf16.mxu1 %v1427_v20  ;;  %v269_v20 = vld [vmem:[%s2011_s3 + $0x138] sm:$0xff] }
 0x103   :  { %v223_v41 = vadd.f32 %v1183_v40, %v988_v23  ;;  %v228_v42 = vmax.f32 %v220_v39, 0.0  ;;  %v271_v23 = vld [vmem:[%s2011_s3 + $0x148] sm:$0xff] }
 0x105   :  { %v229_v43 = vmax.f32 %v223_v41, 0.0 }
 0x107   :  { %v1396_v44 = vpack.c.bf16 %v229_v43, %v228_v42 }
 0x109   :  { %1397 = vmatpush3.bf16.msra.mxu0 %v1396_v44  ;;  %1401 = vmatpush3.bf16.msra.mxu1 %v1396_v44 }
 0x10c   :  { %1303 = vmatmul.mubr.msk.f32.vlgmr.msra.gmra.mrb[0].mxu1 %vm279_vm1, %v249_v45  ;;  %1246 = vmatmul.mubr.msk.f32.vlgmr.msra.gmra.mrb[8].mxu0 %vm279_vm1, %v230_v46 }
 0x10d   :  { %1305 = vmatprep.mubr.msk.f32.mxu1 %vm1428_vm0, %v1429_v21  ;;  %1248 = vmatprep.mubr.msk.f32.mxu0 %vm1428_vm0, %v1429_v21 }
 0x110   :  { %1306 = vmatmul.mubr.msk.f32.gmra.mrb[2].mxu1 %vm279_vm1, %v250_v47  ;;  %1249 = vmatmul.mubr.msk.f32.gmra.mrb[10].mxu0 %vm279_vm1, %v231_v48 }
 0x111   :  { %1308 = vmatprep.mubr.msk.f32.mxu1 %vm1428_vm0, %v1429_v21  ;;  %1251 = vmatprep.mubr.msk.f32.mxu0 %vm1428_vm0, %v1429_v21 }
 0x114   :  { %1309 = vmatmul.mubr.msk.f32.gmra.mrb[4].mxu1 %vm279_vm1, %v251_v49  ;;  %1252 = vmatmul.mubr.msk.f32.gmra.mrb[12].mxu0 %vm279_vm1, %v232_v50 }
 0x115   :  { %1311 = vmatprep.mubr.msk.f32.mxu1 %vm1428_vm0, %v1429_v21  ;;  %1254 = vmatprep.mubr.msk.f32.mxu0 %vm1428_vm0, %v1429_v21 }
 0x118   :  { %1312 = vmatmul.mubr.msk.f32.gmra.mrb[6].mxu1 %vm279_vm1, %v252_v51  ;;  %1255 = vmatmul.mubr.msk.f32.gmra.mrb[14].mxu0 %vm279_vm1, %v233_v52 }
 0x119   :  { %1314 = vmatprep.mubr.msk.f32.mxu1 %vm1428_vm0, %v1429_v21  ;;  %1257 = vmatprep.mubr.msk.f32.mxu0 %vm1428_vm0, %v1429_v21 }
 0x11c   :  { %1315 = vmatmul.mubr.msk.f32.gmra.mrb[8].mxu1 %vm279_vm1, %v253_v53  ;;  %1258 = vmatmul.mubr.msk.f32.gmra.mrb[16].mxu0 %vm279_vm1, %v234_v54 }
 0x11d   :  { %1317 = vmatprep.mubr.msk.f32.mxu1 %vm1428_vm0, %v1429_v21  ;;  %1260 = vmatprep.mubr.msk.f32.mxu0 %vm1428_vm0, %v1429_v21 }
 0x120   :  { %1318 = vmatmul.mubr.msk.f32.gmra.mrb[10].mxu1 %vm279_vm1, %v254_v55  ;;  %1261 = vmatmul.mubr.msk.f32.gmra.mrb[18].mxu0 %vm279_vm1, %v235_v56 }
 0x121   :  { %1320 = vmatprep.mubr.msk.f32.mxu1 %vm1428_vm0, %v1429_v21  ;;  %1263 = vmatprep.mubr.msk.f32.mxu0 %vm1428_vm0, %v1429_v21 }
 0x124   :  { %1321 = vmatmul.mubr.msk.f32.gmra.mrb[12].mxu1 %vm279_vm1, %v255_v57  ;;  %1264 = vmatmul.mubr.msk.f32.gmra.mrb[20].mxu0 %vm279_vm1, %v236_v58 }
 0x125   :  { %1323 = vmatprep.mubr.msk.f32.mxu1 %vm1428_vm0, %v1429_v21  ;;  %1266 = vmatprep.mubr.msk.f32.mxu0 %vm1428_vm0, %v1429_v21 }
 0x128   :  { %1324 = vmatmul.mubr.msk.f32.gmra.mrb[14].mxu1 %vm279_vm1, %v256_v59  ;;  %1267 = vmatmul.mubr.msk.f32.gmra.mrb[22].mxu0 %vm279_vm1, %v237_v60 }
 0x129   :  { %1326 = vmatprep.mubr.msk.f32.mxu1 %vm1428_vm0, %v1429_v21  ;;  %1269 = vmatprep.mubr.msk.f32.mxu0 %vm1428_vm0, %v1429_v21 }
 0x12c   :  { %1327 = vmatmul.mubr.msk.f32.gmra.mrb[16].mxu1 %vm279_vm1, %v257_v61  ;;  %1270 = vmatmul.mubr.msk.f32.gmra.mrb[24].mxu0 %vm279_vm1, %v238_v62 }
 0x12d   :  { %1329 = vmatprep.mubr.msk.f32.mxu1 %vm1428_vm0, %v1429_v21  ;;  %1272 = vmatprep.mubr.msk.f32.mxu0 %vm1428_vm0, %v1429_v21 }
 0x130   :  { %1330 = vmatmul.mubr.msk.f32.gmra.mrb[18].mxu1 %vm279_vm1, %v258_v63  ;;  %1273 = vmatmul.mubr.msk.f32.gmra.mrb[26].mxu0 %vm279_vm1, %v239_v0 }
 0x131   :  { %1332 = vmatprep.mubr.msk.f32.mxu1 %vm1428_vm0, %v1429_v21  ;;  %1275 = vmatprep.mubr.msk.f32.mxu0 %vm1428_vm0, %v1429_v21 }
 0x134   :  { %1333 = vmatmul.mubr.msk.f32.gmra.mrb[20].mxu1 %vm279_vm1, %v259_v1  ;;  %1276 = vmatmul.mubr.msk.f32.gmra.mrb[28].mxu0 %vm279_vm1, %v240_v2 }
 0x135   :  { %1335 = vmatprep.mubr.msk.f32.mxu1 %vm1428_vm0, %v1429_v21  ;;  %1278 = vmatprep.mubr.msk.f32.mxu0 %vm1428_vm0, %v1429_v21 }
 0x138   :  { %1336 = vmatmul.mubr.msk.f32.gmra.mrb[22].mxu1 %vm279_vm1, %v260_v3  ;;  %1279 = vmatmul.mubr.msk.f32.gmra.mrb[30].mxu0 %vm279_vm1, %v241_v4 }
 0x139   :  { %1338 = vmatprep.mubr.msk.f32.mxu1 %vm1428_vm0, %v1429_v21  ;;  %1281 = vmatprep.mubr.msk.f32.mxu0 %vm1428_vm0, %v1429_v21 }
 0x13c   :  { %1339 = vmatmul.mubr.msk.f32.gmra.mrb[24].mxu1 %vm279_vm1, %v261_v5  ;;  %1282 = vmatmul.mubr.msk.f32.gmra.mrb[32].mxu0 %vm279_vm1, %v242_v6 }
 0x13d   :  { %1341 = vmatprep.mubr.msk.f32.mxu1 %vm1428_vm0, %v1429_v21  ;;  %1284 = vmatprep.mubr.msk.f32.mxu0 %vm1428_vm0, %v1429_v21 }
 0x140   :  { %1342 = vmatmul.mubr.msk.f32.gmra.mrb[26].mxu1 %vm279_vm1, %v262_v7  ;;  %1285 = vmatmul.mubr.msk.f32.gmra.mrb[34].mxu0 %vm279_vm1, %v243_v8 }
 0x141   :  { %1344 = vmatprep.mubr.msk.f32.mxu1 %vm1428_vm0, %v1429_v21  ;;  %1287 = vmatprep.mubr.msk.f32.mxu0 %vm1428_vm0, %v1429_v21 }
 0x144   :  { %1345 = vmatmul.mubr.msk.f32.gmra.mrb[28].mxu1 %vm279_vm1, %v263_v9  ;;  %1288 = vmatmul.mubr.msk.f32.gmra.mrb[36].mxu0 %vm279_vm1, %v244_v10 }
 0x145   :  { %1347 = vmatprep.mubr.msk.f32.mxu1 %vm1428_vm0, %v1429_v21  ;;  %1290 = vmatprep.mubr.msk.f32.mxu0 %vm1428_vm0, %v1429_v21 }
 0x148   :  { %1348 = vmatmul.mubr.msk.f32.gmra.mrb[30].mxu1 %vm279_vm1, %v264_v11  ;;  %1291 = vmatmul.mubr.msk.f32.gmra.mrb[38].mxu0 %vm279_vm1, %v245_v12 }
 0x149   :  { %1350 = vmatprep.mubr.msk.f32.mxu1 %vm1428_vm0, %v1429_v21  ;;  %1293 = vmatprep.mubr.msk.f32.mxu0 %vm1428_vm0, %v1429_v21 }
 0x14c   :  { %1351 = vmatmul.mubr.msk.f32.gmra.mrb[32].mxu1 %vm279_vm1, %v265_v13  ;;  %1294 = vmatmul.mubr.msk.f32.gmra.mrb[40].mxu0 %vm279_vm1, %v246_v14 }
 0x14d   :  { %1353 = vmatprep.mubr.msk.f32.mxu1 %vm1428_vm0, %v1429_v21  ;;  %1296 = vmatprep.mubr.msk.f32.mxu0 %vm1428_vm0, %v1429_v21 }
 0x150   :  { %1354 = vmatmul.mubr.msk.f32.gmra.mrb[34].mxu1 %vm279_vm1, %v266_v15  ;;  %1297 = vmatmul.mubr.msk.f32.gmra.mrb[42].mxu0 %vm279_vm1, %v247_v16 }
 0x151   :  { %1356 = vmatprep.mubr.msk.f32.mxu1 %vm1428_vm0, %v1429_v21  ;;  %1299 = vmatprep.mubr.msk.f32.mxu0 %vm1428_vm0, %v1429_v21 }
 0x154   :  { %1357 = vmatmul.mubr.msk.f32.gmra.mrb[36].mxu1 %vm279_vm1, %v267_v17  ;;  %1300 = vmatmul.mubr.msk.f32.gmra.mrb[44].mxu0 %vm279_vm1, %v248_v18 }
 0x155   :  { %1359 = vmatprep.mubr.msk.f32.mxu1 %vm1428_vm0, %v1429_v21 }
 0x158   :  { %1360 = vmatmul.mubr.msk.f32.gmra.mrb[38].mxu1 %vm279_vm1, %v268_v19 }
 0x159   :  { %1362 = vmatprep.mubr.msk.f32.mxu1 %vm1428_vm0, %v1429_v21 }
 0x15c   :  { %1363 = vmatmul.mubr.msk.f32.gmra.mrb[40].mxu1 %vm279_vm1, %v269_v20 }
 0x15d   :  { %1365 = vmatprep.mubr.msk.f32.mxu1 %vm1428_vm0, %v1429_v21 }
 0x160   :  { %1366 = vmatmul.mubr.msk.f32.gmra.mrb[42].mxu1 %vm279_vm1, %v270_v22 }
 0x161   :  { %1368 = vmatprep.mubr.msk.f32.mxu1 %vm1428_vm0, %v1429_v21 }
 0x164   :  { %1369 = vmatmul.mubr.msk.f32.gmra.mrb[44].mxu1 %vm279_vm1, %v271_v23 }
 0x165   :  { %1371 = vmatprep.mubr.msk.f32.mxu1 %vm1428_vm0, %v1429_v21 }
 0x168   :  { %1372 = vmatmul.mubr.msk.f32.gmra.mrb[46].mxu1 %vm279_vm1, %v272_v24 }
 0x169   :  { %1374 = vmatprep.mubr.msk.f32.mxu1 %vm1428_vm0, %v1429_v21 }
 0x16c   :  { %1375 = vmatmul.mubr.msk.f32.gmra.mrb[48].mxu1 %vm279_vm1, %v273_v25 }
 0x16d   :  { %1377 = vmatprep.mubr.msk.f32.mxu1 %vm1428_vm0, %v1429_v21 }
 0x170   :  { %1378 = vmatmul.mubr.msk.f32.gmra.mrb[50].mxu1 %vm279_vm1, %v274_v26 }
 0x171   :  { %1380 = vmatprep.mubr.msk.f32.mxu1 %vm1428_vm0, %v1429_v21 }
 0x174   :  { %1381 = vmatmul.mubr.msk.f32.gmra.mrb[52].mxu1 %vm279_vm1, %v275_v27 }
 0x175   :  { %1383 = vmatprep.mubr.msk.f32.mxu1 %vm1428_vm0, %v1429_v21 }
 0x178   :  { %1384 = vmatmul.mubr.msk.f32.gmra.mrb[54].mxu1 %vm279_vm1, %v276_v28 }
 0x179   :  { %1386 = vmatprep.mubr.msk.f32.mxu1 %vm1428_vm0, %v1429_v21 }
 0x17c   :  { %1387 = vmatmul.mubr.msk.f32.gmra.mrb[56].mxu1 %vm279_vm1, %v277_v29 }
 0x17d   :  { %1389 = vmatprep.mubr.msk.f32.mxu1 %vm1428_vm0, %v1429_v21 }
 0x180   :  { %1390 = vmatmul.mubr.msk.f32.gmra.mrb[58].mxu1 %vm279_vm1, %v278_v30 }
 0x1df   :  { %v588_v31 = vpop.f32.mrb[0].mxu1  ;;  %v493_v32 = vpop.f32.mrb[8].mxu0 }
 0x1e0   :  { %v1126_v33 = vpack.c.bf16 %v588_v31, %v588_v31  ;;  %v1304_v34 = vpop.f32.mrb[1].mxu1  ;;  %v1107_v35 = vpack.c.bf16 %v493_v32, %v493_v32  ;;  %v1247_v36 = vpop.f32.mrb[9].mxu0 }
 0x1e2   :  { %954 = vst.msk [vmem:[%s2012_s4 + $0x4c] sm:$0xf] %vm934_vm2, %v1126_v33  ;;  %935 = vst.msk [vmem:[%s2012_s4] sm:$0xf] %vm934_vm2, %v1107_v35 }
 0x1e3   :  { %v593_v21 = vpop.f32.mrb[2].mxu1  ;;  %v498_v37 = vpop.f32.mrb[10].mxu0 }
 0x1e4   :  { %v1127_v38 = vpack.c.bf16 %v593_v21, %v593_v21  ;;  %v1307_v39 = vpop.f32.mrb[3].mxu1  ;;  %v1108_v40 = vpack.c.bf16 %v498_v37, %v498_v37  ;;  %v1250_v41 = vpop.f32.mrb[11].mxu0 }
 0x1e6   :  { %955 = vst.msk [vmem:[%s2012_s4 + $0x50] sm:$0xf] %vm934_vm2, %v1127_v38  ;;  %936 = vst.msk [vmem:[%s2012_s4 + $0x4] sm:$0xf] %vm934_vm2, %v1108_v40 }
 0x1e7   :  { %v598_v42 = vpop.f32.mrb[4].mxu1  ;;  %v503_v43 = vpop.f32.mrb[12].mxu0 }
 0x1e8   :  { %v1128_v44 = vpack.c.bf16 %v598_v42, %v598_v42  ;;  %v1310_v45 = vpop.f32.mrb[5].mxu1  ;;  %v1109_v46 = vpack.c.bf16 %v503_v43, %v503_v43  ;;  %v1253_v47 = vpop.f32.mrb[13].mxu0 }
 0x1ea   :  { %956 = vst.msk [vmem:[%s2012_s4 + $0x54] sm:$0xf] %vm934_vm2, %v1128_v44  ;;  %937 = vst.msk [vmem:[%s2012_s4 + $0x8] sm:$0xf] %vm934_vm2, %v1109_v46 }
 0x1eb   :  { %v603_v48 = vpop.f32.mrb[6].mxu1  ;;  %v508_v49 = vpop.f32.mrb[14].mxu0 }
 0x1ec   :  { %v1129_v50 = vpack.c.bf16 %v603_v48, %v603_v48  ;;  %v1313_v51 = vpop.f32.mrb[7].mxu1  ;;  %v1110_v52 = vpack.c.bf16 %v508_v49, %v508_v49  ;;  %v1256_v53 = vpop.f32.mrb[15].mxu0 }
 0x1ee   :  { %957 = vst.msk [vmem:[%s2012_s4 + $0x58] sm:$0xf] %vm934_vm2, %v1129_v50  ;;  %938 = vst.msk [vmem:[%s2012_s4 + $0xc] sm:$0xf] %vm934_vm2, %v1110_v52 }
 0x1ef   :  { %v608_v54 = vpop.f32.mrb[8].mxu1  ;;  %v513_v55 = vpop.f32.mrb[16].mxu0 }
 0x1f0   :  { %v1130_v56 = vpack.c.bf16 %v608_v54, %v608_v54  ;;  %v1316_v57 = vpop.f32.mrb[9].mxu1  ;;  %v1111_v58 = vpack.c.bf16 %v513_v55, %v513_v55  ;;  %v1259_v59 = vpop.f32.mrb[17].mxu0 }
 0x1f2   :  { %958 = vst.msk [vmem:[%s2012_s4 + $0x5c] sm:$0xf] %vm934_vm2, %v1130_v56  ;;  %939 = vst.msk [vmem:[%s2012_s4 + $0x10] sm:$0xf] %vm934_vm2, %v1111_v58 }
 0x1f3   :  { %v613_v60 = vpop.f32.mrb[10].mxu1  ;;  %v518_v61 = vpop.f32.mrb[18].mxu0 }
 0x1f4   :  { %v1131_v62 = vpack.c.bf16 %v613_v60, %v613_v60  ;;  %v1319_v63 = vpop.f32.mrb[11].mxu1  ;;  %v1112_v0 = vpack.c.bf16 %v518_v61, %v518_v61  ;;  %v1262_v1 = vpop.f32.mrb[19].mxu0 }
 0x1f6   :  { %959 = vst.msk [vmem:[%s2012_s4 + $0x60] sm:$0xf] %vm934_vm2, %v1131_v62  ;;  %940 = vst.msk [vmem:[%s2012_s4 + $0x14] sm:$0xf] %vm934_vm2, %v1112_v0 }
 0x1f7   :  { %v618_v2 = vpop.f32.mrb[12].mxu1  ;;  %v523_v3 = vpop.f32.mrb[20].mxu0 }
 0x1f8   :  { %v1132_v4 = vpack.c.bf16 %v618_v2, %v618_v2  ;;  %v1322_v5 = vpop.f32.mrb[13].mxu1  ;;  %v1113_v6 = vpack.c.bf16 %v523_v3, %v523_v3  ;;  %v1265_v7 = vpop.f32.mrb[21].mxu0 }
 0x1fa   :  { %960 = vst.msk [vmem:[%s2012_s4 + $0x64] sm:$0xf] %vm934_vm2, %v1132_v4  ;;  %941 = vst.msk [vmem:[%s2012_s4 + $0x18] sm:$0xf] %vm934_vm2, %v1113_v6 }
 0x1fb   :  { %v623_v8 = vpop.f32.mrb[14].mxu1  ;;  %v528_v9 = vpop.f32.mrb[22].mxu0 }
 0x1fc   :  { %v1133_v10 = vpack.c.bf16 %v623_v8, %v623_v8  ;;  %v1325_v11 = vpop.f32.mrb[15].mxu1  ;;  %v1114_v12 = vpack.c.bf16 %v528_v9, %v528_v9  ;;  %v1268_v13 = vpop.f32.mrb[23].mxu0 }
 0x1fe   :  { %961 = vst.msk [vmem:[%s2012_s4 + $0x68] sm:$0xf] %vm934_vm2, %v1133_v10  ;;  %942 = vst.msk [vmem:[%s2012_s4 + $0x1c] sm:$0xf] %vm934_vm2, %v1114_v12 }
 0x1ff   :  { %v628_v14 = vpop.f32.mrb[16].mxu1  ;;  %v533_v15 = vpop.f32.mrb[24].mxu0 }
 0x200   :  { %v1134_v16 = vpack.c.bf16 %v628_v14, %v628_v14  ;;  %v1328_v17 = vpop.f32.mrb[17].mxu1  ;;  %v1115_v18 = vpack.c.bf16 %v533_v15, %v533_v15  ;;  %v1271_v19 = vpop.f32.mrb[25].mxu0 }
 0x202   :  { %962 = vst.msk [vmem:[%s2012_s4 + $0x6c] sm:$0xf] %vm934_vm2, %v1134_v16  ;;  %943 = vst.msk [vmem:[%s2012_s4 + $0x20] sm:$0xf] %vm934_vm2, %v1115_v18 }
 0x203   :  { %v633_v20 = vpop.f32.mrb[18].mxu1  ;;  %v538_v22 = vpop.f32.mrb[26].mxu0 }
 0x204   :  { %v1135_v23 = vpack.c.bf16 %v633_v20, %v633_v20  ;;  %v1331_v24 = vpop.f32.mrb[19].mxu1  ;;  %v1116_v25 = vpack.c.bf16 %v538_v22, %v538_v22  ;;  %v1274_v26 = vpop.f32.mrb[27].mxu0 }
 0x206   :  { %963 = vst.msk [vmem:[%s2012_s4 + $0x70] sm:$0xf] %vm934_vm2, %v1135_v23  ;;  %944 = vst.msk [vmem:[%s2012_s4 + $0x24] sm:$0xf] %vm934_vm2, %v1116_v25 }
 0x207   :  { %v638_v27 = vpop.f32.mrb[20].mxu1  ;;  %v543_v28 = vpop.f32.mrb[28].mxu0 }
 0x208   :  { %v1136_v29 = vpack.c.bf16 %v638_v27, %v638_v27  ;;  %v1334_v30 = vpop.f32.mrb[21].mxu1  ;;  %v1117_v31 = vpack.c.bf16 %v543_v28, %v543_v28  ;;  %v1277_v32 = vpop.f32.mrb[29].mxu0 }
 0x20a   :  { %964 = vst.msk [vmem:[%s2012_s4 + $0x74] sm:$0xf] %vm934_vm2, %v1136_v29  ;;  %945 = vst.msk [vmem:[%s2012_s4 + $0x28] sm:$0xf] %vm934_vm2, %v1117_v31 }
 0x20b   :  { %v643_v33 = vpop.f32.mrb[22].mxu1  ;;  %v548_v34 = vpop.f32.mrb[30].mxu0 }
 0x20c   :  { %v1137_v35 = vpack.c.bf16 %v643_v33, %v643_v33  ;;  %v1337_v36 = vpop.f32.mrb[23].mxu1  ;;  %v1118_v21 = vpack.c.bf16 %v548_v34, %v548_v34  ;;  %v1280_v37 = vpop.f32.mrb[31].mxu0 }
 0x20e   :  { %965 = vst.msk [vmem:[%s2012_s4 + $0x78] sm:$0xf] %vm934_vm2, %v1137_v35  ;;  %946 = vst.msk [vmem:[%s2012_s4 + $0x2c] sm:$0xf] %vm934_vm2, %v1118_v21 }
 0x20f   :  { %v648_v38 = vpop.f32.mrb[24].mxu1  ;;  %v553_v39 = vpop.f32.mrb[32].mxu0 }
 0x210   :  { %v1138_v40 = vpack.c.bf16 %v648_v38, %v648_v38  ;;  %v1340_v41 = vpop.f32.mrb[25].mxu1  ;;  %v1119_v42 = vpack.c.bf16 %v553_v39, %v553_v39  ;;  %v1283_v43 = vpop.f32.mrb[33].mxu0 }
 0x212   :  { %966 = vst.msk [vmem:[%s2012_s4 + $0x7c] sm:$0xf] %vm934_vm2, %v1138_v40  ;;  %947 = vst.msk [vmem:[%s2012_s4 + $0x30] sm:$0xf] %vm934_vm2, %v1119_v42 }
 0x213   :  { %v653_v44 = vpop.f32.mrb[26].mxu1  ;;  %v558_v45 = vpop.f32.mrb[34].mxu0 }
 0x214   :  { %v1139_v46 = vpack.c.bf16 %v653_v44, %v653_v44  ;;  %v1343_v47 = vpop.f32.mrb[27].mxu1  ;;  %v1120_v48 = vpack.c.bf16 %v558_v45, %v558_v45  ;;  %v1286_v49 = vpop.f32.mrb[35].mxu0 }
 0x216   :  { %967 = vst.msk [vmem:[%s2012_s4 + $0x80] sm:$0xf] %vm934_vm2, %v1139_v46  ;;  %948 = vst.msk [vmem:[%s2012_s4 + $0x34] sm:$0xf] %vm934_vm2, %v1120_v48 }
 0x217   :  { %v658_v50 = vpop.f32.mrb[28].mxu1  ;;  %v563_v51 = vpop.f32.mrb[36].mxu0 }
 0x218   :  { %v1140_v52 = vpack.c.bf16 %v658_v50, %v658_v50  ;;  %v1346_v53 = vpop.f32.mrb[29].mxu1  ;;  %v1121_v54 = vpack.c.bf16 %v563_v51, %v563_v51  ;;  %v1289_v55 = vpop.f32.mrb[37].mxu0 }
 0x21a   :  { %968 = vst.msk [vmem:[%s2012_s4 + $0x84] sm:$0xf] %vm934_vm2, %v1140_v52  ;;  %949 = vst.msk [vmem:[%s2012_s4 + $0x38] sm:$0xf] %vm934_vm2, %v1121_v54 }
 0x21b   :  { %v663_v56 = vpop.f32.mrb[30].mxu1  ;;  %v568_v57 = vpop.f32.mrb[38].mxu0 }
 0x21c   :  { %v1141_v58 = vpack.c.bf16 %v663_v56, %v663_v56  ;;  %v1349_v59 = vpop.f32.mrb[31].mxu1  ;;  %v1122_v60 = vpack.c.bf16 %v568_v57, %v568_v57  ;;  %v1292_v61 = vpop.f32.mrb[39].mxu0 }
 0x21e   :  { %969 = vst.msk [vmem:[%s2012_s4 + $0x88] sm:$0xf] %vm934_vm2, %v1141_v58  ;;  %950 = vst.msk [vmem:[%s2012_s4 + $0x3c] sm:$0xf] %vm934_vm2, %v1122_v60 }
 0x21f   :  { %v668_v62 = vpop.f32.mrb[32].mxu1  ;;  %v573_v63 = vpop.f32.mrb[40].mxu0 }
 0x220   :  { %v1142_v0 = vpack.c.bf16 %v668_v62, %v668_v62  ;;  %v1352_v1 = vpop.f32.mrb[33].mxu1  ;;  %v1123_v2 = vpack.c.bf16 %v573_v63, %v573_v63  ;;  %v1295_v3 = vpop.f32.mrb[41].mxu0 }
 0x222   :  { %970 = vst.msk [vmem:[%s2012_s4 + $0x8c] sm:$0xf] %vm934_vm2, %v1142_v0  ;;  %951 = vst.msk [vmem:[%s2012_s4 + $0x40] sm:$0xf] %vm934_vm2, %v1123_v2 }
 0x223   :  { %v673_v4 = vpop.f32.mrb[34].mxu1  ;;  %v578_v5 = vpop.f32.mrb[42].mxu0 }
 0x224   :  { %v1143_v6 = vpack.c.bf16 %v673_v4, %v673_v4  ;;  %v1355_v7 = vpop.f32.mrb[35].mxu1  ;;  %v1124_v8 = vpack.c.bf16 %v578_v5, %v578_v5  ;;  %v1298_v9 = vpop.f32.mrb[43].mxu0 }
 0x226   :  { %971 = vst.msk [vmem:[%s2012_s4 + $0x90] sm:$0xf] %vm934_vm2, %v1143_v6  ;;  %952 = vst.msk [vmem:[%s2012_s4 + $0x44] sm:$0xf] %vm934_vm2, %v1124_v8 }
 0x227   :  { %v678_v10 = vpop.f32.mrb[36].mxu1  ;;  %v583_v11 = vpop.f32.mrb[44].mxu0 }
 0x228   :  { %v1144_v12 = vpack.c.bf16 %v678_v10, %v678_v10  ;;  %v1358_v13 = vpop.f32.mrb[37].mxu1  ;;  %v1125_v14 = vpack.c.bf16 %v583_v11, %v583_v11  ;;  %v1301_v15 = vpop.f32.mrb[45].mxu0 }
 0x22a   :  { %972 = vst.msk [vmem:[%s2012_s4 + $0x94] sm:$0xf] %vm934_vm2, %v1144_v12  ;;  %953 = vst.msk [vmem:[%s2012_s4 + $0x48] sm:$0xf] %vm934_vm2, %v1125_v14 }
 0x22b   :  { %v683_v16 = vpop.f32.mrb[38].mxu1 }
 0x22c   :  { %v1145_v17 = vpack.c.bf16 %v683_v16, %v683_v16  ;;  %v1361_v18 = vpop.f32.mrb[39].mxu1 }
 0x22e   :  { %973 = vst.msk [vmem:[%s2012_s4 + $0x98] sm:$0xf] %vm934_vm2, %v1145_v17 }
 0x22f   :  { %v688_v19 = vpop.f32.mrb[40].mxu1 }
 0x230   :  { %v1146_v20 = vpack.c.bf16 %v688_v19, %v688_v19  ;;  %v1364_v22 = vpop.f32.mrb[41].mxu1 }
 0x232   :  { %974 = vst.msk [vmem:[%s2012_s4 + $0x9c] sm:$0xf] %vm934_vm2, %v1146_v20 }
 0x233   :  { %v693_v23 = vpop.f32.mrb[42].mxu1 }
 0x234   :  { %v1147_v24 = vpack.c.bf16 %v693_v23, %v693_v23  ;;  %v1367_v25 = vpop.f32.mrb[43].mxu1 }
 0x236   :  { %975 = vst.msk [vmem:[%s2012_s4 + $0xa0] sm:$0xf] %vm934_vm2, %v1147_v24 }
 0x237   :  { %v698_v26 = vpop.f32.mrb[44].mxu1 }
 0x238   :  { %v1148_v27 = vpack.c.bf16 %v698_v26, %v698_v26  ;;  %v1370_v28 = vpop.f32.mrb[45].mxu1 }
 0x23a   :  { %976 = vst.msk [vmem:[%s2012_s4 + $0xa4] sm:$0xf] %vm934_vm2, %v1148_v27 }
 0x23b   :  { %v703_v29 = vpop.f32.mrb[46].mxu1 }
 0x23c   :  { %v1149_v30 = vpack.c.bf16 %v703_v29, %v703_v29  ;;  %v1373_v31 = vpop.f32.mrb[47].mxu1 }
 0x23e   :  { %977 = vst.msk [vmem:[%s2012_s4 + $0xa8] sm:$0xf] %vm934_vm2, %v1149_v30 }
 0x23f   :  { %v708_v32 = vpop.f32.mrb[48].mxu1 }
 0x240   :  { %v1150_v33 = vpack.c.bf16 %v708_v32, %v708_v32  ;;  %v1376_v34 = vpop.f32.mrb[49].mxu1 }
 0x242   :  { %978 = vst.msk [vmem:[%s2012_s4 + $0xac] sm:$0xf] %vm934_vm2, %v1150_v33 }
 0x243   :  { %v713_v35 = vpop.f32.mrb[50].mxu1 }
 0x244   :  { %v1151_v36 = vpack.c.bf16 %v713_v35, %v713_v35  ;;  %v1379_v21 = vpop.f32.mrb[51].mxu1 }
 0x246   :  { %979 = vst.msk [vmem:[%s2012_s4 + $0xb0] sm:$0xf] %vm934_vm2, %v1151_v36 }
 0x247   :  { %v718_v37 = vpop.f32.mrb[52].mxu1 }
 0x248   :  { %v1152_v38 = vpack.c.bf16 %v718_v37, %v718_v37  ;;  %v1382_v39 = vpop.f32.mrb[53].mxu1 }
 0x24a   :  { %980 = vst.msk [vmem:[%s2012_s4 + $0xb4] sm:$0xf] %vm934_vm2, %v1152_v38 }
 0x24b   :  { %v723_v40 = vpop.f32.mrb[54].mxu1 }
 0x24c   :  { %v1153_v41 = vpack.c.bf16 %v723_v40, %v723_v40  ;;  %v1385_v42 = vpop.f32.mrb[55].mxu1 }
 0x24e   :  { %981 = vst.msk [vmem:[%s2012_s4 + $0xb8] sm:$0xf] %vm934_vm2, %v1153_v41 }
 0x24f   :  { %v728_v43 = vpop.f32.mrb[56].mxu1 }
 0x250   :  { %v1154_v44 = vpack.c.bf16 %v728_v43, %v728_v43  ;;  %v1388_v45 = vpop.f32.mrb[57].mxu1 }
 0x252   :  { %982 = vst.msk [vmem:[%s2012_s4 + $0xbc] sm:$0xf] %vm934_vm2, %v1154_v44 }
 0x253   :  { %v733_v46 = vpop.f32.mrb[58].mxu1 }
 0x254   :  { %v1155_v47 = vpack.c.bf16 %v733_v46, %v733_v46  ;;  %v1391_v48 = vpop.f32.mrb[59].mxu1 }
 0x256   :  { %983 = vst.msk [vmem:[%s2012_s4 + $0xc0] sm:$0xf] %vm934_vm2, %v1155_v47 }

// kernel: forward.9
= control target key start
LH: loop header
LB: loop body
LE: loop exit
PB: predicated region body
PF: predicated region fallthrough
CT: control target
= control target key end

     0   :  { %s3161_s0 = inlined_call_operand.vmem [shape: f32[8,1024], index: 0, kind: input, shape index: {}]   ;;  %s3162_s1 = inlined_call_operand.vmem [shape: bf16[1024,256], index: 1, kind: input, shape index: {}]   ;;  %s3163_s2 = inlined_call_operand.vmem [shape: f32[1,256], index: 2, kind: input, shape index: {}]   ;;  %s3164_s3 = inlined_call_operand.vmem [shape: f32[1,256], index: 3, kind: input, shape index: {}]   ;;  %s3165_s4 = inlined_call_operand.vmem [shape: f32[1,256], index: 4, kind: input, shape index: {}]   ;;  %s3166_s5 = inlined_call_operand.vmem [shape: f32[8,8], index: 5, kind: input, shape index: {}]   ;;  %s3167_s6 = inlined_call_operand.vmem [shape: bf16[256,128], index: 6, kind: input, shape index: {}]   ;;  %s3168_s7 = inlined_call_operand.vmem [shape: f32[1,128], index: 7, kind: input, shape index: {}]   ;;  %s3169_s8 = inlined_call_operand.vmem [shape: bf16[256,128], index: 8, kind: input, shape index: {}]   ;;  %s3170_s9 = inlined_call_operand.vmem [shape: bf16[256,128], index: 9, kind: input, shape index: {}]   ;;  %s3171_s10 = inlined_call_operand.vmem [shape: f32[1,128], index: 10, kind: input, shape index: {}]   ;;  %s3172_s11 = inlined_call_operand.vmem [shape: f32[16,8], index: 11, kind: input, shape index: {}]   ;;  %s3173_s12 = inlined_call_operand.vmem [shape: f32[16,8], index: 12, kind: input, shape index: {}]   ;;  %s3174_s13 = inlined_call_operand.hbm [shape: f32[8,128], index: 13, kind: output, shape index: {0}]   ;;  %s3175_s14 = inlined_call_operand.vmem [shape: f32[16,128], index: 14, kind: output, shape index: {1}]  }
   0x1   :  { %v2193_v0 = vld [vmem:[%s3162_s1 + $0x104] ss:$8 sps:$4 sm:$0xff]   ;;  %v2195_v1 = vld [vmem:[%s3162_s1 + $0x100] ss:$8 sps:$4 sm:$0xff]   ;;  %v2196_v2 = vld [vmem:[%s3162_s1 + $0x114] ss:$8 sps:$4 sm:$0xff]  }
   0x2   :  { %873 = vmatprep.subr.bf16.mxu0 %v2193_v0  ;;  %v2198_v3 = vld [vmem:[%s3162_s1 + $0x110] ss:$8 sps:$4 sm:$0xff]   ;;  %v2199_v4 = vld [vmem:[%s3162_s1 + $0x124] ss:$8 sps:$4 sm:$0xff]   ;;  %v2201_v5 = vld [vmem:[%s3162_s1 + $0x120] ss:$8 sps:$4 sm:$0xff]  }
   0x3   :  { %874 = vmatpush1.bf16.msra.mxu0 %v2195_v1  ;;  %v2202_v6 = vld [vmem:[%s3162_s1 + $0x134] ss:$8 sps:$4 sm:$0xff]   ;;  %v2204_v7 = vld [vmem:[%s3162_s1 + $0x130] ss:$8 sps:$4 sm:$0xff]   ;;  %v2205_v8 = vld [vmem:[%s3162_s1 + $0x144] ss:$8 sps:$4 sm:$0xff]  }
   0x4   :  { %875 = vmatprep.subr.bf16.mxu0 %v2196_v2  ;;  %v2207_v9 = vld [vmem:[%s3162_s1 + $0x140] ss:$8 sps:$4 sm:$0xff]   ;;  %v2208_v10 = vld [vmem:[%s3162_s1 + $0x154] ss:$8 sps:$4 sm:$0xff]   ;;  %v2210_v11 = vld [vmem:[%s3162_s1 + $0x150] ss:$8 sps:$4 sm:$0xff]  }
   0x5   :  { %v2211_v12 = vld [vmem:[%s3162_s1 + $0x164] ss:$8 sps:$4 sm:$0xff]   ;;  %v51_v13 = vld [vmem:[%s3161_s0 + $0x18] sm:$0xff]  ;;  %v2213_v15 = vld [vmem:[%s3162_s1 + $0x160] ss:$8 sps:$4 sm:$0xff]  }
   0x6   :  { %v59_v14 = vpack.c.bf16 %v51_v13, %v51_v13  ;;  %v2214_v16 = vld [vmem:[%s3162_s1 + $0x174] ss:$8 sps:$4 sm:$0xff]   ;;  %v2216_v17 = vld [vmem:[%s3162_s1 + $0x170] ss:$8 sps:$4 sm:$0xff]   ;;  %v2217_v18 = vld [vmem:[%s3162_s1 + $0x184] ss:$8 sps:$4 sm:$0xff]  }
   0x7   :  { %876 = vmatpush1.bf16.msra.mxu0 %v2198_v3  ;;  %v2219_v19 = vld [vmem:[%s3162_s1 + $0x180] ss:$8 sps:$4 sm:$0xff]   ;;  %v2220_v20 = vld [vmem:[%s3162_s1 + $0x194] ss:$8 sps:$4 sm:$0xff]   ;;  %v2222_v21 = vld [vmem:[%s3162_s1 + $0x190] ss:$8 sps:$4 sm:$0xff]  }
   0x8   :  { %877 = vmatprep.subr.bf16.mxu0 %v2199_v4  ;;  %905 = vmatprep.mubr.bf16.mxu0 %v59_v14  ;;  %v2223_v22 = vld [vmem:[%s3162_s1 + $0x1a4] ss:$8 sps:$4 sm:$0xff]   ;;  %v2225_v23 = vld [vmem:[%s3162_s1 + $0x1a0] ss:$8 sps:$4 sm:$0xff]   ;;  %v2226_v24 = vld [vmem:[%s3162_s1 + $0x1b4] ss:$8 sps:$4 sm:$0xff]  }
   0x9   :  { %v2228_v25 = vld [vmem:[%s3162_s1 + $0x1b0] ss:$8 sps:$4 sm:$0xff]   ;;  %v2229_v26 = vld [vmem:[%s3162_s1 + $0x1c4] ss:$8 sps:$4 sm:$0xff]   ;;  %v2291_v28 = vld [vmem:[%s3162_s1] ss:$8 sps:$4 sm:$0xff]  }
   0xa   :  { %v2289_v27 = vld [vmem:[%s3162_s1 + $0x4] ss:$8 sps:$4 sm:$0xff]   ;;  %v2231_v29 = vld [vmem:[%s3162_s1 + $0x1c0] ss:$8 sps:$4 sm:$0xff]   ;;  %v2295_v30 = vld [vmem:[%s3162_s1 + $0x14] ss:$8 sps:$4 sm:$0xff]  }
   0xb   :  { %878 = vmatpush1.bf16.msra.mxu0 %v2201_v5  ;;  %832 = vmatprep.subr.bf16.mxu1 %v2289_v27  ;;  %v2297_v31 = vld [vmem:[%s3162_s1 + $0x10] ss:$8 sps:$4 sm:$0xff]   ;;  %v2232_v32 = vld [vmem:[%s3162_s1 + $0x1d4] ss:$8 sps:$4 sm:$0xff]   ;;  %v2301_v34 = vld [vmem:[%s3162_s1 + $0x24] ss:$8 sps:$4 sm:$0xff]  }
   0xc   :  { %879 = vmatprep.subr.bf16.mxu0 %v2202_v6  ;;  %833 = vmatpush1.bf16.msra.mxu1 %v2291_v28  ;;  %v2234_v33 = vld [vmem:[%s3162_s1 + $0x1d0] ss:$8 sps:$4 sm:$0xff]   ;;  %v2235_v35 = vld [vmem:[%s3162_s1 + $0x1e4] ss:$8 sps:$4 sm:$0xff]   ;;  %v2303_v36 = vld [vmem:[%s3162_s1 + $0x20] ss:$8 sps:$4 sm:$0xff]  }
   0xd   :  { %834 = vmatprep.subr.bf16.mxu1 %v2295_v30  ;;  %v2307_v37 = vld [vmem:[%s3162_s1 + $0x34] ss:$8 sps:$4 sm:$0xff]   ;;  %v2237_v38 = vld [vmem:[%s3162_s1 + $0x1e0] ss:$8 sps:$4 sm:$0xff]   ;;  %v2309_v40 = vld [vmem:[%s3162_s1 + $0x30] ss:$8 sps:$4 sm:$0xff]  }
   0xe   :  { %v2238_v39 = vld [vmem:[%s3162_s1 + $0x1f4] ss:$8 sps:$4 sm:$0xff]   ;;  %v2313_v41 = vld [vmem:[%s3162_s1 + $0x44] ss:$8 sps:$4 sm:$0xff]   ;;  %v2240_v42 = vld [vmem:[%s3162_s1 + $0x1f0] ss:$8 sps:$4 sm:$0xff]  }
   0xf   :  { %880 = vmatpush1.bf16.msra.mxu0 %v2204_v7  ;;  %v2243_v43 = vld [vmem:[%s3162_s1 + $0x204] ss:$8 sps:$4 sm:$0xff]   ;;  %v50_v44 = vld [vmem:[%s3161_s0 + $0x10] sm:$0xff]  ;;  %v2315_v46 = vld [vmem:[%s3162_s1 + $0x40] ss:$8 sps:$4 sm:$0xff]  }
  0x10   :  { %881 = vmatprep.subr.bf16.mxu0 %v2205_v8  ;;  %835 = vmatpush1.bf16.msra.mxu1 %v2297_v31  ;;  %v53_v45 = vld [vmem:[%s3161_s0 + $0x28] sm:$0xff]  ;;  %v2319_v47 = vld [vmem:[%s3162_s1 + $0x54] ss:$8 sps:$4 sm:$0xff]   ;;  %v58_v48 = vpack.c.bf16 %v50_v44, %v50_v44  ;;  %v2321_v52 = vld [vmem:[%s3162_s1 + $0x50] ss:$8 sps:$4 sm:$0xff]  }
  0x11   :  { %836 = vmatprep.subr.bf16.mxu1 %v2301_v34  ;;  %v2241_v49 = vld [vmem:[%s3162_s1 + $0x200] ss:$8 sps:$4 sm:$0xff]   ;;  %v2246_v50 = vld [vmem:[%s3162_s1 + $0x214] ss:$8 sps:$4 sm:$0xff]   ;;  %v61_v51 = vpack.c.bf16 %v53_v45, %v53_v45  ;;  %v2325_v53 = vld [vmem:[%s3162_s1 + $0x64] ss:$8 sps:$4 sm:$0xff]  }
  0x12   :  { %v2244_v54 = vld [vmem:[%s3162_s1 + $0x210] ss:$8 sps:$4 sm:$0xff]   ;;  %v2249_v55 = vld [vmem:[%s3162_s1 + $0x224] ss:$8 sps:$4 sm:$0xff]   ;;  %v2327_v56 = vld [vmem:[%s3162_s1 + $0x60] ss:$8 sps:$4 sm:$0xff]  }
  0x13   :  { %882 = vmatpush1.bf16.msra.mxu0 %v2207_v9  ;;  %v2331_v57 = vld [vmem:[%s3162_s1 + $0x74] ss:$8 sps:$4 sm:$0xff]   ;;  %v2247_v58 = vld [vmem:[%s3162_s1 + $0x220] ss:$8 sps:$4 sm:$0xff]   ;;  %v2333_v60 = vld [vmem:[%s3162_s1 + $0x70] ss:$8 sps:$4 sm:$0xff]  }
  0x14   :  { %883 = vmatprep.subr.bf16.mxu0 %v2208_v10  ;;  %837 = vmatpush1.bf16.msra.mxu1 %v2303_v36  ;;  %v2252_v59 = vld [vmem:[%s3162_s1 + $0x234] ss:$8 sps:$4 sm:$0xff]   ;;  %v2337_v61 = vld [vmem:[%s3162_s1 + $0x84] ss:$8 sps:$4 sm:$0xff]   ;;  %v2250_v62 = vld [vmem:[%s3162_s1 + $0x230] ss:$8 sps:$4 sm:$0xff]  }
  0x15   :  { %838 = vmatprep.subr.bf16.mxu1 %v2307_v37  ;;  %v2255_v63 = vld [vmem:[%s3162_s1 + $0x244] ss:$8 sps:$4 sm:$0xff]   ;;  %v2339_v0 = vld [vmem:[%s3162_s1 + $0x80] ss:$8 sps:$4 sm:$0xff]   ;;  %v2343_v1 = vld [vmem:[%s3162_s1 + $0x94] ss:$8 sps:$4 sm:$0xff]  }
  0x16   :  { %v2253_v2 = vld [vmem:[%s3162_s1 + $0x240] ss:$8 sps:$4 sm:$0xff]   ;;  %v2258_v3 = vld [vmem:[%s3162_s1 + $0x254] ss:$8 sps:$4 sm:$0xff]   ;;  %v2345_v4 = vld [vmem:[%s3162_s1 + $0x90] ss:$8 sps:$4 sm:$0xff]  }
  0x17   :  { %884 = vmatpush1.bf16.msra.mxu0 %v2210_v11  ;;  %v2349_v5 = vld [vmem:[%s3162_s1 + $0xa4] ss:$8 sps:$4 sm:$0xff]   ;;  %v2256_v6 = vld [vmem:[%s3162_s1 + $0x250] ss:$8 sps:$4 sm:$0xff]   ;;  %v2351_v8 = vld [vmem:[%s3162_s1 + $0xa0] ss:$8 sps:$4 sm:$0xff]  }
  0x18   :  { %885 = vmatprep.subr.bf16.mxu0 %v2211_v12  ;;  %839 = vmatpush1.bf16.msra.mxu1 %v2309_v40  ;;  %v2261_v7 = vld [vmem:[%s3162_s1 + $0x264] ss:$8 sps:$4 sm:$0xff]   ;;  %v2355_v9 = vld [vmem:[%s3162_s1 + $0xb4] ss:$8 sps:$4 sm:$0xff]   ;;  %v2259_v11 = vld [vmem:[%s3162_s1 + $0x260] ss:$8 sps:$4 sm:$0xff]  }
  0x19   :  { %840 = vmatprep.subr.bf16.mxu1 %v2313_v41  ;;  %v49_v10 = vld [vmem:[%s3161_s0 + $0x8] sm:$0xff]  ;;  %v2264_v13 = vld [vmem:[%s3162_s1 + $0x274] ss:$8 sps:$4 sm:$0xff]   ;;  %v2357_v14 = vld [vmem:[%s3162_s1 + $0xb0] ss:$8 sps:$4 sm:$0xff]  }
  0x1a   :  { %v57_v12 = vpack.c.bf16 %v49_v10, %v49_v10  ;;  %v2379_v27 = vld [vmem:[%s3162_s1 + $0xf4] ss:$8 sps:$4 sm:$0xff]   ;;  %v2271_v28 = vld [vmem:[%s3162_s1 + $0x2a0] ss:$8 sps:$4 sm:$0xff]   ;;  %v2381_v30 = vld [vmem:[%s3162_s1 + $0xf0] ss:$8 sps:$4 sm:$0xff]  }
  0x1b   :  { %886 = vmatpush1.bf16.msra.mxu0 %v2213_v15  ;;  %v2361_v15 = vld [vmem:[%s3162_s1 + $0xc4] ss:$8 sps:$4 sm:$0xff]   ;;  %v2282_v36 = vld [vmem:[%s3162_s1 + $0x2d4] ss:$8 sps:$4 sm:$0xff]   ;;  %v2280_v37 = vld [vmem:[%s3162_s1 + $0x2d0] ss:$8 sps:$4 sm:$0xff]  }
  0x1c   :  { %887 = vmatprep.subr.bf16.mxu0 %v2214_v16  ;;  %841 = vmatpush1.bf16.msra.mxu1 %v2315_v46  ;;  %v2262_v16 = vld [vmem:[%s3162_s1 + $0x270] ss:$8 sps:$4 sm:$0xff]   ;;  %v48_v31 = vld [vmem:[%s3161_s0] sm:$0xff]  ;;  %v2288_v40 = vld [vmem:[%s3162_s1 + $0x2f4] ss:$8 sps:$4 sm:$0xff]  }
  0x1d   :  { %842 = vmatprep.subr.bf16.mxu1 %v2319_v47  ;;  %864 = vmatprep.mubr.bf16.mxu1 %v57_v12  ;;  %v56_v34 = vpack.c.bf16 %v48_v31, %v48_v31 }
  0x1f   :  { %888 = vmatpush1.bf16.msra.mxu0 %v2216_v17  ;;  %v2267_v17 = vld [vmem:[%s3162_s1 + $0x284] ss:$8 sps:$4 sm:$0xff]  }
  0x20   :  { %889 = vmatprep.subr.bf16.mxu0 %v2217_v18  ;;  %843 = vmatpush1.bf16.msra.mxu1 %v2321_v52  ;;  %v2363_v18 = vld [vmem:[%s3162_s1 + $0xc0] ss:$8 sps:$4 sm:$0xff]  }
  0x21   :  { %844 = vmatprep.subr.bf16.mxu1 %v2325_v53 }
  0x23   :  { %890 = vmatpush1.bf16.msra.mxu0 %v2219_v19  ;;  %v2367_v19 = vld [vmem:[%s3162_s1 + $0xd4] ss:$8 sps:$4 sm:$0xff]  }
  0x24   :  { %891 = vmatprep.subr.bf16.mxu0 %v2220_v20  ;;  %845 = vmatpush1.bf16.msra.mxu1 %v2327_v56  ;;  %v2265_v20 = vld [vmem:[%s3162_s1 + $0x280] ss:$8 sps:$4 sm:$0xff]  }
  0x25   :  { %846 = vmatprep.subr.bf16.mxu1 %v2331_v57 }
  0x27   :  { %892 = vmatpush1.bf16.msra.mxu0 %v2222_v21  ;;  %v2270_v21 = vld [vmem:[%s3162_s1 + $0x294] ss:$8 sps:$4 sm:$0xff]  }
  0x28   :  { %893 = vmatprep.subr.bf16.mxu0 %v2223_v22  ;;  %847 = vmatpush1.bf16.msra.mxu1 %v2333_v60  ;;  %v2369_v22 = vld [vmem:[%s3162_s1 + $0xd0] ss:$8 sps:$4 sm:$0xff]  }
  0x29   :  { %848 = vmatprep.subr.bf16.mxu1 %v2337_v61 }
  0x2b   :  { %894 = vmatpush1.bf16.msra.mxu0 %v2225_v23  ;;  %v2373_v23 = vld [vmem:[%s3162_s1 + $0xe4] ss:$8 sps:$4 sm:$0xff]  }
  0x2c   :  { %895 = vmatprep.subr.bf16.mxu0 %v2226_v24  ;;  %849 = vmatpush1.bf16.msra.mxu1 %v2339_v0  ;;  %v2268_v24 = vld [vmem:[%s3162_s1 + $0x290] ss:$8 sps:$4 sm:$0xff]  }
  0x2d   :  { %850 = vmatprep.subr.bf16.mxu1 %v2343_v1 }
  0x2f   :  { %896 = vmatpush1.bf16.msra.mxu0 %v2228_v25  ;;  %v2273_v25 = vld [vmem:[%s3162_s1 + $0x2a4] ss:$8 sps:$4 sm:$0xff]  }
  0x30   :  { %897 = vmatprep.subr.bf16.mxu0 %v2229_v26  ;;  %851 = vmatpush1.bf16.msra.mxu1 %v2345_v4  ;;  %v2375_v26 = vld [vmem:[%s3162_s1 + $0xe0] ss:$8 sps:$4 sm:$0xff]  }
  0x31   :  { %852 = vmatprep.subr.bf16.mxu1 %v2349_v5 }
  0x33   :  { %898 = vmatpush1.bf16.msra.mxu0 %v2231_v29  ;;  %v2276_v29 = vld [vmem:[%s3162_s1 + $0x2b4] ss:$8 sps:$4 sm:$0xff]  }
  0x34   :  { %899 = vmatprep.subr.bf16.mxu0 %v2232_v32  ;;  %853 = vmatpush1.bf16.msra.mxu1 %v2351_v8  ;;  %v2274_v32 = vld [vmem:[%s3162_s1 + $0x2b0] ss:$8 sps:$4 sm:$0xff]  }
  0x35   :  { %854 = vmatprep.subr.bf16.mxu1 %v2355_v9 }
  0x37   :  { %900 = vmatpush1.bf16.msra.mxu0 %v2234_v33  ;;  %v2279_v33 = vld [vmem:[%s3162_s1 + $0x2c4] ss:$8 sps:$4 sm:$0xff]  }
  0x38   :  { %901 = vmatprep.subr.bf16.mxu0 %v2235_v35  ;;  %855 = vmatpush1.bf16.msra.mxu1 %v2357_v14  ;;  %v2277_v35 = vld [vmem:[%s3162_s1 + $0x2c0] ss:$8 sps:$4 sm:$0xff]  }
  0x39   :  { %856 = vmatprep.subr.bf16.mxu1 %v2361_v15 }
  0x3b   :  { %902 = vmatpush1.bf16.msra.mxu0 %v2237_v38  ;;  %v2285_v38 = vld [vmem:[%s3162_s1 + $0x2e4] ss:$8 sps:$4 sm:$0xff]  }
  0x3c   :  { %903 = vmatprep.subr.bf16.mxu0 %v2238_v39  ;;  %857 = vmatpush1.bf16.msra.mxu1 %v2363_v18  ;;  %v2283_v39 = vld [vmem:[%s3162_s1 + $0x2e0] ss:$8 sps:$4 sm:$0xff]  }
  0x3d   :  { %858 = vmatprep.subr.bf16.mxu1 %v2367_v19 }
  0x3f   :  { %904 = vmatpush1.bf16.msra.mxu0 %v2240_v42 }
  0x40   :  { %914 = vmatprep.subr.bf16.mxu0 %v2243_v43  ;;  %859 = vmatpush1.bf16.msra.mxu1 %v2369_v22 }
  0x41   :  { %860 = vmatprep.subr.bf16.mxu1 %v2373_v23 }
  0x42   :  { %906 = vmatmul.mubr.bf16.vlgmr.msra.gmra.mrb[0].mxu0 %v58_v48 }
  0x43   :  { %915 = vmatpush1.bf16.msra.mxu0 %v2241_v49  ;;  %946 = vmatprep.mubr.bf16.mxu0 %v61_v51 }
  0x44   :  { %916 = vmatprep.subr.bf16.mxu0 %v2246_v50  ;;  %861 = vmatpush1.bf16.msra.mxu1 %v2375_v26 }
  0x45   :  { %862 = vmatprep.subr.bf16.mxu1 %v2379_v27 }
  0x47   :  { %917 = vmatpush1.bf16.msra.mxu0 %v2244_v54 }
  0x48   :  { %918 = vmatprep.subr.bf16.mxu0 %v2249_v55  ;;  %863 = vmatpush1.bf16.msra.mxu1 %v2381_v30 }
  0x4b   :  { %919 = vmatpush1.bf16.msra.mxu0 %v2247_v58  ;;  %865 = vmatmul.mubr.bf16.vlgmr.msra.gmra.mrb[0].mxu1 %v56_v34 }
  0x4c   :  { %920 = vmatprep.subr.bf16.mxu0 %v2252_v59 }
  0x4f   :  { %921 = vmatpush1.bf16.msra.mxu0 %v2250_v62 }
  0x50   :  { %922 = vmatprep.subr.bf16.mxu0 %v2255_v63 }
  0x53   :  { %923 = vmatpush1.bf16.msra.mxu0 %v2253_v2 }
  0x54   :  { %924 = vmatprep.subr.bf16.mxu0 %v2258_v3 }
  0x57   :  { %925 = vmatpush1.bf16.msra.mxu0 %v2256_v6 }
  0x58   :  { %926 = vmatprep.subr.bf16.mxu0 %v2261_v7 }
  0x5b   :  { %927 = vmatpush1.bf16.msra.mxu0 %v2259_v11 }
  0x5c   :  { %928 = vmatprep.subr.bf16.mxu0 %v2264_v13 }
  0x5f   :  { %929 = vmatpush1.bf16.msra.mxu0 %v2262_v16 }
  0x60   :  { %930 = vmatprep.subr.bf16.mxu0 %v2267_v17 }
  0x63   :  { %931 = vmatpush1.bf16.msra.mxu0 %v2265_v20 }
  0x64   :  { %932 = vmatprep.subr.bf16.mxu0 %v2270_v21 }
  0x67   :  { %933 = vmatpush1.bf16.msra.mxu0 %v2268_v24 }
  0x68   :  { %934 = vmatprep.subr.bf16.mxu0 %v2273_v25 }
  0x6b   :  { %935 = vmatpush1.bf16.msra.mxu0 %v2271_v28 }
  0x6c   :  { %936 = vmatprep.subr.bf16.mxu0 %v2276_v29 }
  0x6f   :  { %937 = vmatpush1.bf16.msra.mxu0 %v2274_v32 }
  0x70   :  { %938 = vmatprep.subr.bf16.mxu0 %v2279_v33 }
  0x73   :  { %939 = vmatpush1.bf16.msra.mxu0 %v2277_v35 }
  0x74   :  { %940 = vmatprep.subr.bf16.mxu0 %v2282_v36 }
  0x77   :  { %941 = vmatpush1.bf16.msra.mxu0 %v2280_v37 }
  0x78   :  { %942 = vmatprep.subr.bf16.mxu0 %v2285_v38 }
  0x79   :  { %20 = vsyncpa [#allocation3], 0  ;;  %v2286_v41 = vld [vmem:[%s3162_s1 + $0x2f0] ss:$8 sps:$4 sm:$0xff]   ;;  %v52_v42 = vld [vmem:[%s3161_s0 + $0x20] sm:$0xff]  ;;  %v998_v16 = vlaneseq  ;;  %vm1106_vm2 = vcmask 64512  }
  0x7a   :  { %v2294_v43 = vld [vmem:[%s3162_s1 + $0x304] ss:$8 sps:$4 sm:$0xff]   ;;  %v55_v44 = vld [vmem:[%s3161_s0 + $0x38] sm:$0xff]  ;;  %v60_v45 = vpack.c.bf16 %v52_v42, %v52_v42  ;;  %v2292_v46 = vld [vmem:[%s3162_s1 + $0x300] ss:$8 sps:$4 sm:$0xff]   ;;  %s2462_s28 = smov [#allocation2]  }
  0x7b   :  { %943 = vmatpush1.bf16.msra.mxu0 %v2283_v39  ;;  %v63_v47 = vpack.c.bf16 %v55_v44, %v55_v44  ;;  %v2300_v48 = vld [vmem:[%s3162_s1 + $0x314] ss:$8 sps:$4 sm:$0xff]   ;;  %v2298_v49 = vld [vmem:[%s3162_s1 + $0x310] ss:$8 sps:$4 sm:$0xff]   ;;  %v2306_v50 = vld [vmem:[%s3162_s1 + $0x324] ss:$8 sps:$4 sm:$0xff]  }
  0x7c   :  { %944 = vmatprep.subr.bf16.mxu0 %v2288_v40  ;;  %v2304_v51 = vld [vmem:[%s3162_s1 + $0x320] ss:$8 sps:$4 sm:$0xff]   ;;  %v2312_v52 = vld [vmem:[%s3162_s1 + $0x334] ss:$8 sps:$4 sm:$0xff]   ;;  %v2310_v53 = vld [vmem:[%s3162_s1 + $0x330] ss:$8 sps:$4 sm:$0xff]  }
  0x7d   :  { %v2318_v54 = vld [vmem:[%s3162_s1 + $0x344] ss:$8 sps:$4 sm:$0xff]   ;;  %v2316_v55 = vld [vmem:[%s3162_s1 + $0x340] ss:$8 sps:$4 sm:$0xff]   ;;  %v2324_v56 = vld [vmem:[%s3162_s1 + $0x354] ss:$8 sps:$4 sm:$0xff]  }
  0x7e   :  { %v2322_v57 = vld [vmem:[%s3162_s1 + $0x350] ss:$8 sps:$4 sm:$0xff]   ;;  %v2330_v58 = vld [vmem:[%s3162_s1 + $0x364] ss:$8 sps:$4 sm:$0xff]   ;;  %v2328_v59 = vld [vmem:[%s3162_s1 + $0x360] ss:$8 sps:$4 sm:$0xff]  }
  0x7f   :  { %945 = vmatpush1.bf16.msra.mxu0 %v2286_v41  ;;  %v2336_v60 = vld [vmem:[%s3162_s1 + $0x374] ss:$8 sps:$4 sm:$0xff]   ;;  %v2334_v61 = vld [vmem:[%s3162_s1 + $0x370] ss:$8 sps:$4 sm:$0xff]   ;;  %v2342_v62 = vld [vmem:[%s3162_s1 + $0x384] ss:$8 sps:$4 sm:$0xff]  }
  0x80   :  { %955 = vmatprep.subr.bf16.mxu0 %v2294_v43  ;;  %v2340_v63 = vld [vmem:[%s3162_s1 + $0x380] ss:$8 sps:$4 sm:$0xff]   ;;  %v2348_v0 = vld [vmem:[%s3162_s1 + $0x394] ss:$8 sps:$4 sm:$0xff]   ;;  %v2346_v1 = vld [vmem:[%s3162_s1 + $0x390] ss:$8 sps:$4 sm:$0xff]  }
  0x81   :  { %v2354_v2 = vld [vmem:[%s3162_s1 + $0x3a4] ss:$8 sps:$4 sm:$0xff]   ;;  %v2352_v3 = vld [vmem:[%s3162_s1 + $0x3a0] ss:$8 sps:$4 sm:$0xff]   ;;  %v2360_v4 = vld [vmem:[%s3162_s1 + $0x3b4] ss:$8 sps:$4 sm:$0xff]  }
  0x82   :  { %947 = vmatmul.mubr.bf16.vlgmr.msra.gmra.mrb[0].mxu0 %v60_v45  ;;  %v2358_v5 = vld [vmem:[%s3162_s1 + $0x3b0] ss:$8 sps:$4 sm:$0xff]   ;;  %v2366_v6 = vld [vmem:[%s3162_s1 + $0x3c4] ss:$8 sps:$4 sm:$0xff]   ;;  %v2364_v7 = vld [vmem:[%s3162_s1 + $0x3c0] ss:$8 sps:$4 sm:$0xff]  }
  0x83   :  { %956 = vmatpush1.bf16.msra.mxu0 %v2292_v46  ;;  %987 = vmatprep.mubr.bf16.mxu0 %v63_v47  ;;  %v2372_v8 = vld [vmem:[%s3162_s1 + $0x3d4] ss:$8 sps:$4 sm:$0xff]   ;;  %v2370_v9 = vld [vmem:[%s3162_s1 + $0x3d0] ss:$8 sps:$4 sm:$0xff]   ;;  %v2378_v10 = vld [vmem:[%s3162_s1 + $0x3e4] ss:$8 sps:$4 sm:$0xff]  }
  0x84   :  { %957 = vmatprep.subr.bf16.mxu0 %v2300_v48  ;;  %v2376_v11 = vld [vmem:[%s3162_s1 + $0x3e0] ss:$8 sps:$4 sm:$0xff]   ;;  %v2384_v12 = vld [vmem:[%s3162_s1 + $0x3f4] ss:$8 sps:$4 sm:$0xff]   ;;  %v2382_v13 = vld [vmem:[%s3162_s1 + $0x3f0] ss:$8 sps:$4 sm:$0xff]  }
  0x85   :  { %v54_v14 = vld [vmem:[%s3161_s0 + $0x30] sm:$0xff]  ;;  %v999_v17 = vshrl.u32 %v998_v16, 7  ;;  %v1013_v19 = vld [vmem:[%s3163_s2] sm:$0x3] }
  0x86   :  { %v62_v15 = vpack.c.bf16 %v54_v14, %v54_v14  ;;  %v996_v26 = vld [vmem:[%s3164_s3] sm:$0x3] }
  0x87   :  { %958 = vmatpush1.bf16.msra.mxu0 %v2298_v49  ;;  %v2946_v18 = vsub.s32 1, %v999_v17  ;;  %v2952_v25 = vsub.s32 0, %v999_v17  ;;  %v1103_v43 = vld [vmem:[%s3166_s5] sm:$0xff] }
  0x88   :  { %959 = vmatprep.subr.bf16.mxu0 %v2306_v50  ;;  %vm1104_vm1 = vcmp.gt.f32.partialorder %v1103_v43, 0.5  ;;  %v2424_v43 = vld [vmem:[%s3170_s9 + $0x18] sm:$0xff]  }
  0x89   :  { %v1022_v20 = vrot.slane %v1013_v19, %v2946_v18  ;;  %v1001_v27 = vrot.slane %v996_v26, %v2952_v25  ;;  %v1005_v29 = vrot.slane %v996_v26, %v2946_v18  ;;  %v1018_v36 = vrot.slane %v1013_v19, %v2952_v25  ;;  %v2407_v26 = vld [vmem:[%s3169_s8 + $0x58] sm:$0xff]  }
  0x8b   :  { %960 = vmatpush1.bf16.msra.mxu0 %v2304_v51  ;;  %1089 = vmatprep.mubr.f32.mxu1 %v1022_v20 }
  0x8c   :  { %961 = vmatprep.subr.bf16.mxu0 %v2312_v52 }
  0x8f   :  { %962 = vmatpush1.bf16.msra.mxu0 %v2310_v53 }
  0x90   :  { %963 = vmatprep.subr.bf16.mxu0 %v2318_v54 }
  0x93   :  { %964 = vmatpush1.bf16.msra.mxu0 %v2316_v55  ;;  %v2461_v55 = vmov 0.0  }
  0x94   :  { %965 = vmatprep.subr.bf16.mxu0 %v2324_v56  ;;  %v2385_v56 = vld [vmem:[%s3167_s6 + $0x40] sm:$0xff]  }
  0x97   :  { %966 = vmatpush1.bf16.msra.mxu0 %v2322_v57 }
  0x98   :  { %967 = vmatprep.subr.bf16.mxu0 %v2330_v58 }
  0x9b   :  { %968 = vmatpush1.bf16.msra.mxu0 %v2328_v59  ;;  %v2386_v59 = vld [vmem:[%s3167_s6] sm:$0xff]  }
  0x9c   :  { %969 = vmatprep.subr.bf16.mxu0 %v2336_v60 }
  0x9f   :  { %970 = vmatpush1.bf16.msra.mxu0 %v2334_v61  ;;  %v2387_v61 = vld [vmem:[%s3167_s6 + $0x48] sm:$0xff]  }
  0xa0   :  { %971 = vmatprep.subr.bf16.mxu0 %v2342_v62  ;;  %v2388_v62 = vld [vmem:[%s3167_s6 + $0x8] sm:$0xff]  }
  0xa3   :  { %972 = vmatpush1.bf16.msra.mxu0 %v2340_v63  ;;  %v2389_v63 = vld [vmem:[%s3167_s6 + $0x50] sm:$0xff]  }
  0xa4   :  { %973 = vmatprep.subr.bf16.mxu0 %v2348_v0  ;;  %v2390_v0 = vld [vmem:[%s3167_s6 + $0x10] sm:$0xff]  }
  0xa7   :  { %974 = vmatpush1.bf16.msra.mxu0 %v2346_v1  ;;  %v2391_v1 = vld [vmem:[%s3167_s6 + $0x58] sm:$0xff]  }
  0xa8   :  { %975 = vmatprep.subr.bf16.mxu0 %v2354_v2  ;;  %v2392_v2 = vld [vmem:[%s3167_s6 + $0x18] sm:$0xff]  }
  0xab   :  { %976 = vmatpush1.bf16.msra.mxu0 %v2352_v3  ;;  %v2393_v3 = vld [vmem:[%s3167_s6 + $0x60] sm:$0xff]  }
  0xac   :  { %977 = vmatprep.subr.bf16.mxu0 %v2360_v4  ;;  %v2394_v4 = vld [vmem:[%s3167_s6 + $0x20] sm:$0xff]  }
  0xaf   :  { %978 = vmatpush1.bf16.msra.mxu0 %v2358_v5  ;;  %v2395_v5 = vld [vmem:[%s3167_s6 + $0x68] sm:$0xff]  }
  0xb0   :  { %979 = vmatprep.subr.bf16.mxu0 %v2366_v6  ;;  %v2396_v6 = vld [vmem:[%s3167_s6 + $0x28] sm:$0xff]  }
  0xb3   :  { %980 = vmatpush1.bf16.msra.mxu0 %v2364_v7  ;;  %v2397_v7 = vld [vmem:[%s3167_s6 + $0x70] sm:$0xff]  }
  0xb4   :  { %981 = vmatprep.subr.bf16.mxu0 %v2372_v8  ;;  %v2398_v8 = vld [vmem:[%s3167_s6 + $0x30] sm:$0xff]  }
  0xb7   :  { %982 = vmatpush1.bf16.msra.mxu0 %v2370_v9  ;;  %v2399_v9 = vld [vmem:[%s3167_s6 + $0x78] sm:$0xff]  }
  0xb8   :  { %983 = vmatprep.subr.bf16.mxu0 %v2378_v10  ;;  %v2400_v10 = vld [vmem:[%s3167_s6 + $0x38] sm:$0xff]  }
  0xbb   :  { %984 = vmatpush1.bf16.msra.mxu0 %v2376_v11  ;;  %v2401_v11 = vld [vmem:[%s3169_s8 + $0x40] sm:$0xff]  }
  0xbc   :  { %985 = vmatprep.subr.bf16.mxu0 %v2384_v12  ;;  %v1119_v12 = vld [vmem:[%s3165_s4] sm:$0x3] }
  0xbd   :  { %v1128_v14 = vrot.slane %v1119_v12, %v2946_v18  ;;  %v2404_v18 = vld [vmem:[%s3169_s8 + $0x8] sm:$0xff]  }
  0xbf   :  { %986 = vmatpush1.bf16.msra.mxu0 %v2382_v13  ;;  %v1124_v13 = vrot.slane %v1119_v12, %v2952_v25 }
  0xc2   :  { %988 = vmatmul.mubr.bf16.vlgmr.msra.gmra.mrb[0].mxu0 %v62_v15 }
 0x11e   :  { %v866_v21 = vpop.f32.mrb[0].mxu1 }
 0x11f   :  { %v868_v22 = vpop.f32.mrb[1].mxu1 }
 0x120   :  { %v870_v23 = vpop.f32.mrb[2].mxu1 }
 0x121   :  { %v871_v24 = vpop.f32.mrb[3].mxu1  ;;  %v2403_v23 = vld [vmem:[%s3169_s8 + $0x48] sm:$0xff]  }
 0x122   :  { %v2405_v24 = vld [vmem:[%s3169_s8 + $0x50] sm:$0xff]  }
 0x195   :  { %v989_v28 = vpop.f32.mrb[0].mxu0 }
 0x196   :  { %v2179_v30 = vadd.f32 %v989_v28, %v866_v21  ;;  %v991_v31 = vpop.f32.mrb[1].mxu0  ;;  %v2402_v21 = vld [vmem:[%s3169_s8] sm:$0xff]  }
 0x197   :  { %v2180_v32 = vadd.f32 %v991_v31, %v868_v22  ;;  %v993_v33 = vpop.f32.mrb[2].mxu0  ;;  %v2409_v28 = vld [vmem:[%s3169_s8 + $0x60] sm:$0xff]   ;;  %v2412_v31 = vld [vmem:[%s3169_s8 + $0x28] sm:$0xff]  }
 0x198   :  { %v994_v34 = vpop.f32.mrb[3].mxu0  ;;  %v1008_v35 = vmul.f32 %v2179_v30, %v1001_v27  ;;  %v2408_v27 = vld [vmem:[%s3169_s8 + $0x18] sm:$0xff]   ;;  %v2414_v33 = vld [vmem:[%s3169_s8 + $0x30] sm:$0xff]  }
 0x199   :  { %1025 = vmatprep.subr.mxu1 %v2180_v32  ;;  %v1009_v37 = vmul.f32 %v2180_v32, %v1005_v29  ;;  %v2410_v29 = vld [vmem:[%s3169_s8 + $0x20] sm:$0xff]   ;;  %v2415_v34 = vld [vmem:[%s3169_s8 + $0x78] sm:$0xff]  }
 0x19a   :  { %1026 = vmatpush1.xpose.msra.mxu1 %v2179_v30 }
 0x19b   :  { %1134 = vmatprep.subr.mxu1 %v2180_v32  ;;  %v1010_v38 = vadd.f32 %v1009_v37, %v1008_v35  ;;  %v2413_v32 = vld [vmem:[%s3169_s8 + $0x70] sm:$0xff]   ;;  %v2416_v35 = vld [vmem:[%s3169_s8 + $0x38] sm:$0xff]   ;;  %v2418_v37 = vld [vmem:[%s3170_s9] sm:$0xff]  }
 0x19d   :  { %1090 = vmatmul.mubr.f32.vlgmr.msra.gmra.mrb[4].mxu1 %v1018_v36  ;;  %1011 = vadd.xlane.f32.xlu0 %v1010_v38  ;;  %v2417_v36 = vld [vmem:[%s3170_s9 + $0x40] sm:$0xff]   ;;  %v2419_v38 = vld [vmem:[%s3170_s9 + $0x48] sm:$0xff]  }
 0x19e   :  { %1135 = vmatpush1.msra.mxu1 %v2179_v30  ;;  %1198 = vmatprep.mubr.f32.mxu1 %v2461_v55  ;;  %v2411_v30 = vld [vmem:[%s3169_s8 + $0x68] sm:$0xff]   ;;  %v2043_v55 = vld [vmem:[%s3168_s7] ss:$0 sm:$0xff] }
 0x19f   :  { %2097 = vmatprep.subr.bf16.mxu1 %v2385_v56 }
 0x22a   :  { %v1012_v42 = vpop.xlane.xlu0 %1011 }
 0x270   :  { %v1091_v39 = vpop.f32.mrb[4].mxu1 }
 0x271   :  { %v1098_v40 = vrot.slane %v1091_v39, %v2952_v25  ;;  %v1093_v41 = vpop.f32.mrb[5].mxu1  ;;  %v2406_v25 = vld [vmem:[%s3169_s8 + $0x10] sm:$0xff]   ;;  %v2420_v39 = vld [vmem:[%s3170_s9 + $0x8] sm:$0xff]  }
 0x272   :  { %v2422_v41 = vld [vmem:[%s3170_s9 + $0x10] sm:$0xff]  }
 0x273   :  { %v1099_v44 = vadd.f32 %v1098_v40, %v1012_v42  ;;  %v2421_v40 = vld [vmem:[%s3170_s9 + $0x50] sm:$0xff]   ;;  %v2423_v42 = vld [vmem:[%s3170_s9 + $0x58] sm:$0xff]  }
 0x275   :  { %vm1100_vm0 = vcmp.ge.f32.partialorder %v1099_v44, 0.0  ;;  %v1101_v45 = vmul.f32 0.2, %v1099_v44 }
 0x277   :  { %v1102_v46 = vsel %vm1100_vm0, %v1099_v44, %v1101_v45  ;;  %v2425_v44 = vld [vmem:[%s3170_s9 + $0x60] sm:$0xff]  }
 0x278   :  { %v1105_v47 = vsel %vm1104_vm1, %v1102_v46, -1e+30  ;;  %v2426_v45 = vld [vmem:[%s3170_s9 + $0x20] sm:$0xff]   ;;  %v2427_v46 = vld [vmem:[%s3170_s9 + $0x68] sm:$0xff]  }
 0x279   :  { %v1107_v48 = vsel %vm1106_vm2, %v1105_v47, -inf }
 0x27a   :  { %1108 = vmax.xlane.f32.xlu0 %v1107_v48  ;;  %v2429_v48 = vld [vmem:[%s3170_s9 + $0x70] sm:$0xff]  }
 0x307   :  { %v1109_v49 = vpop.xlane.xlu0 %1108 }
 0x308   :  { %v1110_v50 = vsub.f32 %v1105_v47, %v1109_v49  ;;  %v2428_v47 = vld [vmem:[%s3170_s9 + $0x28] sm:$0xff]   ;;  %v2430_v49 = vld [vmem:[%s3170_s9 + $0x30] sm:$0xff]  }
 0x30a   :  { %v1111_v51 = vmul.f32 1.442695, %v1110_v50  ;;  %v2431_v50 = vld [vmem:[%s3170_s9 + $0x78] sm:$0xff]  }
 0x30c   :  { %2433 = vpow2.f32 %v1111_v51  ;;  %v2432_v51 = vld [vmem:[%s3170_s9 + $0x38] sm:$0xff]  }
 0x316   :  { %v2434_v52 = vpop.eup %2433 }
 0x317   :  { %v1113_v53 = vsel %vm1104_vm1, %v2434_v52, 0.0  ;;  %v1721_v52 = vld [vmem:[%s3173_s12] sm:$0xff] }
 0x318   :  { %v1114_v54 = vsel %vm1106_vm2, %v1113_v53, 0.0 }
 0x319   :  { %1115 = vadd.xlane.f32.xlu1 %v1114_v54 }
 0x3a6   :  { %v1116_v57 = vpop.xlane.xlu1 %1115 }
 0x3a7   :  { %2435 = vrcp.f32 %v1116_v57 }
 0x3b1   :  { %v2436_v58 = vpop.eup %2435 }
 0x3b2   :  { %v1118_v60 = vmul.f32 %v2436_v58, %v1113_v53 }
 0x3b4   :  { %2042 = vmatmul.mubr.msk.f32.vlgmr.msra.gmra.mrb[6].mxu1 %vm1106_vm2, %v1118_v60 }
 0x3b5   :  { %2098 = vmatpush3.bf16.msra.mxu1 %v2386_v59 }
 0x3b6   :  { %2099 = vmatprep.subr.bf16.mxu1 %v2387_v61 }
 0x3b9   :  { %2100 = vmatpush3.bf16.msra.mxu1 %v2388_v62 }
 0x3ba   :  { %2101 = vmatprep.subr.bf16.mxu1 %v2389_v63 }
 0x3bd   :  { %2102 = vmatpush3.bf16.msra.mxu1 %v2390_v0 }
 0x3be   :  { %2103 = vmatprep.subr.bf16.mxu1 %v2391_v1 }
 0x3c1   :  { %2104 = vmatpush3.bf16.msra.mxu1 %v2392_v2 }
 0x3c2   :  { %2105 = vmatprep.subr.bf16.mxu1 %v2393_v3 }
 0x3c5   :  { %2106 = vmatpush3.bf16.msra.mxu1 %v2394_v4 }
 0x3c6   :  { %2107 = vmatprep.subr.bf16.mxu1 %v2395_v5 }
 0x3c9   :  { %2108 = vmatpush3.bf16.msra.mxu1 %v2396_v6  ;;  %v1722_v6 = vld [vmem:[%s3173_s12 + $0x8] sm:$0xff]  ;;  %s1902_s12 = sshll.u32 %s2462_s28, 4  ;;  %s1903_s12 = int_to_ptr.vmem [resolvable:$true] %s1902_s12 }
 0x3ca   :  { %2109 = vmatprep.subr.bf16.mxu1 %v2397_v7  ;;  %v1719_v7 = vld [vmem:[%s3172_s11] sm:$0xff]  ;;  %s2437_s6 = scalar_lea.vmem %s1903_s12, 128  ;;  %p2442_p1 = scmp.lt.s32.totalorder %s1903_s12, %s1903_s12 }
 0x3cb   :  { %p2438_p0 = scmp.ne.s32.totalorder %s1903_s12, %s2437_s6  ;;  %p2443_p2 = scmp.lt.s32.totalorder %s2437_s6, %s2437_s6 }
 0x3cd   :  { %2110 = vmatpush3.bf16.msra.mxu1 %v2398_v8  ;;  %v1720_v8 = vld [vmem:[%s3172_s11 + $0x8] sm:$0xff]  ;;  %p2444_p3 = por %p2443_p2, %p2442_p1 }
 0x3ce   :  { %2111 = vmatprep.subr.bf16.mxu1 %v2399_v9 }
 0x3cf   :  { %p2445_p4 = pnand %p2444_p3, %p2438_p0 }
 0x3d1   :  { %2112 = vmatpush3.bf16.msra.mxu1 %v2400_v10 }
 0x3d2   :  { %2119 = vmatprep.subr.bf16.mxu1 %v2401_v11 }
 0x487   :  { %v1200_v15 = vpop.f32.mrb[6].mxu1 }
 0x488   :  { %v1201_v16 = vadd.f32 %v1200_v15, %v1124_v13  ;;  %v1202_v17 = vpop.f32.mrb[7].mxu1 }
 0x489   :  { %v1203_v19 = vadd.f32 %v1202_v17, %v1128_v14 }
 0x48a   :  { %v3026_v22 = vpack.c.bf16 %v1201_v16, %v1201_v16 }
 0x48b   :  { %v1206_v20 = vpack.c.bf16 %v1203_v19, %v1203_v19 }
 0x48d   :  { %1374 = vmatprep.mubr.bf16.mxu1 %v1206_v20 }
 0x48e   :  { %1375 = vmatmul.mubr.bf16.vlgmr.msra.gmra.mrb[8].mxu1 %v3026_v22 }
 0x48f   :  { %2120 = vmatpush3.bf16.msra.mxu1 %v2402_v21  ;;  %1543 = vmatprep.mubr.bf16.mxu1 %v1206_v20 }
 0x490   :  { %2121 = vmatprep.subr.bf16.mxu1 %v2403_v23 }
 0x493   :  { %2122 = vmatpush3.bf16.msra.mxu1 %v2404_v18 }
 0x494   :  { %2123 = vmatprep.subr.bf16.mxu1 %v2405_v24 }
 0x497   :  { %2124 = vmatpush3.bf16.msra.mxu1 %v2406_v25 }
 0x498   :  { %2125 = vmatprep.subr.bf16.mxu1 %v2407_v26 }
 0x49b   :  { %2126 = vmatpush3.bf16.msra.mxu1 %v2408_v27 }
 0x49c   :  { %2127 = vmatprep.subr.bf16.mxu1 %v2409_v28 }
 0x49f   :  { %2128 = vmatpush3.bf16.msra.mxu1 %v2410_v29 }
 0x4a0   :  { %2129 = vmatprep.subr.bf16.mxu1 %v2411_v30 }
 0x4a3   :  { %2130 = vmatpush3.bf16.msra.mxu1 %v2412_v31 }
 0x4a4   :  { %2131 = vmatprep.subr.bf16.mxu1 %v2413_v32 }
 0x4a7   :  { %2132 = vmatpush3.bf16.msra.mxu1 %v2414_v33 }
 0x4a8   :  { %2133 = vmatprep.subr.bf16.mxu1 %v2415_v34 }
 0x4ab   :  { %2134 = vmatpush3.bf16.msra.mxu1 %v2416_v35 }
 0x4ac   :  { %2141 = vmatprep.subr.bf16.mxu1 %v2417_v36 }
 0x4ae   :  { %1544 = vmatmul.mubr.bf16.vlgmr.msra.gmra.mrb[12].mxu1 %v3026_v22 }
 0x4af   :  { %2142 = vmatpush3.bf16.msra.mxu1 %v2418_v37  ;;  %1711 = vmatprep.mubr.bf16.mxu1 %v1206_v20 }
 0x4b0   :  { %2143 = vmatprep.subr.bf16.mxu1 %v2419_v38 }
 0x4b3   :  { %2144 = vmatpush3.bf16.msra.mxu1 %v2420_v39 }
 0x4b4   :  { %2145 = vmatprep.subr.bf16.mxu1 %v2421_v40 }
 0x4b7   :  { %2146 = vmatpush3.bf16.msra.mxu1 %v2422_v41 }
 0x4b8   :  { %2147 = vmatprep.subr.bf16.mxu1 %v2423_v42 }
 0x4bb   :  { %2148 = vmatpush3.bf16.msra.mxu1 %v2424_v43 }
 0x4bc   :  { %2149 = vmatprep.subr.bf16.mxu1 %v2425_v44 }
 0x4bf   :  { %2150 = vmatpush3.bf16.msra.mxu1 %v2426_v45 }
 0x4c0   :  { %2151 = vmatprep.subr.bf16.mxu1 %v2427_v46 }
 0x4c3   :  { %2152 = vmatpush3.bf16.msra.mxu1 %v2428_v47 }
 0x4c4   :  { %2153 = vmatprep.subr.bf16.mxu1 %v2429_v48 }
 0x4c7   :  { %2154 = vmatpush3.bf16.msra.mxu1 %v2430_v49 }
 0x4c8   :  { %2155 = vmatprep.subr.bf16.mxu1 %v2431_v50 }
 0x4cb   :  { %2156 = vmatpush3.bf16.msra.mxu1 %v2432_v51 }
 0x4ce   :  { %1712 = vmatmul.mubr.bf16.vlgmr.msra.gmra.mrb[16].mxu1 %v3026_v22 }
 0x4cf   :  { %2171 = vmatprep.mubr.msk.f32.mxu1 %vm1106_vm2, %v1721_v52 }
 0x561   :  { %v2113_v53 = vpop.f32.mrb[8].mxu1 }
 0x562   :  { %v2114_v54 = vpop.f32.mrb[9].mxu1 }
 0x563   :  { %v2115_v56 = vadd.f32 %v2114_v54, %v2113_v53  ;;  %v2116_v57 = vpop.f32.mrb[10].mxu1 }
 0x564   :  { %v2117_v58 = vpop.f32.mrb[11].mxu1 }
 0x565   :  { %v1377_v59 = vadd.f32 %v2115_v56, %v2043_v55 }
 0x567   :  { %1382 = vst [vmem:[#allocation2] sm:$0xff] %v1377_v59 }
 0x581   :  { %v2135_v60 = vpop.f32.mrb[12].mxu1 }
 0x582   :  { %v2136_v61 = vpop.f32.mrb[13].mxu1 }
 0x583   :  { %v2137_v62 = vadd.f32 %v2136_v61, %v2135_v60  ;;  %v2138_v63 = vpop.f32.mrb[14].mxu1 }
 0x584   :  { %v2139_v0 = vpop.f32.mrb[15].mxu1 }
 0x5a1   :  { %v2157_v1 = vpop.f32.mrb[16].mxu1 }
 0x5a2   :  { %v2158_v2 = vpop.f32.mrb[17].mxu1 }
 0x5a3   :  { %v2159_v3 = vadd.f32 %v2158_v2, %v2157_v1  ;;  %v2160_v4 = vpop.f32.mrb[18].mxu1 }
 0x5a4   :  { %v2161_v5 = vpop.f32.mrb[19].mxu1 }
 0x5a5   :  { %2169 = vmatprep.subr.mxu1 %v2159_v3 }
 0x5a6   :  { %2170 = vmatpush3.msra.mxu1 %v2159_v3 }
 0x5a7   :  { %2172 = vmatmul.mubr.msk.f32.vlgmr.msra.gmra.mrb[20].mxu1 %vm1106_vm2, %v1722_v6  ;;  %2174 = vmatprep.subr.mxu1 %v2137_v62 }
 0x5a8   :  { %2175 = vmatpush3.msra.mxu1 %v2137_v62  ;;  %2176 = vmatprep.mubr.msk.f32.mxu1 %vm1106_vm2, %v1719_v7 }
 0x5af   :  { %2177 = vmatmul.mubr.msk.f32.vlgmr.msra.gmra.mrb[20].mxu1 %vm1106_vm2, %v1720_v8 }
 0x5b0   :  { %2448 = shalt.err (!%p2445_p4)
}
 0x5b1   :  { %s2449_s0 = scalar_lea.hbm %s3174_s13, 128 }
 0x5b2   :  { %p2450_p5 = scmp.ne.s32.totalorder %s3174_s13, %s2449_s0  ;;  %p2453_p6 = scmp.lt.u32.totalorder %s2449_s0, %s3174_s13 }
 0x5b4   :  { %p2455_p7 = pnand %p2453_p6, %p2450_p5 }
 0x5b6   :  { %2458 = shalt.err (!%p2455_p7)
}
 0x5b7   :  { %1905 = dma.vmem_to_hbm [thread:$0]  %s1903_s12, 128, %s3174_s13, [#allocation3]   ;;  %v2096_v9 = vld [vmem:[%s3171_s10] ss:$0 sm:$0xff] }
 0x682   :  { %v2178_v10 = vpop.f32.mrb[20].mxu1 }
 0x683   :  { %v1893_v11 = vadd.f32 %v2178_v10, %v2096_v9  ;;  %v1876_v12 = vpop.f32.mrb[21].mxu1 }
 0x684   :  { %v1892_v13 = vadd.f32 %v2096_v9, %v1876_v12 }
 0x685   :  { %1895 = vst [vmem:[%s3175_s14 + $0x8] sm:$0xff] %v1893_v11 }
 0x686   :  { %1894 = vst [vmem:[%s3175_s14] sm:$0xff] %v1892_v13 }
 0x687   :  { %2459 = dma.done.wait [#allocation3], 128  }
 0x688   :  { %2460 = vsyncadd [#allocation3], 4294967168 }
 0x689   :  { %1913 = vsyncpa [#allocation3], 1 }

// kernel: forward.8
= control target key start
LH: loop header
LB: loop body
LE: loop exit
PB: predicated region body
PF: predicated region fallthrough
CT: control target
= control target key end

     0   :  { %vm2500_vm0 = vcmask 523264   ;;  %vm4332_vm3 = vcmask 64512   ;;  %s8357_s1 = inlined_call_operand.vmem [shape: bf16[3136,256], index: 1, kind: input, shape index: {}]   ;;  %s8358_s0 = inlined_call_operand.vmem [shape: bf16[8,3136], index: 0, kind: input, shape index: {}]   ;;  %s8359_s3 = inlined_call_operand.vmem [shape: bf16[256,256], index: 3, kind: input, shape index: {}]   ;;  %s8360_s5 = inlined_call_operand.vmem [shape: bf16[256,1024], index: 5, kind: input, shape index: {}]   ;;  %s8361_s2 = inlined_call_operand.vmem [shape: f32[1,256], index: 2, kind: input, shape index: {}]   ;;  %s8362_s4 = inlined_call_operand.vmem [shape: f32[1,256], index: 4, kind: input, shape index: {}]   ;;  %s8363_s6 = inlined_call_operand.vmem [shape: f32[1,1024], index: 6, kind: input, shape index: {}]   ;;  %s8364_s7 = inlined_call_operand.vmem [shape: f32[1,1024], index: 7, kind: input, shape index: {}]   ;;  %s8365_s9 = inlined_call_operand.vmem [shape: f32[8,8], index: 9, kind: input, shape index: {}]   ;;  %s8366_s8 = inlined_call_operand.vmem [shape: f32[1,1024], index: 8, kind: input, shape index: {}]   ;;  %s8367_s10 = inlined_call_operand.vmem [shape: f32[8,1024], index: 10, kind: output, shape index: {}]  }
   0x1   :  { %v5691_v0 = vld [vmem:[%s8357_s1 + $0x304] ss:$8 sps:$4 sm:$0xff]   ;;  %v5693_v1 = vld [vmem:[%s8357_s1 + $0x300] ss:$8 sps:$4 sm:$0xff]   ;;  %v5694_v2 = vld [vmem:[%s8357_s1 + $0x314] ss:$8 sps:$4 sm:$0xff]  }
   0x2   :  { %2627 = vmatprep.subr.bf16.mxu0 %v5691_v0  ;;  %v5696_v3 = vld [vmem:[%s8357_s1 + $0x310] ss:$8 sps:$4 sm:$0xff]   ;;  %v5697_v4 = vld [vmem:[%s8357_s1 + $0x324] ss:$8 sps:$4 sm:$0xff]   ;;  %v5699_v5 = vld [vmem:[%s8357_s1 + $0x320] ss:$8 sps:$4 sm:$0xff]  }
   0x3   :  { %2628 = vmatpush1.bf16.msra.mxu0 %v5693_v1  ;;  %v5700_v6 = vld [vmem:[%s8357_s1 + $0x334] ss:$8 sps:$4 sm:$0xff]   ;;  %v5702_v7 = vld [vmem:[%s8357_s1 + $0x330] ss:$8 sps:$4 sm:$0xff]   ;;  %v5703_v8 = vld [vmem:[%s8357_s1 + $0x344] ss:$8 sps:$4 sm:$0xff]  }
   0x4   :  { %2629 = vmatprep.subr.bf16.mxu0 %v5694_v2  ;;  %v5705_v9 = vld [vmem:[%s8357_s1 + $0x340] ss:$8 sps:$4 sm:$0xff]   ;;  %v5706_v10 = vld [vmem:[%s8357_s1 + $0x354] ss:$8 sps:$4 sm:$0xff]   ;;  %v5708_v11 = vld [vmem:[%s8357_s1 + $0x350] ss:$8 sps:$4 sm:$0xff]  }
   0x5   :  { %v5709_v12 = vld [vmem:[%s8357_s1 + $0x364] ss:$8 sps:$4 sm:$0xff]   ;;  %v39_v13 = vld [vmem:[%s8358_s0 + $0x18] sm:$0xff]  ;;  %v5711_v15 = vld [vmem:[%s8357_s1 + $0x360] ss:$8 sps:$4 sm:$0xff]  }
   0x6   :  { %v5068_v14 = vcombine.high %v39_v13, %v39_v13  ;;  %v5712_v16 = vld [vmem:[%s8357_s1 + $0x374] ss:$8 sps:$4 sm:$0xff]   ;;  %v5714_v17 = vld [vmem:[%s8357_s1 + $0x370] ss:$8 sps:$4 sm:$0xff]   ;;  %v5715_v18 = vld [vmem:[%s8357_s1 + $0x384] ss:$8 sps:$4 sm:$0xff]   ;;  %v5067_v36 = vcombine.low %v39_v13, %v39_v13 }
   0x7   :  { %2630 = vmatpush1.bf16.msra.mxu0 %v5696_v3  ;;  %v5717_v19 = vld [vmem:[%s8357_s1 + $0x380] ss:$8 sps:$4 sm:$0xff]   ;;  %v5718_v20 = vld [vmem:[%s8357_s1 + $0x394] ss:$8 sps:$4 sm:$0xff]   ;;  %v5720_v21 = vld [vmem:[%s8357_s1 + $0x390] ss:$8 sps:$4 sm:$0xff]  }
   0x8   :  { %2631 = vmatprep.subr.bf16.mxu0 %v5697_v4  ;;  %2659 = vmatprep.mubr.bf16.mxu0 %v5068_v14  ;;  %v5721_v22 = vld [vmem:[%s8357_s1 + $0x3a4] ss:$8 sps:$4 sm:$0xff]   ;;  %v5723_v23 = vld [vmem:[%s8357_s1 + $0x3a0] ss:$8 sps:$4 sm:$0xff]   ;;  %v5724_v24 = vld [vmem:[%s8357_s1 + $0x3b4] ss:$8 sps:$4 sm:$0xff]  }
   0x9   :  { %v5726_v25 = vld [vmem:[%s8357_s1 + $0x3b0] ss:$8 sps:$4 sm:$0xff]   ;;  %v5727_v26 = vld [vmem:[%s8357_s1 + $0x3c4] ss:$8 sps:$4 sm:$0xff]   ;;  %v5729_v27 = vld [vmem:[%s8357_s1 + $0x3c0] ss:$8 sps:$4 sm:$0xff]  }
   0xa   :  { %v5730_v28 = vld [vmem:[%s8357_s1 + $0x3d4] ss:$8 sps:$4 sm:$0xff]   ;;  %v5732_v29 = vld [vmem:[%s8357_s1 + $0x3d0] ss:$8 sps:$4 sm:$0xff]   ;;  %v5733_v30 = vld [vmem:[%s8357_s1 + $0x3e4] ss:$8 sps:$4 sm:$0xff]  }
   0xb   :  { %2632 = vmatpush1.bf16.msra.mxu0 %v5699_v5  ;;  %v5735_v31 = vld [vmem:[%s8357_s1 + $0x3e0] ss:$8 sps:$4 sm:$0xff]   ;;  %v5736_v32 = vld [vmem:[%s8357_s1 + $0x3f4] ss:$8 sps:$4 sm:$0xff]   ;;  %v5738_v33 = vld [vmem:[%s8357_s1 + $0x3f0] ss:$8 sps:$4 sm:$0xff]  }
   0xc   :  { %2633 = vmatprep.subr.bf16.mxu0 %v5700_v6  ;;  %v5743_v34 = vld [vmem:[%s8357_s1 + $0x404] ss:$8 sps:$4 sm:$0xff]   ;;  %v5741_v37 = vld [vmem:[%s8357_s1 + $0x400] ss:$8 sps:$4 sm:$0xff]   ;;  %v5746_v39 = vld [vmem:[%s8357_s1 + $0x414] ss:$8 sps:$4 sm:$0xff]  }
   0xd   :  { %v6530_v35 = vld [vmem:[%s8358_s0 + $0x20] sm:$0xff]  ;;  %v5744_v40 = vld [vmem:[%s8357_s1 + $0x410] ss:$8 sps:$4 sm:$0xff]   ;;  %v5752_v43 = vld [vmem:[%s8357_s1 + $0x434] ss:$8 sps:$4 sm:$0xff]  }
   0xe   :  { %v5070_v38 = vcombine.high %v6530_v35, %v6530_v35  ;;  %v5749_v41 = vld [vmem:[%s8357_s1 + $0x424] ss:$8 sps:$4 sm:$0xff]   ;;  %v5747_v42 = vld [vmem:[%s8357_s1 + $0x420] ss:$8 sps:$4 sm:$0xff]   ;;  %v5750_v44 = vld [vmem:[%s8357_s1 + $0x430] ss:$8 sps:$4 sm:$0xff]  }
   0xf   :  { %2634 = vmatpush1.bf16.msra.mxu0 %v5702_v7  ;;  %v5755_v45 = vld [vmem:[%s8357_s1 + $0x444] ss:$8 sps:$4 sm:$0xff]   ;;  %v5753_v46 = vld [vmem:[%s8357_s1 + $0x440] ss:$8 sps:$4 sm:$0xff]   ;;  %v5758_v47 = vld [vmem:[%s8357_s1 + $0x454] ss:$8 sps:$4 sm:$0xff]  }
  0x10   :  { %2635 = vmatprep.subr.bf16.mxu0 %v5703_v8  ;;  %v5756_v48 = vld [vmem:[%s8357_s1 + $0x450] ss:$8 sps:$4 sm:$0xff]   ;;  %v5761_v49 = vld [vmem:[%s8357_s1 + $0x464] ss:$8 sps:$4 sm:$0xff]   ;;  %v5759_v50 = vld [vmem:[%s8357_s1 + $0x460] ss:$8 sps:$4 sm:$0xff]  }
  0x11   :  { %v5764_v51 = vld [vmem:[%s8357_s1 + $0x474] ss:$8 sps:$4 sm:$0xff]   ;;  %v5762_v52 = vld [vmem:[%s8357_s1 + $0x470] ss:$8 sps:$4 sm:$0xff]   ;;  %v5767_v53 = vld [vmem:[%s8357_s1 + $0x484] ss:$8 sps:$4 sm:$0xff]  }
  0x12   :  { %v5765_v54 = vld [vmem:[%s8357_s1 + $0x480] ss:$8 sps:$4 sm:$0xff]   ;;  %v5770_v55 = vld [vmem:[%s8357_s1 + $0x494] ss:$8 sps:$4 sm:$0xff]   ;;  %v5768_v56 = vld [vmem:[%s8357_s1 + $0x490] ss:$8 sps:$4 sm:$0xff]  }
  0x13   :  { %2636 = vmatpush1.bf16.msra.mxu0 %v5705_v9  ;;  %v5773_v57 = vld [vmem:[%s8357_s1 + $0x4a4] ss:$8 sps:$4 sm:$0xff]   ;;  %v5771_v58 = vld [vmem:[%s8357_s1 + $0x4a0] ss:$8 sps:$4 sm:$0xff]   ;;  %v5776_v59 = vld [vmem:[%s8357_s1 + $0x4b4] ss:$8 sps:$4 sm:$0xff]  }
  0x14   :  { %2637 = vmatprep.subr.bf16.mxu0 %v5706_v10  ;;  %v5774_v60 = vld [vmem:[%s8357_s1 + $0x4b0] ss:$8 sps:$4 sm:$0xff]   ;;  %v5779_v61 = vld [vmem:[%s8357_s1 + $0x4c4] ss:$8 sps:$4 sm:$0xff]   ;;  %v5777_v62 = vld [vmem:[%s8357_s1 + $0x4c0] ss:$8 sps:$4 sm:$0xff]  }
  0x15   :  { %v5782_v63 = vld [vmem:[%s8357_s1 + $0x4d4] ss:$8 sps:$4 sm:$0xff]   ;;  %v5877_v0 = vld [vmem:[%s8357_s1 + $0x4] ss:$8 sps:$4 sm:$0xff]   ;;  %v5882_v1 = vld [vmem:[%s8357_s1] ss:$8 sps:$4 sm:$0xff]  }
  0x16   :  { %2504 = vmatprep.subr.bf16.mxu1 %v5877_v0  ;;  %v5780_v2 = vld [vmem:[%s8357_s1 + $0x4d0] ss:$8 sps:$4 sm:$0xff]   ;;  %v5785_v3 = vld [vmem:[%s8357_s1 + $0x4e4] ss:$8 sps:$4 sm:$0xff]   ;;  %v5883_v4 = vld [vmem:[%s8357_s1 + $0x14] ss:$8 sps:$4 sm:$0xff]  }
  0x17   :  { %2638 = vmatpush1.bf16.msra.mxu0 %v5708_v11  ;;  %2505 = vmatpush1.bf16.msra.mxu1 %v5882_v1  ;;  %v5888_v5 = vld [vmem:[%s8357_s1 + $0x10] ss:$8 sps:$4 sm:$0xff]   ;;  %v5783_v6 = vld [vmem:[%s8357_s1 + $0x4e0] ss:$8 sps:$4 sm:$0xff]   ;;  %v5788_v7 = vld [vmem:[%s8357_s1 + $0x4f4] ss:$8 sps:$4 sm:$0xff]  }
  0x18   :  { %2639 = vmatprep.subr.bf16.mxu0 %v5709_v12  ;;  %2506 = vmatprep.subr.bf16.mxu1 %v5883_v4  ;;  %v5889_v8 = vld [vmem:[%s8357_s1 + $0x24] ss:$8 sps:$4 sm:$0xff]   ;;  %v5894_v9 = vld [vmem:[%s8357_s1 + $0x20] ss:$8 sps:$4 sm:$0xff]   ;;  %v5786_v10 = vld [vmem:[%s8357_s1 + $0x4f0] ss:$8 sps:$4 sm:$0xff]  }
  0x19   :  { %v5793_v11 = vld [vmem:[%s8357_s1 + $0x504] ss:$8 sps:$4 sm:$0xff]   ;;  %v5895_v13 = vld [vmem:[%s8357_s1 + $0x34] ss:$8 sps:$4 sm:$0xff]   ;;  %v5900_v14 = vld [vmem:[%s8357_s1 + $0x30] ss:$8 sps:$4 sm:$0xff]  }
  0x1a   :  { %v6651_v12 = vld [vmem:[%s8358_s0 + $0x28] sm:$0xff]  ;;  %v5974_v0 = vld [vmem:[%s8357_s1 + $0xf0] ss:$8 sps:$4 sm:$0xff]   ;;  %v5832_v4 = vld [vmem:[%s8357_s1 + $0x5d4] ss:$8 sps:$4 sm:$0xff]  }
  0x1b   :  { %2640 = vmatpush1.bf16.msra.mxu0 %v5711_v15  ;;  %2507 = vmatpush1.bf16.msra.mxu1 %v5888_v5  ;;  %v5069_v15 = vcombine.low %v6530_v35, %v6530_v35  ;;  %v5927_v35 = vld [vmem:[%s8357_s1 + $0x84] ss:$8 sps:$4 sm:$0xff]   ;;  %v5827_v1 = vld [vmem:[%s8357_s1 + $0x5c0] ss:$8 sps:$4 sm:$0xff]  }
  0x1c   :  { %2641 = vmatprep.subr.bf16.mxu0 %v5712_v16  ;;  %2508 = vmatprep.subr.bf16.mxu1 %v5889_v8  ;;  %v5791_v16 = vld [vmem:[%s8357_s1 + $0x500] ss:$8 sps:$4 sm:$0xff]   ;;  %v5830_v8 = vld [vmem:[%s8357_s1 + $0x5d0] ss:$8 sps:$4 sm:$0xff]  }
  0x1f   :  { %2642 = vmatpush1.bf16.msra.mxu0 %v5714_v17  ;;  %2509 = vmatpush1.bf16.msra.mxu1 %v5894_v9  ;;  %v5072_v17 = vcombine.high %v6651_v12, %v6651_v12  ;;  %v5835_v9 = vld [vmem:[%s8357_s1 + $0x5e4] ss:$8 sps:$4 sm:$0xff]  }
  0x20   :  { %2643 = vmatprep.subr.bf16.mxu0 %v5715_v18  ;;  %2510 = vmatprep.subr.bf16.mxu1 %v5895_v13  ;;  %v5901_v18 = vld [vmem:[%s8357_s1 + $0x44] ss:$8 sps:$4 sm:$0xff]   ;;  %v5833_v13 = vld [vmem:[%s8357_s1 + $0x5e0] ss:$8 sps:$4 sm:$0xff]  }
  0x23   :  { %2644 = vmatpush1.bf16.msra.mxu0 %v5717_v19  ;;  %2511 = vmatpush1.bf16.msra.mxu1 %v5900_v14  ;;  %v5796_v19 = vld [vmem:[%s8357_s1 + $0x514] ss:$8 sps:$4 sm:$0xff]  }
  0x24   :  { %2645 = vmatprep.subr.bf16.mxu0 %v5718_v20  ;;  %v5908_v20 = vld [vmem:[%s8357_s1 + $0x40] ss:$8 sps:$4 sm:$0xff]   ;;  %2512 = vmatprep.subr.bf16.mxu1 %v5901_v18  ;;  %v5838_v14 = vld [vmem:[%s8357_s1 + $0x5f4] ss:$8 sps:$4 sm:$0xff]   ;;  %v5843_v18 = vld [vmem:[%s8357_s1 + $0x604] ss:$8 sps:$4 sm:$0xff]  }
  0x27   :  { %2646 = vmatpush1.bf16.msra.mxu0 %v5720_v21  ;;  %2513 = vmatpush1.bf16.msra.mxu1 %v5908_v20  ;;  %v5794_v21 = vld [vmem:[%s8357_s1 + $0x510] ss:$8 sps:$4 sm:$0xff]   ;;  %v5997_v20 = vld [vmem:[%s8357_s1 + $0x134] ss:$8 sps:$4 sm:$0xff]  }
  0x28   :  { %2647 = vmatprep.subr.bf16.mxu0 %v5721_v22  ;;  %v5799_v22 = vld [vmem:[%s8357_s1 + $0x524] ss:$8 sps:$4 sm:$0xff]  }
  0x2b   :  { %2648 = vmatpush1.bf16.msra.mxu0 %v5723_v23  ;;  %v5909_v23 = vld [vmem:[%s8357_s1 + $0x54] ss:$8 sps:$4 sm:$0xff]  }
  0x2c   :  { %2649 = vmatprep.subr.bf16.mxu0 %v5724_v24  ;;  %v5914_v24 = vld [vmem:[%s8357_s1 + $0x50] ss:$8 sps:$4 sm:$0xff]   ;;  %2514 = vmatprep.subr.bf16.mxu1 %v5909_v23  ;;  %v5841_v23 = vld [vmem:[%s8357_s1 + $0x600] ss:$8 sps:$4 sm:$0xff]  }
  0x2d   :  { %2515 = vmatpush1.bf16.msra.mxu1 %v5914_v24 }
  0x2f   :  { %2650 = vmatpush1.bf16.msra.mxu0 %v5726_v25  ;;  %v5797_v25 = vld [vmem:[%s8357_s1 + $0x520] ss:$8 sps:$4 sm:$0xff]  }
  0x30   :  { %2651 = vmatprep.subr.bf16.mxu0 %v5727_v26  ;;  %v5802_v26 = vld [vmem:[%s8357_s1 + $0x534] ss:$8 sps:$4 sm:$0xff]  }
  0x33   :  { %2652 = vmatpush1.bf16.msra.mxu0 %v5729_v27  ;;  %v5915_v27 = vld [vmem:[%s8357_s1 + $0x64] ss:$8 sps:$4 sm:$0xff]  }
  0x34   :  { %2653 = vmatprep.subr.bf16.mxu0 %v5730_v28  ;;  %v5920_v28 = vld [vmem:[%s8357_s1 + $0x60] ss:$8 sps:$4 sm:$0xff]   ;;  %2516 = vmatprep.subr.bf16.mxu1 %v5915_v27  ;;  %v5844_v27 = vld [vmem:[%s8357_s1 + $0x610] ss:$8 sps:$4 sm:$0xff]  }
  0x35   :  { %2517 = vmatpush1.bf16.msra.mxu1 %v5920_v28  ;;  %v5849_v28 = vld [vmem:[%s8357_s1 + $0x624] ss:$8 sps:$4 sm:$0xff]  }
  0x37   :  { %2654 = vmatpush1.bf16.msra.mxu0 %v5732_v29  ;;  %v5800_v29 = vld [vmem:[%s8357_s1 + $0x530] ss:$8 sps:$4 sm:$0xff]  }
  0x38   :  { %2655 = vmatprep.subr.bf16.mxu0 %v5733_v30  ;;  %v5805_v30 = vld [vmem:[%s8357_s1 + $0x544] ss:$8 sps:$4 sm:$0xff]  }
  0x3b   :  { %2656 = vmatpush1.bf16.msra.mxu0 %v5735_v31  ;;  %v5921_v31 = vld [vmem:[%s8357_s1 + $0x74] ss:$8 sps:$4 sm:$0xff]  }
  0x3c   :  { %2657 = vmatprep.subr.bf16.mxu0 %v5736_v32  ;;  %v5926_v32 = vld [vmem:[%s8357_s1 + $0x70] ss:$8 sps:$4 sm:$0xff]   ;;  %2518 = vmatprep.subr.bf16.mxu1 %v5921_v31  ;;  %v5847_v31 = vld [vmem:[%s8357_s1 + $0x620] ss:$8 sps:$4 sm:$0xff]  }
  0x3d   :  { %2519 = vmatpush1.bf16.msra.mxu1 %v5926_v32  ;;  %v5852_v32 = vld [vmem:[%s8357_s1 + $0x634] ss:$8 sps:$4 sm:$0xff]  }
  0x3e   :  { %2520 = vmatprep.subr.bf16.mxu1 %v5927_v35  ;;  %v5850_v35 = vld [vmem:[%s8357_s1 + $0x630] ss:$8 sps:$4 sm:$0xff]  }
  0x3f   :  { %2658 = vmatpush1.bf16.msra.mxu0 %v5738_v33  ;;  %v5803_v33 = vld [vmem:[%s8357_s1 + $0x540] ss:$8 sps:$4 sm:$0xff]  }
  0x40   :  { %2668 = vmatprep.subr.bf16.mxu0 %v5743_v34  ;;  %v5808_v34 = vld [vmem:[%s8357_s1 + $0x554] ss:$8 sps:$4 sm:$0xff]  }
  0x42   :  { %2660 = vmatmul.mubr.bf16.vlgmr.msra.gmra.mrb[0].mxu0 %v5067_v36  ;;  %v5932_v36 = vld [vmem:[%s8357_s1 + $0x80] ss:$8 sps:$4 sm:$0xff]  }
  0x43   :  { %2669 = vmatpush1.bf16.msra.mxu0 %v5741_v37  ;;  %2700 = vmatprep.mubr.bf16.mxu0 %v5070_v38  ;;  %v5806_v37 = vld [vmem:[%s8357_s1 + $0x550] ss:$8 sps:$4 sm:$0xff]   ;;  %v5811_v38 = vld [vmem:[%s8357_s1 + $0x564] ss:$8 sps:$4 sm:$0xff]  }
  0x44   :  { %2670 = vmatprep.subr.bf16.mxu0 %v5746_v39  ;;  %2521 = vmatpush1.bf16.msra.mxu1 %v5932_v36  ;;  %v5933_v39 = vld [vmem:[%s8357_s1 + $0x94] ss:$8 sps:$4 sm:$0xff]   ;;  %v5855_v36 = vld [vmem:[%s8357_s1 + $0x644] ss:$8 sps:$4 sm:$0xff]  }
  0x45   :  { %2522 = vmatprep.subr.bf16.mxu1 %v5933_v39  ;;  %v5853_v39 = vld [vmem:[%s8357_s1 + $0x640] ss:$8 sps:$4 sm:$0xff]  }
  0x47   :  { %2671 = vmatpush1.bf16.msra.mxu0 %v5744_v40  ;;  %v5938_v40 = vld [vmem:[%s8357_s1 + $0x90] ss:$8 sps:$4 sm:$0xff]  }
  0x48   :  { %2672 = vmatprep.subr.bf16.mxu0 %v5749_v41  ;;  %2523 = vmatpush1.bf16.msra.mxu1 %v5938_v40  ;;  %v5809_v41 = vld [vmem:[%s8357_s1 + $0x560] ss:$8 sps:$4 sm:$0xff]   ;;  %v6029_v40 = vld [vmem:[%s8357_s1 + $0x184] ss:$8 sps:$4 sm:$0xff]  }
  0x4b   :  { %2673 = vmatpush1.bf16.msra.mxu0 %v5747_v42  ;;  %v5814_v42 = vld [vmem:[%s8357_s1 + $0x574] ss:$8 sps:$4 sm:$0xff]  }
  0x4c   :  { %2674 = vmatprep.subr.bf16.mxu0 %v5752_v43  ;;  %v5939_v43 = vld [vmem:[%s8357_s1 + $0xa4] ss:$8 sps:$4 sm:$0xff]  }
  0x4d   :  { %2524 = vmatprep.subr.bf16.mxu1 %v5939_v43  ;;  %v5856_v43 = vld [vmem:[%s8357_s1 + $0x650] ss:$8 sps:$4 sm:$0xff]  }
  0x4f   :  { %2675 = vmatpush1.bf16.msra.mxu0 %v5750_v44  ;;  %v5944_v44 = vld [vmem:[%s8357_s1 + $0xa0] ss:$8 sps:$4 sm:$0xff]  }
  0x50   :  { %2676 = vmatprep.subr.bf16.mxu0 %v5755_v45  ;;  %2525 = vmatpush1.bf16.msra.mxu1 %v5944_v44  ;;  %v5812_v45 = vld [vmem:[%s8357_s1 + $0x570] ss:$8 sps:$4 sm:$0xff]   ;;  %v6035_v44 = vld [vmem:[%s8357_s1 + $0x194] ss:$8 sps:$4 sm:$0xff]  }
  0x53   :  { %2677 = vmatpush1.bf16.msra.mxu0 %v5753_v46  ;;  %v5817_v46 = vld [vmem:[%s8357_s1 + $0x584] ss:$8 sps:$4 sm:$0xff]  }
  0x54   :  { %2678 = vmatprep.subr.bf16.mxu0 %v5758_v47  ;;  %v5945_v47 = vld [vmem:[%s8357_s1 + $0xb4] ss:$8 sps:$4 sm:$0xff]  }
  0x55   :  { %2526 = vmatprep.subr.bf16.mxu1 %v5945_v47  ;;  %v5859_v47 = vld [vmem:[%s8357_s1 + $0x660] ss:$8 sps:$4 sm:$0xff]  }
  0x57   :  { %2679 = vmatpush1.bf16.msra.mxu0 %v5756_v48  ;;  %v5950_v48 = vld [vmem:[%s8357_s1 + $0xb0] ss:$8 sps:$4 sm:$0xff]  }
  0x58   :  { %2680 = vmatprep.subr.bf16.mxu0 %v5761_v49  ;;  %2527 = vmatpush1.bf16.msra.mxu1 %v5950_v48  ;;  %v5815_v49 = vld [vmem:[%s8357_s1 + $0x580] ss:$8 sps:$4 sm:$0xff]   ;;  %v6041_v48 = vld [vmem:[%s8357_s1 + $0x1a4] ss:$8 sps:$4 sm:$0xff]  }
  0x5b   :  { %2681 = vmatpush1.bf16.msra.mxu0 %v5759_v50  ;;  %v5820_v50 = vld [vmem:[%s8357_s1 + $0x594] ss:$8 sps:$4 sm:$0xff]  }
  0x5c   :  { %2682 = vmatprep.subr.bf16.mxu0 %v5764_v51  ;;  %v5951_v51 = vld [vmem:[%s8357_s1 + $0xc4] ss:$8 sps:$4 sm:$0xff]  }
  0x5d   :  { %2528 = vmatprep.subr.bf16.mxu1 %v5951_v51  ;;  %v5862_v51 = vld [vmem:[%s8357_s1 + $0x670] ss:$8 sps:$4 sm:$0xff]  }
  0x5f   :  { %2683 = vmatpush1.bf16.msra.mxu0 %v5762_v52  ;;  %v5956_v52 = vld [vmem:[%s8357_s1 + $0xc0] ss:$8 sps:$4 sm:$0xff]  }
  0x60   :  { %2684 = vmatprep.subr.bf16.mxu0 %v5767_v53  ;;  %2529 = vmatpush1.bf16.msra.mxu1 %v5956_v52  ;;  %v5818_v53 = vld [vmem:[%s8357_s1 + $0x590] ss:$8 sps:$4 sm:$0xff]   ;;  %v6047_v52 = vld [vmem:[%s8357_s1 + $0x1b4] ss:$8 sps:$4 sm:$0xff]  }
  0x63   :  { %2685 = vmatpush1.bf16.msra.mxu0 %v5765_v54  ;;  %v5823_v54 = vld [vmem:[%s8357_s1 + $0x5a4] ss:$8 sps:$4 sm:$0xff]  }
  0x64   :  { %2686 = vmatprep.subr.bf16.mxu0 %v5770_v55  ;;  %v5957_v55 = vld [vmem:[%s8357_s1 + $0xd4] ss:$8 sps:$4 sm:$0xff]  }
  0x65   :  { %2530 = vmatprep.subr.bf16.mxu1 %v5957_v55  ;;  %v5865_v55 = vld [vmem:[%s8357_s1 + $0x680] ss:$8 sps:$4 sm:$0xff]  }
  0x67   :  { %2687 = vmatpush1.bf16.msra.mxu0 %v5768_v56  ;;  %v5962_v56 = vld [vmem:[%s8357_s1 + $0xd0] ss:$8 sps:$4 sm:$0xff]  }
  0x68   :  { %2688 = vmatprep.subr.bf16.mxu0 %v5773_v57  ;;  %2531 = vmatpush1.bf16.msra.mxu1 %v5962_v56  ;;  %v5821_v57 = vld [vmem:[%s8357_s1 + $0x5a0] ss:$8 sps:$4 sm:$0xff]   ;;  %v6053_v56 = vld [vmem:[%s8357_s1 + $0x1c4] ss:$8 sps:$4 sm:$0xff]  }
  0x6b   :  { %2689 = vmatpush1.bf16.msra.mxu0 %v5771_v58  ;;  %v5826_v58 = vld [vmem:[%s8357_s1 + $0x5b4] ss:$8 sps:$4 sm:$0xff]  }
  0x6c   :  { %2690 = vmatprep.subr.bf16.mxu0 %v5776_v59  ;;  %v5963_v59 = vld [vmem:[%s8357_s1 + $0xe4] ss:$8 sps:$4 sm:$0xff]  }
  0x6d   :  { %2532 = vmatprep.subr.bf16.mxu1 %v5963_v59  ;;  %v5868_v59 = vld [vmem:[%s8357_s1 + $0x690] ss:$8 sps:$4 sm:$0xff]  }
  0x6f   :  { %2691 = vmatpush1.bf16.msra.mxu0 %v5774_v60  ;;  %v5968_v60 = vld [vmem:[%s8357_s1 + $0xe0] ss:$8 sps:$4 sm:$0xff]  }
  0x70   :  { %2692 = vmatprep.subr.bf16.mxu0 %v5779_v61  ;;  %2533 = vmatpush1.bf16.msra.mxu1 %v5968_v60  ;;  %v5824_v61 = vld [vmem:[%s8357_s1 + $0x5b0] ss:$8 sps:$4 sm:$0xff]   ;;  %v6059_v60 = vld [vmem:[%s8357_s1 + $0x1d4] ss:$8 sps:$4 sm:$0xff]  }
  0x73   :  { %2693 = vmatpush1.bf16.msra.mxu0 %v5777_v62  ;;  %v5829_v62 = vld [vmem:[%s8357_s1 + $0x5c4] ss:$8 sps:$4 sm:$0xff]  }
  0x74   :  { %2694 = vmatprep.subr.bf16.mxu0 %v5782_v63  ;;  %v5969_v63 = vld [vmem:[%s8357_s1 + $0xf4] ss:$8 sps:$4 sm:$0xff]  }
  0x75   :  { %2534 = vmatprep.subr.bf16.mxu1 %v5969_v63  ;;  %v5871_v63 = vld [vmem:[%s8357_s1 + $0x6a0] ss:$8 sps:$4 sm:$0xff]  }
  0x76   :  { %2535 = vmatpush1.bf16.msra.mxu1 %v5974_v0  ;;  %v6065_v0 = vld [vmem:[%s8357_s1 + $0x1e4] ss:$8 sps:$4 sm:$0xff]  }
  0x77   :  { %2695 = vmatpush1.bf16.msra.mxu0 %v5780_v2  ;;  %v36_v2 = vld [vmem:[%s8358_s0] sm:$0xff] }
  0x78   :  { %2696 = vmatprep.subr.bf16.mxu0 %v5785_v3  ;;  %v5979_v3 = vld [vmem:[%s8357_s1 + $0x104] ss:$8 sps:$4 sm:$0xff]   ;;  %v5061_v5 = vcombine.low %v36_v2, %v36_v2 }
  0x79   :  { %2545 = vmatprep.subr.bf16.mxu1 %v5979_v3  ;;  %v5874_v3 = vld [vmem:[%s8357_s1 + $0x6b0] ss:$8 sps:$4 sm:$0xff]  }
  0x7b   :  { %2697 = vmatpush1.bf16.msra.mxu0 %v5783_v6  ;;  %v5062_v6 = vcombine.high %v36_v2, %v36_v2  ;;  %v6063_v2 = vld [vmem:[%s8357_s1 + $0x1e0] ss:$8 sps:$4 sm:$0xff]  }
  0x7c   :  { %2698 = vmatprep.subr.bf16.mxu0 %v5788_v7  ;;  %v5977_v7 = vld [vmem:[%s8357_s1 + $0x100] ss:$8 sps:$4 sm:$0xff]  }
  0x7d   :  { %2536 = vmatprep.mubr.bf16.mxu1 %v5062_v6  ;;  %v6069_v6 = vld [vmem:[%s8357_s1 + $0x1f0] ss:$8 sps:$4 sm:$0xff]  }
  0x7e   :  { %2537 = vmatmul.mubr.bf16.vlgmr.msra.gmra.mrb[0].mxu1 %v5061_v5  ;;  %v5881_v5 = vld [vmem:[%s8357_s1 + $0x6c4] ss:$8 sps:$4 sm:$0xff]  }
  0x7f   :  { %2699 = vmatpush1.bf16.msra.mxu0 %v5786_v10  ;;  %v5985_v10 = vld [vmem:[%s8357_s1 + $0x114] ss:$8 sps:$4 sm:$0xff]   ;;  %2546 = vmatpush1.bf16.msra.mxu1 %v5977_v7  ;;  %v5879_v7 = vld [vmem:[%s8357_s1 + $0x6c0] ss:$8 sps:$4 sm:$0xff]  }
  0x80   :  { %2709 = vmatprep.subr.bf16.mxu0 %v5793_v11  ;;  %v5983_v11 = vld [vmem:[%s8357_s1 + $0x110] ss:$8 sps:$4 sm:$0xff]   ;;  %2547 = vmatprep.subr.bf16.mxu1 %v5985_v10  ;;  %v5887_v10 = vld [vmem:[%s8357_s1 + $0x6d4] ss:$8 sps:$4 sm:$0xff]  }
  0x82   :  { %2701 = vmatmul.mubr.bf16.vlgmr.msra.gmra.mrb[0].mxu0 %v5069_v15  ;;  %v5991_v15 = vld [vmem:[%s8357_s1 + $0x124] ss:$8 sps:$4 sm:$0xff]  }
  0x83   :  { %2710 = vmatpush1.bf16.msra.mxu0 %v5791_v16  ;;  %2741 = vmatprep.mubr.bf16.mxu0 %v5072_v17  ;;  %v5989_v16 = vld [vmem:[%s8357_s1 + $0x120] ss:$8 sps:$4 sm:$0xff]   ;;  %v5836_v17 = vld [vmem:[%s8357_s1 + $0x5f0] ss:$8 sps:$4 sm:$0xff]  }
  0x84   :  { %2711 = vmatprep.subr.bf16.mxu0 %v5796_v19  ;;  %2548 = vmatpush1.bf16.msra.mxu1 %v5983_v11  ;;  %v6855_v19 = vld [vmem:[%s8358_s0 + $0x30] sm:$0xff] }
  0x85   :  { %2549 = vmatprep.subr.bf16.mxu1 %v5991_v15  ;;  %v5074_v24 = vcombine.high %v6855_v19, %v6855_v19  ;;  %v5885_v15 = vld [vmem:[%s8357_s1 + $0x6d0] ss:$8 sps:$4 sm:$0xff]  }
  0x87   :  { %2712 = vmatpush1.bf16.msra.mxu0 %v5794_v21  ;;  %v5995_v21 = vld [vmem:[%s8357_s1 + $0x130] ss:$8 sps:$4 sm:$0xff]  }
  0x88   :  { %2713 = vmatprep.subr.bf16.mxu0 %v5799_v22  ;;  %2550 = vmatpush1.bf16.msra.mxu1 %v5989_v16  ;;  %v5071_v22 = vcombine.low %v6651_v12, %v6651_v12  ;;  %v6001_v12 = vld [vmem:[%s8357_s1 + $0x140] ss:$8 sps:$4 sm:$0xff]   ;;  %v6085_v16 = vld [vmem:[%s8357_s1 + $0x214] ss:$8 sps:$4 sm:$0xff]  }
  0x89   :  { %2551 = vmatprep.subr.bf16.mxu1 %v5997_v20  ;;  %v5891_v20 = vld [vmem:[%s8357_s1 + $0x6e0] ss:$8 sps:$4 sm:$0xff]  }
  0x8b   :  { %2714 = vmatpush1.bf16.msra.mxu0 %v5797_v25  ;;  %v6003_v25 = vld [vmem:[%s8357_s1 + $0x144] ss:$8 sps:$4 sm:$0xff]  }
  0x8c   :  { %2715 = vmatprep.subr.bf16.mxu0 %v5802_v26  ;;  %v5846_v26 = vld [vmem:[%s8357_s1 + $0x614] ss:$8 sps:$4 sm:$0xff]   ;;  %2552 = vmatpush1.bf16.msra.mxu1 %v5995_v21  ;;  %v6091_v21 = vld [vmem:[%s8357_s1 + $0x224] ss:$8 sps:$4 sm:$0xff]  }
  0x8d   :  { %2553 = vmatprep.subr.bf16.mxu1 %v6003_v25  ;;  %v6097_v25 = vld [vmem:[%s8357_s1 + $0x234] ss:$8 sps:$4 sm:$0xff]  }
  0x8f   :  { %2716 = vmatpush1.bf16.msra.mxu0 %v5800_v29  ;;  %v6011_v29 = vld [vmem:[%s8357_s1 + $0x154] ss:$8 sps:$4 sm:$0xff]  }
  0x90   :  { %2717 = vmatprep.subr.bf16.mxu0 %v5805_v30  ;;  %2554 = vmatpush1.bf16.msra.mxu1 %v6001_v12  ;;  %v6009_v30 = vld [vmem:[%s8357_s1 + $0x150] ss:$8 sps:$4 sm:$0xff]  }
  0x91   :  { %2555 = vmatprep.subr.bf16.mxu1 %v6011_v29  ;;  %v7062_v12 = vld [vmem:[%s8358_s0 + $0x38] sm:$0xff]  ;;  %v5905_v29 = vld [vmem:[%s8357_s1 + $0x700] ss:$8 sps:$4 sm:$0xff]  }
  0x93   :  { %2718 = vmatpush1.bf16.msra.mxu0 %v5803_v33  ;;  %v6017_v33 = vld [vmem:[%s8357_s1 + $0x164] ss:$8 sps:$4 sm:$0xff]  }
  0x94   :  { %2719 = vmatprep.subr.bf16.mxu0 %v5808_v34  ;;  %2556 = vmatpush1.bf16.msra.mxu1 %v6009_v30  ;;  %v6015_v34 = vld [vmem:[%s8357_s1 + $0x160] ss:$8 sps:$4 sm:$0xff]   ;;  %v5076_v30 = vcombine.high %v7062_v12, %v7062_v12 }
  0x95   :  { %2557 = vmatprep.subr.bf16.mxu1 %v6017_v33  ;;  %v5911_v33 = vld [vmem:[%s8357_s1 + $0x710] ss:$8 sps:$4 sm:$0xff]  }
  0x97   :  { %2720 = vmatpush1.bf16.msra.mxu0 %v5806_v37  ;;  %v6023_v37 = vld [vmem:[%s8357_s1 + $0x174] ss:$8 sps:$4 sm:$0xff]  }
  0x98   :  { %2721 = vmatprep.subr.bf16.mxu0 %v5811_v38  ;;  %2558 = vmatpush1.bf16.msra.mxu1 %v6015_v34  ;;  %v6021_v38 = vld [vmem:[%s8357_s1 + $0x170] ss:$8 sps:$4 sm:$0xff]   ;;  %v6111_v34 = vld [vmem:[%s8357_s1 + $0x254] ss:$8 sps:$4 sm:$0xff]  }
  0x99   :  { %2559 = vmatprep.subr.bf16.mxu1 %v6023_v37  ;;  %v5917_v37 = vld [vmem:[%s8357_s1 + $0x720] ss:$8 sps:$4 sm:$0xff]  }
  0x9b   :  { %2722 = vmatpush1.bf16.msra.mxu0 %v5809_v41  ;;  %v5858_v41 = vld [vmem:[%s8357_s1 + $0x654] ss:$8 sps:$4 sm:$0xff]  }
  0x9c   :  { %2723 = vmatprep.subr.bf16.mxu0 %v5814_v42  ;;  %2560 = vmatpush1.bf16.msra.mxu1 %v6021_v38  ;;  %v6027_v42 = vld [vmem:[%s8357_s1 + $0x180] ss:$8 sps:$4 sm:$0xff]   ;;  %v6117_v38 = vld [vmem:[%s8357_s1 + $0x264] ss:$8 sps:$4 sm:$0xff]  }
  0x9d   :  { %2561 = vmatprep.subr.bf16.mxu1 %v6029_v40  ;;  %v6115_v40 = vld [vmem:[%s8357_s1 + $0x260] ss:$8 sps:$4 sm:$0xff]  }
  0x9f   :  { %2724 = vmatpush1.bf16.msra.mxu0 %v5812_v45  ;;  %v5861_v45 = vld [vmem:[%s8357_s1 + $0x664] ss:$8 sps:$4 sm:$0xff]  }
  0xa0   :  { %2725 = vmatprep.subr.bf16.mxu0 %v5817_v46  ;;  %2562 = vmatpush1.bf16.msra.mxu1 %v6027_v42  ;;  %v6033_v46 = vld [vmem:[%s8357_s1 + $0x190] ss:$8 sps:$4 sm:$0xff]   ;;  %v6123_v42 = vld [vmem:[%s8357_s1 + $0x274] ss:$8 sps:$4 sm:$0xff]  }
  0xa1   :  { %2563 = vmatprep.subr.bf16.mxu1 %v6035_v44  ;;  %v6121_v44 = vld [vmem:[%s8357_s1 + $0x270] ss:$8 sps:$4 sm:$0xff]  }
  0xa3   :  { %2726 = vmatpush1.bf16.msra.mxu0 %v5815_v49  ;;  %v5864_v49 = vld [vmem:[%s8357_s1 + $0x674] ss:$8 sps:$4 sm:$0xff]  }
  0xa4   :  { %2727 = vmatprep.subr.bf16.mxu0 %v5820_v50  ;;  %2564 = vmatpush1.bf16.msra.mxu1 %v6033_v46  ;;  %v6039_v50 = vld [vmem:[%s8357_s1 + $0x1a0] ss:$8 sps:$4 sm:$0xff]   ;;  %v6129_v46 = vld [vmem:[%s8357_s1 + $0x284] ss:$8 sps:$4 sm:$0xff]  }
  0xa5   :  { %2565 = vmatprep.subr.bf16.mxu1 %v6041_v48  ;;  %v6127_v48 = vld [vmem:[%s8357_s1 + $0x280] ss:$8 sps:$4 sm:$0xff]  }
  0xa7   :  { %2728 = vmatpush1.bf16.msra.mxu0 %v5818_v53  ;;  %v5867_v53 = vld [vmem:[%s8357_s1 + $0x684] ss:$8 sps:$4 sm:$0xff]  }
  0xa8   :  { %2729 = vmatprep.subr.bf16.mxu0 %v5823_v54  ;;  %2566 = vmatpush1.bf16.msra.mxu1 %v6039_v50  ;;  %v6045_v54 = vld [vmem:[%s8357_s1 + $0x1b0] ss:$8 sps:$4 sm:$0xff]   ;;  %v6135_v50 = vld [vmem:[%s8357_s1 + $0x294] ss:$8 sps:$4 sm:$0xff]  }
  0xa9   :  { %2567 = vmatprep.subr.bf16.mxu1 %v6047_v52  ;;  %v6133_v52 = vld [vmem:[%s8357_s1 + $0x290] ss:$8 sps:$4 sm:$0xff]  }
  0xab   :  { %2730 = vmatpush1.bf16.msra.mxu0 %v5821_v57  ;;  %v5870_v57 = vld [vmem:[%s8357_s1 + $0x694] ss:$8 sps:$4 sm:$0xff]  }
  0xac   :  { %2731 = vmatprep.subr.bf16.mxu0 %v5826_v58  ;;  %2568 = vmatpush1.bf16.msra.mxu1 %v6045_v54  ;;  %v6051_v58 = vld [vmem:[%s8357_s1 + $0x1c0] ss:$8 sps:$4 sm:$0xff]   ;;  %v6141_v54 = vld [vmem:[%s8357_s1 + $0x2a4] ss:$8 sps:$4 sm:$0xff]  }
  0xad   :  { %2569 = vmatprep.subr.bf16.mxu1 %v6053_v56  ;;  %v6139_v56 = vld [vmem:[%s8357_s1 + $0x2a0] ss:$8 sps:$4 sm:$0xff]  }
  0xaf   :  { %2732 = vmatpush1.bf16.msra.mxu0 %v5824_v61  ;;  %v5873_v61 = vld [vmem:[%s8357_s1 + $0x6a4] ss:$8 sps:$4 sm:$0xff]  }
  0xb0   :  { %2733 = vmatprep.subr.bf16.mxu0 %v5829_v62  ;;  %2570 = vmatpush1.bf16.msra.mxu1 %v6051_v58  ;;  %v6057_v62 = vld [vmem:[%s8357_s1 + $0x1d0] ss:$8 sps:$4 sm:$0xff]   ;;  %v6147_v58 = vld [vmem:[%s8357_s1 + $0x2b4] ss:$8 sps:$4 sm:$0xff]  }
  0xb1   :  { %2571 = vmatprep.subr.bf16.mxu1 %v6059_v60  ;;  %v6145_v60 = vld [vmem:[%s8357_s1 + $0x2b0] ss:$8 sps:$4 sm:$0xff]  }
  0xb3   :  { %2734 = vmatpush1.bf16.msra.mxu0 %v5827_v1  ;;  %v5876_v1 = vld [vmem:[%s8357_s1 + $0x6b4] ss:$8 sps:$4 sm:$0xff]  }
  0xb4   :  { %2735 = vmatprep.subr.bf16.mxu0 %v5832_v4  ;;  %2572 = vmatpush1.bf16.msra.mxu1 %v6057_v62  ;;  %v6071_v4 = vld [vmem:[%s8357_s1 + $0x1f4] ss:$8 sps:$4 sm:$0xff]   ;;  %v6153_v62 = vld [vmem:[%s8357_s1 + $0x2c4] ss:$8 sps:$4 sm:$0xff]  }
  0xb5   :  { %2573 = vmatprep.subr.bf16.mxu1 %v6065_v0  ;;  %v6151_v0 = vld [vmem:[%s8357_s1 + $0x2c0] ss:$8 sps:$4 sm:$0xff]  }
  0xb7   :  { %2736 = vmatpush1.bf16.msra.mxu0 %v5830_v8  ;;  %v37_v8 = vld [vmem:[%s8358_s0 + $0x8] sm:$0xff] }
  0xb8   :  { %2737 = vmatprep.subr.bf16.mxu0 %v5835_v9  ;;  %2574 = vmatpush1.bf16.msra.mxu1 %v6063_v2  ;;  %v6079_v9 = vld [vmem:[%s8357_s1 + $0x204] ss:$8 sps:$4 sm:$0xff]   ;;  %v5063_v11 = vcombine.low %v37_v8, %v37_v8  ;;  %v6159_v2 = vld [vmem:[%s8357_s1 + $0x2d4] ss:$8 sps:$4 sm:$0xff]  }
  0xb9   :  { %2575 = vmatprep.subr.bf16.mxu1 %v6071_v4  ;;  %v6157_v4 = vld [vmem:[%s8357_s1 + $0x2d0] ss:$8 sps:$4 sm:$0xff]  }
  0xbb   :  { %2738 = vmatpush1.bf16.msra.mxu0 %v5833_v13  ;;  %v5064_v13 = vcombine.high %v37_v8, %v37_v8  ;;  %v6163_v8 = vld [vmem:[%s8357_s1 + $0x2e0] ss:$8 sps:$4 sm:$0xff]  }
  0xbc   :  { %2739 = vmatprep.subr.bf16.mxu0 %v5838_v14  ;;  %2576 = vmatpush1.bf16.msra.mxu1 %v6069_v6  ;;  %v6077_v14 = vld [vmem:[%s8357_s1 + $0x200] ss:$8 sps:$4 sm:$0xff]   ;;  %v6165_v6 = vld [vmem:[%s8357_s1 + $0x2e4] ss:$8 sps:$4 sm:$0xff]  }
  0xbd   :  { %2586 = vmatprep.subr.bf16.mxu1 %v6079_v9  ;;  %2577 = vmatprep.mubr.bf16.mxu1 %v5064_v13  ;;  %v5971_v9 = vld [vmem:[%s8357_s1 + $0x7b0] ss:$8 sps:$4 sm:$0xff]  }
  0xbe   :  { %v6169_v13 = vld [vmem:[%s8357_s1 + $0x2f0] ss:$8 sps:$4 sm:$0xff]  }
  0xbf   :  { %2740 = vmatpush1.bf16.msra.mxu0 %v5836_v17  ;;  %2578 = vmatmul.mubr.bf16.vlgmr.msra.gmra.mrb[0].mxu1 %v5063_v11  ;;  %v5893_v17 = vld [vmem:[%s8357_s1 + $0x6e4] ss:$8 sps:$4 sm:$0xff]  }
  0xc0   :  { %2750 = vmatprep.subr.bf16.mxu0 %v5843_v18  ;;  %2587 = vmatpush1.bf16.msra.mxu1 %v6077_v14  ;;  %v6083_v18 = vld [vmem:[%s8357_s1 + $0x210] ss:$8 sps:$4 sm:$0xff]   ;;  %v5982_v11 = vld [vmem:[%s8357_s1 + $0x7c4] ss:$8 sps:$4 sm:$0xff]  }
  0xc1   :  { %2588 = vmatprep.subr.bf16.mxu1 %v6085_v16  ;;  %v38_v14 = vld [vmem:[%s8358_s0 + $0x10] sm:$0xff] }
  0xc2   :  { %2742 = vmatmul.mubr.bf16.vlgmr.msra.gmra.mrb[0].mxu0 %v5071_v22  ;;  %v5899_v22 = vld [vmem:[%s8357_s1 + $0x6f4] ss:$8 sps:$4 sm:$0xff]   ;;  %v5065_v16 = vcombine.low %v38_v14, %v38_v14 }
  0xc3   :  { %2751 = vmatpush1.bf16.msra.mxu0 %v5841_v23  ;;  %2782 = vmatprep.mubr.bf16.mxu0 %v5074_v24  ;;  %v6089_v23 = vld [vmem:[%s8357_s1 + $0x220] ss:$8 sps:$4 sm:$0xff]   ;;  %v5897_v24 = vld [vmem:[%s8357_s1 + $0x6f0] ss:$8 sps:$4 sm:$0xff]  }
  0xc4   :  { %2752 = vmatprep.subr.bf16.mxu0 %v5846_v26  ;;  %2589 = vmatpush1.bf16.msra.mxu1 %v6083_v18  ;;  %v5907_v26 = vld [vmem:[%s8357_s1 + $0x704] ss:$8 sps:$4 sm:$0xff]   ;;  %v5988_v18 = vld [vmem:[%s8357_s1 + $0x7d4] ss:$8 sps:$4 sm:$0xff]  }
  0xc5   :  { %2590 = vmatprep.subr.bf16.mxu1 %v6091_v21  ;;  %v5994_v21 = vld [vmem:[%s8357_s1 + $0x7e4] ss:$8 sps:$4 sm:$0xff]  }
  0xc7   :  { %2753 = vmatpush1.bf16.msra.mxu0 %v5844_v27  ;;  %v6095_v27 = vld [vmem:[%s8357_s1 + $0x230] ss:$8 sps:$4 sm:$0xff]  }
  0xc8   :  { %2754 = vmatprep.subr.bf16.mxu0 %v5849_v28  ;;  %2591 = vmatpush1.bf16.msra.mxu1 %v6089_v23  ;;  %v5073_v28 = vcombine.low %v6855_v19, %v6855_v19  ;;  %v6101_v19 = vld [vmem:[%s8357_s1 + $0x240] ss:$8 sps:$4 sm:$0xff]   ;;  %v6000_v23 = vld [vmem:[%s8357_s1 + $0x7f4] ss:$8 sps:$4 sm:$0xff]  }
  0xc9   :  { %2592 = vmatprep.subr.bf16.mxu1 %v6097_v25  ;;  %v6008_v25 = vld [vmem:[%s8357_s1 + $0x804] ss:$8 sps:$4 sm:$0xff]  }
  0xcb   :  { %2755 = vmatpush1.bf16.msra.mxu0 %v5847_v31  ;;  %v6103_v31 = vld [vmem:[%s8357_s1 + $0x244] ss:$8 sps:$4 sm:$0xff]  }
  0xcc   :  { %2756 = vmatprep.subr.bf16.mxu0 %v5852_v32  ;;  %v5913_v32 = vld [vmem:[%s8357_s1 + $0x714] ss:$8 sps:$4 sm:$0xff]   ;;  %2593 = vmatpush1.bf16.msra.mxu1 %v6095_v27  ;;  %v5075_v27 = vcombine.low %v7062_v12, %v7062_v12  ;;  %v6020_v12 = vld [vmem:[%s8357_s1 + $0x824] ss:$8 sps:$4 sm:$0xff]  }
  0xcd   :  { %2594 = vmatprep.subr.bf16.mxu1 %v6103_v31  ;;  %v6012_v31 = vld [vmem:[%s8357_s1 + $0x810] ss:$8 sps:$4 sm:$0xff]  }
  0xcf   :  { %2757 = vmatpush1.bf16.msra.mxu0 %v5850_v35  ;;  %v5919_v35 = vld [vmem:[%s8357_s1 + $0x724] ss:$8 sps:$4 sm:$0xff]  }
  0xd0   :  { %2758 = vmatprep.subr.bf16.mxu0 %v5855_v36  ;;  %2595 = vmatpush1.bf16.msra.mxu1 %v6101_v19  ;;  %v6109_v36 = vld [vmem:[%s8357_s1 + $0x250] ss:$8 sps:$4 sm:$0xff]   ;;  %v6026_v19 = vld [vmem:[%s8357_s1 + $0x834] ss:$8 sps:$4 sm:$0xff]  }
  0xd1   :  { %2596 = vmatprep.subr.bf16.mxu1 %v6111_v34  ;;  %v6032_v34 = vld [vmem:[%s8357_s1 + $0x844] ss:$8 sps:$4 sm:$0xff]  }
  0xd3   :  { %2759 = vmatpush1.bf16.msra.mxu0 %v5853_v39  ;;  %v5925_v39 = vld [vmem:[%s8357_s1 + $0x734] ss:$8 sps:$4 sm:$0xff]  }
  0xd4   :  { %2760 = vmatprep.subr.bf16.mxu0 %v5858_v41  ;;  %2597 = vmatpush1.bf16.msra.mxu1 %v6109_v36  ;;  %v5923_v41 = vld [vmem:[%s8357_s1 + $0x730] ss:$8 sps:$4 sm:$0xff]   ;;  %v6038_v36 = vld [vmem:[%s8357_s1 + $0x854] ss:$8 sps:$4 sm:$0xff]  }
  0xd5   :  { %2598 = vmatprep.subr.bf16.mxu1 %v6117_v38  ;;  %v6044_v38 = vld [vmem:[%s8357_s1 + $0x864] ss:$8 sps:$4 sm:$0xff]  }
  0xd7   :  { %2761 = vmatpush1.bf16.msra.mxu0 %v5856_v43  ;;  %v5931_v43 = vld [vmem:[%s8357_s1 + $0x744] ss:$8 sps:$4 sm:$0xff]  }
  0xd8   :  { %2762 = vmatprep.subr.bf16.mxu0 %v5861_v45  ;;  %2599 = vmatpush1.bf16.msra.mxu1 %v6115_v40  ;;  %v5929_v45 = vld [vmem:[%s8357_s1 + $0x740] ss:$8 sps:$4 sm:$0xff]   ;;  %v6050_v40 = vld [vmem:[%s8357_s1 + $0x874] ss:$8 sps:$4 sm:$0xff]  }
  0xd9   :  { %2600 = vmatprep.subr.bf16.mxu1 %v6123_v42  ;;  %v6056_v42 = vld [vmem:[%s8357_s1 + $0x884] ss:$8 sps:$4 sm:$0xff]  }
  0xdb   :  { %2763 = vmatpush1.bf16.msra.mxu0 %v5859_v47  ;;  %v5937_v47 = vld [vmem:[%s8357_s1 + $0x754] ss:$8 sps:$4 sm:$0xff]  }
  0xdc   :  { %2764 = vmatprep.subr.bf16.mxu0 %v5864_v49  ;;  %2601 = vmatpush1.bf16.msra.mxu1 %v6121_v44  ;;  %v5935_v49 = vld [vmem:[%s8357_s1 + $0x750] ss:$8 sps:$4 sm:$0xff]   ;;  %v6062_v44 = vld [vmem:[%s8357_s1 + $0x894] ss:$8 sps:$4 sm:$0xff]  }
  0xdd   :  { %2602 = vmatprep.subr.bf16.mxu1 %v6129_v46  ;;  %v6068_v46 = vld [vmem:[%s8357_s1 + $0x8a4] ss:$8 sps:$4 sm:$0xff]  }
  0xdf   :  { %2765 = vmatpush1.bf16.msra.mxu0 %v5862_v51  ;;  %v5943_v51 = vld [vmem:[%s8357_s1 + $0x764] ss:$8 sps:$4 sm:$0xff]  }
  0xe0   :  { %2766 = vmatprep.subr.bf16.mxu0 %v5867_v53  ;;  %2603 = vmatpush1.bf16.msra.mxu1 %v6127_v48  ;;  %v5941_v53 = vld [vmem:[%s8357_s1 + $0x760] ss:$8 sps:$4 sm:$0xff]   ;;  %v6074_v48 = vld [vmem:[%s8357_s1 + $0x8b4] ss:$8 sps:$4 sm:$0xff]  }
  0xe1   :  { %2604 = vmatprep.subr.bf16.mxu1 %v6135_v50  ;;  %v6082_v50 = vld [vmem:[%s8357_s1 + $0x8c4] ss:$8 sps:$4 sm:$0xff]  }
  0xe3   :  { %2767 = vmatpush1.bf16.msra.mxu0 %v5865_v55  ;;  %v5949_v55 = vld [vmem:[%s8357_s1 + $0x774] ss:$8 sps:$4 sm:$0xff]  }
  0xe4   :  { %2768 = vmatprep.subr.bf16.mxu0 %v5870_v57  ;;  %2605 = vmatpush1.bf16.msra.mxu1 %v6133_v52  ;;  %v5947_v57 = vld [vmem:[%s8357_s1 + $0x770] ss:$8 sps:$4 sm:$0xff]   ;;  %v6088_v52 = vld [vmem:[%s8357_s1 + $0x8d4] ss:$8 sps:$4 sm:$0xff]  }
  0xe5   :  { %2606 = vmatprep.subr.bf16.mxu1 %v6141_v54  ;;  %v6094_v54 = vld [vmem:[%s8357_s1 + $0x8e4] ss:$8 sps:$4 sm:$0xff]  }
  0xe7   :  { %2769 = vmatpush1.bf16.msra.mxu0 %v5868_v59  ;;  %v5955_v59 = vld [vmem:[%s8357_s1 + $0x784] ss:$8 sps:$4 sm:$0xff]  }
  0xe8   :  { %2770 = vmatprep.subr.bf16.mxu0 %v5873_v61  ;;  %2607 = vmatpush1.bf16.msra.mxu1 %v6139_v56  ;;  %v5953_v61 = vld [vmem:[%s8357_s1 + $0x780] ss:$8 sps:$4 sm:$0xff]   ;;  %v6100_v56 = vld [vmem:[%s8357_s1 + $0x8f4] ss:$8 sps:$4 sm:$0xff]  }
  0xe9   :  { %2608 = vmatprep.subr.bf16.mxu1 %v6147_v58  ;;  %v6108_v58 = vld [vmem:[%s8357_s1 + $0x904] ss:$8 sps:$4 sm:$0xff]  }
  0xeb   :  { %2771 = vmatpush1.bf16.msra.mxu0 %v5871_v63  ;;  %v5961_v63 = vld [vmem:[%s8357_s1 + $0x794] ss:$8 sps:$4 sm:$0xff]  }
  0xec   :  { %2772 = vmatprep.subr.bf16.mxu0 %v5876_v1  ;;  %2609 = vmatpush1.bf16.msra.mxu1 %v6145_v60  ;;  %v5959_v1 = vld [vmem:[%s8357_s1 + $0x790] ss:$8 sps:$4 sm:$0xff]  }
  0xed   :  { %2610 = vmatprep.subr.bf16.mxu1 %v6153_v62 }
  0xef   :  { %2773 = vmatpush1.bf16.msra.mxu0 %v5874_v3  ;;  %v5967_v3 = vld [vmem:[%s8357_s1 + $0x7a4] ss:$8 sps:$4 sm:$0xff]  }
  0xf0   :  { %2774 = vmatprep.subr.bf16.mxu0 %v5881_v5  ;;  %2611 = vmatpush1.bf16.msra.mxu1 %v6151_v0  ;;  %v5965_v5 = vld [vmem:[%s8357_s1 + $0x7a0] ss:$8 sps:$4 sm:$0xff]   ;;  %v6112_v0 = vld [vmem:[%s8357_s1 + $0x910] ss:$8 sps:$4 sm:$0xff]  }
  0xf1   :  { %2612 = vmatprep.subr.bf16.mxu1 %v6159_v2  ;;  %v6118_v2 = vld [vmem:[%s8357_s1 + $0x920] ss:$8 sps:$4 sm:$0xff]  }
  0xf3   :  { %2775 = vmatpush1.bf16.msra.mxu0 %v5879_v7  ;;  %v5973_v7 = vld [vmem:[%s8357_s1 + $0x7b4] ss:$8 sps:$4 sm:$0xff]  }
  0xf4   :  { %2776 = vmatprep.subr.bf16.mxu0 %v5887_v10  ;;  %2613 = vmatpush1.bf16.msra.mxu1 %v6157_v4  ;;  %v6171_v10 = vld [vmem:[%s8357_s1 + $0x2f4] ss:$8 sps:$4 sm:$0xff]   ;;  %v6124_v4 = vld [vmem:[%s8357_s1 + $0x930] ss:$8 sps:$4 sm:$0xff]  }
  0xf5   :  { %2614 = vmatprep.subr.bf16.mxu1 %v6165_v6  ;;  %v6130_v6 = vld [vmem:[%s8357_s1 + $0x940] ss:$8 sps:$4 sm:$0xff]  }
  0xf7   :  { %2777 = vmatpush1.bf16.msra.mxu0 %v5885_v15  ;;  %v5980_v15 = vld [vmem:[%s8357_s1 + $0x7c0] ss:$8 sps:$4 sm:$0xff]  }
  0xf8   :  { %2778 = vmatprep.subr.bf16.mxu0 %v5893_v17  ;;  %2615 = vmatpush1.bf16.msra.mxu1 %v6163_v8  ;;  %v5066_v17 = vcombine.high %v38_v14, %v38_v14  ;;  %v6136_v8 = vld [vmem:[%s8357_s1 + $0x950] ss:$8 sps:$4 sm:$0xff]   ;;  %v6156_v14 = vld [vmem:[%s8357_s1 + $0x984] ss:$8 sps:$4 sm:$0xff]  }
  0xf9   :  { %2616 = vmatprep.subr.bf16.mxu1 %v6171_v10  ;;  %v6142_v10 = vld [vmem:[%s8357_s1 + $0x960] ss:$8 sps:$4 sm:$0xff]  }
  0xfa   :  { %2618 = vmatprep.mubr.bf16.mxu1 %v5066_v17  ;;  %v6160_v17 = vld [vmem:[%s8357_s1 + $0x990] ss:$8 sps:$4 sm:$0xff]  }
  0xfb   :  { %2779 = vmatpush1.bf16.msra.mxu0 %v5891_v20  ;;  %v5986_v20 = vld [vmem:[%s8357_s1 + $0x7d0] ss:$8 sps:$4 sm:$0xff]  }
  0xfc   :  { %2780 = vmatprep.subr.bf16.mxu0 %v5899_v22  ;;  %2617 = vmatpush1.bf16.msra.mxu1 %v6169_v13  ;;  %v5992_v22 = vld [vmem:[%s8357_s1 + $0x7e0] ss:$8 sps:$4 sm:$0xff]   ;;  %v6148_v13 = vld [vmem:[%s8357_s1 + $0x970] ss:$8 sps:$4 sm:$0xff]  }
  0xff   :  { %2781 = vmatpush1.bf16.msra.mxu0 %v5897_v24  ;;  %2619 = vmatmul.mubr.bf16.vlgmr.msra.gmra.mrb[0].mxu1 %v5065_v16  ;;  %v5998_v24 = vld [vmem:[%s8357_s1 + $0x7f0] ss:$8 sps:$4 sm:$0xff]   ;;  %v6162_v16 = vld [vmem:[%s8357_s1 + $0x994] ss:$8 sps:$4 sm:$0xff]  }
 0x100   :  { %2791 = vmatprep.subr.bf16.mxu0 %v5907_v26  ;;  %v7245_v26 = vld [vmem:[%s8358_s0 + $0x40] sm:$0xff] }
 0x101   :  { %v5077_v60 = vcombine.low %v7245_v26, %v7245_v26 }
 0x102   :  { %2783 = vmatmul.mubr.bf16.vlgmr.msra.gmra.mrb[0].mxu0 %v5073_v28  ;;  %v6006_v28 = vld [vmem:[%s8357_s1 + $0x800] ss:$8 sps:$4 sm:$0xff]  }
 0x103   :  { %2792 = vmatpush1.bf16.msra.mxu0 %v5905_v29  ;;  %2823 = vmatprep.mubr.bf16.mxu0 %v5076_v30  ;;  %v5078_v29 = vcombine.high %v7245_v26, %v7245_v26  ;;  %v6014_v30 = vld [vmem:[%s8357_s1 + $0x814] ss:$8 sps:$4 sm:$0xff]   ;;  %v6279_v26 = vld [vmem:[%s8357_s1 + $0xc04] ss:$8 sps:$4 sm:$0xff]  }
 0x104   :  { %2793 = vmatprep.subr.bf16.mxu0 %v5913_v32  ;;  %v6018_v32 = vld [vmem:[%s8357_s1 + $0x820] ss:$8 sps:$4 sm:$0xff]   ;;  %2996 = vmatprep.subr.bf16.mxu1 %v6279_v26  ;;  %v6229_v26 = vld [vmem:[%s8357_s1 + $0xac4] ss:$8 sps:$4 sm:$0xff]  }
 0x107   :  { %2794 = vmatpush1.bf16.msra.mxu0 %v5911_v33  ;;  %v6024_v33 = vld [vmem:[%s8357_s1 + $0x830] ss:$8 sps:$4 sm:$0xff]  }
 0x108   :  { %2795 = vmatprep.subr.bf16.mxu0 %v5919_v35  ;;  %v6030_v35 = vld [vmem:[%s8357_s1 + $0x840] ss:$8 sps:$4 sm:$0xff]  }
 0x10b   :  { %2796 = vmatpush1.bf16.msra.mxu0 %v5917_v37  ;;  %v6036_v37 = vld [vmem:[%s8357_s1 + $0x850] ss:$8 sps:$4 sm:$0xff]  }
 0x10c   :  { %2797 = vmatprep.subr.bf16.mxu0 %v5925_v39  ;;  %v6042_v39 = vld [vmem:[%s8357_s1 + $0x860] ss:$8 sps:$4 sm:$0xff]  }
 0x10f   :  { %2798 = vmatpush1.bf16.msra.mxu0 %v5923_v41  ;;  %v6048_v41 = vld [vmem:[%s8357_s1 + $0x870] ss:$8 sps:$4 sm:$0xff]  }
 0x110   :  { %2799 = vmatprep.subr.bf16.mxu0 %v5931_v43  ;;  %v6054_v43 = vld [vmem:[%s8357_s1 + $0x880] ss:$8 sps:$4 sm:$0xff]  }
 0x113   :  { %2800 = vmatpush1.bf16.msra.mxu0 %v5929_v45  ;;  %v6060_v45 = vld [vmem:[%s8357_s1 + $0x890] ss:$8 sps:$4 sm:$0xff]  }
 0x114   :  { %2801 = vmatprep.subr.bf16.mxu0 %v5937_v47  ;;  %v6066_v47 = vld [vmem:[%s8357_s1 + $0x8a0] ss:$8 sps:$4 sm:$0xff]  }
 0x117   :  { %2802 = vmatpush1.bf16.msra.mxu0 %v5935_v49  ;;  %v6072_v49 = vld [vmem:[%s8357_s1 + $0x8b0] ss:$8 sps:$4 sm:$0xff]  }
 0x118   :  { %2803 = vmatprep.subr.bf16.mxu0 %v5943_v51  ;;  %v6080_v51 = vld [vmem:[%s8357_s1 + $0x8c0] ss:$8 sps:$4 sm:$0xff]  }
 0x11b   :  { %2804 = vmatpush1.bf16.msra.mxu0 %v5941_v53  ;;  %v6086_v53 = vld [vmem:[%s8357_s1 + $0x8d0] ss:$8 sps:$4 sm:$0xff]  }
 0x11c   :  { %2805 = vmatprep.subr.bf16.mxu0 %v5949_v55  ;;  %v6092_v55 = vld [vmem:[%s8357_s1 + $0x8e0] ss:$8 sps:$4 sm:$0xff]  }
 0x11f   :  { %2806 = vmatpush1.bf16.msra.mxu0 %v5947_v57  ;;  %v6098_v57 = vld [vmem:[%s8357_s1 + $0x8f0] ss:$8 sps:$4 sm:$0xff]  }
 0x120   :  { %2807 = vmatprep.subr.bf16.mxu0 %v5955_v59  ;;  %v7350_v59 = vld [vmem:[%s8358_s0 + $0x48] sm:$0xff] }
 0x121   :  { %v5080_v62 = vcombine.high %v7350_v59, %v7350_v59 }
 0x123   :  { %2808 = vmatpush1.bf16.msra.mxu0 %v5953_v61  ;;  %v6106_v61 = vld [vmem:[%s8357_s1 + $0x900] ss:$8 sps:$4 sm:$0xff]  }
 0x124   :  { %2809 = vmatprep.subr.bf16.mxu0 %v5961_v63  ;;  %v6114_v63 = vld [vmem:[%s8357_s1 + $0x914] ss:$8 sps:$4 sm:$0xff]  }
 0x127   :  { %2810 = vmatpush1.bf16.msra.mxu0 %v5959_v1  ;;  %v6120_v1 = vld [vmem:[%s8357_s1 + $0x924] ss:$8 sps:$4 sm:$0xff]  }
 0x128   :  { %2811 = vmatprep.subr.bf16.mxu0 %v5967_v3  ;;  %v6126_v3 = vld [vmem:[%s8357_s1 + $0x934] ss:$8 sps:$4 sm:$0xff]  }
 0x12b   :  { %2812 = vmatpush1.bf16.msra.mxu0 %v5965_v5  ;;  %v6132_v5 = vld [vmem:[%s8357_s1 + $0x944] ss:$8 sps:$4 sm:$0xff]  }
 0x12c   :  { %2813 = vmatprep.subr.bf16.mxu0 %v5973_v7  ;;  %v6138_v7 = vld [vmem:[%s8357_s1 + $0x954] ss:$8 sps:$4 sm:$0xff]  }
 0x12f   :  { %2814 = vmatpush1.bf16.msra.mxu0 %v5971_v9  ;;  %v6144_v9 = vld [vmem:[%s8357_s1 + $0x964] ss:$8 sps:$4 sm:$0xff]  }
 0x130   :  { %2815 = vmatprep.subr.bf16.mxu0 %v5982_v11  ;;  %v6150_v11 = vld [vmem:[%s8357_s1 + $0x974] ss:$8 sps:$4 sm:$0xff]  }
 0x133   :  { %2816 = vmatpush1.bf16.msra.mxu0 %v5980_v15  ;;  %v6154_v15 = vld [vmem:[%s8357_s1 + $0x980] ss:$8 sps:$4 sm:$0xff]  }
 0x134   :  { %2817 = vmatprep.subr.bf16.mxu0 %v5988_v18  ;;  %v6168_v18 = vld [vmem:[%s8357_s1 + $0x9a4] ss:$8 sps:$4 sm:$0xff]  }
 0x137   :  { %2818 = vmatpush1.bf16.msra.mxu0 %v5986_v20  ;;  %v6166_v20 = vld [vmem:[%s8357_s1 + $0x9a0] ss:$8 sps:$4 sm:$0xff]  }
 0x138   :  { %2819 = vmatprep.subr.bf16.mxu0 %v5994_v21  ;;  %v6174_v21 = vld [vmem:[%s8357_s1 + $0x9b4] ss:$8 sps:$4 sm:$0xff]  }
 0x13b   :  { %2820 = vmatpush1.bf16.msra.mxu0 %v5992_v22  ;;  %v6172_v22 = vld [vmem:[%s8357_s1 + $0x9b0] ss:$8 sps:$4 sm:$0xff]  }
 0x13c   :  { %2821 = vmatprep.subr.bf16.mxu0 %v6000_v23  ;;  %v6179_v23 = vld [vmem:[%s8357_s1 + $0x9c4] ss:$8 sps:$4 sm:$0xff]  }
 0x13f   :  { %2822 = vmatpush1.bf16.msra.mxu0 %v5998_v24  ;;  %v6177_v24 = vld [vmem:[%s8357_s1 + $0x9c0] ss:$8 sps:$4 sm:$0xff]  }
 0x140   :  { %2832 = vmatprep.subr.bf16.mxu0 %v6008_v25  ;;  %v6277_v25 = vld [vmem:[%s8357_s1 + $0xc00] ss:$8 sps:$4 sm:$0xff]  }
 0x141   :  { %2997 = vmatpush1.bf16.msra.mxu1 %v6277_v25  ;;  %v6334_v25 = vld [vmem:[%s8359_s3 + $0xa0] ss:$8 sps:$4 sm:$0xff]  }
 0x142   :  { %2824 = vmatmul.mubr.bf16.vlgmr.msra.gmra.mrb[0].mxu0 %v5075_v27  ;;  %v6182_v27 = vld [vmem:[%s8357_s1 + $0x9d4] ss:$8 sps:$4 sm:$0xff]  }
 0x143   :  { %2833 = vmatpush1.bf16.msra.mxu0 %v6006_v28  ;;  %2864 = vmatprep.mubr.bf16.mxu0 %v5078_v29  ;;  %v6180_v28 = vld [vmem:[%s8357_s1 + $0x9d0] ss:$8 sps:$4 sm:$0xff]  }
 0x144   :  { %2834 = vmatprep.subr.bf16.mxu0 %v6014_v30  ;;  %v6283_v29 = vld [vmem:[%s8357_s1 + $0xc10] ss:$8 sps:$4 sm:$0xff]   ;;  %v6285_v30 = vld [vmem:[%s8357_s1 + $0xc14] ss:$8 sps:$4 sm:$0xff]  }
 0x145   :  { %2998 = vmatprep.subr.bf16.mxu1 %v6285_v30  ;;  %v6232_v30 = vld [vmem:[%s8357_s1 + $0xad4] ss:$8 sps:$4 sm:$0xff]  }
 0x146   :  { %2999 = vmatpush1.bf16.msra.mxu1 %v6283_v29  ;;  %v6337_v29 = vld [vmem:[%s8359_s3 + $0xb0] ss:$8 sps:$4 sm:$0xff]  }
 0x147   :  { %2835 = vmatpush1.bf16.msra.mxu0 %v6012_v31  ;;  %v6185_v31 = vld [vmem:[%s8357_s1 + $0x9e4] ss:$8 sps:$4 sm:$0xff]  }
 0x148   :  { %2836 = vmatprep.subr.bf16.mxu0 %v6020_v12  ;;  %v6183_v12 = vld [vmem:[%s8357_s1 + $0x9e0] ss:$8 sps:$4 sm:$0xff]  }
 0x14b   :  { %2837 = vmatpush1.bf16.msra.mxu0 %v6018_v32  ;;  %v6289_v32 = vld [vmem:[%s8357_s1 + $0xc20] ss:$8 sps:$4 sm:$0xff]  }
 0x14c   :  { %2838 = vmatprep.subr.bf16.mxu0 %v6026_v19  ;;  %v6291_v19 = vld [vmem:[%s8357_s1 + $0xc24] ss:$8 sps:$4 sm:$0xff]  }
 0x14d   :  { %3000 = vmatprep.subr.bf16.mxu1 %v6291_v19  ;;  %v6235_v19 = vld [vmem:[%s8357_s1 + $0xae4] ss:$8 sps:$4 sm:$0xff]  }
 0x14e   :  { %3001 = vmatpush1.bf16.msra.mxu1 %v6289_v32  ;;  %v6340_v32 = vld [vmem:[%s8359_s3 + $0xc0] ss:$8 sps:$4 sm:$0xff]  }
 0x14f   :  { %2839 = vmatpush1.bf16.msra.mxu0 %v6024_v33  ;;  %v6188_v33 = vld [vmem:[%s8357_s1 + $0x9f4] ss:$8 sps:$4 sm:$0xff]  }
 0x150   :  { %2840 = vmatprep.subr.bf16.mxu0 %v6032_v34  ;;  %v6186_v34 = vld [vmem:[%s8357_s1 + $0x9f0] ss:$8 sps:$4 sm:$0xff]  }
 0x153   :  { %2841 = vmatpush1.bf16.msra.mxu0 %v6030_v35  ;;  %v6295_v35 = vld [vmem:[%s8357_s1 + $0xc30] ss:$8 sps:$4 sm:$0xff]  }
 0x154   :  { %2842 = vmatprep.subr.bf16.mxu0 %v6038_v36  ;;  %v6297_v36 = vld [vmem:[%s8357_s1 + $0xc34] ss:$8 sps:$4 sm:$0xff]  }
 0x155   :  { %3002 = vmatprep.subr.bf16.mxu1 %v6297_v36  ;;  %v6243_v36 = vld [vmem:[%s8357_s1 + $0xb04] ss:$8 sps:$4 sm:$0xff]  }
 0x156   :  { %3003 = vmatpush1.bf16.msra.mxu1 %v6295_v35  ;;  %v6236_v35 = vld [vmem:[%s8357_s1 + $0xaf0] ss:$8 sps:$4 sm:$0xff]  }
 0x157   :  { %2843 = vmatpush1.bf16.msra.mxu0 %v6036_v37  ;;  %v6193_v37 = vld [vmem:[%s8357_s1 + $0xa04] ss:$8 sps:$4 sm:$0xff]  }
 0x158   :  { %2844 = vmatprep.subr.bf16.mxu0 %v6044_v38  ;;  %v7479_v38 = vld [vmem:[%s8358_s0 + $0x50] sm:$0xff] }
 0x15b   :  { %2845 = vmatpush1.bf16.msra.mxu0 %v6042_v39  ;;  %v5079_v39 = vcombine.low %v7350_v59, %v7350_v59  ;;  %v6313_v59 = vld [vmem:[%s8359_s3 + $0x30] ss:$8 sps:$4 sm:$0xff]  }
 0x15c   :  { %2846 = vmatprep.subr.bf16.mxu0 %v6050_v40  ;;  %v6191_v40 = vld [vmem:[%s8357_s1 + $0xa00] ss:$8 sps:$4 sm:$0xff]  }
 0x15f   :  { %2847 = vmatpush1.bf16.msra.mxu0 %v6048_v41  ;;  %v5082_v41 = vcombine.high %v7479_v38, %v7479_v38 }
 0x160   :  { %2848 = vmatprep.subr.bf16.mxu0 %v6056_v42  ;;  %v6303_v42 = vld [vmem:[%s8358_s0 + $0x60] ss:$0 sps:$4 sm:$0xff]  }
 0x163   :  { %2849 = vmatpush1.bf16.msra.mxu0 %v6054_v43  ;;  %v6196_v43 = vld [vmem:[%s8357_s1 + $0xa14] ss:$8 sps:$4 sm:$0xff]  }
 0x164   :  { %2850 = vmatprep.subr.bf16.mxu0 %v6062_v44  ;;  %v6368_v44 = vmov 0  }
 0x165   :  { %3028 = vmatprep.mubr.bf16.mxu1 %v6368_v44 }
 0x166   :  { %5478 = vmatmul.mubr.msk.bf16.vlgmr.msra.gmra.mrb[4].mxu1 %vm2500_vm0, %v6303_v42  ;;  %v6246_v42 = vld [vmem:[%s8357_s1 + $0xb14] ss:$8 sps:$4 sm:$0xff]  }
 0x167   :  { %2851 = vmatpush1.bf16.msra.mxu0 %v6060_v45  ;;  %v6194_v45 = vld [vmem:[%s8357_s1 + $0xa10] ss:$8 sps:$4 sm:$0xff]  }
 0x168   :  { %2852 = vmatprep.subr.bf16.mxu0 %v6068_v46  ;;  %v6199_v46 = vld [vmem:[%s8357_s1 + $0xa24] ss:$8 sps:$4 sm:$0xff]  }
 0x16b   :  { %2853 = vmatpush1.bf16.msra.mxu0 %v6066_v47  ;;  %v6304_v47 = vld [vmem:[%s8359_s3] ss:$8 sps:$4 sm:$0xff]  }
 0x16c   :  { %2854 = vmatprep.subr.bf16.mxu0 %v6074_v48  ;;  %v6306_v48 = vld [vmem:[%s8359_s3 + $0x4] ss:$8 sps:$4 sm:$0xff]  }
 0x16d   :  { %3245 = vmatprep.subr.bf16.mxu1 %v6306_v48 }
 0x16e   :  { %3246 = vmatpush1.bf16.msra.mxu1 %v6304_v47  ;;  %v6252_v47 = vld [vmem:[%s8357_s1 + $0xb34] ss:$8 sps:$4 sm:$0xff]  }
 0x16f   :  { %2855 = vmatpush1.bf16.msra.mxu0 %v6072_v49  ;;  %v6309_v49 = vld [vmem:[%s8359_s3 + $0x14] ss:$8 sps:$4 sm:$0xff]  }
 0x170   :  { %2856 = vmatprep.subr.bf16.mxu0 %v6082_v50  ;;  %v6197_v50 = vld [vmem:[%s8357_s1 + $0xa20] ss:$8 sps:$4 sm:$0xff]   ;;  %3247 = vmatprep.subr.bf16.mxu1 %v6309_v49 }
 0x173   :  { %2857 = vmatpush1.bf16.msra.mxu0 %v6080_v51  ;;  %v6307_v51 = vld [vmem:[%s8359_s3 + $0x10] ss:$8 sps:$4 sm:$0xff]  }
 0x174   :  { %2858 = vmatprep.subr.bf16.mxu0 %v6088_v52  ;;  %v6202_v52 = vld [vmem:[%s8357_s1 + $0xa34] ss:$8 sps:$4 sm:$0xff]   ;;  %3248 = vmatpush1.bf16.msra.mxu1 %v6307_v51  ;;  %v6255_v51 = vld [vmem:[%s8357_s1 + $0xb44] ss:$8 sps:$4 sm:$0xff]  }
 0x177   :  { %2859 = vmatpush1.bf16.msra.mxu0 %v6086_v53  ;;  %v6312_v53 = vld [vmem:[%s8359_s3 + $0x24] ss:$8 sps:$4 sm:$0xff]  }
 0x178   :  { %2860 = vmatprep.subr.bf16.mxu0 %v6094_v54  ;;  %v6200_v54 = vld [vmem:[%s8357_s1 + $0xa30] ss:$8 sps:$4 sm:$0xff]   ;;  %3249 = vmatprep.subr.bf16.mxu1 %v6312_v53  ;;  %v6258_v53 = vld [vmem:[%s8357_s1 + $0xb54] ss:$8 sps:$4 sm:$0xff]  }
 0x17b   :  { %2861 = vmatpush1.bf16.msra.mxu0 %v6092_v55  ;;  %v6310_v55 = vld [vmem:[%s8359_s3 + $0x20] ss:$8 sps:$4 sm:$0xff]  }
 0x17c   :  { %2862 = vmatprep.subr.bf16.mxu0 %v6100_v56  ;;  %v6205_v56 = vld [vmem:[%s8357_s1 + $0xa44] ss:$8 sps:$4 sm:$0xff]   ;;  %3250 = vmatpush1.bf16.msra.mxu1 %v6310_v55 }
 0x17d   :  { %v6261_v55 = vld [vmem:[%s8357_s1 + $0xb64] ss:$8 sps:$4 sm:$0xff]  }
 0x17f   :  { %2863 = vmatpush1.bf16.msra.mxu0 %v6098_v57  ;;  %v6315_v57 = vld [vmem:[%s8359_s3 + $0x34] ss:$8 sps:$4 sm:$0xff]  }
 0x180   :  { %2873 = vmatprep.subr.bf16.mxu0 %v6108_v58  ;;  %v6203_v58 = vld [vmem:[%s8357_s1 + $0xa40] ss:$8 sps:$4 sm:$0xff]   ;;  %3251 = vmatprep.subr.bf16.mxu1 %v6315_v57  ;;  %v6345_v57 = vld [vmem:[%s8359_s3 + $0xd4] ss:$8 sps:$4 sm:$0xff]  }
 0x181   :  { %3252 = vmatpush1.bf16.msra.mxu1 %v6313_v59  ;;  %v6264_v59 = vld [vmem:[%s8357_s1 + $0xb74] ss:$8 sps:$4 sm:$0xff]  }
 0x182   :  { %2865 = vmatmul.mubr.bf16.vlgmr.msra.gmra.mrb[0].mxu0 %v5077_v60  ;;  %v6208_v60 = vld [vmem:[%s8357_s1 + $0xa54] ss:$8 sps:$4 sm:$0xff]  }
 0x183   :  { %2874 = vmatpush1.bf16.msra.mxu0 %v6106_v61  ;;  %2905 = vmatprep.mubr.bf16.mxu0 %v5080_v62  ;;  %v6318_v61 = vld [vmem:[%s8359_s3 + $0x44] ss:$8 sps:$4 sm:$0xff]   ;;  %v6206_v62 = vld [vmem:[%s8357_s1 + $0xa50] ss:$8 sps:$4 sm:$0xff]  }
 0x184   :  { %2875 = vmatprep.subr.bf16.mxu0 %v6114_v63  ;;  %v6316_v63 = vld [vmem:[%s8359_s3 + $0x40] ss:$8 sps:$4 sm:$0xff]   ;;  %3253 = vmatprep.subr.bf16.mxu1 %v6318_v61  ;;  %v6267_v61 = vld [vmem:[%s8357_s1 + $0xb84] ss:$8 sps:$4 sm:$0xff]  }
 0x185   :  { %3254 = vmatpush1.bf16.msra.mxu1 %v6316_v63  ;;  %v6270_v63 = vld [vmem:[%s8357_s1 + $0xb94] ss:$8 sps:$4 sm:$0xff]  }
 0x187   :  { %2876 = vmatpush1.bf16.msra.mxu0 %v6112_v0  ;;  %v6211_v0 = vld [vmem:[%s8357_s1 + $0xa64] ss:$8 sps:$4 sm:$0xff]  }
 0x188   :  { %2877 = vmatprep.subr.bf16.mxu0 %v6120_v1  ;;  %v6321_v1 = vld [vmem:[%s8359_s3 + $0x54] ss:$8 sps:$4 sm:$0xff]  }
 0x189   :  { %3255 = vmatprep.subr.bf16.mxu1 %v6321_v1  ;;  %v6273_v1 = vld [vmem:[%s8357_s1 + $0xba4] ss:$8 sps:$4 sm:$0xff]  }
 0x18b   :  { %2878 = vmatpush1.bf16.msra.mxu0 %v6118_v2  ;;  %v6209_v2 = vld [vmem:[%s8357_s1 + $0xa60] ss:$8 sps:$4 sm:$0xff]  }
 0x18c   :  { %2879 = vmatprep.subr.bf16.mxu0 %v6126_v3  ;;  %v6319_v3 = vld [vmem:[%s8359_s3 + $0x50] ss:$8 sps:$4 sm:$0xff]  }
 0x18d   :  { %3256 = vmatpush1.bf16.msra.mxu1 %v6319_v3  ;;  %v6276_v3 = vld [vmem:[%s8357_s1 + $0xbb4] ss:$8 sps:$4 sm:$0xff]  }
 0x18f   :  { %2880 = vmatpush1.bf16.msra.mxu0 %v6124_v4  ;;  %v6214_v4 = vld [vmem:[%s8357_s1 + $0xa74] ss:$8 sps:$4 sm:$0xff]  }
 0x190   :  { %2881 = vmatprep.subr.bf16.mxu0 %v6132_v5  ;;  %v6324_v5 = vld [vmem:[%s8359_s3 + $0x64] ss:$8 sps:$4 sm:$0xff]  }
 0x191   :  { %3257 = vmatprep.subr.bf16.mxu1 %v6324_v5  ;;  %v6282_v5 = vld [vmem:[%s8357_s1 + $0xbc4] ss:$8 sps:$4 sm:$0xff]  }
 0x193   :  { %2882 = vmatpush1.bf16.msra.mxu0 %v6130_v6  ;;  %v6212_v6 = vld [vmem:[%s8357_s1 + $0xa70] ss:$8 sps:$4 sm:$0xff]  }
 0x194   :  { %2883 = vmatprep.subr.bf16.mxu0 %v6138_v7  ;;  %v6322_v7 = vld [vmem:[%s8359_s3 + $0x60] ss:$8 sps:$4 sm:$0xff]  }
 0x195   :  { %3258 = vmatpush1.bf16.msra.mxu1 %v6322_v7  ;;  %v6288_v7 = vld [vmem:[%s8357_s1 + $0xbd4] ss:$8 sps:$4 sm:$0xff]  }
 0x197   :  { %2884 = vmatpush1.bf16.msra.mxu0 %v6136_v8  ;;  %v6217_v8 = vld [vmem:[%s8357_s1 + $0xa84] ss:$8 sps:$4 sm:$0xff]  }
 0x198   :  { %2885 = vmatprep.subr.bf16.mxu0 %v6144_v9  ;;  %v6327_v9 = vld [vmem:[%s8359_s3 + $0x74] ss:$8 sps:$4 sm:$0xff]  }
 0x199   :  { %3259 = vmatprep.subr.bf16.mxu1 %v6327_v9  ;;  %v6294_v9 = vld [vmem:[%s8357_s1 + $0xbe4] ss:$8 sps:$4 sm:$0xff]  }
 0x19b   :  { %2886 = vmatpush1.bf16.msra.mxu0 %v6142_v10  ;;  %v6215_v10 = vld [vmem:[%s8357_s1 + $0xa80] ss:$8 sps:$4 sm:$0xff]  }
 0x19c   :  { %2887 = vmatprep.subr.bf16.mxu0 %v6150_v11  ;;  %v6325_v11 = vld [vmem:[%s8359_s3 + $0x70] ss:$8 sps:$4 sm:$0xff]  }
 0x19d   :  { %3260 = vmatpush1.bf16.msra.mxu1 %v6325_v11  ;;  %v6300_v11 = vld [vmem:[%s8357_s1 + $0xbf4] ss:$8 sps:$4 sm:$0xff]  }
 0x19f   :  { %2888 = vmatpush1.bf16.msra.mxu0 %v6148_v13  ;;  %v6220_v13 = vld [vmem:[%s8357_s1 + $0xa94] ss:$8 sps:$4 sm:$0xff]  }
 0x1a0   :  { %2889 = vmatprep.subr.bf16.mxu0 %v6156_v14  ;;  %v6330_v14 = vld [vmem:[%s8359_s3 + $0x84] ss:$8 sps:$4 sm:$0xff]  }
 0x1a1   :  { %3261 = vmatprep.subr.bf16.mxu1 %v6330_v14 }
 0x1a3   :  { %2890 = vmatpush1.bf16.msra.mxu0 %v6154_v15  ;;  %v6218_v15 = vld [vmem:[%s8357_s1 + $0xa90] ss:$8 sps:$4 sm:$0xff]  }
 0x1a4   :  { %2891 = vmatprep.subr.bf16.mxu0 %v6162_v16  ;;  %v6328_v16 = vld [vmem:[%s8359_s3 + $0x80] ss:$8 sps:$4 sm:$0xff]  }
 0x1a5   :  { %3262 = vmatpush1.bf16.msra.mxu1 %v6328_v16 }
 0x1a7   :  { %2892 = vmatpush1.bf16.msra.mxu0 %v6160_v17  ;;  %v6223_v17 = vld [vmem:[%s8357_s1 + $0xaa4] ss:$8 sps:$4 sm:$0xff]  }
 0x1a8   :  { %2893 = vmatprep.subr.bf16.mxu0 %v6168_v18  ;;  %v6333_v18 = vld [vmem:[%s8359_s3 + $0x94] ss:$8 sps:$4 sm:$0xff]  }
 0x1a9   :  { %3263 = vmatprep.subr.bf16.mxu1 %v6333_v18  ;;  %v6348_v18 = vld [vmem:[%s8359_s3 + $0xe4] ss:$8 sps:$4 sm:$0xff]  }
 0x1ab   :  { %2894 = vmatpush1.bf16.msra.mxu0 %v6166_v20  ;;  %v6221_v20 = vld [vmem:[%s8357_s1 + $0xaa0] ss:$8 sps:$4 sm:$0xff]  }
 0x1ac   :  { %2895 = vmatprep.subr.bf16.mxu0 %v6174_v21  ;;  %v6331_v21 = vld [vmem:[%s8359_s3 + $0x90] ss:$8 sps:$4 sm:$0xff]  }
 0x1ad   :  { %3264 = vmatpush1.bf16.msra.mxu1 %v6331_v21  ;;  %v6346_v21 = vld [vmem:[%s8359_s3 + $0xe0] ss:$8 sps:$4 sm:$0xff]  }
 0x1af   :  { %2896 = vmatpush1.bf16.msra.mxu0 %v6172_v22  ;;  %v6226_v22 = vld [vmem:[%s8357_s1 + $0xab4] ss:$8 sps:$4 sm:$0xff]  }
 0x1b0   :  { %2897 = vmatprep.subr.bf16.mxu0 %v6179_v23  ;;  %v6336_v23 = vld [vmem:[%s8359_s3 + $0xa4] ss:$8 sps:$4 sm:$0xff]  }
 0x1b1   :  { %3265 = vmatprep.subr.bf16.mxu1 %v6336_v23  ;;  %v6349_v23 = vld [vmem:[%s8359_s3 + $0xf0] ss:$8 sps:$4 sm:$0xff]  }
 0x1b2   :  { %3266 = vmatpush1.bf16.msra.mxu1 %v6334_v25  ;;  %v3294_v25 = vld [vmem:[%s8360_s5 + $0x20] sm:$0xff] }
 0x1b3   :  { %2898 = vmatpush1.bf16.msra.mxu0 %v6177_v24  ;;  %v6224_v24 = vld [vmem:[%s8357_s1 + $0xab0] ss:$8 sps:$4 sm:$0xff]  }
 0x1b4   :  { %2899 = vmatprep.subr.bf16.mxu0 %v6182_v27  ;;  %v6339_v27 = vld [vmem:[%s8359_s3 + $0xb4] ss:$8 sps:$4 sm:$0xff]  }
 0x1b5   :  { %3267 = vmatprep.subr.bf16.mxu1 %v6339_v27 }
 0x1b6   :  { %3268 = vmatpush1.bf16.msra.mxu1 %v6337_v29 }
 0x1b7   :  { %2900 = vmatpush1.bf16.msra.mxu0 %v6180_v28  ;;  %v6227_v28 = vld [vmem:[%s8357_s1 + $0xac0] ss:$8 sps:$4 sm:$0xff]  }
 0x1b8   :  { %2901 = vmatprep.subr.bf16.mxu0 %v6185_v31  ;;  %v6342_v31 = vld [vmem:[%s8359_s3 + $0xc4] ss:$8 sps:$4 sm:$0xff]  }
 0x1b9   :  { %3269 = vmatprep.subr.bf16.mxu1 %v6342_v31  ;;  %v441_v31 = vld [vmem:[%s8361_s2] sm:$0x3] }
 0x1ba   :  { %3270 = vmatpush1.bf16.msra.mxu1 %v6340_v32 }
 0x1bb   :  { %2902 = vmatpush1.bf16.msra.mxu0 %v6183_v12  ;;  %v6230_v12 = vld [vmem:[%s8357_s1 + $0xad0] ss:$8 sps:$4 sm:$0xff]   ;;  %3271 = vmatprep.subr.bf16.mxu1 %v6345_v57 }
 0x1bc   :  { %2903 = vmatprep.subr.bf16.mxu0 %v6188_v33  ;;  %v6233_v33 = vld [vmem:[%s8357_s1 + $0xae0] ss:$8 sps:$4 sm:$0xff]  }
 0x1bf   :  { %2904 = vmatpush1.bf16.msra.mxu0 %v6186_v34  ;;  %v6238_v34 = vld [vmem:[%s8357_s1 + $0xaf4] ss:$8 sps:$4 sm:$0xff]  }
 0x1c0   :  { %2914 = vmatprep.subr.bf16.mxu0 %v6193_v37  ;;  %v7665_v37 = vld [vmem:[%s8358_s0 + $0x58] sm:$0xff] }
 0x1c1   :  { %v5083_v14 = vcombine.low %v7665_v37, %v7665_v37 }
 0x1c2   :  { %2906 = vmatmul.mubr.bf16.vlgmr.msra.gmra.mrb[0].mxu0 %v5079_v39  ;;  %v5081_v39 = vcombine.low %v7479_v38, %v7479_v38  ;;  %v6249_v38 = vld [vmem:[%s8357_s1 + $0xb24] ss:$8 sps:$4 sm:$0xff]  }
 0x1c3   :  { %2915 = vmatpush1.bf16.msra.mxu0 %v6191_v40  ;;  %2946 = vmatprep.mubr.bf16.mxu0 %v5082_v41  ;;  %v6241_v40 = vld [vmem:[%s8357_s1 + $0xb00] ss:$8 sps:$4 sm:$0xff]   ;;  %v5084_v41 = vcombine.high %v7665_v37, %v7665_v37 }
 0x1c4   :  { %2916 = vmatprep.subr.bf16.mxu0 %v6196_v43  ;;  %v6244_v43 = vld [vmem:[%s8357_s1 + $0xb10] ss:$8 sps:$4 sm:$0xff]  }
 0x1c7   :  { %2917 = vmatpush1.bf16.msra.mxu0 %v6194_v45  ;;  %v6247_v45 = vld [vmem:[%s8357_s1 + $0xb20] ss:$8 sps:$4 sm:$0xff]  }
 0x1c8   :  { %2918 = vmatprep.subr.bf16.mxu0 %v6199_v46 }
 0x1cb   :  { %2919 = vmatpush1.bf16.msra.mxu0 %v6197_v50  ;;  %v6250_v50 = vld [vmem:[%s8357_s1 + $0xb30] ss:$8 sps:$4 sm:$0xff]  }
 0x1cc   :  { %2920 = vmatprep.subr.bf16.mxu0 %v6202_v52  ;;  %v6253_v52 = vld [vmem:[%s8357_s1 + $0xb40] ss:$8 sps:$4 sm:$0xff]  }
 0x1cf   :  { %2921 = vmatpush1.bf16.msra.mxu0 %v6200_v54  ;;  %v6256_v54 = vld [vmem:[%s8357_s1 + $0xb50] ss:$8 sps:$4 sm:$0xff]  }
 0x1d0   :  { %2922 = vmatprep.subr.bf16.mxu0 %v6205_v56  ;;  %v6343_v56 = vld [vmem:[%s8359_s3 + $0xd0] ss:$8 sps:$4 sm:$0xff]  }
 0x1d1   :  { %3272 = vmatpush1.bf16.msra.mxu1 %v6343_v56 }
 0x1d2   :  { %v7683_v44 = vpop.f32.mrb[0].mxu1  ;;  %3273 = vmatprep.subr.bf16.mxu1 %v6348_v18 }
 0x1d3   :  { %2923 = vmatpush1.bf16.msra.mxu0 %v6203_v58  ;;  %v7688_v46 = vpop.f32.mrb[1].mxu1  ;;  %v6259_v58 = vld [vmem:[%s8357_s1 + $0xb60] ss:$8 sps:$4 sm:$0xff]  }
 0x1d4   :  { %2924 = vmatprep.subr.bf16.mxu0 %v6208_v60  ;;  %v2624_v48 = vpop.f32.mrb[2].mxu1  ;;  %v6262_v60 = vld [vmem:[%s8357_s1 + $0xb70] ss:$8 sps:$4 sm:$0xff]  }
 0x1d5   :  { %v2625_v49 = vpop.f32.mrb[3].mxu1  ;;  %3274 = vmatpush1.bf16.msra.mxu1 %v6346_v21  ;;  %v3374_v21 = vld [vmem:[%s8360_s5 + $0x2a0] sm:$0xff] }
 0x1d7   :  { %2925 = vmatpush1.bf16.msra.mxu0 %v6206_v62  ;;  %v6265_v62 = vld [vmem:[%s8357_s1 + $0xb80] ss:$8 sps:$4 sm:$0xff]  }
 0x1d8   :  { %2926 = vmatprep.subr.bf16.mxu0 %v6211_v0  ;;  %v6268_v0 = vld [vmem:[%s8357_s1 + $0xb90] ss:$8 sps:$4 sm:$0xff]  }
 0x1db   :  { %2927 = vmatpush1.bf16.msra.mxu0 %v6209_v2  ;;  %v6271_v2 = vld [vmem:[%s8357_s1 + $0xba0] ss:$8 sps:$4 sm:$0xff]  }
 0x1dc   :  { %2928 = vmatprep.subr.bf16.mxu0 %v6214_v4  ;;  %v6274_v4 = vld [vmem:[%s8357_s1 + $0xbb0] ss:$8 sps:$4 sm:$0xff]  }
 0x1df   :  { %2929 = vmatpush1.bf16.msra.mxu0 %v6212_v6  ;;  %v6280_v6 = vld [vmem:[%s8357_s1 + $0xbc0] ss:$8 sps:$4 sm:$0xff]  }
 0x1e0   :  { %2930 = vmatprep.subr.bf16.mxu0 %v6217_v8  ;;  %v6286_v8 = vld [vmem:[%s8357_s1 + $0xbd0] ss:$8 sps:$4 sm:$0xff]  }
 0x1e3   :  { %2931 = vmatpush1.bf16.msra.mxu0 %v6215_v10  ;;  %v6292_v10 = vld [vmem:[%s8357_s1 + $0xbe0] ss:$8 sps:$4 sm:$0xff]  }
 0x1e4   :  { %2932 = vmatprep.subr.bf16.mxu0 %v6220_v13  ;;  %v6298_v13 = vld [vmem:[%s8357_s1 + $0xbf0] ss:$8 sps:$4 sm:$0xff]  }
 0x1e7   :  { %2933 = vmatpush1.bf16.msra.mxu0 %v6218_v15 }
 0x1e8   :  { %2934 = vmatprep.subr.bf16.mxu0 %v6223_v17 }
 0x1eb   :  { %2935 = vmatpush1.bf16.msra.mxu0 %v6221_v20 }
 0x1ec   :  { %2936 = vmatprep.subr.bf16.mxu0 %v6226_v22  ;;  %v6351_v22 = vld [vmem:[%s8359_s3 + $0xf4] ss:$8 sps:$4 sm:$0xff]  }
 0x1ed   :  { %3275 = vmatprep.subr.bf16.mxu1 %v6351_v22 }
 0x1ee   :  { %3276 = vmatpush1.bf16.msra.mxu1 %v6349_v23 }
 0x1ef   :  { %2937 = vmatpush1.bf16.msra.mxu0 %v6224_v24  ;;  %v3290_v24 = vld [vmem:[%s8360_s5] sm:$0xff] }
 0x1f0   :  { %2938 = vmatprep.subr.bf16.mxu0 %v6229_v26  ;;  %v5511_v26 = vcombine.low %v3290_v24, %v3294_v25  ;;  %v5512_v27 = vcombine.high %v3290_v24, %v3294_v25  ;;  %v3378_v24 = vld [vmem:[%s8360_s5 + $0x2c0] sm:$0xff] }
 0x1f1   :  { %v3382_v25 = vld [vmem:[%s8360_s5 + $0x2e0] sm:$0xff] }
 0x1f2   :  { %4058 = vmatprep.subr.bf16.mxu1 %v5512_v27  ;;  %v5600_v27 = vcombine.high %v3378_v24, %v3382_v25 }
 0x1f3   :  { %2939 = vmatpush1.bf16.msra.mxu0 %v6227_v28  ;;  %v443_v28 = vlaneseq }
 0x1f4   :  { %2940 = vmatprep.subr.bf16.mxu0 %v6232_v30 }
 0x1f5   :  { %v444_v29 = vshrl.u32 %v443_v28, 7  ;;  %v3386_v28 = vld [vmem:[%s8360_s5 + $0x300] sm:$0xff] }
 0x1f7   :  { %2941 = vmatpush1.bf16.msra.mxu0 %v6230_v12  ;;  %v7794_v30 = vsub.s32 0, %v444_v29  ;;  %v7799_v12 = vsub.s32 1, %v444_v29  ;;  %v3390_v29 = vld [vmem:[%s8360_s5 + $0x320] sm:$0xff] }
 0x1f8   :  { %2942 = vmatprep.subr.bf16.mxu0 %v6235_v19 }
 0x1f9   :  { %v446_v32 = vrot.slane %v441_v31, %v7794_v30  ;;  %v450_v19 = vrot.slane %v441_v31, %v7799_v12  ;;  %v5599_v31 = vcombine.low %v3378_v24, %v3382_v25  ;;  %v3351_v24 = vld [vmem:[%s8360_s5 + $0x1e8] sm:$0xff] }
 0x1fb   :  { %2943 = vmatpush1.bf16.msra.mxu0 %v6233_v33  ;;  %v5643_v33 = vadd.f32 %v7683_v44, %v446_v32  ;;  %v3302_v44 = vld [vmem:[%s8360_s5 + $0x60] sm:$0xff]  ;;  %v5608_v32 = vcombine.high %v3386_v28, %v3390_v29 }
 0x1fc   :  { %2944 = vmatprep.subr.bf16.mxu0 %v6238_v34  ;;  %v5646_v34 = vadd.f32 %v7688_v46, %v450_v19  ;;  %v3394_v19 = vld [vmem:[%s8360_s5 + $0x340] sm:$0xff] }
 0x1ff   :  { %2945 = vmatpush1.bf16.msra.mxu0 %v6236_v35 }
 0x200   :  { %2955 = vmatprep.subr.bf16.mxu0 %v6243_v36 }
 0x202   :  { %2947 = vmatmul.mubr.bf16.vlgmr.msra.gmra.mrb[0].mxu0 %v5081_v39 }
 0x203   :  { %2956 = vmatpush1.bf16.msra.mxu0 %v6241_v40  ;;  %2987 = vmatprep.mubr.bf16.mxu0 %v5084_v41 }
 0x204   :  { %2957 = vmatprep.subr.bf16.mxu0 %v6246_v42 }
 0x207   :  { %2958 = vmatpush1.bf16.msra.mxu0 %v6244_v43 }
 0x208   :  { %2959 = vmatprep.subr.bf16.mxu0 %v6249_v38 }
 0x20b   :  { %2960 = vmatpush1.bf16.msra.mxu0 %v6247_v45 }
 0x20c   :  { %2961 = vmatprep.subr.bf16.mxu0 %v6252_v47  ;;  %v3298_v47 = vld [vmem:[%s8360_s5 + $0x40] sm:$0xff] }
 0x20d   :  { %v5520_v49 = vcombine.high %v3298_v47, %v3302_v44 }
 0x20f   :  { %2962 = vmatpush1.bf16.msra.mxu0 %v6250_v50  ;;  %v3306_v50 = vld [vmem:[%s8360_s5 + $0x80] sm:$0xff] }
 0x210   :  { %2963 = vmatprep.subr.bf16.mxu0 %v6255_v51  ;;  %v3310_v51 = vld [vmem:[%s8360_s5 + $0xa0] sm:$0xff] }
 0x211   :  { %v5527_v56 = vcombine.low %v3306_v50, %v3310_v51 }
 0x213   :  { %2964 = vmatpush1.bf16.msra.mxu0 %v6253_v52  ;;  %v5519_v52 = vcombine.low %v3298_v47, %v3302_v44  ;;  %v3291_v47 = vld [vmem:[%s8360_s5 + $0x8] sm:$0xff] }
 0x214   :  { %2965 = vmatprep.subr.bf16.mxu0 %v6258_v53  ;;  %v5528_v53 = vcombine.high %v3306_v50, %v3310_v51  ;;  %v3295_v44 = vld [vmem:[%s8360_s5 + $0x28] sm:$0xff] }
 0x217   :  { %2966 = vmatpush1.bf16.msra.mxu0 %v6256_v54  ;;  %v3314_v54 = vld [vmem:[%s8360_s5 + $0xc0] sm:$0xff] }
 0x218   :  { %2967 = vmatprep.subr.bf16.mxu0 %v6261_v55  ;;  %v3318_v55 = vld [vmem:[%s8360_s5 + $0xe0] sm:$0xff] }
 0x219   :  { %v5536_v57 = vcombine.high %v3314_v54, %v3318_v55 }
 0x21b   :  { %2968 = vmatpush1.bf16.msra.mxu0 %v6259_v58  ;;  %v3322_v58 = vld [vmem:[%s8360_s5 + $0x100] sm:$0xff] }
 0x21c   :  { %2969 = vmatprep.subr.bf16.mxu0 %v6264_v59  ;;  %v3326_v59 = vld [vmem:[%s8360_s5 + $0x120] sm:$0xff] }
 0x21f   :  { %2970 = vmatpush1.bf16.msra.mxu0 %v6262_v60  ;;  %v5535_v60 = vcombine.low %v3314_v54, %v3318_v55 }
 0x220   :  { %2971 = vmatprep.subr.bf16.mxu0 %v6267_v61  ;;  %v5544_v61 = vcombine.high %v3322_v58, %v3326_v59 }
 0x223   :  { %2972 = vmatpush1.bf16.msra.mxu0 %v6265_v62  ;;  %v3330_v62 = vld [vmem:[%s8360_s5 + $0x140] sm:$0xff] }
 0x224   :  { %2973 = vmatprep.subr.bf16.mxu0 %v6270_v63  ;;  %v3334_v63 = vld [vmem:[%s8360_s5 + $0x160] sm:$0xff] }
 0x227   :  { %2974 = vmatpush1.bf16.msra.mxu0 %v6268_v0  ;;  %v5543_v0 = vcombine.low %v3322_v58, %v3326_v59 }
 0x228   :  { %2975 = vmatprep.subr.bf16.mxu0 %v6273_v1  ;;  %v5552_v1 = vcombine.high %v3330_v62, %v3334_v63 }
 0x22b   :  { %2976 = vmatpush1.bf16.msra.mxu0 %v6271_v2  ;;  %v3338_v2 = vld [vmem:[%s8360_s5 + $0x180] sm:$0xff] }
 0x22c   :  { %2977 = vmatprep.subr.bf16.mxu0 %v6276_v3  ;;  %v3342_v3 = vld [vmem:[%s8360_s5 + $0x1a0] sm:$0xff] }
 0x22f   :  { %2978 = vmatpush1.bf16.msra.mxu0 %v6274_v4  ;;  %v5551_v4 = vcombine.low %v3330_v62, %v3334_v63 }
 0x230   :  { %2979 = vmatprep.subr.bf16.mxu0 %v6282_v5  ;;  %v5560_v5 = vcombine.high %v3338_v2, %v3342_v3 }
 0x233   :  { %2980 = vmatpush1.bf16.msra.mxu0 %v6280_v6  ;;  %v3346_v6 = vld [vmem:[%s8360_s5 + $0x1c0] sm:$0xff] }
 0x234   :  { %2981 = vmatprep.subr.bf16.mxu0 %v6288_v7  ;;  %v3350_v7 = vld [vmem:[%s8360_s5 + $0x1e0] sm:$0xff] }
 0x237   :  { %2982 = vmatpush1.bf16.msra.mxu0 %v6286_v8  ;;  %v5559_v8 = vcombine.low %v3338_v2, %v3342_v3  ;;  %v3311_v2 = vld [vmem:[%s8360_s5 + $0xa8] sm:$0xff] }
 0x238   :  { %2983 = vmatprep.subr.bf16.mxu0 %v6294_v9  ;;  %v5568_v9 = vcombine.high %v3346_v6, %v3350_v7 }
 0x239   :  { %v3030_v15 = vpop.f32.mrb[4].mxu1 }
 0x23a   :  { %v3032_v16 = vpop.f32.mrb[5].mxu1 }
 0x23b   :  { %2984 = vmatpush1.bf16.msra.mxu0 %v6292_v10  ;;  %v3034_v17 = vpop.f32.mrb[6].mxu1  ;;  %v3354_v10 = vld [vmem:[%s8360_s5 + $0x200] sm:$0xff] }
 0x23c   :  { %2985 = vmatprep.subr.bf16.mxu0 %v6300_v11  ;;  %v3035_v20 = vpop.f32.mrb[7].mxu1  ;;  %v3358_v11 = vld [vmem:[%s8360_s5 + $0x220] sm:$0xff] }
 0x23d   :  { %v5575_v17 = vcombine.low %v3354_v10, %v3358_v11  ;;  %v3370_v20 = vld [vmem:[%s8360_s5 + $0x280] sm:$0xff] }
 0x23e   :  { %v5592_v23 = vcombine.high %v3370_v20, %v3374_v21 }
 0x23f   :  { %2986 = vmatpush1.bf16.msra.mxu0 %v6298_v13  ;;  %v5567_v13 = vcombine.low %v3346_v6, %v3350_v7  ;;  %v3319_v6 = vld [vmem:[%s8360_s5 + $0xe8] sm:$0xff] }
 0x242   :  { %2988 = vmatmul.mubr.bf16.vlgmr.msra.gmra.mrb[0].mxu0 %v5083_v14  ;;  %v5576_v14 = vcombine.high %v3354_v10, %v3358_v11  ;;  %v3327_v10 = vld [vmem:[%s8360_s5 + $0x128] sm:$0xff] }
 0x315   :  { %v2989_v35 = vpop.f32.mrb[0].mxu0 }
 0x316   :  { %v5644_v36 = vadd.f32 %v5643_v33, %v2989_v35  ;;  %v2991_v37 = vpop.f32.mrb[1].mxu0  ;;  %v3398_v33 = vld [vmem:[%s8360_s5 + $0x360] sm:$0xff] }
 0x317   :  { %v5647_v39 = vadd.f32 %v5646_v34, %v2991_v37  ;;  %v2993_v40 = vpop.f32.mrb[2].mxu0  ;;  %v5607_v34 = vcombine.low %v3386_v28, %v3390_v29  ;;  %v5616_v35 = vcombine.high %v3394_v19, %v3398_v33  ;;  %v3402_v37 = vld [vmem:[%s8360_s5 + $0x380] sm:$0xff]  ;;  %v3359_v28 = vld [vmem:[%s8360_s5 + $0x228] sm:$0xff] }
 0x318   :  { %v5645_v41 = vadd.f32 %v5644_v36, %v3030_v15  ;;  %v2994_v42 = vpop.f32.mrb[3].mxu0  ;;  %v3362_v15 = vld [vmem:[%s8360_s5 + $0x240] sm:$0xff]  ;;  %v5615_v36 = vcombine.low %v3394_v19, %v3398_v33  ;;  %v3367_v19 = vld [vmem:[%s8360_s5 + $0x268] sm:$0xff] }
 0x319   :  { %v5648_v43 = vadd.f32 %v5647_v39, %v3032_v16  ;;  %v3366_v16 = vld [vmem:[%s8360_s5 + $0x260] sm:$0xff] }
 0x31a   :  { %v3037_v38 = vmax.f32 %v5645_v41, 0.0  ;;  %v5584_v18 = vcombine.high %v3362_v15, %v3366_v16  ;;  %v5583_v22 = vcombine.low %v3362_v15, %v3366_v16  ;;  %v3406_v39 = vld [vmem:[%s8360_s5 + $0x3a0] sm:$0xff]  ;;  %v3335_v15 = vld [vmem:[%s8360_s5 + $0x168] sm:$0xff] }
 0x31b   :  { %v3038_v45 = vmax.f32 %v5648_v43, 0.0  ;;  %v5624_v40 = vcombine.high %v3402_v37, %v3406_v39  ;;  %v5623_v41 = vcombine.low %v3402_v37, %v3406_v39  ;;  %v3410_v42 = vld [vmem:[%s8360_s5 + $0x3c0] sm:$0xff] }
 0x31c   :  { %v3039_v46 = vpack.c.bf16 %v3037_v38, %v3037_v38  ;;  %v3414_v43 = vld [vmem:[%s8360_s5 + $0x3e0] sm:$0xff] }
 0x31d   :  { %v3040_v48 = vpack.c.bf16 %v3038_v45, %v3038_v45  ;;  %v5632_v38 = vcombine.high %v3410_v42, %v3414_v43  ;;  %v5631_v45 = vcombine.low %v3410_v42, %v3414_v43 }
 0x31f   :  { %3277 = vmatprep.mubr.bf16.mxu1 %v3040_v48  ;;  %v5514_v48 = vcombine.high %v3291_v47, %v3295_v44 }
 0x320   :  { %3278 = vmatmul.mubr.bf16.vlgmr.msra.gmra.mrb[8].mxu1 %v3039_v46  ;;  %v5513_v46 = vcombine.low %v3291_v47, %v3295_v44 }
 0x321   :  { %4059 = vmatpush1.bf16.msra.mxu1 %v5511_v26  ;;  %v5591_v26 = vcombine.low %v3370_v20, %v3374_v21  ;;  %v3343_v20 = vld [vmem:[%s8360_s5 + $0x1a8] sm:$0xff] }
 0x322   :  { %4060 = vmatprep.subr.bf16.mxu1 %v5520_v49  ;;  %v3073_v49 = vld [vmem:[%s8362_s4] sm:$0x3] }
 0x323   :  { %v3078_v50 = vrot.slane %v3073_v49, %v7794_v30  ;;  %v3082_v51 = vrot.slane %v3073_v49, %v7799_v12 }
 0x325   :  { %4061 = vmatpush1.bf16.msra.mxu1 %v5519_v52 }
 0x326   :  { %4062 = vmatprep.subr.bf16.mxu1 %v5528_v53 }
 0x329   :  { %4063 = vmatpush1.bf16.msra.mxu1 %v5527_v56 }
 0x32a   :  { %4064 = vmatprep.subr.bf16.mxu1 %v5536_v57 }
 0x32d   :  { %4065 = vmatpush1.bf16.msra.mxu1 %v5535_v60  ;;  %v3299_v60 = vld [vmem:[%s8360_s5 + $0x48] sm:$0xff] }
 0x32e   :  { %4066 = vmatprep.subr.bf16.mxu1 %v5544_v61  ;;  %v3303_v61 = vld [vmem:[%s8360_s5 + $0x68] sm:$0xff] }
 0x32f   :  { %v5521_v3 = vcombine.low %v3299_v60, %v3303_v61 }
 0x331   :  { %4067 = vmatpush1.bf16.msra.mxu1 %v5543_v0  ;;  %v5522_v0 = vcombine.high %v3299_v60, %v3303_v61  ;;  %v3296_v60 = vld [vmem:[%s8360_s5 + $0x30] sm:$0xff] }
 0x332   :  { %4068 = vmatprep.subr.bf16.mxu1 %v5552_v1  ;;  %v3307_v1 = vld [vmem:[%s8360_s5 + $0x88] sm:$0xff] }
 0x333   :  { %v5529_v7 = vcombine.low %v3307_v1, %v3311_v2 }
 0x335   :  { %4069 = vmatpush1.bf16.msra.mxu1 %v5551_v4  ;;  %v5530_v4 = vcombine.high %v3307_v1, %v3311_v2  ;;  %v3300_v1 = vld [vmem:[%s8360_s5 + $0x50] sm:$0xff] }
 0x336   :  { %4070 = vmatprep.subr.bf16.mxu1 %v5560_v5  ;;  %v3315_v5 = vld [vmem:[%s8360_s5 + $0xc8] sm:$0xff]  ;;  %v3304_v2 = vld [vmem:[%s8360_s5 + $0x70] sm:$0xff] }
 0x337   :  { %v5537_v11 = vcombine.low %v3315_v5, %v3319_v6 }
 0x339   :  { %4071 = vmatpush1.bf16.msra.mxu1 %v5559_v8  ;;  %v5538_v8 = vcombine.high %v3315_v5, %v3319_v6  ;;  %v3308_v5 = vld [vmem:[%s8360_s5 + $0x90] sm:$0xff] }
 0x33a   :  { %4072 = vmatprep.subr.bf16.mxu1 %v5568_v9  ;;  %v3323_v9 = vld [vmem:[%s8360_s5 + $0x108] sm:$0xff]  ;;  %v3312_v6 = vld [vmem:[%s8360_s5 + $0xb0] sm:$0xff] }
 0x33b   :  { %v5545_v16 = vcombine.low %v3323_v9, %v3327_v10 }
 0x33d   :  { %4073 = vmatpush1.bf16.msra.mxu1 %v5567_v13  ;;  %v5546_v13 = vcombine.high %v3323_v9, %v3327_v10  ;;  %v3316_v9 = vld [vmem:[%s8360_s5 + $0xd0] sm:$0xff] }
 0x33e   :  { %4074 = vmatprep.subr.bf16.mxu1 %v5576_v14  ;;  %v3331_v14 = vld [vmem:[%s8360_s5 + $0x148] sm:$0xff]  ;;  %v3320_v10 = vld [vmem:[%s8360_s5 + $0xf0] sm:$0xff] }
 0x33f   :  { %v5553_v21 = vcombine.low %v3331_v14, %v3335_v15 }
 0x341   :  { %4075 = vmatpush1.bf16.msra.mxu1 %v5575_v17  ;;  %v5554_v17 = vcombine.high %v3331_v14, %v3335_v15  ;;  %v3324_v14 = vld [vmem:[%s8360_s5 + $0x110] sm:$0xff] }
 0x342   :  { %4076 = vmatprep.subr.bf16.mxu1 %v5584_v18  ;;  %v3339_v18 = vld [vmem:[%s8360_s5 + $0x188] sm:$0xff]  ;;  %v3328_v15 = vld [vmem:[%s8360_s5 + $0x130] sm:$0xff] }
 0x343   :  { %v5561_v25 = vcombine.low %v3339_v18, %v3343_v20 }
 0x345   :  { %4077 = vmatpush1.bf16.msra.mxu1 %v5583_v22  ;;  %v5562_v22 = vcombine.high %v3339_v18, %v3343_v20  ;;  %v3332_v18 = vld [vmem:[%s8360_s5 + $0x150] sm:$0xff] }
 0x346   :  { %4078 = vmatprep.subr.bf16.mxu1 %v5592_v23  ;;  %v3347_v23 = vld [vmem:[%s8360_s5 + $0x1c8] sm:$0xff]  ;;  %v3336_v20 = vld [vmem:[%s8360_s5 + $0x170] sm:$0xff] }
 0x347   :  { %v5569_v29 = vcombine.low %v3347_v23, %v3351_v24 }
 0x349   :  { %4079 = vmatpush1.bf16.msra.mxu1 %v5591_v26  ;;  %v5570_v26 = vcombine.high %v3347_v23, %v3351_v24  ;;  %v3340_v23 = vld [vmem:[%s8360_s5 + $0x190] sm:$0xff] }
 0x34a   :  { %4080 = vmatprep.subr.bf16.mxu1 %v5600_v27  ;;  %v3355_v27 = vld [vmem:[%s8360_s5 + $0x208] sm:$0xff]  ;;  %v3344_v24 = vld [vmem:[%s8360_s5 + $0x1b0] sm:$0xff] }
 0x34b   :  { %v5577_v33 = vcombine.low %v3355_v27, %v3359_v28 }
 0x34d   :  { %4081 = vmatpush1.bf16.msra.mxu1 %v5599_v31  ;;  %v5578_v31 = vcombine.high %v3355_v27, %v3359_v28  ;;  %v3348_v27 = vld [vmem:[%s8360_s5 + $0x1d0] sm:$0xff] }
 0x34e   :  { %4082 = vmatprep.subr.bf16.mxu1 %v5608_v32  ;;  %v3363_v32 = vld [vmem:[%s8360_s5 + $0x248] sm:$0xff]  ;;  %v3352_v28 = vld [vmem:[%s8360_s5 + $0x1f0] sm:$0xff] }
 0x34f   :  { %v5585_v37 = vcombine.low %v3363_v32, %v3367_v19 }
 0x351   :  { %4083 = vmatpush1.bf16.msra.mxu1 %v5607_v34  ;;  %v5586_v34 = vcombine.high %v3363_v32, %v3367_v19  ;;  %v3356_v32 = vld [vmem:[%s8360_s5 + $0x210] sm:$0xff] }
 0x352   :  { %4084 = vmatprep.subr.bf16.mxu1 %v5616_v35  ;;  %v3371_v35 = vld [vmem:[%s8360_s5 + $0x288] sm:$0xff]  ;;  %v3360_v19 = vld [vmem:[%s8360_s5 + $0x230] sm:$0xff] }
 0x355   :  { %4085 = vmatpush1.bf16.msra.mxu1 %v5615_v36  ;;  %v3375_v36 = vld [vmem:[%s8360_s5 + $0x2a8] sm:$0xff] }
 0x356   :  { %4086 = vmatprep.subr.bf16.mxu1 %v5624_v40  ;;  %v5594_v39 = vcombine.high %v3371_v35, %v3375_v36  ;;  %v3379_v40 = vld [vmem:[%s8360_s5 + $0x2c8] sm:$0xff]  ;;  %v5593_v42 = vcombine.low %v3371_v35, %v3375_v36  ;;  %v3364_v35 = vld [vmem:[%s8360_s5 + $0x250] sm:$0xff] }
 0x357   :  { %v3368_v36 = vld [vmem:[%s8360_s5 + $0x270] sm:$0xff] }
 0x359   :  { %4087 = vmatpush1.bf16.msra.mxu1 %v5623_v41  ;;  %v3383_v41 = vld [vmem:[%s8360_s5 + $0x2e8] sm:$0xff] }
 0x35a   :  { %4088 = vmatprep.subr.bf16.mxu1 %v5632_v38  ;;  %v5602_v43 = vcombine.high %v3379_v40, %v3383_v41  ;;  %v3387_v38 = vld [vmem:[%s8360_s5 + $0x308] sm:$0xff]  ;;  %v5601_v47 = vcombine.low %v3379_v40, %v3383_v41  ;;  %v3372_v40 = vld [vmem:[%s8360_s5 + $0x290] sm:$0xff] }
 0x35b   :  { %v3376_v41 = vld [vmem:[%s8360_s5 + $0x2b0] sm:$0xff] }
 0x35d   :  { %4089 = vmatpush1.bf16.msra.mxu1 %v5631_v45  ;;  %v3391_v45 = vld [vmem:[%s8360_s5 + $0x328] sm:$0xff] }
 0x35e   :  { %4099 = vmatprep.subr.bf16.mxu1 %v5514_v48  ;;  %v5610_v44 = vcombine.high %v3387_v38, %v3391_v45  ;;  %v3395_v48 = vld [vmem:[%s8360_s5 + $0x348] sm:$0xff]  ;;  %v5609_v49 = vcombine.low %v3387_v38, %v3391_v45  ;;  %v3380_v38 = vld [vmem:[%s8360_s5 + $0x2d0] sm:$0xff] }
 0x35f   :  { %v3384_v45 = vld [vmem:[%s8360_s5 + $0x2f0] sm:$0xff] }
 0x3f3   :  { %v3279_v52 = vpop.f32.mrb[8].mxu1 }
 0x3f4   :  { %v3280_v53 = vadd.f32 %v3279_v52, %v3078_v50  ;;  %v3281_v54 = vpop.f32.mrb[9].mxu1  ;;  %v3407_v52 = vld [vmem:[%s8360_s5 + $0x3a8] sm:$0xff] }
 0x3f5   :  { %v3282_v55 = vadd.f32 %v3281_v54, %v3082_v51  ;;  %v3283_v56 = vpop.f32.mrb[10].mxu1  ;;  %v3403_v51 = vld [vmem:[%s8360_s5 + $0x388] sm:$0xff] }
 0x3f6   :  { %v3286_v57 = vmax.f32 %v3280_v53, 0.0  ;;  %v3284_v58 = vpop.f32.mrb[11].mxu1  ;;  %v5626_v54 = vcombine.high %v3403_v51, %v3407_v52  ;;  %v3415_v56 = vld [vmem:[%s8360_s5 + $0x3e8] sm:$0xff] }
 0x3f7   :  { %v3287_v59 = vmax.f32 %v3282_v55, 0.0  ;;  %v3411_v55 = vld [vmem:[%s8360_s5 + $0x3c8] sm:$0xff] }
 0x3f8   :  { %v7914_v63 = vpack.c.bf16 %v3286_v57, %v3286_v57  ;;  %v5625_v57 = vcombine.low %v3403_v51, %v3407_v52  ;;  %v5634_v58 = vcombine.high %v3411_v55, %v3415_v56  ;;  %v5633_v61 = vcombine.low %v3411_v55, %v3415_v56  ;;  %v3396_v51 = vld [vmem:[%s8360_s5 + $0x350] sm:$0xff] }
 0x3f9   :  { %v7912_v62 = vpack.c.bf16 %v3287_v59, %v3287_v59  ;;  %v3292_v59 = vld [vmem:[%s8360_s5 + $0x10] sm:$0xff] }
 0x3fa   :  { %v3400_v52 = vld [vmem:[%s8360_s5 + $0x370] sm:$0xff] }
 0x3fb   :  { %4090 = vmatprep.mubr.bf16.mxu1 %v7912_v62  ;;  %v3404_v55 = vld [vmem:[%s8360_s5 + $0x390] sm:$0xff] }
 0x3fc   :  { %4091 = vmatmul.mubr.bf16.vlgmr.msra.gmra.mrb[12].mxu1 %v7914_v63  ;;  %v3408_v56 = vld [vmem:[%s8360_s5 + $0x3b0] sm:$0xff] }
 0x3fd   :  { %4100 = vmatpush1.bf16.msra.mxu1 %v5513_v46  ;;  %4131 = vmatprep.mubr.bf16.mxu1 %v7912_v62  ;;  %v3399_v46 = vld [vmem:[%s8360_s5 + $0x368] sm:$0xff] }
 0x3fe   :  { %4101 = vmatprep.subr.bf16.mxu1 %v5522_v0  ;;  %v5618_v50 = vcombine.high %v3395_v48, %v3399_v46  ;;  %v5617_v53 = vcombine.low %v3395_v48, %v3399_v46  ;;  %v5516_v0 = vcombine.high %v3292_v59, %v3296_v60  ;;  %v3388_v48 = vld [vmem:[%s8360_s5 + $0x310] sm:$0xff] }
 0x3ff   :  { %v3392_v46 = vld [vmem:[%s8360_s5 + $0x330] sm:$0xff] }
 0x401   :  { %4102 = vmatpush1.bf16.msra.mxu1 %v5521_v3  ;;  %v5515_v3 = vcombine.low %v3292_v59, %v3296_v60  ;;  %v3412_v59 = vld [vmem:[%s8360_s5 + $0x3d0] sm:$0xff] }
 0x402   :  { %4103 = vmatprep.subr.bf16.mxu1 %v5530_v4  ;;  %v5524_v4 = vcombine.high %v3300_v1, %v3304_v2  ;;  %v3416_v60 = vld [vmem:[%s8360_s5 + $0x3f0] sm:$0xff] }
 0x405   :  { %4104 = vmatpush1.bf16.msra.mxu1 %v5529_v7  ;;  %v5523_v7 = vcombine.low %v3300_v1, %v3304_v2  ;;  %v3293_v1 = vld [vmem:[%s8360_s5 + $0x18] sm:$0xff] }
 0x406   :  { %4105 = vmatprep.subr.bf16.mxu1 %v5538_v8  ;;  %v5532_v8 = vcombine.high %v3308_v5, %v3312_v6  ;;  %v3297_v2 = vld [vmem:[%s8360_s5 + $0x38] sm:$0xff] }
 0x409   :  { %4106 = vmatpush1.bf16.msra.mxu1 %v5537_v11  ;;  %v5531_v11 = vcombine.low %v3308_v5, %v3312_v6  ;;  %v3301_v5 = vld [vmem:[%s8360_s5 + $0x58] sm:$0xff] }
 0x40a   :  { %4107 = vmatprep.subr.bf16.mxu1 %v5546_v13  ;;  %v5540_v13 = vcombine.high %v3316_v9, %v3320_v10  ;;  %v3305_v6 = vld [vmem:[%s8360_s5 + $0x78] sm:$0xff] }
 0x40d   :  { %4108 = vmatpush1.bf16.msra.mxu1 %v5545_v16  ;;  %v5539_v16 = vcombine.low %v3316_v9, %v3320_v10  ;;  %v3309_v9 = vld [vmem:[%s8360_s5 + $0x98] sm:$0xff] }
 0x40e   :  { %4109 = vmatprep.subr.bf16.mxu1 %v5554_v17  ;;  %v5548_v17 = vcombine.high %v3324_v14, %v3328_v15  ;;  %v3313_v10 = vld [vmem:[%s8360_s5 + $0xb8] sm:$0xff] }
 0x411   :  { %4110 = vmatpush1.bf16.msra.mxu1 %v5553_v21  ;;  %v5547_v21 = vcombine.low %v3324_v14, %v3328_v15  ;;  %v3317_v14 = vld [vmem:[%s8360_s5 + $0xd8] sm:$0xff] }
 0x412   :  { %4111 = vmatprep.subr.bf16.mxu1 %v5562_v22  ;;  %v5556_v22 = vcombine.high %v3332_v18, %v3336_v20  ;;  %v3321_v15 = vld [vmem:[%s8360_s5 + $0xf8] sm:$0xff] }
 0x415   :  { %4112 = vmatpush1.bf16.msra.mxu1 %v5561_v25  ;;  %v5555_v25 = vcombine.low %v3332_v18, %v3336_v20  ;;  %v3325_v18 = vld [vmem:[%s8360_s5 + $0x118] sm:$0xff]  ;;  %v5541_v20 = vcombine.low %v3317_v14, %v3321_v15 }
 0x416   :  { %4113 = vmatprep.subr.bf16.mxu1 %v5570_v26  ;;  %v5564_v26 = vcombine.high %v3340_v23, %v3344_v24 }
 0x419   :  { %4114 = vmatpush1.bf16.msra.mxu1 %v5569_v29  ;;  %v5563_v29 = vcombine.low %v3340_v23, %v3344_v24  ;;  %v3337_v23 = vld [vmem:[%s8360_s5 + $0x178] sm:$0xff] }
 0x41a   :  { %4115 = vmatprep.subr.bf16.mxu1 %v5578_v31  ;;  %v5572_v31 = vcombine.high %v3348_v27, %v3352_v28 }
 0x41d   :  { %4116 = vmatpush1.bf16.msra.mxu1 %v5577_v33  ;;  %v5571_v33 = vcombine.low %v3348_v27, %v3352_v28  ;;  %v3345_v27 = vld [vmem:[%s8360_s5 + $0x1b8] sm:$0xff] }
 0x41e   :  { %4117 = vmatprep.subr.bf16.mxu1 %v5586_v34  ;;  %v5580_v34 = vcombine.high %v3356_v32, %v3360_v19 }
 0x421   :  { %4118 = vmatpush1.bf16.msra.mxu1 %v5585_v37  ;;  %v5579_v37 = vcombine.low %v3356_v32, %v3360_v19  ;;  %v3353_v32 = vld [vmem:[%s8360_s5 + $0x1f8] sm:$0xff] }
 0x422   :  { %4119 = vmatprep.subr.bf16.mxu1 %v5594_v39  ;;  %v5588_v39 = vcombine.high %v3364_v35, %v3368_v36 }
 0x425   :  { %4120 = vmatpush1.bf16.msra.mxu1 %v5593_v42  ;;  %v5587_v42 = vcombine.low %v3364_v35, %v3368_v36  ;;  %v3361_v35 = vld [vmem:[%s8360_s5 + $0x238] sm:$0xff] }
 0x426   :  { %4121 = vmatprep.subr.bf16.mxu1 %v5602_v43  ;;  %v5596_v43 = vcombine.high %v3372_v40, %v3376_v41 }
 0x429   :  { %4122 = vmatpush1.bf16.msra.mxu1 %v5601_v47  ;;  %v5595_v47 = vcombine.low %v3372_v40, %v3376_v41  ;;  %v3369_v40 = vld [vmem:[%s8360_s5 + $0x278] sm:$0xff] }
 0x42a   :  { %4123 = vmatprep.subr.bf16.mxu1 %v5610_v44  ;;  %v5604_v44 = vcombine.high %v3380_v38, %v3384_v45 }
 0x42d   :  { %4124 = vmatpush1.bf16.msra.mxu1 %v5609_v49  ;;  %v5603_v49 = vcombine.low %v3380_v38, %v3384_v45  ;;  %v3377_v38 = vld [vmem:[%s8360_s5 + $0x2b8] sm:$0xff] }
 0x42e   :  { %4125 = vmatprep.subr.bf16.mxu1 %v5618_v50  ;;  %v5612_v50 = vcombine.high %v3388_v48, %v3392_v46 }
 0x431   :  { %4126 = vmatpush1.bf16.msra.mxu1 %v5617_v53  ;;  %v5611_v53 = vcombine.low %v3388_v48, %v3392_v46  ;;  %v3385_v48 = vld [vmem:[%s8360_s5 + $0x2f8] sm:$0xff] }
 0x432   :  { %4127 = vmatprep.subr.bf16.mxu1 %v5626_v54  ;;  %v5620_v54 = vcombine.high %v3396_v51, %v3400_v52 }
 0x435   :  { %4128 = vmatpush1.bf16.msra.mxu1 %v5625_v57  ;;  %v5619_v57 = vcombine.low %v3396_v51, %v3400_v52  ;;  %v3393_v51 = vld [vmem:[%s8360_s5 + $0x338] sm:$0xff] }
 0x436   :  { %4129 = vmatprep.subr.bf16.mxu1 %v5634_v58  ;;  %v5628_v58 = vcombine.high %v3404_v55, %v3408_v56 }
 0x439   :  { %4130 = vmatpush1.bf16.msra.mxu1 %v5633_v61  ;;  %v5627_v61 = vcombine.low %v3404_v55, %v3408_v56  ;;  %v3401_v55 = vld [vmem:[%s8360_s5 + $0x378] sm:$0xff] }
 0x43a   :  { %4140 = vmatprep.subr.bf16.mxu1 %v5516_v0  ;;  %v5636_v0 = vcombine.high %v3412_v59, %v3416_v60 }
 0x43c   :  { %4132 = vmatmul.mubr.bf16.vlgmr.msra.gmra.mrb[16].mxu1 %v7914_v63 }
 0x43d   :  { %4141 = vmatpush1.bf16.msra.mxu1 %v5515_v3  ;;  %4172 = vmatprep.mubr.bf16.mxu1 %v7912_v62  ;;  %v5635_v3 = vcombine.low %v3412_v59, %v3416_v60  ;;  %v3409_v59 = vld [vmem:[%s8360_s5 + $0x3b8] sm:$0xff] }
 0x43e   :  { %4142 = vmatprep.subr.bf16.mxu1 %v5524_v4  ;;  %v5518_v4 = vcombine.high %v3293_v1, %v3297_v2 }
 0x441   :  { %4143 = vmatpush1.bf16.msra.mxu1 %v5523_v7  ;;  %v5517_v7 = vcombine.low %v3293_v1, %v3297_v2  ;;  %v3417_v1 = vld [vmem:[%s8360_s5 + $0x3f8] sm:$0xff] }
 0x442   :  { %4144 = vmatprep.subr.bf16.mxu1 %v5532_v8  ;;  %v5526_v8 = vcombine.high %v3301_v5, %v3305_v6 }
 0x445   :  { %4145 = vmatpush1.bf16.msra.mxu1 %v5531_v11  ;;  %v5525_v11 = vcombine.low %v3301_v5, %v3305_v6  ;;  %v4241_v5 = vld [vmem:[%s8363_s6] sm:$0x3] }
 0x446   :  { %4146 = vmatprep.subr.bf16.mxu1 %v5540_v13  ;;  %v5534_v13 = vcombine.high %v3309_v9, %v3313_v10  ;;  %v4250_v6 = vrot.slane %v4241_v5, %v7799_v12 }
 0x449   :  { %4147 = vmatpush1.bf16.msra.mxu1 %v5539_v16  ;;  %v5533_v16 = vcombine.low %v3309_v9, %v3313_v10 }
 0x44a   :  { %4148 = vmatprep.subr.bf16.mxu1 %v5548_v17  ;;  %v5542_v17 = vcombine.high %v3317_v14, %v3321_v15  ;;  %v4246_v15 = vrot.slane %v4241_v5, %v7794_v30 }
 0x44d   :  { %4149 = vmatpush1.bf16.msra.mxu1 %v5547_v21 }
 0x44e   :  { %4150 = vmatprep.subr.bf16.mxu1 %v5556_v22  ;;  %v3333_v22 = vld [vmem:[%s8360_s5 + $0x158] sm:$0xff] }
 0x44f   :  { %v5557_v28 = vcombine.low %v3333_v22, %v3337_v23 }
 0x451   :  { %4151 = vmatpush1.bf16.msra.mxu1 %v5555_v25  ;;  %v5558_v25 = vcombine.high %v3333_v22, %v3337_v23 }
 0x452   :  { %4152 = vmatprep.subr.bf16.mxu1 %v5564_v26  ;;  %v3341_v26 = vld [vmem:[%s8360_s5 + $0x198] sm:$0xff] }
 0x453   :  { %v5565_v19 = vcombine.low %v3341_v26, %v3345_v27 }
 0x455   :  { %4153 = vmatpush1.bf16.msra.mxu1 %v5563_v29  ;;  %v5566_v29 = vcombine.high %v3341_v26, %v3345_v27 }
 0x456   :  { %4154 = vmatprep.subr.bf16.mxu1 %v5572_v31  ;;  %v3349_v31 = vld [vmem:[%s8360_s5 + $0x1d8] sm:$0xff] }
 0x457   :  { %v5573_v36 = vcombine.low %v3349_v31, %v3353_v32 }
 0x459   :  { %4155 = vmatpush1.bf16.msra.mxu1 %v5571_v33  ;;  %v5574_v33 = vcombine.high %v3349_v31, %v3353_v32 }
 0x45a   :  { %4156 = vmatprep.subr.bf16.mxu1 %v5580_v34  ;;  %v3357_v34 = vld [vmem:[%s8360_s5 + $0x218] sm:$0xff] }
 0x45b   :  { %v5581_v41 = vcombine.low %v3357_v34, %v3361_v35 }
 0x45d   :  { %4157 = vmatpush1.bf16.msra.mxu1 %v5579_v37  ;;  %v5582_v37 = vcombine.high %v3357_v34, %v3361_v35 }
 0x45e   :  { %4158 = vmatprep.subr.bf16.mxu1 %v5588_v39  ;;  %v3365_v39 = vld [vmem:[%s8360_s5 + $0x258] sm:$0xff] }
 0x45f   :  { %v5589_v45 = vcombine.low %v3365_v39, %v3369_v40 }
 0x461   :  { %4159 = vmatpush1.bf16.msra.mxu1 %v5587_v42  ;;  %v5590_v42 = vcombine.high %v3365_v39, %v3369_v40  ;;  %v4849_v39 = vld [vmem:[%s8364_s7 + $0x6] sm:$0x3] }
 0x462   :  { %4160 = vmatprep.subr.bf16.mxu1 %v5596_v43  ;;  %v3373_v43 = vld [vmem:[%s8360_s5 + $0x298] sm:$0xff]  ;;  %v4854_v40 = vrot.slane %v4849_v39, %v7794_v30 }
 0x463   :  { %v5597_v46 = vcombine.low %v3373_v43, %v3377_v38 }
 0x465   :  { %4161 = vmatpush1.bf16.msra.mxu1 %v5595_v47  ;;  %v5598_v47 = vcombine.high %v3373_v43, %v3377_v38 }
 0x466   :  { %4162 = vmatprep.subr.bf16.mxu1 %v5604_v44  ;;  %v3381_v44 = vld [vmem:[%s8360_s5 + $0x2d8] sm:$0xff] }
 0x467   :  { %v5605_v52 = vcombine.low %v3381_v44, %v3385_v48 }
 0x469   :  { %4163 = vmatpush1.bf16.msra.mxu1 %v5603_v49  ;;  %v5606_v49 = vcombine.high %v3381_v44, %v3385_v48 }
 0x46a   :  { %4164 = vmatprep.subr.bf16.mxu1 %v5612_v50  ;;  %v3389_v50 = vld [vmem:[%s8360_s5 + $0x318] sm:$0xff] }
 0x46b   :  { %v5613_v56 = vcombine.low %v3389_v50, %v3393_v51 }
 0x46d   :  { %4165 = vmatpush1.bf16.msra.mxu1 %v5611_v53  ;;  %v5614_v53 = vcombine.high %v3389_v50, %v3393_v51 }
 0x46e   :  { %4166 = vmatprep.subr.bf16.mxu1 %v5620_v54  ;;  %v3397_v54 = vld [vmem:[%s8360_s5 + $0x358] sm:$0xff] }
 0x46f   :  { %v5621_v60 = vcombine.low %v3397_v54, %v3401_v55 }
 0x471   :  { %4167 = vmatpush1.bf16.msra.mxu1 %v5619_v57  ;;  %v5622_v57 = vcombine.high %v3397_v54, %v3401_v55 }
 0x472   :  { %4168 = vmatprep.subr.bf16.mxu1 %v5628_v58  ;;  %v3405_v58 = vld [vmem:[%s8360_s5 + $0x398] sm:$0xff] }
 0x473   :  { %v5629_v2 = vcombine.low %v3405_v58, %v3409_v59 }
 0x475   :  { %4169 = vmatpush1.bf16.msra.mxu1 %v5627_v61  ;;  %v5630_v61 = vcombine.high %v3405_v58, %v3409_v59 }
 0x476   :  { %4170 = vmatprep.subr.bf16.mxu1 %v5636_v0  ;;  %v3413_v0 = vld [vmem:[%s8360_s5 + $0x3d8] sm:$0xff] }
 0x479   :  { %4171 = vmatpush1.bf16.msra.mxu1 %v5635_v3  ;;  %v5638_v3 = vcombine.high %v3413_v0, %v3417_v1 }
 0x47a   :  { %4181 = vmatprep.subr.bf16.mxu1 %v5518_v4  ;;  %v5637_v4 = vcombine.low %v3413_v0, %v3417_v1 }
 0x47c   :  { %4173 = vmatmul.mubr.bf16.vlgmr.msra.gmra.mrb[20].mxu1 %v7914_v63 }
 0x47d   :  { %4182 = vmatpush1.bf16.msra.mxu1 %v5517_v7  ;;  %4213 = vmatprep.mubr.bf16.mxu1 %v7912_v62  ;;  %v3329_v62 = vld [vmem:[%s8360_s5 + $0x138] sm:$0xff]  ;;  %v4224_v7 = vld [vmem:[%s8364_s7] sm:$0x3] }
 0x47e   :  { %4183 = vmatprep.subr.bf16.mxu1 %v5526_v8  ;;  %v5550_v21 = vcombine.high %v3325_v18, %v3329_v62  ;;  %v5549_v24 = vcombine.low %v3325_v18, %v3329_v62  ;;  %v4229_v8 = vrot.slane %v4224_v7, %v7794_v30  ;;  %v4233_v9 = vrot.slane %v4224_v7, %v7799_v12  ;;  %v4433_v18 = vld [vmem:[%s8364_s7 + $0x2] sm:$0x3] }
 0x47f   :  { %v4438_v62 = vrot.slane %v4433_v18, %v7794_v30 }
 0x481   :  { %4184 = vmatpush1.bf16.msra.mxu1 %v5525_v11 }
 0x482   :  { %4185 = vmatprep.subr.bf16.mxu1 %v5534_v13 }
 0x485   :  { %4186 = vmatpush1.bf16.msra.mxu1 %v5533_v16 }
 0x486   :  { %4187 = vmatprep.subr.bf16.mxu1 %v5542_v17 }
 0x489   :  { %4188 = vmatpush1.bf16.msra.mxu1 %v5541_v20  ;;  %v4442_v20 = vrot.slane %v4433_v18, %v7799_v12 }
 0x48a   :  { %4189 = vmatprep.subr.bf16.mxu1 %v5550_v21 }
 0x48d   :  { %4190 = vmatpush1.bf16.msra.mxu1 %v5549_v24 }
 0x48e   :  { %4191 = vmatprep.subr.bf16.mxu1 %v5558_v25 }
 0x491   :  { %4192 = vmatpush1.bf16.msra.mxu1 %v5557_v28  ;;  %v4641_v28 = vld [vmem:[%s8364_s7 + $0x4] sm:$0x3] }
 0x492   :  { %4193 = vmatprep.subr.bf16.mxu1 %v5566_v29  ;;  %v4646_v29 = vrot.slane %v4641_v28, %v7794_v30  ;;  %v4650_v31 = vrot.slane %v4641_v28, %v7799_v12 }
 0x495   :  { %4194 = vmatpush1.bf16.msra.mxu1 %v5565_v19 }
 0x496   :  { %4195 = vmatprep.subr.bf16.mxu1 %v5574_v33 }
 0x499   :  { %4196 = vmatpush1.bf16.msra.mxu1 %v5573_v36 }
 0x49a   :  { %4197 = vmatprep.subr.bf16.mxu1 %v5582_v37 }
 0x49d   :  { %4198 = vmatpush1.bf16.msra.mxu1 %v5581_v41  ;;  %v4858_v41 = vrot.slane %v4849_v39, %v7799_v12 }
 0x49e   :  { %4199 = vmatprep.subr.bf16.mxu1 %v5590_v42 }
 0x4a1   :  { %4200 = vmatpush1.bf16.msra.mxu1 %v5589_v45 }
 0x4a2   :  { %4201 = vmatprep.subr.bf16.mxu1 %v5598_v47 }
 0x4a5   :  { %4202 = vmatpush1.bf16.msra.mxu1 %v5597_v46 }
 0x4a6   :  { %4203 = vmatprep.subr.bf16.mxu1 %v5606_v49 }
 0x4a9   :  { %4204 = vmatpush1.bf16.msra.mxu1 %v5605_v52  ;;  %v8248_v52 = vld [vmem:[%s8365_s9] sm:$0xff] }
 0x4aa   :  { %4205 = vmatprep.subr.bf16.mxu1 %v5614_v53  ;;  %vm4223_vm1 = vcmp.gt.f32.partialorder %v8248_v52, 0.5 }
 0x4ad   :  { %4206 = vmatpush1.bf16.msra.mxu1 %v5613_v56 }
 0x4ae   :  { %4207 = vmatprep.subr.bf16.mxu1 %v5622_v57 }
 0x4b1   :  { %4208 = vmatpush1.bf16.msra.mxu1 %v5621_v60 }
 0x4b2   :  { %4209 = vmatprep.subr.bf16.mxu1 %v5630_v61 }
 0x4b5   :  { %4210 = vmatpush1.bf16.msra.mxu1 %v5629_v2  ;;  %v6369_v2 = vmov 0.0  }
 0x4b6   :  { %4211 = vmatprep.subr.bf16.mxu1 %v5638_v3 }
 0x4b9   :  { %4212 = vmatpush1.bf16.msra.mxu1 %v5637_v4  ;;  %v4450_v4 = vld [vmem:[%s8363_s6 + $0x2] sm:$0x3] }
 0x4bc   :  { %4214 = vmatmul.mubr.bf16.vlgmr.msra.gmra.mrb[24].mxu1 %v7914_v63 }
 0x4bd   :  { %4317 = vmatprep.mubr.f32.mxu1 %v4250_v6  ;;  %v4459_v6 = vrot.slane %v4450_v4, %v7799_v12 }
 0x4cf   :  { %v4092_v10 = vpop.f32.mrb[12].mxu1 }
 0x4d0   :  { %v4094_v11 = vpop.f32.mrb[13].mxu1  ;;  %v4236_v13 = vmul.f32 %v4229_v8, %v4092_v10  ;;  %v4455_v8 = vrot.slane %v4450_v4, %v7794_v30 }
 0x4d1   :  { %v4096_v14 = vpop.f32.mrb[14].mxu1  ;;  %4253 = vmatprep.subr.mxu1 %v4094_v11  ;;  %v4237_v16 = vmul.f32 %v4233_v9, %v4094_v11  ;;  %v4345_v9 = vld [vmem:[%s8366_s8] sm:$0x3] }
 0x4d2   :  { %v4097_v17 = vpop.f32.mrb[15].mxu1  ;;  %4254 = vmatpush1.xpose.msra.mxu1 %v4092_v10 }
 0x4d3   :  { %4360 = vmatprep.subr.mxu1 %v4094_v11  ;;  %v4238_v63 = vadd.f32 %v4237_v16, %v4236_v13  ;;  %v4354_v11 = vrot.slane %v4345_v9, %v7799_v12 }
 0x4d5   :  { %4318 = vmatmul.mubr.f32.vlgmr.msra.gmra.mrb[28].mxu1 %v4246_v15  ;;  %4239 = vadd.xlane.f32.xlu0 %v4238_v63 }
 0x4d6   :  { %4361 = vmatpush1.msra.mxu1 %v4092_v10  ;;  %4424 = vmatprep.mubr.f32.mxu1 %v6369_v2  ;;  %v4350_v10 = vrot.slane %v4345_v9, %v7794_v30 }
 0x50f   :  { %v8215_v21 = vpop.f32.mrb[16].mxu1 }
 0x510   :  { %v4135_v22 = vpop.f32.mrb[17].mxu1  ;;  %v4445_v23 = vmul.f32 %v4438_v62, %v8215_v21 }
 0x511   :  { %v4137_v24 = vpop.f32.mrb[18].mxu1  ;;  %4462 = vmatprep.subr.mxu1 %v4135_v22  ;;  %v4446_v25 = vmul.f32 %v4442_v20, %v4135_v22 }
 0x512   :  { %v4138_v26 = vpop.f32.mrb[19].mxu1 }
 0x513   :  { %v4447_v27 = vadd.f32 %v4446_v25, %v4445_v23 }
 0x54f   :  { %v8223_v32 = vpop.f32.mrb[20].mxu1 }
 0x550   :  { %v8225_v19 = vpop.f32.mrb[21].mxu1  ;;  %v4653_v33 = vmul.f32 %v4646_v29, %v8223_v32 }
 0x551   :  { %v4178_v34 = vpop.f32.mrb[22].mxu1  ;;  %v4654_v35 = vmul.f32 %v4650_v31, %v8225_v19 }
 0x552   :  { %v4179_v36 = vpop.f32.mrb[23].mxu1  ;;  %v4658_v34 = vld [vmem:[%s8363_s6 + $0x4] sm:$0x3] }
 0x553   :  { %v8229_v37 = vadd.f32 %v4654_v35, %v4653_v33  ;;  %v4667_v36 = vrot.slane %v4658_v34, %v7799_v12  ;;  %v4663_v39 = vrot.slane %v4658_v34, %v7794_v30 }
 0x562   :  { %v4240_v51 = vpop.xlane.xlu0 %4239 }
 0x58f   :  { %v8236_v42 = vpop.f32.mrb[24].mxu1 }
 0x590   :  { %v8238_v43 = vpop.f32.mrb[25].mxu1  ;;  %v4861_v38 = vmul.f32 %v4854_v40, %v8236_v42  ;;  %v4553_v40 = vld [vmem:[%s8366_s8 + $0x2] sm:$0x3] }
 0x591   :  { %v4219_v45 = vpop.f32.mrb[26].mxu1  ;;  %v4862_v47 = vmul.f32 %v4858_v41, %v8238_v43  ;;  %v4558_v41 = vrot.slane %v4553_v40, %v7794_v30 }
 0x592   :  { %v4220_v44 = vpop.f32.mrb[27].mxu1 }
 0x593   :  { %v8242_v48 = vadd.f32 %v4862_v47, %v4861_v38  ;;  %v4562_v38 = vrot.slane %v4553_v40, %v7799_v12 }
 0x5a8   :  { %v4319_v46 = vpop.f32.mrb[28].mxu1 }
 0x5a9   :  { %v4326_v49 = vrot.slane %v4319_v46, %v7794_v30  ;;  %v4321_v50 = vpop.f32.mrb[29].mxu1 }
 0x5ab   :  { %v4327_v53 = vadd.f32 %v4326_v49, %v4240_v51 }
 0x5ad   :  { %vm4328_vm2 = vcmp.ge.f32.partialorder %v4327_v53, 0.0  ;;  %v4329_v54 = vmul.f32 0.2, %v4327_v53 }
 0x5af   :  { %v4330_v55 = vsel %vm4328_vm2, %v4327_v53, %v4329_v54 }
 0x5b0   :  { %v4331_v56 = vsel %vm4223_vm1, %v4330_v55, -1e+30 }
 0x5b1   :  { %v4333_v57 = vsel %vm4332_vm3, %v4331_v56, -inf }
 0x5b2   :  { %4334 = vmax.xlane.f32.xlu0 %v4333_v57 }
 0x63f   :  { %v4335_v58 = vpop.xlane.xlu0 %4334 }
 0x640   :  { %v4336_v59 = vsub.f32 %v4331_v56, %v4335_v58 }
 0x642   :  { %v4337_v60 = vmul.f32 1.442695, %v4336_v59 }
 0x644   :  { %6352 = vpow2.f32 %v4337_v60 }
 0x64e   :  { %v6353_v61 = vpop.eup %6352 }
 0x64f   :  { %v4339_v0 = vsel %vm4223_vm1, %v6353_v61, 0.0 }
 0x650   :  { %v4340_v1 = vsel %vm4332_vm3, %v4339_v0, 0.0 }
 0x651   :  { %4341 = vadd.xlane.f32.xlu1 %v4340_v1 }
 0x655   :  { %4448 = vadd.xlane.f32.xlu1 %v4447_v27 }
 0x6de   :  { %v4342_v3 = vpop.xlane.xlu1 %4341 }
 0x6df   :  { %6354 = vrcp.f32 %v4342_v3  ;;  %v4866_v3 = vld [vmem:[%s8363_s6 + $0x6] sm:$0x3] }
 0x6e2   :  { %v4449_v62 = vpop.xlane.xlu1 %4448 }
 0x6e9   :  { %v6355_v5 = vpop.eup %6354 }
 0x6ea   :  { %v4344_v7 = vmul.f32 %v6355_v5, %v4339_v0 }
 0x6ec   :  { %5639 = vmatmul.mubr.msk.f32.vlgmr.msra.gmra.mrb[30].mxu1 %vm4332_vm3, %v4344_v7  ;;  %v4761_v7 = vld [vmem:[%s8366_s8 + $0x4] sm:$0x3] }
 0x6ed   :  { %4463 = vmatpush1.xpose.msra.mxu1 %v8215_v21  ;;  %4526 = vmatprep.mubr.f32.mxu1 %v4459_v6  ;;  %v4871_v6 = vrot.slane %v4866_v3, %v7794_v30  ;;  %v4770_v9 = vrot.slane %v4761_v7, %v7799_v12 }
 0x6ee   :  { %4568 = vmatprep.subr.mxu1 %v4135_v22 }
 0x6f0   :  { %4527 = vmatmul.mubr.f32.vlgmr.msra.gmra.mrb[32].mxu1 %v4455_v8  ;;  %v4766_v8 = vrot.slane %v4761_v7, %v7794_v30 }
 0x6f1   :  { %4569 = vmatpush1.msra.mxu1 %v8215_v21  ;;  %4632 = vmatprep.mubr.f32.mxu1 %v6369_v2 }
 0x6f2   :  { %4670 = vmatprep.subr.mxu1 %v8225_v19 }
 0x7bf   :  { %v4426_v13 = vpop.f32.mrb[30].mxu1 }
 0x7c0   :  { %v4427_v14 = vadd.f32 %v4426_v13, %v4350_v10  ;;  %v4428_v15 = vpop.f32.mrb[31].mxu1 }
 0x7c1   :  { %v4429_v16 = vadd.f32 %v4428_v15, %v4354_v11 }
 0x7c2   :  { %4431 = vst [vmem:[%s8367_s10] sm:$0xff] %v4427_v14 }
 0x7c3   :  { %4432 = vst [vmem:[%s8367_s10 + $0x8] sm:$0xff] %v4429_v16  ;;  %v4528_v17 = vpop.f32.mrb[32].mxu1 }
 0x7c4   :  { %v4535_v63 = vrot.slane %v4528_v17, %v7794_v30  ;;  %v4530_v18 = vpop.f32.mrb[33].mxu1 }
 0x7c6   :  { %v4536_v20 = vadd.f32 %v4535_v63, %v4449_v62 }
 0x7c8   :  { %vm4537_vm4 = vcmp.ge.f32.partialorder %v4536_v20, 0.0  ;;  %v4538_v21 = vmul.f32 0.2, %v4536_v20 }
 0x7ca   :  { %v4539_v22 = vsel %vm4537_vm4, %v4536_v20, %v4538_v21 }
 0x7cb   :  { %v4540_v23 = vsel %vm4223_vm1, %v4539_v22, -1e+30 }
 0x7cc   :  { %v4541_v24 = vsel %vm4332_vm3, %v4540_v23, -inf }
 0x7cd   :  { %4542 = vmax.xlane.f32.xlu0 %v4541_v24 }
 0x7d1   :  { %4656 = vadd.xlane.f32.xlu0 %v8229_v37 }
 0x85a   :  { %v4543_v25 = vpop.xlane.xlu0 %4542 }
 0x85b   :  { %v4544_v26 = vsub.f32 %v4540_v23, %v4543_v25 }
 0x85d   :  { %v4545_v27 = vmul.f32 1.442695, %v4544_v26 }
 0x85e   :  { %v4657_v50 = vpop.xlane.xlu0 %4656 }
 0x85f   :  { %6356 = vpow2.f32 %v4545_v27 }
 0x869   :  { %v6357_v28 = vpop.eup %6356 }
 0x86a   :  { %v4547_v29 = vsel %vm4223_vm1, %v6357_v28, 0.0 }
 0x86b   :  { %v4548_v31 = vsel %vm4332_vm3, %v4547_v29, 0.0 }
 0x86c   :  { %4549 = vadd.xlane.f32.xlu1 %v4548_v31 }
 0x8f9   :  { %v4550_v33 = vpop.xlane.xlu1 %4549 }
 0x8fa   :  { %6358 = vrcp.f32 %v4550_v33 }
 0x904   :  { %v6359_v35 = vpop.eup %6358 }
 0x905   :  { %v4552_v37 = vmul.f32 %v6359_v35, %v4547_v29  ;;  %v4969_v29 = vld [vmem:[%s8366_s8 + $0x6] sm:$0x3] }
 0x906   :  { %v4974_v31 = vrot.slane %v4969_v29, %v7794_v30  ;;  %v4978_v33 = vrot.slane %v4969_v29, %v7799_v12 }
 0x907   :  { %5640 = vmatmul.mubr.msk.f32.vlgmr.msra.gmra.mrb[34].mxu1 %vm4332_vm3, %v4552_v37 }
 0x908   :  { %4671 = vmatpush1.xpose.msra.mxu1 %v8223_v32  ;;  %4734 = vmatprep.mubr.f32.mxu1 %v4667_v36 }
 0x909   :  { %4776 = vmatprep.subr.mxu1 %v8225_v19 }
 0x90b   :  { %4735 = vmatmul.mubr.f32.vlgmr.msra.gmra.mrb[36].mxu1 %v4663_v39 }
 0x90c   :  { %4777 = vmatpush1.msra.mxu1 %v8223_v32  ;;  %4840 = vmatprep.mubr.f32.mxu1 %v6369_v2 }
 0x90d   :  { %4878 = vmatprep.subr.mxu1 %v8238_v43 }
 0x9da   :  { %v4634_v45 = vpop.f32.mrb[34].mxu1 }
 0x9db   :  { %v4635_v47 = vadd.f32 %v4634_v45, %v4558_v41  ;;  %v4636_v44 = vpop.f32.mrb[35].mxu1 }
 0x9dc   :  { %v4637_v46 = vadd.f32 %v4636_v44, %v4562_v38 }
 0x9dd   :  { %4639 = vst [vmem:[%s8367_s10 + $0x10] sm:$0xff] %v4635_v47 }
 0x9de   :  { %4640 = vst [vmem:[%s8367_s10 + $0x18] sm:$0xff] %v4637_v46  ;;  %v4736_v32 = vpop.f32.mrb[36].mxu1 }
 0x9df   :  { %v4743_v19 = vrot.slane %v4736_v32, %v7794_v30  ;;  %v4738_v49 = vpop.f32.mrb[37].mxu1 }
 0x9e1   :  { %v4744_v51 = vadd.f32 %v4743_v19, %v4657_v50 }
 0x9e3   :  { %vm4745_vm5 = vcmp.ge.f32.partialorder %v4744_v51, 0.0  ;;  %v4746_v53 = vmul.f32 0.2, %v4744_v51 }
 0x9e5   :  { %v4747_v54 = vsel %vm4745_vm5, %v4744_v51, %v4746_v53 }
 0x9e6   :  { %v4748_v55 = vsel %vm4223_vm1, %v4747_v54, -1e+30 }
 0x9e7   :  { %v4749_v56 = vsel %vm4332_vm3, %v4748_v55, -inf }
 0x9e8   :  { %4750 = vmax.xlane.f32.xlu1 %v4749_v56 }
 0x9ec   :  { %4864 = vadd.xlane.f32.xlu1 %v8242_v48  ;;  %v4875_v48 = vrot.slane %v4866_v3, %v7799_v12 }
 0xa75   :  { %v4751_v57 = vpop.xlane.xlu1 %4750 }
 0xa76   :  { %v4752_v58 = vsub.f32 %v4748_v55, %v4751_v57 }
 0xa78   :  { %v4753_v59 = vmul.f32 1.442695, %v4752_v58 }
 0xa79   :  { %v4865_v15 = vpop.xlane.xlu1 %4864 }
 0xa7a   :  { %6360 = vpow2.f32 %v4753_v59 }
 0xa84   :  { %v6361_v60 = vpop.eup %6360 }
 0xa85   :  { %v4755_v61 = vsel %vm4223_vm1, %v6361_v60, 0.0 }
 0xa86   :  { %v4756_v0 = vsel %vm4332_vm3, %v4755_v61, 0.0 }
 0xa87   :  { %4757 = vadd.xlane.f32.xlu0 %v4756_v0 }
 0xb14   :  { %v4758_v1 = vpop.xlane.xlu0 %4757 }
 0xb15   :  { %6362 = vrcp.f32 %v4758_v1 }
 0xb1f   :  { %v6363_v4 = vpop.eup %6362 }
 0xb20   :  { %v4760_v5 = vmul.f32 %v6363_v4, %v4755_v61 }
 0xb22   :  { %5641 = vmatmul.mubr.msk.f32.vlgmr.msra.gmra.mrb[38].mxu1 %vm4332_vm3, %v4760_v5 }
 0xb23   :  { %4879 = vmatpush1.xpose.msra.mxu1 %v8236_v42  ;;  %4942 = vmatprep.mubr.f32.mxu1 %v4875_v48 }
 0xb24   :  { %4984 = vmatprep.subr.mxu1 %v8238_v43 }
 0xb26   :  { %4943 = vmatmul.mubr.f32.vlgmr.msra.gmra.mrb[40].mxu1 %v4871_v6 }
 0xb27   :  { %4985 = vmatpush1.msra.mxu1 %v8236_v42  ;;  %5048 = vmatprep.mubr.f32.mxu1 %v6369_v2 }
 0xbf5   :  { %v4842_v10 = vpop.f32.mrb[38].mxu1 }
 0xbf6   :  { %v4843_v11 = vadd.f32 %v4842_v10, %v4766_v8  ;;  %v4844_v13 = vpop.f32.mrb[39].mxu1 }
 0xbf7   :  { %v4845_v14 = vadd.f32 %v4844_v13, %v4770_v9 }
 0xbf8   :  { %4847 = vst [vmem:[%s8367_s10 + $0x20] sm:$0xff] %v4843_v11 }
 0xbf9   :  { %4848 = vst [vmem:[%s8367_s10 + $0x28] sm:$0xff] %v4845_v14  ;;  %v4944_v42 = vpop.f32.mrb[40].mxu1 }
 0xbfa   :  { %v4951_v43 = vrot.slane %v4944_v42, %v7794_v30  ;;  %v4946_v2 = vpop.f32.mrb[41].mxu1 }
 0xbfc   :  { %v4952_v16 = vadd.f32 %v4951_v43, %v4865_v15 }
 0xbfe   :  { %vm4953_vm6 = vcmp.ge.f32.partialorder %v4952_v16, 0.0  ;;  %v4954_v17 = vmul.f32 0.2, %v4952_v16 }
 0xc00   :  { %v4955_v63 = vsel %vm4953_vm6, %v4952_v16, %v4954_v17 }
 0xc01   :  { %v4956_v18 = vsel %vm4223_vm1, %v4955_v63, -1e+30 }
 0xc02   :  { %v4957_v62 = vsel %vm4332_vm3, %v4956_v18, -inf }
 0xc03   :  { %4958 = vmax.xlane.f32.xlu0 %v4957_v62 }
 0xc90   :  { %v4959_v20 = vpop.xlane.xlu0 %4958 }
 0xc91   :  { %v4960_v21 = vsub.f32 %v4956_v18, %v4959_v20 }
 0xc93   :  { %v4961_v22 = vmul.f32 1.442695, %v4960_v21 }
 0xc95   :  { %6364 = vpow2.f32 %v4961_v22 }
 0xc9f   :  { %v6365_v23 = vpop.eup %6364 }
 0xca0   :  { %v4963_v24 = vsel %vm4223_vm1, %v6365_v23, 0.0 }
 0xca1   :  { %v4964_v25 = vsel %vm4332_vm3, %v4963_v24, 0.0 }
 0xca2   :  { %4965 = vadd.xlane.f32.xlu1 %v4964_v25 }
 0xd2f   :  { %v4966_v26 = vpop.xlane.xlu1 %4965 }
 0xd30   :  { %6366 = vrcp.f32 %v4966_v26 }
 0xd3a   :  { %v6367_v27 = vpop.eup %6366 }
 0xd3b   :  { %v4968_v28 = vmul.f32 %v6367_v27, %v4963_v24 }
 0xd3d   :  { %5642 = vmatmul.mubr.msk.f32.vlgmr.msra.gmra.mrb[42].mxu1 %vm4332_vm3, %v4968_v28 }
 0xe10   :  { %v5050_v34 = vpop.f32.mrb[42].mxu1 }
 0xe11   :  { %v5051_v52 = vadd.f32 %v5050_v34, %v4974_v31  ;;  %v5052_v35 = vpop.f32.mrb[43].mxu1 }
 0xe12   :  { %v5053_v36 = vadd.f32 %v5052_v35, %v4978_v33 }
 0xe13   :  { %5055 = vst [vmem:[%s8367_s10 + $0x30] sm:$0xff] %v5051_v52 }
 0xe14   :  { %5056 = vst [vmem:[%s8367_s10 + $0x38] sm:$0xff] %v5053_v36 }

</bundles_post_ra>
